<compile_context>
chip_gen: v6e
topology: v6e:2x2x1
jax: 0.10.0
libtpu: 0.0.40
codegen_flags: <defaults>
</compile_context>

<pallas_src>
import functools

import jax
import jax.numpy as jnp
from jax.experimental import pallas as pl
from jax.experimental.pallas import tpu as pltpu


# ---------------------------------------------------------------------------
# Helpers
# ---------------------------------------------------------------------------
def _vmem_cap_bytes():
    """Generation-aware VMEM budget cap (falls back to v7x's 64 MiB per core)."""
    try:
        cap = pltpu.get_tpu_info().vmem_capacity_bytes
    except Exception:
        cap = 64 << 20
    return int(cap * 3 // 4)


def _pick_tile_m(M, cap):
    """Pick an M tile: whole M if it fits, else (near-)even tiles, multiple of 8."""
    if M <= cap:
        return M, 1
    grid_m = pl.cdiv(M, cap)
    tm = ((pl.cdiv(M, grid_m) + 7) // 8) * 8
    return tm, pl.cdiv(M, tm)


# ---------------------------------------------------------------------------
# Pallas kernels
# ---------------------------------------------------------------------------
def _matmul_bias_kernel(x_ref, w_ref, b_ref, o_ref, *, relu):
    """o = relu?(x @ w + b) on one (tm, K) x (K, N) tile pair (bf16 MXU, f32 acc)."""
    acc = jnp.dot(x_ref[...], w_ref[...], preferred_element_type=jnp.float32)
    acc = acc + b_ref[...]
    if relu:
        acc = jnp.maximum(acc, 0.0)
    o_ref[...] = acc.astype(o_ref.dtype)


def dense(x, w, b2d, *, relu, out_dtype, tile_m_cap=512):
    """x:(M,K) @ w:(K,N) + b:(1,N) -> (M,N) out_dtype.

    M is tiled with a 1-D "parallel" grid (software-pipelined DMA, megacore
    shardable); K and N stay whole per tile (N <= 64 for the conv layers)."""
    M, K = x.shape
    K2, N = w.shape
    assert K == K2 and b2d.shape == (1, N)
    if x.dtype != w.dtype:
        x = x.astype(w.dtype)

    tm, grid_m = _pick_tile_m(M, tile_m_cap)
    in_bytes = jnp.dtype(w.dtype).itemsize
    out_bytes = jnp.dtype(out_dtype).itemsize

    # Double-buffered x/w/out/bias tiles + headroom, clamped to the chip's VMEM.
    needed = 2 * (tm * K * in_bytes + K * N * in_bytes + tm * N * out_bytes + N * 4)
    vmem_bytes = int(min(max(needed + (4 << 20), 16 << 20), _vmem_cap_bytes()))

    cost = pl.CostEstimate(
        flops=2 * M * K * N,
        transcendentals=0,
        bytes_accessed=M * K * in_bytes + K * N * in_bytes + M * N * out_bytes + N * 4,
    )

    return pl.pallas_call(
        functools.partial(_matmul_bias_kernel, relu=relu),
        out_shape=jax.ShapeDtypeStruct((M, N), out_dtype),
        grid_spec=pltpu.PrefetchScalarGridSpec(
            num_scalar_prefetch=0,
            grid=(grid_m,),
            in_specs=[
                pl.BlockSpec((tm, K), lambda i: (i, 0)),
                pl.BlockSpec((K, N), lambda i: (0, 0)),
                pl.BlockSpec((1, N), lambda i: (0, 0)),
            ],
            out_specs=pl.BlockSpec((tm, N), lambda i: (i, 0)),
        ),
        compiler_params=pltpu.CompilerParams(
            dimension_semantics=("parallel",),
            vmem_limit_bytes=vmem_bytes,
        ),
        cost_estimate=cost,
    )(x, w, b2d)


def _fc_head_kernel(x_ref, w1_ref, b1_ref, w2_ref, b2_ref, q_ref, *, num_actions):
    """Fused FC1 (both heads' 512-wide hidden layers) + second layers + dueling combine.

    h  = relu(x @ W1 + b1)                     (stays on-chip, never hits HBM)
    va = h @ W2 + b2 ; col 0 = values, cols 1..A = advantages
    q  = v + (adv - mean(adv))  with the mean over ALL elements (matches torch's
    `advantages.mean()` with no dim, i.e. including the batch dimension)."""
    h = jnp.dot(x_ref[...], w1_ref[...], preferred_element_type=jnp.float32)
    h = jnp.maximum(h + b1_ref[...], 0.0)
    va = jnp.dot(h.astype(w2_ref.dtype), w2_ref[...],
                 preferred_element_type=jnp.float32)
    va = va + b2_ref[...]
    v = va[:, 0:1]
    adv = va[:, 1:1 + num_actions]
    mean_adv = jnp.sum(adv) * (1.0 / float(adv.shape[0] * adv.shape[1]))
    q_ref[...] = (v + (adv - mean_adv)).astype(q_ref.dtype)


def fused_fc_head(flat, w1, b1, w2, b2, *, num_actions):
    """flat:(B,3136), w1:(3136,1024), w2:(1024,1+A) -> q:(B,A) f32, one pallas_call."""
    B, K1 = flat.shape
    K1b, H = w1.shape
    Hb, N = w2.shape
    assert K1 == K1b and H == Hb and N == num_actions + 1
    assert b1.shape == (1, H) and b2.shape == (1, N)
    # TODO(synk): tile over B with a two-pass global mean if B ever exceeds one
    # VMEM-resident block (fine for DQN inference batches).
    assert B <= 2048, "fused dueling head assumes B fits a single VMEM block"
    if flat.dtype != w1.dtype:
        flat = flat.astype(w1.dtype)

    ib = jnp.dtype(w1.dtype).itemsize
    needed = (2 * (B * K1 * ib + K1 * H * ib + H * N * ib)
              + B * H * 4                       # on-chip h intermediate (f32)
              + 2 * (B * num_actions * 4)       # output
              + 2 * (H + N) * 4)                # biases
    vmem_bytes = int(min(max(needed + (4 << 20), 16 << 20), _vmem_cap_bytes()))

    cost = pl.CostEstimate(
        flops=2 * B * K1 * H + 2 * B * H * N,
        transcendentals=0,
        bytes_accessed=B * K1 * ib + K1 * H * ib + H * N * ib
                       + (H + N) * 4 + B * num_actions * 4,
    )

    return pl.pallas_call(
        functools.partial(_fc_head_kernel, num_actions=num_actions),
        out_shape=jax.ShapeDtypeStruct((B, num_actions), jnp.float32),
        grid_spec=pltpu.PrefetchScalarGridSpec(
            num_scalar_prefetch=0,
            grid=(1,),
            in_specs=[
                pl.BlockSpec((B, K1), lambda i: (0, 0)),
                pl.BlockSpec((K1, H), lambda i: (0, 0)),
                pl.BlockSpec((1, H), lambda i: (0, 0)),
                pl.BlockSpec((H, N), lambda i: (0, 0)),
                pl.BlockSpec((1, N), lambda i: (0, 0)),
            ],
            out_specs=pl.BlockSpec((B, num_actions), lambda i: (0, 0)),
        ),
        compiler_params=pltpu.CompilerParams(
            dimension_semantics=("arbitrary",),
            vmem_limit_bytes=vmem_bytes,
        ),
        cost_estimate=cost,
    )(flat, w1, b1, w2, b2)


# ---------------------------------------------------------------------------
# Conv = NHWC im2col (strided slices, no gather) + Pallas matmul+bias+ReLU
# ---------------------------------------------------------------------------
# TODO(synk): move patch extraction into the Pallas pipeline (manual
# make_async_copy of the needed input rows per M tile) to avoid materializing
# the patch matrix in HBM; at small batch the glue cost is negligible.
def _im2col_nhwc(x, k, s):
    """x: NHWC -> patches (B*OH*OW, k*k*C) with feature order (kh, kw, c).
    Built from k*k strided slices + one concat: no XLA gather."""
    B, H, W, C = x.shape
    OH = (H - k) // s + 1
    OW = (W - k) // s + 1
    cols = []
    for dh in range(k):
        h_stop = dh + (OH - 1) * s + 1
        for dw in range(k):
            w_stop = dw + (OW - 1) * s + 1
            cols.append(x[:, dh:h_stop:s, dw:w_stop:s, :])   # (B, OH, OW, C)
    patches = jnp.concatenate(cols, axis=-1)                 # (B, OH, OW, k*k*C)
    return patches.reshape(B * OH * OW, k * k * C), OH, OW


def conv2d_relu_nhwc(x, w_mat, b2d, *, k, stride):
    """x: NHWC bf16, w_mat: (k*k*in_c, out_c) bf16 (pre-reshaped), b2d: (1, out_c) f32.
    Returns NHWC bf16.  Output channels are stored unpadded (masked stores)."""
    B = x.shape[0]
    out_c = w_mat.shape[1]
    patches, OH, OW = _im2col_nhwc(x, k, stride)             # (B*OH*OW, k*k*in_c)
    y = dense(patches, w_mat, b2d, relu=True, out_dtype=jnp.bfloat16)
    return y.reshape(B, OH, OW, out_c)                       # NHWC bf16


# ---------------------------------------------------------------------------
# Parameter init (deterministic, PyTorch-default-style uniform, torch layout)
# ---------------------------------------------------------------------------
def init_params(key, in_channels=4, num_actions=4):
    def u(k, shape, fan_in):
        bound = 1.0 / float(fan_in) ** 0.5
        return jax.random.uniform(k, shape, jnp.float32, -bound, bound)

    ks = jax.random.split(key, 14)
    in_features = 7 * 7 * 64  # 84x84 input through the three convs
    return {
        "c1_w": u(ks[0], (32, in_channels, 8, 8), in_channels * 8 * 8),
        "c1_b": u(ks[1], (32,), in_channels * 8 * 8),
        "c2_w": u(ks[2], (64, 32, 4, 4), 32 * 4 * 4),
        "c2_b": u(ks[3], (64,), 32 * 4 * 4),
        "c3_w": u(ks[4], (64, 64, 3, 3), 64 * 3 * 3),
        "c3_b": u(ks[5], (64,), 64 * 3 * 3),
        "v1_w": u(ks[6], (in_features, 512), in_features),
        "v1_b": u(ks[7], (512,), in_features),
        "v2_w": u(ks[8], (512, 1), 512),
        "v2_b": u(ks[9], (1,), 512),
        "a1_w": u(ks[10], (in_features, 512), in_features),
        "a1_b": u(ks[11], (512,), in_features),
        "a2_w": u(ks[12], (512, num_actions), 512),
        "a2_b": u(ks[13], (num_actions,), 512),
    }


def prepare_params(p, conv_out=64, conv_hw=7, compute_dtype=jnp.bfloat16):
    """One-time weight prep (outside the per-step forward):

    - Conv weights -> (k*k*in_c, out_c) matmul layout, bf16; biases -> (1,out_c) f32.
    - fc1_w = [v1_w | a1_w] (3136, 1024) bf16, rows reordered from torch's
      channel-major flat index (c*49 + h*7 + w) to the NHWC flat index
      (h*7*64 + w*64 + c) so the NHWC flatten matches torch's `view(B, -1)`.
    - fc2_w = block-diagonal (1024, 1+A) bf16: [:512,0] = v2_w, [512:,1:] = a2_w.
    """
    num_actions = p["a2_w"].shape[1]

    def conv_mat(w):
        out_c, in_c, k, _ = w.shape
        return (jnp.transpose(w, (2, 3, 1, 0))
                .reshape(k * k * in_c, out_c).astype(compute_dtype))

    def bias_row(b):
        return b.reshape(1, -1).astype(jnp.float32)

    w1 = jnp.concatenate([p["v1_w"], p["a1_w"]], axis=1)          # (3136, 1024)
    b1 = jnp.concatenate([p["v1_b"], p["a1_b"]], axis=0)          # (1024,)

    c = jnp.arange(conv_out)
    h = jnp.arange(conv_hw)
    w = jnp.arange(conv_hw)
    torch_idx = (c[None, None, :] * (conv_hw * conv_hw)
                 + h[:, None, None] * conv_hw
                 + w[None, :, None]).reshape(-1)                  # NHWC pos -> torch row
    w1 = w1[torch_idx, :]

    hidden = w1.shape[1]                                          # 1024
    w2 = jnp.zeros((hidden, 1 + num_actions), jnp.float32)
    w2 = w2.at[:512, 0:1].set(p["v2_w"])
    w2 = w2.at[512:, 1:].set(p["a2_w"])
    b2 = jnp.concatenate([p["v2_b"], p["a2_b"]], axis=0)          # (1 + A,)

    return {
        "c1_w": conv_mat(p["c1_w"]), "c1_b": bias_row(p["c1_b"]),
        "c2_w": conv_mat(p["c2_w"]), "c2_b": bias_row(p["c2_b"]),
        "c3_w": conv_mat(p["c3_w"]), "c3_b": bias_row(p["c3_b"]),
        "fc1_w": w1.astype(compute_dtype), "fc1_b": bias_row(b1),
        "fc2_w": w2.astype(compute_dtype), "fc2_b": bias_row(b2),
    }


# ---------------------------------------------------------------------------
# Forward pass (mirrors DQN.forward)
# ---------------------------------------------------------------------------
def dqn_forward(params, obs):
    """obs: NCHW (B, 4, 84, 84) float32 -> q-values (B, num_actions) float32."""
    # NCHW -> NHWC and f32 -> bf16, once; all conv activations stay NHWC bf16.
    x = jnp.transpose(obs, (0, 2, 3, 1)).astype(jnp.bfloat16)
    x = conv2d_relu_nhwc(x, params["c1_w"], params["c1_b"], k=8, stride=4)  # (B,20,20,32)
    x = conv2d_relu_nhwc(x, params["c2_w"], params["c2_b"], k=4, stride=2)  # (B, 9, 9,64)
    x = conv2d_relu_nhwc(x, params["c3_w"], params["c3_b"], k=3, stride=1)  # (B, 7, 7,64)

    B = obs.shape[0]
    flat = x.reshape(B, -1)                       # contiguous NHWC flatten (B, 3136) bf16

    num_actions = params["fc2_w"].shape[1] - 1
    # One pallas_call: FC1 of both heads + second layers + dueling combine.
    return fused_fc_head(flat, params["fc1_w"], params["fc1_b"],
                         params["fc2_w"], params["fc2_b"],
                         num_actions=num_actions)                           # (B, A) f32


if __name__ == "__main__":
    key = jax.random.PRNGKey(0)
    k_param, k_obs = jax.random.split(key)

    params = init_params(k_param, in_channels=4, num_actions=4)
    prepared = prepare_params(params)

    # The module hard-codes in_features for 84x84 inputs (Atari frames),
    # so the forward implies spatial size 84. Keep batch small.
    obs = jax.random.normal(k_obs, (2, 4, 84, 84), dtype=jnp.float32)

    fwd = jax.jit(dqn_forward)
    qvals = fwd(prepared, obs)
    qvals = jax.block_until_ready(qvals)
    assert qvals.shape == (2, 4) and qvals.dtype == jnp.float32
    assert bool(jnp.all(jnp.isfinite(qvals)))
    print("KERNEL_OK")
</pallas_src>

<mosaic_0001>
module attributes {stable_mosaic.version = 11 : i64} {
  func.func @_matmul_bias_kernel(%arg0: i32, %arg1: memref<400x256xbf16, #tpu.memory_space<vmem>>, %arg2: memref<256x32xbf16, #tpu.memory_space<vmem>>, %arg3: memref<1x32xf32, #tpu.memory_space<vmem>>, %arg4: memref<400x32xbf16, #tpu.memory_space<vmem>>) attributes {dimension_semantics = [#tpu.dimension_semantics<parallel>], iteration_bounds = array<i64: 2>, scalar_prefetch = 0 : i64, scratch_operands = 0 : i64, tpu.core_type = #tpu.core_type<tc>, window_params = [{transform_indices = @transform_0, window_bounds = array<i64: 400, 256>}, {pipeline_mode = #tpu.pipeline_mode<synchronous>, transform_indices = @transform_1, window_bounds = array<i64: 256, 32>}, {pipeline_mode = #tpu.pipeline_mode<synchronous>, transform_indices = @transform_2, window_bounds = array<i64: 1, 32>}, {transform_indices = @transform_3, window_bounds = array<i64: 400, 32>}]} {
    %c0 = arith.constant 0 : index
    %c0_0 = arith.constant 0 : index
    %0 = vector.load %arg1[%c0, %c0_0] : memref<400x256xbf16, #tpu.memory_space<vmem>>, vector<400x256xbf16>
    %c0_1 = arith.constant 0 : index
    %c0_2 = arith.constant 0 : index
    %1 = vector.load %arg2[%c0_1, %c0_2] : memref<256x32xbf16, #tpu.memory_space<vmem>>, vector<256x32xbf16>
    %cst = arith.constant dense<0.000000e+00> : vector<400x32xf32>
    %2 = tpu.matmul %0, %1, %cst {dimension_numbers = #tpu.dot_dimension_numbers<[1], [0], [0], [1], [0, 0, 1, 1], [], []>} : vector<400x256xbf16>, vector<256x32xbf16>, vector<400x32xf32> -> vector<400x32xf32>
    %c0_3 = arith.constant 0 : index
    %c0_4 = arith.constant 0 : index
    %3 = vector.load %arg3[%c0_3, %c0_4] : memref<1x32xf32, #tpu.memory_space<vmem>>, vector<1x32xf32>
    %4 = vector.broadcast %3 : vector<1x32xf32> to vector<400x32xf32>
    %5 = arith.addf %2, %4 : vector<400x32xf32>
    %cst_5 = arith.constant 0.000000e+00 : f32
    %6 = vector.broadcast %cst_5 : f32 to vector<400x32xf32>
    %7 = arith.maximumf %5, %6 : vector<400x32xf32>
    %8 = arith.truncf %7 : vector<400x32xf32> to vector<400x32xbf16>
    %c0_6 = arith.constant 0 : index
    %c0_7 = arith.constant 0 : index
    %9 = vector.load %arg4[%c0_6, %c0_7] : memref<400x32xbf16, #tpu.memory_space<vmem>>, vector<400x32xbf16>
    tpu.vector_store %arg4[%c0_6, %c0_7], %8 {strides = array<i32>} : memref<400x32xbf16, #tpu.memory_space<vmem>>, vector<400x32xbf16>,
    return
  }
  func.func @transform_0(%arg0: i32) -> (i32, i32) {
    %c0_i32 = arith.constant 0 : i32
    %c0_i32_0 = arith.constant 0 : i32
    return %arg0, %c0_i32 : i32, i32
  }
  func.func @transform_1(%arg0: i32) -> (i32, i32) {
    %c0_i32 = arith.constant 0 : i32
    %c0_i32_0 = arith.constant 0 : i32
    %c0_i32_1 = arith.constant 0 : i32
    return %c0_i32, %c0_i32_0 : i32, i32
  }
  func.func @transform_2(%arg0: i32) -> (i32, i32) {
    %c0_i32 = arith.constant 0 : i32
    %c0_i32_0 = arith.constant 0 : i32
    %c0_i32_1 = arith.constant 0 : i32
    return %c0_i32, %c0_i32_0 : i32, i32
  }
  func.func @transform_3(%arg0: i32) -> (i32, i32) {
    %c0_i32 = arith.constant 0 : i32
    %c0_i32_0 = arith.constant 0 : i32
    return %arg0, %c0_i32 : i32, i32
  }
}

module attributes {stable_mosaic.version = 11 : i64} {
  func.func @_matmul_bias_kernel(%arg0: i32, %arg1: memref<162x512xbf16, #tpu.memory_space<vmem>>, %arg2: memref<512x64xbf16, #tpu.memory_space<vmem>>, %arg3: memref<1x64xf32, #tpu.memory_space<vmem>>, %arg4: memref<162x64xbf16, #tpu.memory_space<vmem>>) attributes {dimension_semantics = [#tpu.dimension_semantics<parallel>], iteration_bounds = array<i64: 1>, scalar_prefetch = 0 : i64, scratch_operands = 0 : i64, tpu.core_type = #tpu.core_type<tc>, window_params = [{transform_indices = @transform_0, window_bounds = array<i64: 162, 512>}, {pipeline_mode = #tpu.pipeline_mode<synchronous>, transform_indices = @transform_1, window_bounds = array<i64: 512, 64>}, {pipeline_mode = #tpu.pipeline_mode<synchronous>, transform_indices = @transform_2, window_bounds = array<i64: 1, 64>}, {transform_indices = @transform_3, window_bounds = array<i64: 162, 64>}]} {
    %c0 = arith.constant 0 : index
    %c0_0 = arith.constant 0 : index
    %0 = vector.load %arg1[%c0, %c0_0] : memref<162x512xbf16, #tpu.memory_space<vmem>>, vector<162x512xbf16>
    %c0_1 = arith.constant 0 : index
    %c0_2 = arith.constant 0 : index
    %1 = vector.load %arg2[%c0_1, %c0_2] : memref<512x64xbf16, #tpu.memory_space<vmem>>, vector<512x64xbf16>
    %cst = arith.constant dense<0.000000e+00> : vector<162x64xf32>
    %2 = tpu.matmul %0, %1, %cst {dimension_numbers = #tpu.dot_dimension_numbers<[1], [0], [0], [1], [0, 0, 1, 1], [], []>} : vector<162x512xbf16>, vector<512x64xbf16>, vector<162x64xf32> -> vector<162x64xf32>
    %c0_3 = arith.constant 0 : index
    %c0_4 = arith.constant 0 : index
    %3 = vector.load %arg3[%c0_3, %c0_4] : memref<1x64xf32, #tpu.memory_space<vmem>>, vector<1x64xf32>
    %4 = vector.broadcast %3 : vector<1x64xf32> to vector<162x64xf32>
    %5 = arith.addf %2, %4 : vector<162x64xf32>
    %cst_5 = arith.constant 0.000000e+00 : f32
    %6 = vector.broadcast %cst_5 : f32 to vector<162x64xf32>
    %7 = arith.maximumf %5, %6 : vector<162x64xf32>
    %8 = arith.truncf %7 : vector<162x64xf32> to vector<162x64xbf16>
    %c0_6 = arith.constant 0 : index
    %c0_7 = arith.constant 0 : index
    %9 = vector.load %arg4[%c0_6, %c0_7] : memref<162x64xbf16, #tpu.memory_space<vmem>>, vector<162x64xbf16>
    tpu.vector_store %arg4[%c0_6, %c0_7], %8 {strides = array<i32>} : memref<162x64xbf16, #tpu.memory_space<vmem>>, vector<162x64xbf16>,
    return
  }
  func.func @transform_0(%arg0: i32) -> (i32, i32) {
    %c0_i32 = arith.constant 0 : i32
    %c0_i32_0 = arith.constant 0 : i32
    return %arg0, %c0_i32 : i32, i32
  }
  func.func @transform_1(%arg0: i32) -> (i32, i32) {
    %c0_i32 = arith.constant 0 : i32
    %c0_i32_0 = arith.constant 0 : i32
    %c0_i32_1 = arith.constant 0 : i32
    return %c0_i32, %c0_i32_0 : i32, i32
  }
  func.func @transform_2(%arg0: i32) -> (i32, i32) {
    %c0_i32 = arith.constant 0 : i32
    %c0_i32_0 = arith.constant 0 : i32
    %c0_i32_1 = arith.constant 0 : i32
    return %c0_i32, %c0_i32_0 : i32, i32
  }
  func.func @transform_3(%arg0: i32) -> (i32, i32) {
    %c0_i32 = arith.constant 0 : i32
    %c0_i32_0 = arith.constant 0 : i32
    return %arg0, %c0_i32 : i32, i32
  }
}

module attributes {stable_mosaic.version = 11 : i64} {
  func.func @_matmul_bias_kernel(%arg0: i32, %arg1: memref<98x576xbf16, #tpu.memory_space<vmem>>, %arg2: memref<576x64xbf16, #tpu.memory_space<vmem>>, %arg3: memref<1x64xf32, #tpu.memory_space<vmem>>, %arg4: memref<98x64xbf16, #tpu.memory_space<vmem>>) attributes {dimension_semantics = [#tpu.dimension_semantics<parallel>], iteration_bounds = array<i64: 1>, scalar_prefetch = 0 : i64, scratch_operands = 0 : i64, tpu.core_type = #tpu.core_type<tc>, window_params = [{transform_indices = @transform_0, window_bounds = array<i64: 98, 576>}, {pipeline_mode = #tpu.pipeline_mode<synchronous>, transform_indices = @transform_1, window_bounds = array<i64: 576, 64>}, {pipeline_mode = #tpu.pipeline_mode<synchronous>, transform_indices = @transform_2, window_bounds = array<i64: 1, 64>}, {transform_indices = @transform_3, window_bounds = array<i64: 98, 64>}]} {
    %c0 = arith.constant 0 : index
    %c0_0 = arith.constant 0 : index
    %0 = vector.load %arg1[%c0, %c0_0] : memref<98x576xbf16, #tpu.memory_space<vmem>>, vector<98x576xbf16>
    %c0_1 = arith.constant 0 : index
    %c0_2 = arith.constant 0 : index
    %1 = vector.load %arg2[%c0_1, %c0_2] : memref<576x64xbf16, #tpu.memory_space<vmem>>, vector<576x64xbf16>
    %cst = arith.constant dense<0.000000e+00> : vector<98x64xf32>
    %2 = tpu.matmul %0, %1, %cst {dimension_numbers = #tpu.dot_dimension_numbers<[1], [0], [0], [1], [0, 0, 1, 1], [], []>} : vector<98x576xbf16>, vector<576x64xbf16>, vector<98x64xf32> -> vector<98x64xf32>
    %c0_3 = arith.constant 0 : index
    %c0_4 = arith.constant 0 : index
    %3 = vector.load %arg3[%c0_3, %c0_4] : memref<1x64xf32, #tpu.memory_space<vmem>>, vector<1x64xf32>
    %4 = vector.broadcast %3 : vector<1x64xf32> to vector<98x64xf32>
    %5 = arith.addf %2, %4 : vector<98x64xf32>
    %cst_5 = arith.constant 0.000000e+00 : f32
    %6 = vector.broadcast %cst_5 : f32 to vector<98x64xf32>
    %7 = arith.maximumf %5, %6 : vector<98x64xf32>
    %8 = arith.truncf %7 : vector<98x64xf32> to vector<98x64xbf16>
    %c0_6 = arith.constant 0 : index
    %c0_7 = arith.constant 0 : index
    %9 = vector.load %arg4[%c0_6, %c0_7] : memref<98x64xbf16, #tpu.memory_space<vmem>>, vector<98x64xbf16>
    tpu.vector_store %arg4[%c0_6, %c0_7], %8 {strides = array<i32>} : memref<98x64xbf16, #tpu.memory_space<vmem>>, vector<98x64xbf16>,
    return
  }
  func.func @transform_0(%arg0: i32) -> (i32, i32) {
    %c0_i32 = arith.constant 0 : i32
    %c0_i32_0 = arith.constant 0 : i32
    return %arg0, %c0_i32 : i32, i32
  }
  func.func @transform_1(%arg0: i32) -> (i32, i32) {
    %c0_i32 = arith.constant 0 : i32
    %c0_i32_0 = arith.constant 0 : i32
    %c0_i32_1 = arith.constant 0 : i32
    return %c0_i32, %c0_i32_0 : i32, i32
  }
  func.func @transform_2(%arg0: i32) -> (i32, i32) {
    %c0_i32 = arith.constant 0 : i32
    %c0_i32_0 = arith.constant 0 : i32
    %c0_i32_1 = arith.constant 0 : i32
    return %c0_i32, %c0_i32_0 : i32, i32
  }
  func.func @transform_3(%arg0: i32) -> (i32, i32) {
    %c0_i32 = arith.constant 0 : i32
    %c0_i32_0 = arith.constant 0 : i32
    return %arg0, %c0_i32 : i32, i32
  }
}

module attributes {stable_mosaic.version = 11 : i64} {
  func.func @_fc_head_kernel(%arg0: i32, %arg1: memref<2x3136xbf16, #tpu.memory_space<vmem>>, %arg2: memref<3136x1024xbf16, #tpu.memory_space<vmem>>, %arg3: memref<1x1024xf32, #tpu.memory_space<vmem>>, %arg4: memref<1024x5xbf16, #tpu.memory_space<vmem>>, %arg5: memref<1x5xf32, #tpu.memory_space<vmem>>, %arg6: memref<2x4xf32, #tpu.memory_space<vmem>>) attributes {dimension_semantics = [#tpu.dimension_semantics<arbitrary>], iteration_bounds = array<i64: 1>, scalar_prefetch = 0 : i64, scratch_operands = 0 : i64, tpu.core_type = #tpu.core_type<tc>, window_params = [{pipeline_mode = #tpu.pipeline_mode<synchronous>, transform_indices = @transform_0, window_bounds = array<i64: 2, 3136>}, {pipeline_mode = #tpu.pipeline_mode<synchronous>, transform_indices = @transform_1, window_bounds = array<i64: 3136, 1024>}, {pipeline_mode = #tpu.pipeline_mode<synchronous>, transform_indices = @transform_2, window_bounds = array<i64: 1, 1024>}, {pipeline_mode = #tpu.pipeline_mode<synchronous>, transform_indices = @transform_3, window_bounds = array<i64: 1024, 5>}, {pipeline_mode = #tpu.pipeline_mode<synchronous>, transform_indices = @transform_4, window_bounds = array<i64: 1, 5>}, {pipeline_mode = #tpu.pipeline_mode<synchronous>, transform_indices = @transform_5, window_bounds = array<i64: 2, 4>}]} {
    %c0 = arith.constant 0 : index
    %c0_0 = arith.constant 0 : index
    %0 = vector.load %arg1[%c0, %c0_0] : memref<2x3136xbf16, #tpu.memory_space<vmem>>, vector<2x3136xbf16>
    %c0_1 = arith.constant 0 : index
    %c0_2 = arith.constant 0 : index
    %1 = vector.load %arg2[%c0_1, %c0_2] : memref<3136x1024xbf16, #tpu.memory_space<vmem>>, vector<3136x1024xbf16>
    %cst = arith.constant dense<0.000000e+00> : vector<2x1024xf32>
    %2 = tpu.matmul %0, %1, %cst {dimension_numbers = #tpu.dot_dimension_numbers<[1], [0], [0], [1], [0, 0, 1, 1], [], []>} : vector<2x3136xbf16>, vector<3136x1024xbf16>, vector<2x1024xf32> -> vector<2x1024xf32>
    %c0_3 = arith.constant 0 : index
    %c0_4 = arith.constant 0 : index
    %3 = vector.load %arg3[%c0_3, %c0_4] : memref<1x1024xf32, #tpu.memory_space<vmem>>, vector<1x1024xf32>
    %4 = vector.broadcast %3 : vector<1x1024xf32> to vector<2x1024xf32>
    %5 = arith.addf %2, %4 : vector<2x1024xf32>
    %cst_5 = arith.constant 0.000000e+00 : f32
    %6 = vector.broadcast %cst_5 : f32 to vector<2x1024xf32>
    %7 = arith.maximumf %5, %6 : vector<2x1024xf32>
    %8 = arith.truncf %7 : vector<2x1024xf32> to vector<2x1024xbf16>
    %c0_6 = arith.constant 0 : index
    %c0_7 = arith.constant 0 : index
    %9 = vector.load %arg4[%c0_6, %c0_7] : memref<1024x5xbf16, #tpu.memory_space<vmem>>, vector<1024x5xbf16>
    %cst_8 = arith.constant dense<0.000000e+00> : vector<2x5xf32>
    %10 = tpu.matmul %8, %9, %cst_8 {dimension_numbers = #tpu.dot_dimension_numbers<[1], [0], [0], [1], [0, 0, 1, 1], [], []>} : vector<2x1024xbf16>, vector<1024x5xbf16>, vector<2x5xf32> -> vector<2x5xf32>
    %c0_9 = arith.constant 0 : index
    %c0_10 = arith.constant 0 : index
    %11 = vector.load %arg5[%c0_9, %c0_10] : memref<1x5xf32, #tpu.memory_space<vmem>>, vector<1x5xf32>
    %12 = vector.broadcast %11 : vector<1x5xf32> to vector<2x5xf32>
    %13 = arith.addf %10, %12 : vector<2x5xf32>
    %14 = vector.extract_strided_slice %13 {offsets = [0, 0], sizes = [2, 1], strides = [1, 1]} : vector<2x5xf32> to vector<2x1xf32>
    %15 = vector.extract_strided_slice %13 {offsets = [0, 1], sizes = [2, 4], strides = [1, 1]} : vector<2x5xf32> to vector<2x4xf32>
    %16 = vector.shape_cast %15 : vector<2x4xf32> to vector<1x2x4xf32>
    %cst_11 = arith.constant dense<0.000000e+00> : vector<1xf32>
    %17 = vector.multi_reduction <add>, %16, %cst_11 [1, 2] : vector<1x2x4xf32> to vector<1xf32>
    %18 = vector.shape_cast %17 : vector<1xf32> to vector<1x1x1xf32>
    %19 = vector.extract %18[0, 0, 0] : f32 from vector<1x1x1xf32>
    %cst_12 = arith.constant 1.250000e-01 : f32
    %20 = arith.mulf %19, %cst_12 : f32
    %21 = vector.broadcast %20 : f32 to vector<2x4xf32>
    %22 = arith.subf %15, %21 : vector<2x4xf32>
    %23 = vector.broadcast %14 : vector<2x1xf32> to vector<2x4xf32>
    %24 = arith.addf %23, %22 : vector<2x4xf32>
    %c0_13 = arith.constant 0 : index
    %c0_14 = arith.constant 0 : index
    %25 = vector.load %arg6[%c0_13, %c0_14] : memref<2x4xf32, #tpu.memory_space<vmem>>, vector<2x4xf32>
    tpu.vector_store %arg6[%c0_13, %c0_14], %24 {strides = array<i32>} : memref<2x4xf32, #tpu.memory_space<vmem>>, vector<2x4xf32>,
    return
  }
  func.func @transform_0(%arg0: i32) -> (i32, i32) {
    %c0_i32 = arith.constant 0 : i32
    %c0_i32_0 = arith.constant 0 : i32
    %c0_i32_1 = arith.constant 0 : i32
    return %c0_i32, %c0_i32_0 : i32, i32
  }
  func.func @transform_1(%arg0: i32) -> (i32, i32) {
    %c0_i32 = arith.constant 0 : i32
    %c0_i32_0 = arith.constant 0 : i32
    %c0_i32_1 = arith.constant 0 : i32
    return %c0_i32, %c0_i32_0 : i32, i32
  }
  func.func @transform_2(%arg0: i32) -> (i32, i32) {
    %c0_i32 = arith.constant 0 : i32
    %c0_i32_0 = arith.constant 0 : i32
    %c0_i32_1 = arith.constant 0 : i32
    return %c0_i32, %c0_i32_0 : i32, i32
  }
  func.func @transform_3(%arg0: i32) -> (i32, i32) {
    %c0_i32 = arith.constant 0 : i32
    %c0_i32_0 = arith.constant 0 : i32
    %c0_i32_1 = arith.constant 0 : i32
    return %c0_i32, %c0_i32_0 : i32, i32
  }
  func.func @transform_4(%arg0: i32) -> (i32, i32) {
    %c0_i32 = arith.constant 0 : i32
    %c0_i32_0 = arith.constant 0 : i32
    %c0_i32_1 = arith.constant 0 : i32
    return %c0_i32, %c0_i32_0 : i32, i32
  }
  func.func @transform_5(%arg0: i32) -> (i32, i32) {
    %c0_i32 = arith.constant 0 : i32
    %c0_i32_0 = arith.constant 0 : i32
    %c0_i32_1 = arith.constant 0 : i32
    return %c0_i32, %c0_i32_0 : i32, i32
  }
}

</mosaic_0001>

<bundles_post_ra>
// kernel: dqn_forward.4
= control target key start
LH: loop header
LB: loop body
LE: loop exit
PB: predicated region body
PF: predicated region fallthrough
CT: control target
= control target key end

     0   :  { %s1542_s12 = smov 0   ;;  %s1852_s0 = inlined_call_operand.vmem [shape: bf16[800,256], index: 0, kind: input, shape index: {}]   ;;  %s1853_s1 = inlined_call_operand.vmem [shape: bf16[256,32], index: 1, kind: input, shape index: {}]   ;;  %s1854_s2 = inlined_call_operand.vmem [shape: f32[1,32], index: 2, kind: input, shape index: {}]   ;;  %s1855_s3 = inlined_call_operand.vmem [shape: bf16[800,32], index: 3, kind: output, shape index: {}]  }
   0x1 LB: > { %s1203_s13 = sadd.s32 4294967295, %s1519_s12   ;;  %p1207_p0 = scmp.ge.s32.totalorder %s1519_s12, 1  ;;  %s1519_s12 = sphi %s1542_s12, %s13_s12  }
   0x2   : > { %p139_p1 = scmp.lt.s32.totalorder %s1519_s12, 3 }
   0x4   : > { %p140_p2 = pnand %p1207_p0, %p139_p1 }
   0x5   : > { %s164_s16 = smul.u32 (!%p140_p2), 50, %s1203_s13 }
   0x6   : > { %143 = sbr.rel (%p140_p2) target bundleno = 376 (0x178), region = 32 }
   0x7   : > { %p165_p3 = scmp.lt.s32.totalorder (!%p140_p2), %s164_s16, 99 }
   0xb   : > { %v1422_v0 = vld [vmem:[%s1853_s1 + $0x38] sm:$0xff]   ;;  %v1521_v1 = vmov 0   ;;  %v1423_v2 = vld [vmem:[%s1853_s1 + $0x30] sm:$0xff]   ;;  %v1424_v3 = vld [vmem:[%s1853_s1 + $0x28] sm:$0xff]   ;;  %s1857_s16 = smov (!%p165_p3, %s164_s16), 99  ;;  %vm1096_vm0 = vcmask 257024  }
   0xc   : > { %613 = vmatprep.subr.bf16.mxu0 %v1521_v1  ;;  %1381 = vmatprep.subr.bf16.mxu1 %v1521_v1  ;;  %v1425_v4 = vld [vmem:[%s1853_s1 + $0x20] sm:$0xff]   ;;  %s1330_s23 = sshll.u32 %s1857_s16, 3  ;;  %v1426_v5 = vld [vmem:[%s1853_s1 + $0x18] sm:$0xff]   ;;  %v1427_v7 = vld [vmem:[%s1853_s1 + $0x10] sm:$0xff]   ;;  %s1210_s29 = sshll.u32 %s1857_s16, 2 }
   0xd   : > { %614 = vmatpush1.bf16.msra.mxu0 %v1422_v0  ;;  %1397 = vmatpush1.bf16.msra.mxu1 %v1422_v0  ;;  %s1579_s28 = scalar_lea.vmem %s1852_s0, %s1330_s23  ;;  %v1428_v9 = vld [vmem:[%s1853_s1 + $0x8] sm:$0xff]   ;;  %v1429_v10 = vld [vmem:[%s1853_s1] sm:$0xff]   ;;  %v1430_v11 = vld [vmem:[%s1853_s1 + $0x78] sm:$0xff]  }
   0xe   : > { %615 = vmatprep.subr.bf16.mxu0 %v1521_v1  ;;  %1382 = vmatprep.subr.bf16.mxu1 %v1521_v1  ;;  %v1440_v6 = vld [vmem:[%s1579_s28 + $0x4] ss:$8 sps:$4 sm:$0xff]   ;;  %v1443_v8 = vld [vmem:[%s1579_s28 + $0xd4] ss:$8 sps:$4 sm:$0xff]   ;;  %v1438_v19 = vld [vmem:[%s1579_s28] ss:$8 sps:$4 sm:$0xff]  }
   0xf   : > { %645 = vmatprep.mubr.bf16.mxu0 %v1440_v6  ;;  %749 = vmatprep.mubr.bf16.mxu1 %v1443_v8  ;;  %v1431_v12 = vld [vmem:[%s1853_s1 + $0x70] sm:$0xff]   ;;  %v1432_v13 = vld [vmem:[%s1853_s1 + $0x68] sm:$0xff]   ;;  %v1433_v14 = vld [vmem:[%s1853_s1 + $0x60] sm:$0xff]  }
  0x10   : > { %v1434_v15 = vld [vmem:[%s1853_s1 + $0x58] sm:$0xff]   ;;  %v1435_v16 = vld [vmem:[%s1853_s1 + $0x50] sm:$0xff]   ;;  %v1436_v17 = vld [vmem:[%s1853_s1 + $0x48] sm:$0xff]  }
  0x11   : > { %616 = vmatpush1.bf16.msra.mxu0 %v1423_v2  ;;  %1398 = vmatpush1.bf16.msra.mxu1 %v1423_v2  ;;  %v1437_v18 = vld [vmem:[%s1853_s1 + $0x40] sm:$0xff]   ;;  %v1441_v20 = vld [vmem:[%s1579_s28 + $0xd0] ss:$8 sps:$4 sm:$0xff]   ;;  %v1444_v21 = vld [vmem:[%s1579_s28 + $0x14] ss:$8 sps:$4 sm:$0xff]  }
  0x12   : > { %617 = vmatprep.subr.bf16.mxu0 %v1521_v1  ;;  %1383 = vmatprep.subr.bf16.mxu1 %v1521_v1  ;;  %v1447_v22 = vld [vmem:[%s1579_s28 + $0xe4] ss:$8 sps:$4 sm:$0xff]   ;;  %v1446_v23 = vld [vmem:[%s1579_s28 + $0x10] ss:$8 sps:$4 sm:$0xff]   ;;  %v1449_v24 = vld [vmem:[%s1579_s28 + $0xe0] ss:$8 sps:$4 sm:$0xff]  }
  0x13   : > { %v1450_v25 = vld [vmem:[%s1579_s28 + $0x24] ss:$8 sps:$4 sm:$0xff]   ;;  %v1453_v26 = vld [vmem:[%s1579_s28 + $0xf4] ss:$8 sps:$4 sm:$0xff]   ;;  %v1452_v27 = vld [vmem:[%s1579_s28 + $0x20] ss:$8 sps:$4 sm:$0xff]  }
  0x14   : > { %v1455_v28 = vld [vmem:[%s1579_s28 + $0xf0] ss:$8 sps:$4 sm:$0xff]   ;;  %v1456_v29 = vld [vmem:[%s1579_s28 + $0x34] ss:$8 sps:$4 sm:$0xff]   ;;  %v1459_v30 = vld [vmem:[%s1579_s28 + $0x104] ss:$8 sps:$4 sm:$0xff]  }
  0x15   : > { %618 = vmatpush1.bf16.msra.mxu0 %v1424_v3  ;;  %1399 = vmatpush1.bf16.msra.mxu1 %v1424_v3  ;;  %v1458_v31 = vld [vmem:[%s1579_s28 + $0x30] ss:$8 sps:$4 sm:$0xff]   ;;  %v1461_v32 = vld [vmem:[%s1579_s28 + $0x100] ss:$8 sps:$4 sm:$0xff]   ;;  %v1462_v33 = vld [vmem:[%s1579_s28 + $0x44] ss:$8 sps:$4 sm:$0xff]  }
  0x16   : > { %619 = vmatprep.subr.bf16.mxu0 %v1521_v1  ;;  %1384 = vmatprep.subr.bf16.mxu1 %v1521_v1  ;;  %v1465_v34 = vld [vmem:[%s1579_s28 + $0x114] ss:$8 sps:$4 sm:$0xff]   ;;  %v1464_v35 = vld [vmem:[%s1579_s28 + $0x40] ss:$8 sps:$4 sm:$0xff]   ;;  %v1467_v36 = vld [vmem:[%s1579_s28 + $0x110] ss:$8 sps:$4 sm:$0xff]  }
  0x17   : > { %v1468_v37 = vld [vmem:[%s1579_s28 + $0x54] ss:$8 sps:$4 sm:$0xff]   ;;  %v1471_v38 = vld [vmem:[%s1579_s28 + $0x124] ss:$8 sps:$4 sm:$0xff]   ;;  %v1470_v39 = vld [vmem:[%s1579_s28 + $0x50] ss:$8 sps:$4 sm:$0xff]  }
  0x18   : > { %v1473_v40 = vld [vmem:[%s1579_s28 + $0x120] ss:$8 sps:$4 sm:$0xff]   ;;  %v1474_v41 = vld [vmem:[%s1579_s28 + $0x64] ss:$8 sps:$4 sm:$0xff]   ;;  %v1477_v42 = vld [vmem:[%s1579_s28 + $0x134] ss:$8 sps:$4 sm:$0xff]  }
  0x19   : > { %620 = vmatpush1.bf16.msra.mxu0 %v1425_v4  ;;  %1400 = vmatpush1.bf16.msra.mxu1 %v1425_v4  ;;  %v1476_v43 = vld [vmem:[%s1579_s28 + $0x60] ss:$8 sps:$4 sm:$0xff]   ;;  %v1479_v44 = vld [vmem:[%s1579_s28 + $0x130] ss:$8 sps:$4 sm:$0xff]   ;;  %v1480_v45 = vld [vmem:[%s1579_s28 + $0x74] ss:$8 sps:$4 sm:$0xff]  }
  0x1a   : > { %621 = vmatprep.subr.bf16.mxu0 %v1521_v1  ;;  %1385 = vmatprep.subr.bf16.mxu1 %v1521_v1  ;;  %v1483_v46 = vld [vmem:[%s1579_s28 + $0x144] ss:$8 sps:$4 sm:$0xff]   ;;  %v1482_v47 = vld [vmem:[%s1579_s28 + $0x70] ss:$8 sps:$4 sm:$0xff]   ;;  %v1485_v48 = vld [vmem:[%s1579_s28 + $0x140] ss:$8 sps:$4 sm:$0xff]  }
  0x1b   : > { %v1486_v49 = vld [vmem:[%s1579_s28 + $0x84] ss:$8 sps:$4 sm:$0xff]   ;;  %v1489_v50 = vld [vmem:[%s1579_s28 + $0x154] ss:$8 sps:$4 sm:$0xff]   ;;  %v1488_v51 = vld [vmem:[%s1579_s28 + $0x80] ss:$8 sps:$4 sm:$0xff]  }
  0x1c   : > { %v1491_v52 = vld [vmem:[%s1579_s28 + $0x150] ss:$8 sps:$4 sm:$0xff]   ;;  %v1492_v53 = vld [vmem:[%s1579_s28 + $0x94] ss:$8 sps:$4 sm:$0xff]   ;;  %v1495_v54 = vld [vmem:[%s1579_s28 + $0x164] ss:$8 sps:$4 sm:$0xff]  }
  0x1d   : > { %622 = vmatpush1.bf16.msra.mxu0 %v1426_v5  ;;  %1401 = vmatpush1.bf16.msra.mxu1 %v1426_v5  ;;  %v1494_v55 = vld [vmem:[%s1579_s28 + $0x90] ss:$8 sps:$4 sm:$0xff]   ;;  %v1497_v56 = vld [vmem:[%s1579_s28 + $0x160] ss:$8 sps:$4 sm:$0xff]   ;;  %v1498_v57 = vld [vmem:[%s1579_s28 + $0xa4] ss:$8 sps:$4 sm:$0xff]  }
  0x1e   : > { %623 = vmatprep.subr.bf16.mxu0 %v1521_v1  ;;  %1386 = vmatprep.subr.bf16.mxu1 %v1521_v1  ;;  %v1501_v58 = vld [vmem:[%s1579_s28 + $0x174] ss:$8 sps:$4 sm:$0xff]   ;;  %v1500_v59 = vld [vmem:[%s1579_s28 + $0xa0] ss:$8 sps:$4 sm:$0xff]   ;;  %v1503_v60 = vld [vmem:[%s1579_s28 + $0x170] ss:$8 sps:$4 sm:$0xff]  }
  0x1f   : > { %v1504_v61 = vld [vmem:[%s1579_s28 + $0xb4] ss:$8 sps:$4 sm:$0xff]   ;;  %v1507_v62 = vld [vmem:[%s1579_s28 + $0x184] ss:$8 sps:$4 sm:$0xff]   ;;  %v1506_v63 = vld [vmem:[%s1579_s28 + $0xb0] ss:$8 sps:$4 sm:$0xff]  }
  0x20   : > { %v1509_v0 = vld [vmem:[%s1579_s28 + $0x180] ss:$8 sps:$4 sm:$0xff]  }
  0x21   : > { %624 = vmatpush1.bf16.msra.mxu0 %v1427_v7  ;;  %1402 = vmatpush1.bf16.msra.mxu1 %v1427_v7  ;;  %v1512_v2 = vld [vmem:[%s1579_s28 + $0xc0] ss:$8 sps:$4 sm:$0xff]  }
  0x22   : > { %625 = vmatprep.subr.bf16.mxu0 %v1521_v1  ;;  %1387 = vmatprep.subr.bf16.mxu1 %v1521_v1  ;;  %v1691_v3 = vld [vmem:[%s1854_s2] ss:$0 sm:$0xff] }
  0x25   : > { %626 = vmatpush1.bf16.msra.mxu0 %v1428_v9  ;;  %1403 = vmatpush1.bf16.msra.mxu1 %v1428_v9 }
  0x26   : > { %627 = vmatprep.subr.bf16.mxu0 %v1521_v1  ;;  %1388 = vmatprep.subr.bf16.mxu1 %v1521_v1 }
  0x29   : > { %628 = vmatpush1.bf16.msra.mxu0 %v1429_v10  ;;  %1404 = vmatpush1.bf16.msra.mxu1 %v1429_v10 }
  0x2a   : > { %629 = vmatprep.subr.bf16.mxu0 %v1521_v1  ;;  %1389 = vmatprep.subr.bf16.mxu1 %v1521_v1 }
  0x2d   : > { %630 = vmatpush2.bf16.msra.mxu0 %v1430_v11  ;;  %1405 = vmatpush2.bf16.msra.mxu1 %v1430_v11 }
  0x2e   : > { %631 = vmatprep.subr.bf16.mxu0 %v1521_v1  ;;  %1390 = vmatprep.subr.bf16.mxu1 %v1521_v1 }
  0x31   : > { %632 = vmatpush2.bf16.msra.mxu0 %v1431_v12  ;;  %1406 = vmatpush2.bf16.msra.mxu1 %v1431_v12 }
  0x32   : > { %633 = vmatprep.subr.bf16.mxu0 %v1521_v1  ;;  %1391 = vmatprep.subr.bf16.mxu1 %v1521_v1 }
  0x35   : > { %634 = vmatpush2.bf16.msra.mxu0 %v1432_v13  ;;  %1407 = vmatpush2.bf16.msra.mxu1 %v1432_v13 }
  0x36   : > { %635 = vmatprep.subr.bf16.mxu0 %v1521_v1  ;;  %1392 = vmatprep.subr.bf16.mxu1 %v1521_v1 }
  0x39   : > { %636 = vmatpush2.bf16.msra.mxu0 %v1433_v14  ;;  %1408 = vmatpush2.bf16.msra.mxu1 %v1433_v14 }
  0x3a   : > { %637 = vmatprep.subr.bf16.mxu0 %v1521_v1  ;;  %1393 = vmatprep.subr.bf16.mxu1 %v1521_v1 }
  0x3d   : > { %638 = vmatpush2.bf16.msra.mxu0 %v1434_v15  ;;  %1409 = vmatpush2.bf16.msra.mxu1 %v1434_v15 }
  0x3e   : > { %639 = vmatprep.subr.bf16.mxu0 %v1521_v1  ;;  %1394 = vmatprep.subr.bf16.mxu1 %v1521_v1 }
  0x41   : > { %640 = vmatpush2.bf16.msra.mxu0 %v1435_v16  ;;  %1410 = vmatpush2.bf16.msra.mxu1 %v1435_v16 }
  0x42   : > { %641 = vmatprep.subr.bf16.mxu0 %v1521_v1  ;;  %1395 = vmatprep.subr.bf16.mxu1 %v1521_v1 }
  0x45   : > { %642 = vmatpush2.bf16.msra.mxu0 %v1436_v17  ;;  %1411 = vmatpush2.bf16.msra.mxu1 %v1436_v17 }
  0x46   : > { %643 = vmatprep.subr.bf16.mxu0 %v1521_v1  ;;  %1396 = vmatprep.subr.bf16.mxu1 %v1521_v1  ;;  %v1510_v1 = vld [vmem:[%s1579_s28 + $0xc4] ss:$8 sps:$4 sm:$0xff]   ;;  %s1699_s28 = scalar_lea.vmem %s1855_s3, %s1210_s29 }
  0x49   : > { %644 = vmatpush2.bf16.msra.mxu0 %v1437_v18  ;;  %1412 = vmatpush2.bf16.msra.mxu1 %v1437_v18 }
  0x4c   : > { %646 = vmatmul.mubr.bf16.vlgmr.msra.gmra.mxu0 %v1438_v19  ;;  %750 = vmatmul.mubr.bf16.vlgmr.msra.gmra.mxu1 %v1441_v20 }
  0x4d   : > { %653 = vmatprep.mubr.bf16.mxu0 %v1444_v21  ;;  %757 = vmatprep.mubr.bf16.mxu1 %v1447_v22 }
  0x54   : > { %654 = vmatmul.mubr.bf16.gmra.mxu0 %v1446_v23  ;;  %758 = vmatmul.mubr.bf16.gmra.mxu1 %v1449_v24 }
  0x55   : > { %661 = vmatprep.mubr.bf16.mxu0 %v1450_v25  ;;  %765 = vmatprep.mubr.bf16.mxu1 %v1453_v26 }
  0x5c   : > { %662 = vmatmul.mubr.bf16.gmra.mxu0 %v1452_v27  ;;  %766 = vmatmul.mubr.bf16.gmra.mxu1 %v1455_v28 }
  0x5d   : > { %669 = vmatprep.mubr.bf16.mxu0 %v1456_v29  ;;  %773 = vmatprep.mubr.bf16.mxu1 %v1459_v30 }
  0x64   : > { %670 = vmatmul.mubr.bf16.gmra.mxu0 %v1458_v31  ;;  %774 = vmatmul.mubr.bf16.gmra.mxu1 %v1461_v32 }
  0x65   : > { %677 = vmatprep.mubr.bf16.mxu0 %v1462_v33  ;;  %781 = vmatprep.mubr.bf16.mxu1 %v1465_v34 }
  0x6c   : > { %678 = vmatmul.mubr.bf16.gmra.mxu0 %v1464_v35  ;;  %782 = vmatmul.mubr.bf16.gmra.mxu1 %v1467_v36 }
  0x6d   : > { %685 = vmatprep.mubr.bf16.mxu0 %v1468_v37  ;;  %789 = vmatprep.mubr.bf16.mxu1 %v1471_v38 }
  0x74   : > { %686 = vmatmul.mubr.bf16.gmra.mxu0 %v1470_v39  ;;  %790 = vmatmul.mubr.bf16.gmra.mxu1 %v1473_v40 }
  0x75   : > { %693 = vmatprep.mubr.bf16.mxu0 %v1474_v41  ;;  %797 = vmatprep.mubr.bf16.mxu1 %v1477_v42 }
  0x7c   : > { %694 = vmatmul.mubr.bf16.gmra.mxu0 %v1476_v43  ;;  %798 = vmatmul.mubr.bf16.gmra.mxu1 %v1479_v44 }
  0x7d   : > { %701 = vmatprep.mubr.bf16.mxu0 %v1480_v45  ;;  %805 = vmatprep.mubr.bf16.mxu1 %v1483_v46 }
  0x84   : > { %702 = vmatmul.mubr.bf16.gmra.mxu0 %v1482_v47  ;;  %806 = vmatmul.mubr.bf16.gmra.mxu1 %v1485_v48 }
  0x85   : > { %709 = vmatprep.mubr.bf16.mxu0 %v1486_v49  ;;  %813 = vmatprep.mubr.bf16.mxu1 %v1489_v50 }
  0x8c   : > { %710 = vmatmul.mubr.bf16.gmra.mxu0 %v1488_v51  ;;  %814 = vmatmul.mubr.bf16.gmra.mxu1 %v1491_v52 }
  0x8d   : > { %717 = vmatprep.mubr.bf16.mxu0 %v1492_v53  ;;  %821 = vmatprep.mubr.bf16.mxu1 %v1495_v54 }
  0x94   : > { %718 = vmatmul.mubr.bf16.gmra.mxu0 %v1494_v55  ;;  %822 = vmatmul.mubr.bf16.gmra.mxu1 %v1497_v56 }
  0x95   : > { %725 = vmatprep.mubr.bf16.mxu0 %v1498_v57  ;;  %829 = vmatprep.mubr.bf16.mxu1 %v1501_v58 }
  0x9c   : > { %726 = vmatmul.mubr.bf16.gmra.mxu0 %v1500_v59  ;;  %830 = vmatmul.mubr.bf16.gmra.mxu1 %v1503_v60 }
  0x9d   : > { %733 = vmatprep.mubr.bf16.mxu0 %v1504_v61  ;;  %837 = vmatprep.mubr.bf16.mxu1 %v1507_v62 }
  0xa4   : > { %734 = vmatmul.mubr.bf16.gmra.mxu0 %v1506_v63  ;;  %838 = vmatmul.mubr.bf16.gmra.mxu1 %v1509_v0 }
  0xa5   : > { %741 = vmatprep.mubr.bf16.mxu0 %v1510_v1 }
  0xac   : > { %742 = vmatmul.mubr.bf16.gmra.mxu0 %v1512_v2 }
 0x10c   : > { %v647_v4 = vpop.f32.mrf.mxu0  ;;  %v751_v5 = vpop.f32.mrf.mxu1 }
 0x10d   : > { %v648_v6 = vadd.f32 %v1691_v3, %v647_v4  ;;  %v752_v7 = vadd.f32 %v1691_v3, %v751_v5 }
 0x10e   : > { %v649_v8 = vpop.f32.mrf.mxu0  ;;  %v753_v9 = vpop.f32.mrf.mxu1 }
 0x10f   : > { %v846_v10 = vmax.f32 %v648_v6, 0.0  ;;  %v872_v11 = vmax.f32 %v752_v7, 0.0 }
 0x110   : > { %v650_v12 = vpop.f32.mrf.mxu0  ;;  %v754_v13 = vpop.f32.mrf.mxu1 }
 0x111   : > { %v1331_v14 = vpack.c.bf16 %v846_v10, %v846_v10  ;;  %v1357_v15 = vpack.c.bf16 %v872_v11, %v872_v11  ;;  %v651_v16 = vadd.f32 %v1691_v3, %v650_v12  ;;  %v755_v17 = vadd.f32 %v1691_v3, %v754_v13 }
 0x112   : > { %v652_v18 = vpop.f32.mrf.mxu0  ;;  %v756_v19 = vpop.f32.mrf.mxu1 }
 0x113   : > { %1097 = vst.msk [vmem:[%s1699_s28] sm:$0xf] %vm1096_vm0, %v1331_v14  ;;  %1123 = vst.msk [vmem:[%s1699_s28 + $0x68] sm:$0xf] %vm1096_vm0, %v1357_v15  ;;  %v847_v20 = vmax.f32 %v651_v16, 0.0  ;;  %v873_v21 = vmax.f32 %v755_v17, 0.0 }
 0x114   : > { %v655_v22 = vpop.f32.mrf.mxu0  ;;  %v759_v23 = vpop.f32.mrf.mxu1 }
 0x115   : > { %v1332_v24 = vpack.c.bf16 %v847_v20, %v847_v20  ;;  %v1358_v25 = vpack.c.bf16 %v873_v21, %v873_v21  ;;  %v656_v26 = vadd.f32 %v1691_v3, %v655_v22  ;;  %v760_v27 = vadd.f32 %v1691_v3, %v759_v23 }
 0x116   : > { %v657_v28 = vpop.f32.mrf.mxu0  ;;  %v761_v29 = vpop.f32.mrf.mxu1 }
 0x117   : > { %1098 = vst.msk [vmem:[%s1699_s28 + $0x4] sm:$0xf] %vm1096_vm0, %v1332_v24  ;;  %1124 = vst.msk [vmem:[%s1699_s28 + $0x6c] sm:$0xf] %vm1096_vm0, %v1358_v25  ;;  %v848_v30 = vmax.f32 %v656_v26, 0.0  ;;  %v874_v31 = vmax.f32 %v760_v27, 0.0 }
 0x118   : > { %v658_v32 = vpop.f32.mrf.mxu0  ;;  %v762_v33 = vpop.f32.mrf.mxu1 }
 0x119   : > { %v1333_v34 = vpack.c.bf16 %v848_v30, %v848_v30  ;;  %v1359_v35 = vpack.c.bf16 %v874_v31, %v874_v31  ;;  %v659_v36 = vadd.f32 %v1691_v3, %v658_v32  ;;  %v763_v37 = vadd.f32 %v1691_v3, %v762_v33 }
 0x11a   : > { %v660_v38 = vpop.f32.mrf.mxu0  ;;  %v764_v39 = vpop.f32.mrf.mxu1 }
 0x11b   : > { %1099 = vst.msk [vmem:[%s1699_s28 + $0x8] sm:$0xf] %vm1096_vm0, %v1333_v34  ;;  %1125 = vst.msk [vmem:[%s1699_s28 + $0x70] sm:$0xf] %vm1096_vm0, %v1359_v35  ;;  %v849_v40 = vmax.f32 %v659_v36, 0.0  ;;  %v875_v41 = vmax.f32 %v763_v37, 0.0 }
 0x11c   : > { %v663_v42 = vpop.f32.mrf.mxu0  ;;  %v767_v43 = vpop.f32.mrf.mxu1 }
 0x11d   : > { %v1334_v44 = vpack.c.bf16 %v849_v40, %v849_v40  ;;  %v1360_v45 = vpack.c.bf16 %v875_v41, %v875_v41  ;;  %v664_v46 = vadd.f32 %v1691_v3, %v663_v42  ;;  %v768_v47 = vadd.f32 %v1691_v3, %v767_v43 }
 0x11e   : > { %v665_v48 = vpop.f32.mrf.mxu0  ;;  %v769_v49 = vpop.f32.mrf.mxu1 }
 0x11f   : > { %1100 = vst.msk [vmem:[%s1699_s28 + $0xc] sm:$0xf] %vm1096_vm0, %v1334_v44  ;;  %1126 = vst.msk [vmem:[%s1699_s28 + $0x74] sm:$0xf] %vm1096_vm0, %v1360_v45  ;;  %v850_v50 = vmax.f32 %v664_v46, 0.0  ;;  %v876_v51 = vmax.f32 %v768_v47, 0.0 }
 0x120   : > { %v666_v52 = vpop.f32.mrf.mxu0  ;;  %v770_v53 = vpop.f32.mrf.mxu1 }
 0x121   : > { %v1335_v54 = vpack.c.bf16 %v850_v50, %v850_v50  ;;  %v1361_v55 = vpack.c.bf16 %v876_v51, %v876_v51  ;;  %v667_v56 = vadd.f32 %v1691_v3, %v666_v52  ;;  %v771_v57 = vadd.f32 %v1691_v3, %v770_v53 }
 0x122   : > { %v668_v58 = vpop.f32.mrf.mxu0  ;;  %v772_v59 = vpop.f32.mrf.mxu1 }
 0x123   : > { %1101 = vst.msk [vmem:[%s1699_s28 + $0x10] sm:$0xf] %vm1096_vm0, %v1335_v54  ;;  %1127 = vst.msk [vmem:[%s1699_s28 + $0x78] sm:$0xf] %vm1096_vm0, %v1361_v55  ;;  %v851_v60 = vmax.f32 %v667_v56, 0.0  ;;  %v877_v61 = vmax.f32 %v771_v57, 0.0 }
 0x124   : > { %v671_v62 = vpop.f32.mrf.mxu0  ;;  %v775_v63 = vpop.f32.mrf.mxu1 }
 0x125   : > { %v1336_v0 = vpack.c.bf16 %v851_v60, %v851_v60  ;;  %v1362_v1 = vpack.c.bf16 %v877_v61, %v877_v61  ;;  %v672_v2 = vadd.f32 %v1691_v3, %v671_v62  ;;  %v776_v4 = vadd.f32 %v1691_v3, %v775_v63 }
 0x126   : > { %v673_v5 = vpop.f32.mrf.mxu0  ;;  %v777_v6 = vpop.f32.mrf.mxu1 }
 0x127   : > { %1102 = vst.msk [vmem:[%s1699_s28 + $0x14] sm:$0xf] %vm1096_vm0, %v1336_v0  ;;  %1128 = vst.msk [vmem:[%s1699_s28 + $0x7c] sm:$0xf] %vm1096_vm0, %v1362_v1  ;;  %v852_v7 = vmax.f32 %v672_v2, 0.0  ;;  %v878_v8 = vmax.f32 %v776_v4, 0.0 }
 0x128   : > { %v674_v9 = vpop.f32.mrf.mxu0  ;;  %v778_v10 = vpop.f32.mrf.mxu1 }
 0x129   : > { %v1337_v11 = vpack.c.bf16 %v852_v7, %v852_v7  ;;  %v1363_v12 = vpack.c.bf16 %v878_v8, %v878_v8  ;;  %v675_v13 = vadd.f32 %v1691_v3, %v674_v9  ;;  %v779_v14 = vadd.f32 %v1691_v3, %v778_v10 }
 0x12a   : > { %v676_v15 = vpop.f32.mrf.mxu0  ;;  %v780_v16 = vpop.f32.mrf.mxu1 }
 0x12b   : > { %1103 = vst.msk [vmem:[%s1699_s28 + $0x18] sm:$0xf] %vm1096_vm0, %v1337_v11  ;;  %1129 = vst.msk [vmem:[%s1699_s28 + $0x80] sm:$0xf] %vm1096_vm0, %v1363_v12  ;;  %v853_v17 = vmax.f32 %v675_v13, 0.0  ;;  %v879_v18 = vmax.f32 %v779_v14, 0.0 }
 0x12c   : > { %v679_v19 = vpop.f32.mrf.mxu0  ;;  %v783_v20 = vpop.f32.mrf.mxu1 }
 0x12d   : > { %v1338_v21 = vpack.c.bf16 %v853_v17, %v853_v17  ;;  %v1364_v22 = vpack.c.bf16 %v879_v18, %v879_v18  ;;  %v680_v23 = vadd.f32 %v1691_v3, %v679_v19  ;;  %v784_v24 = vadd.f32 %v1691_v3, %v783_v20 }
 0x12e   : > { %v681_v25 = vpop.f32.mrf.mxu0  ;;  %v785_v26 = vpop.f32.mrf.mxu1 }
 0x12f   : > { %1104 = vst.msk [vmem:[%s1699_s28 + $0x1c] sm:$0xf] %vm1096_vm0, %v1338_v21  ;;  %1130 = vst.msk [vmem:[%s1699_s28 + $0x84] sm:$0xf] %vm1096_vm0, %v1364_v22  ;;  %v854_v27 = vmax.f32 %v680_v23, 0.0  ;;  %v880_v28 = vmax.f32 %v784_v24, 0.0 }
 0x130   : > { %v682_v29 = vpop.f32.mrf.mxu0  ;;  %v786_v30 = vpop.f32.mrf.mxu1 }
 0x131   : > { %v1339_v31 = vpack.c.bf16 %v854_v27, %v854_v27  ;;  %v1365_v32 = vpack.c.bf16 %v880_v28, %v880_v28  ;;  %v683_v33 = vadd.f32 %v1691_v3, %v682_v29  ;;  %v787_v34 = vadd.f32 %v1691_v3, %v786_v30 }
 0x132   : > { %v684_v35 = vpop.f32.mrf.mxu0  ;;  %v788_v36 = vpop.f32.mrf.mxu1 }
 0x133   : > { %1105 = vst.msk [vmem:[%s1699_s28 + $0x20] sm:$0xf] %vm1096_vm0, %v1339_v31  ;;  %1131 = vst.msk [vmem:[%s1699_s28 + $0x88] sm:$0xf] %vm1096_vm0, %v1365_v32  ;;  %v855_v37 = vmax.f32 %v683_v33, 0.0  ;;  %v881_v38 = vmax.f32 %v787_v34, 0.0 }
 0x134   : > { %v687_v39 = vpop.f32.mrf.mxu0  ;;  %v791_v40 = vpop.f32.mrf.mxu1 }
 0x135   : > { %v1340_v41 = vpack.c.bf16 %v855_v37, %v855_v37  ;;  %v1366_v42 = vpack.c.bf16 %v881_v38, %v881_v38  ;;  %v688_v43 = vadd.f32 %v1691_v3, %v687_v39  ;;  %v792_v44 = vadd.f32 %v1691_v3, %v791_v40 }
 0x136   : > { %v689_v45 = vpop.f32.mrf.mxu0  ;;  %v793_v46 = vpop.f32.mrf.mxu1 }
 0x137   : > { %1106 = vst.msk [vmem:[%s1699_s28 + $0x24] sm:$0xf] %vm1096_vm0, %v1340_v41  ;;  %1132 = vst.msk [vmem:[%s1699_s28 + $0x8c] sm:$0xf] %vm1096_vm0, %v1366_v42  ;;  %v856_v47 = vmax.f32 %v688_v43, 0.0  ;;  %v882_v48 = vmax.f32 %v792_v44, 0.0 }
 0x138   : > { %v690_v49 = vpop.f32.mrf.mxu0  ;;  %v794_v50 = vpop.f32.mrf.mxu1 }
 0x139   : > { %v1341_v51 = vpack.c.bf16 %v856_v47, %v856_v47  ;;  %v1367_v52 = vpack.c.bf16 %v882_v48, %v882_v48  ;;  %v691_v53 = vadd.f32 %v1691_v3, %v690_v49  ;;  %v795_v54 = vadd.f32 %v1691_v3, %v794_v50 }
 0x13a   : > { %v692_v55 = vpop.f32.mrf.mxu0  ;;  %v796_v56 = vpop.f32.mrf.mxu1 }
 0x13b   : > { %1107 = vst.msk [vmem:[%s1699_s28 + $0x28] sm:$0xf] %vm1096_vm0, %v1341_v51  ;;  %1133 = vst.msk [vmem:[%s1699_s28 + $0x90] sm:$0xf] %vm1096_vm0, %v1367_v52  ;;  %v857_v57 = vmax.f32 %v691_v53, 0.0  ;;  %v883_v58 = vmax.f32 %v795_v54, 0.0 }
 0x13c   : > { %v695_v59 = vpop.f32.mrf.mxu0  ;;  %v799_v60 = vpop.f32.mrf.mxu1 }
 0x13d   : > { %v1342_v61 = vpack.c.bf16 %v857_v57, %v857_v57  ;;  %v1368_v62 = vpack.c.bf16 %v883_v58, %v883_v58  ;;  %v696_v63 = vadd.f32 %v1691_v3, %v695_v59  ;;  %v800_v0 = vadd.f32 %v1691_v3, %v799_v60 }
 0x13e   : > { %v697_v1 = vpop.f32.mrf.mxu0  ;;  %v801_v2 = vpop.f32.mrf.mxu1 }
 0x13f   : > { %1108 = vst.msk [vmem:[%s1699_s28 + $0x2c] sm:$0xf] %vm1096_vm0, %v1342_v61  ;;  %1134 = vst.msk [vmem:[%s1699_s28 + $0x94] sm:$0xf] %vm1096_vm0, %v1368_v62  ;;  %v858_v4 = vmax.f32 %v696_v63, 0.0  ;;  %v884_v5 = vmax.f32 %v800_v0, 0.0 }
 0x140   : > { %v698_v6 = vpop.f32.mrf.mxu0  ;;  %v802_v7 = vpop.f32.mrf.mxu1 }
 0x141   : > { %v1343_v8 = vpack.c.bf16 %v858_v4, %v858_v4  ;;  %v1369_v9 = vpack.c.bf16 %v884_v5, %v884_v5  ;;  %v699_v10 = vadd.f32 %v1691_v3, %v698_v6  ;;  %v803_v11 = vadd.f32 %v1691_v3, %v802_v7 }
 0x142   : > { %v700_v12 = vpop.f32.mrf.mxu0  ;;  %v804_v13 = vpop.f32.mrf.mxu1 }
 0x143   : > { %1109 = vst.msk [vmem:[%s1699_s28 + $0x30] sm:$0xf] %vm1096_vm0, %v1343_v8  ;;  %1135 = vst.msk [vmem:[%s1699_s28 + $0x98] sm:$0xf] %vm1096_vm0, %v1369_v9  ;;  %v859_v14 = vmax.f32 %v699_v10, 0.0  ;;  %v885_v15 = vmax.f32 %v803_v11, 0.0 }
 0x144   : > { %v703_v16 = vpop.f32.mrf.mxu0  ;;  %v807_v17 = vpop.f32.mrf.mxu1 }
 0x145   : > { %v1344_v18 = vpack.c.bf16 %v859_v14, %v859_v14  ;;  %v1370_v19 = vpack.c.bf16 %v885_v15, %v885_v15  ;;  %v704_v20 = vadd.f32 %v1691_v3, %v703_v16  ;;  %v808_v21 = vadd.f32 %v1691_v3, %v807_v17 }
 0x146   : > { %v705_v22 = vpop.f32.mrf.mxu0  ;;  %v809_v23 = vpop.f32.mrf.mxu1 }
 0x147   : > { %1110 = vst.msk [vmem:[%s1699_s28 + $0x34] sm:$0xf] %vm1096_vm0, %v1344_v18  ;;  %1136 = vst.msk [vmem:[%s1699_s28 + $0x9c] sm:$0xf] %vm1096_vm0, %v1370_v19  ;;  %v860_v24 = vmax.f32 %v704_v20, 0.0  ;;  %v886_v25 = vmax.f32 %v808_v21, 0.0 }
 0x148   : > { %v706_v26 = vpop.f32.mrf.mxu0  ;;  %v810_v27 = vpop.f32.mrf.mxu1 }
 0x149   : > { %v1345_v28 = vpack.c.bf16 %v860_v24, %v860_v24  ;;  %v1371_v29 = vpack.c.bf16 %v886_v25, %v886_v25  ;;  %v707_v30 = vadd.f32 %v1691_v3, %v706_v26  ;;  %v811_v31 = vadd.f32 %v1691_v3, %v810_v27 }
 0x14a   : > { %v708_v32 = vpop.f32.mrf.mxu0  ;;  %v812_v33 = vpop.f32.mrf.mxu1 }
 0x14b   : > { %1111 = vst.msk [vmem:[%s1699_s28 + $0x38] sm:$0xf] %vm1096_vm0, %v1345_v28  ;;  %1137 = vst.msk [vmem:[%s1699_s28 + $0xa0] sm:$0xf] %vm1096_vm0, %v1371_v29  ;;  %v861_v34 = vmax.f32 %v707_v30, 0.0  ;;  %v887_v35 = vmax.f32 %v811_v31, 0.0 }
 0x14c   : > { %v711_v36 = vpop.f32.mrf.mxu0  ;;  %v815_v37 = vpop.f32.mrf.mxu1 }
 0x14d   : > { %v1346_v38 = vpack.c.bf16 %v861_v34, %v861_v34  ;;  %v1372_v39 = vpack.c.bf16 %v887_v35, %v887_v35  ;;  %v712_v40 = vadd.f32 %v1691_v3, %v711_v36  ;;  %v816_v41 = vadd.f32 %v1691_v3, %v815_v37 }
 0x14e   : > { %v713_v42 = vpop.f32.mrf.mxu0  ;;  %v817_v43 = vpop.f32.mrf.mxu1 }
 0x14f   : > { %1112 = vst.msk [vmem:[%s1699_s28 + $0x3c] sm:$0xf] %vm1096_vm0, %v1346_v38  ;;  %1138 = vst.msk [vmem:[%s1699_s28 + $0xa4] sm:$0xf] %vm1096_vm0, %v1372_v39  ;;  %v862_v44 = vmax.f32 %v712_v40, 0.0  ;;  %v888_v45 = vmax.f32 %v816_v41, 0.0 }
 0x150   : > { %v714_v46 = vpop.f32.mrf.mxu0  ;;  %v818_v47 = vpop.f32.mrf.mxu1 }
 0x151   : > { %v1347_v48 = vpack.c.bf16 %v862_v44, %v862_v44  ;;  %v1373_v49 = vpack.c.bf16 %v888_v45, %v888_v45  ;;  %v715_v50 = vadd.f32 %v1691_v3, %v714_v46  ;;  %v819_v51 = vadd.f32 %v1691_v3, %v818_v47 }
 0x152   : > { %v716_v52 = vpop.f32.mrf.mxu0  ;;  %v820_v53 = vpop.f32.mrf.mxu1 }
 0x153   : > { %1113 = vst.msk [vmem:[%s1699_s28 + $0x40] sm:$0xf] %vm1096_vm0, %v1347_v48  ;;  %1139 = vst.msk [vmem:[%s1699_s28 + $0xa8] sm:$0xf] %vm1096_vm0, %v1373_v49  ;;  %v863_v54 = vmax.f32 %v715_v50, 0.0  ;;  %v889_v55 = vmax.f32 %v819_v51, 0.0 }
 0x154   : > { %v719_v56 = vpop.f32.mrf.mxu0  ;;  %v823_v57 = vpop.f32.mrf.mxu1 }
 0x155   : > { %v1348_v58 = vpack.c.bf16 %v863_v54, %v863_v54  ;;  %v1374_v59 = vpack.c.bf16 %v889_v55, %v889_v55  ;;  %v720_v60 = vadd.f32 %v1691_v3, %v719_v56  ;;  %v824_v61 = vadd.f32 %v1691_v3, %v823_v57 }
 0x156   : > { %v721_v62 = vpop.f32.mrf.mxu0  ;;  %v825_v63 = vpop.f32.mrf.mxu1 }
 0x157   : > { %1114 = vst.msk [vmem:[%s1699_s28 + $0x44] sm:$0xf] %vm1096_vm0, %v1348_v58  ;;  %1140 = vst.msk [vmem:[%s1699_s28 + $0xac] sm:$0xf] %vm1096_vm0, %v1374_v59  ;;  %v864_v0 = vmax.f32 %v720_v60, 0.0  ;;  %v890_v1 = vmax.f32 %v824_v61, 0.0 }
 0x158   : > { %v722_v2 = vpop.f32.mrf.mxu0  ;;  %v826_v4 = vpop.f32.mrf.mxu1 }
 0x159   : > { %v1349_v5 = vpack.c.bf16 %v864_v0, %v864_v0  ;;  %v1375_v6 = vpack.c.bf16 %v890_v1, %v890_v1  ;;  %v723_v7 = vadd.f32 %v1691_v3, %v722_v2  ;;  %v827_v8 = vadd.f32 %v1691_v3, %v826_v4 }
 0x15a   : > { %v724_v9 = vpop.f32.mrf.mxu0  ;;  %v828_v10 = vpop.f32.mrf.mxu1 }
 0x15b   : > { %1115 = vst.msk [vmem:[%s1699_s28 + $0x48] sm:$0xf] %vm1096_vm0, %v1349_v5  ;;  %1141 = vst.msk [vmem:[%s1699_s28 + $0xb0] sm:$0xf] %vm1096_vm0, %v1375_v6  ;;  %v865_v11 = vmax.f32 %v723_v7, 0.0  ;;  %v891_v12 = vmax.f32 %v827_v8, 0.0 }
 0x15c   : > { %v727_v13 = vpop.f32.mrf.mxu0  ;;  %v831_v14 = vpop.f32.mrf.mxu1 }
 0x15d   : > { %v1350_v15 = vpack.c.bf16 %v865_v11, %v865_v11  ;;  %v1376_v16 = vpack.c.bf16 %v891_v12, %v891_v12  ;;  %v728_v17 = vadd.f32 %v1691_v3, %v727_v13  ;;  %v832_v18 = vadd.f32 %v1691_v3, %v831_v14 }
 0x15e   : > { %v729_v19 = vpop.f32.mrf.mxu0  ;;  %v833_v20 = vpop.f32.mrf.mxu1 }
 0x15f   : > { %1116 = vst.msk [vmem:[%s1699_s28 + $0x4c] sm:$0xf] %vm1096_vm0, %v1350_v15  ;;  %1142 = vst.msk [vmem:[%s1699_s28 + $0xb4] sm:$0xf] %vm1096_vm0, %v1376_v16  ;;  %v866_v21 = vmax.f32 %v728_v17, 0.0  ;;  %v892_v22 = vmax.f32 %v832_v18, 0.0 }
 0x160   : > { %v730_v23 = vpop.f32.mrf.mxu0  ;;  %v834_v24 = vpop.f32.mrf.mxu1 }
 0x161   : > { %v1351_v25 = vpack.c.bf16 %v866_v21, %v866_v21  ;;  %v1377_v26 = vpack.c.bf16 %v892_v22, %v892_v22  ;;  %v731_v27 = vadd.f32 %v1691_v3, %v730_v23  ;;  %v835_v28 = vadd.f32 %v1691_v3, %v834_v24 }
 0x162   : > { %v732_v29 = vpop.f32.mrf.mxu0  ;;  %v836_v30 = vpop.f32.mrf.mxu1 }
 0x163   : > { %1117 = vst.msk [vmem:[%s1699_s28 + $0x50] sm:$0xf] %vm1096_vm0, %v1351_v25  ;;  %1143 = vst.msk [vmem:[%s1699_s28 + $0xb8] sm:$0xf] %vm1096_vm0, %v1377_v26  ;;  %v867_v31 = vmax.f32 %v731_v27, 0.0  ;;  %v893_v32 = vmax.f32 %v835_v28, 0.0 }
 0x164   : > { %v735_v33 = vpop.f32.mrf.mxu0  ;;  %v839_v34 = vpop.f32.mrf.mxu1 }
 0x165   : > { %v1352_v35 = vpack.c.bf16 %v867_v31, %v867_v31  ;;  %v1378_v36 = vpack.c.bf16 %v893_v32, %v893_v32  ;;  %v736_v37 = vadd.f32 %v1691_v3, %v735_v33  ;;  %v840_v38 = vadd.f32 %v1691_v3, %v839_v34 }
 0x166   : > { %v737_v39 = vpop.f32.mrf.mxu0  ;;  %v841_v40 = vpop.f32.mrf.mxu1 }
 0x167   : > { %1118 = vst.msk [vmem:[%s1699_s28 + $0x54] sm:$0xf] %vm1096_vm0, %v1352_v35  ;;  %1144 = vst.msk [vmem:[%s1699_s28 + $0xbc] sm:$0xf] %vm1096_vm0, %v1378_v36  ;;  %v868_v41 = vmax.f32 %v736_v37, 0.0  ;;  %v894_v42 = vmax.f32 %v840_v38, 0.0 }
 0x168   : > { %v738_v43 = vpop.f32.mrf.mxu0  ;;  %v842_v44 = vpop.f32.mrf.mxu1 }
 0x169   : > { %v1353_v45 = vpack.c.bf16 %v868_v41, %v868_v41  ;;  %v1379_v46 = vpack.c.bf16 %v894_v42, %v894_v42  ;;  %v739_v47 = vadd.f32 %v1691_v3, %v738_v43  ;;  %v843_v48 = vadd.f32 %v1691_v3, %v842_v44 }
 0x16a   : > { %v740_v49 = vpop.f32.mrf.mxu0  ;;  %v844_v50 = vpop.f32.mrf.mxu1 }
 0x16b   : > { %1119 = vst.msk [vmem:[%s1699_s28 + $0x58] sm:$0xf] %vm1096_vm0, %v1353_v45  ;;  %1145 = vst.msk [vmem:[%s1699_s28 + $0xc0] sm:$0xf] %vm1096_vm0, %v1379_v46  ;;  %v869_v51 = vmax.f32 %v739_v47, 0.0  ;;  %v895_v52 = vmax.f32 %v843_v48, 0.0 }
 0x16c   : > { %v743_v53 = vpop.f32.mrf.mxu0 }
 0x16d   : > { %v1354_v54 = vpack.c.bf16 %v869_v51, %v869_v51  ;;  %v1380_v55 = vpack.c.bf16 %v895_v52, %v895_v52  ;;  %v744_v56 = vadd.f32 %v1691_v3, %v743_v53 }
 0x16e   : > { %v745_v57 = vpop.f32.mrf.mxu0 }
 0x16f   : > { %1120 = vst.msk [vmem:[%s1699_s28 + $0x5c] sm:$0xf] %vm1096_vm0, %v1354_v54  ;;  %1146 = vst.msk [vmem:[%s1699_s28 + $0xc4] sm:$0xf] %vm1096_vm0, %v1380_v55  ;;  %v870_v58 = vmax.f32 %v744_v56, 0.0 }
 0x170   : > { %v746_v59 = vpop.f32.mrf.mxu0 }
 0x171   : > { %v1355_v60 = vpack.c.bf16 %v870_v58, %v870_v58  ;;  %v747_v61 = vadd.f32 %v1691_v3, %v746_v59 }
 0x172   : > { %v748_v62 = vpop.f32.mrf.mxu0 }
 0x173   : > { %1121 = vst.msk [vmem:[%s1699_s28 + $0x60] sm:$0xf] %vm1096_vm0, %v1355_v60  ;;  %v871_v63 = vmax.f32 %v747_v61, 0.0 }
 0x175   : > { %v1356_v0 = vpack.c.bf16 %v871_v63, %v871_v63 }
 0x177   : > { %1122 = vst.msk [vmem:[%s1699_s28 + $0x64] sm:$0xf] %vm1096_vm0, %v1356_v0 }
 0x178 PF: > { %s13_s12 = sadd.s32 1, %s1519_s12  }
 0x179   : > { %p10_p4 = scmp.ge.s32.totalorder %s13_s12, 4  }
 0x17b   :  { %12 = sbr.rel (!%p10_p4) target bundleno = 1 (0x1), region = 62 }

// kernel: dqn_forward.5
= control target key start
LH: loop header
LB: loop body
LE: loop exit
PB: predicated region body
PF: predicated region fallthrough
CT: control target
= control target key end

     0   :  { %vm880_vm0 = vcmask 519168   ;;  %vm901_vm1 = vcmask 516096   ;;  %s1637_s1 = inlined_call_operand.vmem [shape: bf16[512,64], index: 1, kind: input, shape index: {}]   ;;  %s1638_s0 = inlined_call_operand.vmem [shape: bf16[162,512], index: 0, kind: input, shape index: {}]   ;;  %s1639_s2 = inlined_call_operand.vmem [shape: f32[1,64], index: 2, kind: input, shape index: {}]   ;;  %s1640_s3 = inlined_call_operand.vmem [shape: bf16[162,64], index: 3, kind: output, shape index: {}]  }
   0x1   :  { %v1190_v0 = vld [vmem:[%s1637_s1 + $0x78] sm:$0xff]   ;;  %v1194_v4 = vld [vmem:[%s1637_s1 + $0x70] sm:$0xff]   ;;  %v1198_v8 = vld [vmem:[%s1637_s1 + $0x68] sm:$0xff]  }
   0x2   :  { %v1191_v1 = vld [vmem:[%s1637_s1 + $0xf8] sm:$0xff]   ;;  %1026 = vmatprep.subr.bf16.mxu0 %v1190_v0  ;;  %v1195_v5 = vld [vmem:[%s1637_s1 + $0xf0] sm:$0xff]   ;;  %v1199_v9 = vld [vmem:[%s1637_s1 + $0xe8] sm:$0xff]  }
   0x3   :  { %v1192_v2 = vld [vmem:[%s1637_s1 + $0x38] sm:$0xff]   ;;  %1108 = vmatprep.subr.bf16.mxu1 %v1191_v1  ;;  %v1196_v6 = vld [vmem:[%s1637_s1 + $0x30] sm:$0xff]   ;;  %v1200_v10 = vld [vmem:[%s1637_s1 + $0x28] sm:$0xff]  }
   0x4   :  { %v1193_v3 = vld [vmem:[%s1637_s1 + $0xb8] sm:$0xff]   ;;  %1027 = vmatpush3.bf16.msra.mxu0 %v1192_v2  ;;  %v1197_v7 = vld [vmem:[%s1637_s1 + $0xb0] sm:$0xff]   ;;  %v1201_v11 = vld [vmem:[%s1637_s1 + $0xa8] sm:$0xff]  }
   0x5   :  { %1109 = vmatpush3.bf16.msra.mxu1 %v1193_v3  ;;  %1028 = vmatprep.subr.bf16.mxu0 %v1194_v4  ;;  %v1202_v12 = vld [vmem:[%s1637_s1 + $0x60] sm:$0xff]   ;;  %v1206_v16 = vld [vmem:[%s1637_s1 + $0x58] sm:$0xff]   ;;  %v1210_v20 = vld [vmem:[%s1637_s1 + $0x50] sm:$0xff]  }
   0x6   :  { %1110 = vmatprep.subr.bf16.mxu1 %v1195_v5  ;;  %v1203_v13 = vld [vmem:[%s1637_s1 + $0xe0] sm:$0xff]   ;;  %v1207_v17 = vld [vmem:[%s1637_s1 + $0xd8] sm:$0xff]   ;;  %v1211_v21 = vld [vmem:[%s1637_s1 + $0xd0] sm:$0xff]  }
   0x7   :  { %v1204_v14 = vld [vmem:[%s1637_s1 + $0x20] sm:$0xff]   ;;  %v1208_v18 = vld [vmem:[%s1637_s1 + $0x18] sm:$0xff]   ;;  %v1212_v22 = vld [vmem:[%s1637_s1 + $0x10] sm:$0xff]  }
   0x8   :  { %1029 = vmatpush3.bf16.msra.mxu0 %v1196_v6  ;;  %v1205_v15 = vld [vmem:[%s1637_s1 + $0xa0] sm:$0xff]   ;;  %v1209_v19 = vld [vmem:[%s1637_s1 + $0x98] sm:$0xff]   ;;  %v1213_v23 = vld [vmem:[%s1637_s1 + $0x90] sm:$0xff]  }
   0x9   :  { %1111 = vmatpush3.bf16.msra.mxu1 %v1197_v7  ;;  %1030 = vmatprep.subr.bf16.mxu0 %v1198_v8  ;;  %v1214_v24 = vld [vmem:[%s1637_s1 + $0x48] sm:$0xff]   ;;  %v1218_v28 = vld [vmem:[%s1637_s1 + $0x40] sm:$0xff]  }
   0xa   :  { %1112 = vmatprep.subr.bf16.mxu1 %v1199_v9  ;;  %v1215_v25 = vld [vmem:[%s1637_s1 + $0xc8] sm:$0xff]   ;;  %v1219_v29 = vld [vmem:[%s1637_s1 + $0xc0] sm:$0xff]  }
   0xb   :  { %v1216_v26 = vld [vmem:[%s1637_s1 + $0x8] sm:$0xff]   ;;  %v1220_v30 = vld [vmem:[%s1637_s1] sm:$0xff]  }
   0xc   :  { %1031 = vmatpush3.bf16.msra.mxu0 %v1200_v10  ;;  %v1217_v27 = vld [vmem:[%s1637_s1 + $0x88] sm:$0xff]   ;;  %v1221_v31 = vld [vmem:[%s1637_s1 + $0x80] sm:$0xff]  }
   0xd   :  { %1113 = vmatpush3.bf16.msra.mxu1 %v1201_v11  ;;  %1032 = vmatprep.subr.bf16.mxu0 %v1202_v12  ;;  %v1222_v32 = vld [vmem:[%s1638_s0] ss:$16 sps:$4 sm:$0xff]   ;;  %v1224_v33 = vld [vmem:[%s1638_s0 + $0x4] ss:$16 sps:$4 sm:$0xff]   ;;  %v1225_v34 = vld [vmem:[%s1638_s0 + $0x8] ss:$16 sps:$4 sm:$0xff]  }
   0xe   :  { %1114 = vmatprep.subr.bf16.mxu1 %v1203_v13  ;;  %v1227_v35 = vld [vmem:[%s1638_s0 + $0xc] ss:$16 sps:$4 sm:$0xff]   ;;  %566 = vmatprep.mubr.bf16.mxu0 %v1224_v33  ;;  %v1228_v36 = vld [vmem:[%s1638_s0 + $0x24] ss:$16 sps:$4 sm:$0xff]   ;;  %v1232_v38 = vld [vmem:[%s1638_s0 + $0x20] ss:$16 sps:$4 sm:$0xff]  }
   0xf   :  { %686 = vmatprep.mubr.bf16.mxu1 %v1227_v35  ;;  %v1230_v37 = vld [vmem:[%s1638_s0 + $0x2c] ss:$16 sps:$4 sm:$0xff]   ;;  %v1233_v39 = vld [vmem:[%s1638_s0 + $0x28] ss:$16 sps:$4 sm:$0xff]   ;;  %v1234_v40 = vld [vmem:[%s1638_s0 + $0x44] ss:$16 sps:$4 sm:$0xff]  }
  0x10   :  { %1033 = vmatpush3.bf16.msra.mxu0 %v1204_v14  ;;  %v1236_v41 = vld [vmem:[%s1638_s0 + $0x4c] ss:$16 sps:$4 sm:$0xff]   ;;  %v1238_v42 = vld [vmem:[%s1638_s0 + $0x40] ss:$16 sps:$4 sm:$0xff]   ;;  %v1239_v43 = vld [vmem:[%s1638_s0 + $0x48] ss:$16 sps:$4 sm:$0xff]  }
  0x11   :  { %1115 = vmatpush3.bf16.msra.mxu1 %v1205_v15  ;;  %1034 = vmatprep.subr.bf16.mxu0 %v1206_v16  ;;  %v1240_v44 = vld [vmem:[%s1638_s0 + $0x64] ss:$16 sps:$4 sm:$0xff]   ;;  %v1242_v45 = vld [vmem:[%s1638_s0 + $0x6c] ss:$16 sps:$4 sm:$0xff]   ;;  %v1244_v46 = vld [vmem:[%s1638_s0 + $0x60] ss:$16 sps:$4 sm:$0xff]  }
  0x12   :  { %1116 = vmatprep.subr.bf16.mxu1 %v1207_v17  ;;  %v1245_v47 = vld [vmem:[%s1638_s0 + $0x68] ss:$16 sps:$4 sm:$0xff]   ;;  %v1246_v48 = vld [vmem:[%s1638_s0 + $0x84] ss:$16 sps:$4 sm:$0xff]   ;;  %v1248_v49 = vld [vmem:[%s1638_s0 + $0x8c] ss:$16 sps:$4 sm:$0xff]  }
  0x13   :  { %v1250_v50 = vld [vmem:[%s1638_s0 + $0x80] ss:$16 sps:$4 sm:$0xff]   ;;  %v1251_v51 = vld [vmem:[%s1638_s0 + $0x88] ss:$16 sps:$4 sm:$0xff]   ;;  %v1252_v52 = vld [vmem:[%s1638_s0 + $0xa4] ss:$16 sps:$4 sm:$0xff]  }
  0x14   :  { %1035 = vmatpush3.bf16.msra.mxu0 %v1208_v18  ;;  %v1254_v53 = vld [vmem:[%s1638_s0 + $0xac] ss:$16 sps:$4 sm:$0xff]   ;;  %v1256_v54 = vld [vmem:[%s1638_s0 + $0xa0] ss:$16 sps:$4 sm:$0xff]   ;;  %v1257_v55 = vld [vmem:[%s1638_s0 + $0xa8] ss:$16 sps:$4 sm:$0xff]  }
  0x15   :  { %1117 = vmatpush3.bf16.msra.mxu1 %v1209_v19  ;;  %1036 = vmatprep.subr.bf16.mxu0 %v1210_v20  ;;  %v1258_v56 = vld [vmem:[%s1638_s0 + $0xc4] ss:$16 sps:$4 sm:$0xff]   ;;  %v1260_v57 = vld [vmem:[%s1638_s0 + $0xcc] ss:$16 sps:$4 sm:$0xff]   ;;  %v1262_v58 = vld [vmem:[%s1638_s0 + $0xc0] ss:$16 sps:$4 sm:$0xff]  }
  0x16   :  { %1118 = vmatprep.subr.bf16.mxu1 %v1211_v21  ;;  %v1263_v59 = vld [vmem:[%s1638_s0 + $0xc8] ss:$16 sps:$4 sm:$0xff]   ;;  %v1264_v60 = vld [vmem:[%s1638_s0 + $0xe4] ss:$16 sps:$4 sm:$0xff]   ;;  %v1266_v61 = vld [vmem:[%s1638_s0 + $0xec] ss:$16 sps:$4 sm:$0xff]  }
  0x17   :  { %v1268_v62 = vld [vmem:[%s1638_s0 + $0xe0] ss:$16 sps:$4 sm:$0xff]   ;;  %v1269_v63 = vld [vmem:[%s1638_s0 + $0xe8] ss:$16 sps:$4 sm:$0xff]   ;;  %v1270_v0 = vld [vmem:[%s1638_s0 + $0x104] ss:$16 sps:$4 sm:$0xff]  }
  0x18   :  { %1037 = vmatpush3.bf16.msra.mxu0 %v1212_v22  ;;  %v1272_v1 = vld [vmem:[%s1638_s0 + $0x10c] ss:$16 sps:$4 sm:$0xff]   ;;  %v1274_v2 = vld [vmem:[%s1638_s0 + $0x100] ss:$16 sps:$4 sm:$0xff]   ;;  %v1275_v3 = vld [vmem:[%s1638_s0 + $0x108] ss:$16 sps:$4 sm:$0xff]  }
  0x19   :  { %1119 = vmatpush3.bf16.msra.mxu1 %v1213_v23  ;;  %1038 = vmatprep.subr.bf16.mxu0 %v1214_v24  ;;  %v1276_v4 = vld [vmem:[%s1638_s0 + $0x124] ss:$16 sps:$4 sm:$0xff]   ;;  %v1278_v5 = vld [vmem:[%s1638_s0 + $0x12c] ss:$16 sps:$4 sm:$0xff]   ;;  %v1280_v8 = vld [vmem:[%s1638_s0 + $0x120] ss:$16 sps:$4 sm:$0xff]  }
  0x1a   :  { %1120 = vmatprep.subr.bf16.mxu1 %v1215_v25  ;;  %v55_v6 = vld [vmem:[%s1638_s0 + $0x140] sm:$0x11]  ;;  %v56_v7 = vld [vmem:[%s1638_s0 + $0x148] sm:$0x11] }
  0x1b   :  { %v1281_v9 = vld [vmem:[%s1638_s0 + $0x128] ss:$16 sps:$4 sm:$0xff]   ;;  %v949_v10 = vcombine.high %v55_v6, %v55_v6  ;;  %v951_v11 = vcombine.high %v56_v7, %v56_v7  ;;  %v948_v12 = vcombine.low %v55_v6, %v55_v6  ;;  %v950_v13 = vcombine.low %v56_v7, %v56_v7  ;;  %v1531_v16 = vld [vmem:[%s1639_s2] ss:$0 sm:$0xff] }
  0x1c   :  { %1039 = vmatpush3.bf16.msra.mxu0 %v1216_v26 }
  0x1d   :  { %1121 = vmatpush3.bf16.msra.mxu1 %v1217_v27  ;;  %1040 = vmatprep.subr.bf16.mxu0 %v1218_v28 }
  0x1e   :  { %1122 = vmatprep.subr.bf16.mxu1 %v1219_v29 }
  0x20   :  { %1041 = vmatpush3.bf16.msra.mxu0 %v1220_v30 }
  0x21   :  { %1123 = vmatpush3.bf16.msra.mxu1 %v1221_v31 }
  0x23   :  { %567 = vmatmul.mubr.bf16.vlgmr.msra.gmra.mxu0 %v1222_v32 }
  0x24   :  { %687 = vmatmul.mubr.bf16.vlgmr.msra.gmra.mxu1 %v1225_v34  ;;  %574 = vmatprep.mubr.bf16.mxu0 %v1228_v36 }
  0x25   :  { %694 = vmatprep.mubr.bf16.mxu1 %v1230_v37 }
  0x2b   :  { %575 = vmatmul.mubr.bf16.gmra.mxu0 %v1232_v38 }
  0x2c   :  { %695 = vmatmul.mubr.bf16.gmra.mxu1 %v1233_v39  ;;  %582 = vmatprep.mubr.bf16.mxu0 %v1234_v40 }
  0x2d   :  { %702 = vmatprep.mubr.bf16.mxu1 %v1236_v41 }
  0x33   :  { %583 = vmatmul.mubr.bf16.gmra.mxu0 %v1238_v42 }
  0x34   :  { %703 = vmatmul.mubr.bf16.gmra.mxu1 %v1239_v43  ;;  %590 = vmatprep.mubr.bf16.mxu0 %v1240_v44 }
  0x35   :  { %710 = vmatprep.mubr.bf16.mxu1 %v1242_v45 }
  0x3b   :  { %591 = vmatmul.mubr.bf16.gmra.mxu0 %v1244_v46 }
  0x3c   :  { %711 = vmatmul.mubr.bf16.gmra.mxu1 %v1245_v47  ;;  %598 = vmatprep.mubr.bf16.mxu0 %v1246_v48 }
  0x3d   :  { %718 = vmatprep.mubr.bf16.mxu1 %v1248_v49 }
  0x43   :  { %599 = vmatmul.mubr.bf16.gmra.mxu0 %v1250_v50 }
  0x44   :  { %719 = vmatmul.mubr.bf16.gmra.mxu1 %v1251_v51  ;;  %606 = vmatprep.mubr.bf16.mxu0 %v1252_v52 }
  0x45   :  { %726 = vmatprep.mubr.bf16.mxu1 %v1254_v53 }
  0x4b   :  { %607 = vmatmul.mubr.bf16.gmra.mxu0 %v1256_v54 }
  0x4c   :  { %727 = vmatmul.mubr.bf16.gmra.mxu1 %v1257_v55  ;;  %614 = vmatprep.mubr.bf16.mxu0 %v1258_v56 }
  0x4d   :  { %734 = vmatprep.mubr.bf16.mxu1 %v1260_v57 }
  0x53   :  { %615 = vmatmul.mubr.bf16.gmra.mxu0 %v1262_v58 }
  0x54   :  { %735 = vmatmul.mubr.bf16.gmra.mxu1 %v1263_v59  ;;  %622 = vmatprep.mubr.bf16.mxu0 %v1264_v60 }
  0x55   :  { %742 = vmatprep.mubr.bf16.mxu1 %v1266_v61 }
  0x5b   :  { %623 = vmatmul.mubr.bf16.gmra.mxu0 %v1268_v62 }
  0x5c   :  { %743 = vmatmul.mubr.bf16.gmra.mxu1 %v1269_v63  ;;  %630 = vmatprep.mubr.bf16.mxu0 %v1270_v0 }
  0x5d   :  { %750 = vmatprep.mubr.bf16.mxu1 %v1272_v1 }
  0x63   :  { %631 = vmatmul.mubr.bf16.gmra.mxu0 %v1274_v2 }
  0x64   :  { %751 = vmatmul.mubr.bf16.gmra.mxu1 %v1275_v3  ;;  %638 = vmatprep.mubr.bf16.mxu0 %v1276_v4 }
  0x65   :  { %758 = vmatprep.mubr.bf16.mxu1 %v1278_v5 }
  0x6b   :  { %639 = vmatmul.mubr.bf16.gmra.mxu0 %v1280_v8 }
  0x6c   :  { %759 = vmatmul.mubr.bf16.gmra.mxu1 %v1281_v9  ;;  %646 = vmatprep.mubr.bf16.mxu0 %v949_v10 }
  0x6d   :  { %766 = vmatprep.mubr.bf16.mxu1 %v951_v11 }
  0x73   :  { %647 = vmatmul.mubr.bf16.gmra.mxu0 %v948_v12 }
  0x74   :  { %767 = vmatmul.mubr.bf16.gmra.mxu1 %v950_v13 }
  0xe3   :  { %v1042_v14 = vpop.f32.mrf.mxu0 }
  0xe4   :  { %v1124_v15 = vpop.f32.mrf.mxu1 }
  0xe5   :  { %v1043_v17 = vpop.f32.mrf.mxu0 }
  0xe6   :  { %v1044_v18 = vadd.f32 %v1043_v17, %v1042_v14  ;;  %v1125_v19 = vpop.f32.mrf.mxu1 }
  0xe7   :  { %v1045_v20 = vpop.f32.mrf.mxu0  ;;  %v1126_v22 = vadd.f32 %v1125_v19, %v1124_v15 }
  0xe8   :  { %v569_v21 = vadd.f32 %v1044_v18, %v1531_v16  ;;  %v1127_v23 = vpop.f32.mrf.mxu1 }
  0xe9   :  { %v1046_v24 = vpop.f32.mrf.mxu0 }
  0xea   :  { %v689_v25 = vadd.f32 %v1126_v22, %v569_v21  ;;  %v1047_v26 = vadd.f32 %v1046_v24, %v1045_v20  ;;  %v1128_v27 = vpop.f32.mrf.mxu1 }
  0xeb   :  { %v1048_v28 = vpop.f32.mrf.mxu0  ;;  %v1129_v31 = vadd.f32 %v1128_v27, %v1127_v23 }
  0xec   :  { %v774_v29 = vmax.f32 %v689_v25, 0.0  ;;  %v572_v30 = vadd.f32 %v1047_v26, %v1531_v16  ;;  %v1130_v32 = vpop.f32.mrf.mxu1 }
  0xed   :  { %v1049_v33 = vpop.f32.mrf.mxu0 }
  0xee   :  { %v1005_v34 = vpack.c.bf16 %v774_v29, %v774_v29  ;;  %v692_v35 = vadd.f32 %v1129_v31, %v572_v30  ;;  %v1050_v36 = vadd.f32 %v1049_v33, %v1048_v28  ;;  %v1131_v37 = vpop.f32.mrf.mxu1 }
  0xef   :  { %v1051_v38 = vpop.f32.mrf.mxu0  ;;  %v1132_v41 = vadd.f32 %v1131_v37, %v1130_v32 }
  0xf0   :  { %881 = vst.msk [vmem:[%s1640_s3] sm:$0xf] %vm880_vm0, %v1005_v34  ;;  %v775_v39 = vmax.f32 %v692_v35, 0.0  ;;  %v577_v40 = vadd.f32 %v1050_v36, %v1531_v16  ;;  %v1133_v42 = vpop.f32.mrf.mxu1 }
  0xf1   :  { %v1052_v43 = vpop.f32.mrf.mxu0 }
  0xf2   :  { %v1006_v44 = vpack.c.bf16 %v775_v39, %v775_v39  ;;  %v697_v45 = vadd.f32 %v1132_v41, %v577_v40  ;;  %v1053_v46 = vadd.f32 %v1052_v43, %v1051_v38  ;;  %v1134_v47 = vpop.f32.mrf.mxu1 }
  0xf3   :  { %v1054_v48 = vpop.f32.mrf.mxu0  ;;  %v1135_v51 = vadd.f32 %v1134_v47, %v1133_v42 }
  0xf4   :  { %882 = vst.msk [vmem:[%s1640_s3 + $0x4] sm:$0xf] %vm880_vm0, %v1006_v44  ;;  %v776_v49 = vmax.f32 %v697_v45, 0.0  ;;  %v580_v50 = vadd.f32 %v1053_v46, %v1531_v16  ;;  %v1136_v52 = vpop.f32.mrf.mxu1 }
  0xf5   :  { %v1055_v53 = vpop.f32.mrf.mxu0 }
  0xf6   :  { %v1007_v54 = vpack.c.bf16 %v776_v49, %v776_v49  ;;  %v700_v55 = vadd.f32 %v1135_v51, %v580_v50  ;;  %v1056_v56 = vadd.f32 %v1055_v53, %v1054_v48  ;;  %v1137_v57 = vpop.f32.mrf.mxu1 }
  0xf7   :  { %v1057_v58 = vpop.f32.mrf.mxu0  ;;  %v1138_v61 = vadd.f32 %v1137_v57, %v1136_v52 }
  0xf8   :  { %883 = vst.msk [vmem:[%s1640_s3 + $0x8] sm:$0xf] %vm880_vm0, %v1007_v54  ;;  %v777_v59 = vmax.f32 %v700_v55, 0.0  ;;  %v585_v60 = vadd.f32 %v1056_v56, %v1531_v16  ;;  %v1139_v62 = vpop.f32.mrf.mxu1 }
  0xf9   :  { %v1058_v63 = vpop.f32.mrf.mxu0 }
  0xfa   :  { %v1008_v0 = vpack.c.bf16 %v777_v59, %v777_v59  ;;  %v705_v1 = vadd.f32 %v1138_v61, %v585_v60  ;;  %v1059_v2 = vadd.f32 %v1058_v63, %v1057_v58  ;;  %v1140_v3 = vpop.f32.mrf.mxu1 }
  0xfb   :  { %v1060_v4 = vpop.f32.mrf.mxu0  ;;  %v1141_v7 = vadd.f32 %v1140_v3, %v1139_v62 }
  0xfc   :  { %884 = vst.msk [vmem:[%s1640_s3 + $0xc] sm:$0xf] %vm880_vm0, %v1008_v0  ;;  %v778_v5 = vmax.f32 %v705_v1, 0.0  ;;  %v588_v6 = vadd.f32 %v1059_v2, %v1531_v16  ;;  %v1142_v8 = vpop.f32.mrf.mxu1 }
  0xfd   :  { %v1061_v9 = vpop.f32.mrf.mxu0 }
  0xfe   :  { %v1009_v10 = vpack.c.bf16 %v778_v5, %v778_v5  ;;  %v708_v11 = vadd.f32 %v1141_v7, %v588_v6  ;;  %v1062_v12 = vadd.f32 %v1061_v9, %v1060_v4  ;;  %v1143_v13 = vpop.f32.mrf.mxu1 }
  0xff   :  { %v1063_v14 = vpop.f32.mrf.mxu0  ;;  %v1144_v18 = vadd.f32 %v1143_v13, %v1142_v8 }
 0x100   :  { %885 = vst.msk [vmem:[%s1640_s3 + $0x10] sm:$0xf] %vm880_vm0, %v1009_v10  ;;  %v779_v15 = vmax.f32 %v708_v11, 0.0  ;;  %v593_v17 = vadd.f32 %v1062_v12, %v1531_v16  ;;  %v1145_v19 = vpop.f32.mrf.mxu1 }
 0x101   :  { %v1064_v20 = vpop.f32.mrf.mxu0 }
 0x102   :  { %v1010_v21 = vpack.c.bf16 %v779_v15, %v779_v15  ;;  %v713_v22 = vadd.f32 %v1144_v18, %v593_v17  ;;  %v1065_v23 = vadd.f32 %v1064_v20, %v1063_v14  ;;  %v1146_v24 = vpop.f32.mrf.mxu1 }
 0x103   :  { %v1066_v25 = vpop.f32.mrf.mxu0  ;;  %v1147_v28 = vadd.f32 %v1146_v24, %v1145_v19 }
 0x104   :  { %886 = vst.msk [vmem:[%s1640_s3 + $0x14] sm:$0xf] %vm880_vm0, %v1010_v21  ;;  %v780_v26 = vmax.f32 %v713_v22, 0.0  ;;  %v596_v27 = vadd.f32 %v1065_v23, %v1531_v16  ;;  %v1148_v29 = vpop.f32.mrf.mxu1 }
 0x105   :  { %v1067_v30 = vpop.f32.mrf.mxu0 }
 0x106   :  { %v1011_v31 = vpack.c.bf16 %v780_v26, %v780_v26  ;;  %v716_v32 = vadd.f32 %v1147_v28, %v596_v27  ;;  %v1068_v33 = vadd.f32 %v1067_v30, %v1066_v25  ;;  %v1149_v34 = vpop.f32.mrf.mxu1 }
 0x107   :  { %v1069_v35 = vpop.f32.mrf.mxu0  ;;  %v1150_v38 = vadd.f32 %v1149_v34, %v1148_v29 }
 0x108   :  { %887 = vst.msk [vmem:[%s1640_s3 + $0x18] sm:$0xf] %vm880_vm0, %v1011_v31  ;;  %v781_v36 = vmax.f32 %v716_v32, 0.0  ;;  %v601_v37 = vadd.f32 %v1068_v33, %v1531_v16  ;;  %v1151_v39 = vpop.f32.mrf.mxu1 }
 0x109   :  { %v1070_v40 = vpop.f32.mrf.mxu0 }
 0x10a   :  { %v1012_v41 = vpack.c.bf16 %v781_v36, %v781_v36  ;;  %v721_v42 = vadd.f32 %v1150_v38, %v601_v37  ;;  %v1071_v43 = vadd.f32 %v1070_v40, %v1069_v35  ;;  %v1152_v44 = vpop.f32.mrf.mxu1 }
 0x10b   :  { %v1072_v45 = vpop.f32.mrf.mxu0  ;;  %v1153_v48 = vadd.f32 %v1152_v44, %v1151_v39 }
 0x10c   :  { %888 = vst.msk [vmem:[%s1640_s3 + $0x1c] sm:$0xf] %vm880_vm0, %v1012_v41  ;;  %v782_v46 = vmax.f32 %v721_v42, 0.0  ;;  %v604_v47 = vadd.f32 %v1071_v43, %v1531_v16  ;;  %v1154_v49 = vpop.f32.mrf.mxu1 }
 0x10d   :  { %v1073_v50 = vpop.f32.mrf.mxu0 }
 0x10e   :  { %v1013_v51 = vpack.c.bf16 %v782_v46, %v782_v46  ;;  %v724_v52 = vadd.f32 %v1153_v48, %v604_v47  ;;  %v1074_v53 = vadd.f32 %v1073_v50, %v1072_v45  ;;  %v1155_v54 = vpop.f32.mrf.mxu1 }
 0x10f   :  { %v1075_v55 = vpop.f32.mrf.mxu0  ;;  %v1156_v58 = vadd.f32 %v1155_v54, %v1154_v49 }
 0x110   :  { %889 = vst.msk [vmem:[%s1640_s3 + $0x20] sm:$0xf] %vm880_vm0, %v1013_v51  ;;  %v783_v56 = vmax.f32 %v724_v52, 0.0  ;;  %v609_v57 = vadd.f32 %v1074_v53, %v1531_v16  ;;  %v1157_v59 = vpop.f32.mrf.mxu1 }
 0x111   :  { %v1076_v60 = vpop.f32.mrf.mxu0 }
 0x112   :  { %v1014_v61 = vpack.c.bf16 %v783_v56, %v783_v56  ;;  %v729_v62 = vadd.f32 %v1156_v58, %v609_v57  ;;  %v1077_v63 = vadd.f32 %v1076_v60, %v1075_v55  ;;  %v1158_v0 = vpop.f32.mrf.mxu1 }
 0x113   :  { %v1078_v1 = vpop.f32.mrf.mxu0  ;;  %v1159_v4 = vadd.f32 %v1158_v0, %v1157_v59 }
 0x114   :  { %890 = vst.msk [vmem:[%s1640_s3 + $0x24] sm:$0xf] %vm880_vm0, %v1014_v61  ;;  %v784_v2 = vmax.f32 %v729_v62, 0.0  ;;  %v612_v3 = vadd.f32 %v1077_v63, %v1531_v16  ;;  %v1160_v5 = vpop.f32.mrf.mxu1 }
 0x115   :  { %v1079_v6 = vpop.f32.mrf.mxu0 }
 0x116   :  { %v1015_v7 = vpack.c.bf16 %v784_v2, %v784_v2  ;;  %v732_v8 = vadd.f32 %v1159_v4, %v612_v3  ;;  %v1080_v9 = vadd.f32 %v1079_v6, %v1078_v1  ;;  %v1161_v10 = vpop.f32.mrf.mxu1 }
 0x117   :  { %v1081_v11 = vpop.f32.mrf.mxu0  ;;  %v1162_v14 = vadd.f32 %v1161_v10, %v1160_v5 }
 0x118   :  { %891 = vst.msk [vmem:[%s1640_s3 + $0x28] sm:$0xf] %vm880_vm0, %v1015_v7  ;;  %v785_v12 = vmax.f32 %v732_v8, 0.0  ;;  %v617_v13 = vadd.f32 %v1080_v9, %v1531_v16  ;;  %v1163_v15 = vpop.f32.mrf.mxu1 }
 0x119   :  { %v1082_v17 = vpop.f32.mrf.mxu0 }
 0x11a   :  { %v1016_v18 = vpack.c.bf16 %v785_v12, %v785_v12  ;;  %v737_v19 = vadd.f32 %v1162_v14, %v617_v13  ;;  %v1083_v20 = vadd.f32 %v1082_v17, %v1081_v11  ;;  %v1164_v21 = vpop.f32.mrf.mxu1 }
 0x11b   :  { %v1084_v22 = vpop.f32.mrf.mxu0  ;;  %v1165_v25 = vadd.f32 %v1164_v21, %v1163_v15 }
 0x11c   :  { %892 = vst.msk [vmem:[%s1640_s3 + $0x2c] sm:$0xf] %vm880_vm0, %v1016_v18  ;;  %v786_v23 = vmax.f32 %v737_v19, 0.0  ;;  %v620_v24 = vadd.f32 %v1083_v20, %v1531_v16  ;;  %v1166_v26 = vpop.f32.mrf.mxu1 }
 0x11d   :  { %v1085_v27 = vpop.f32.mrf.mxu0 }
 0x11e   :  { %v1017_v28 = vpack.c.bf16 %v786_v23, %v786_v23  ;;  %v740_v29 = vadd.f32 %v1165_v25, %v620_v24  ;;  %v1086_v30 = vadd.f32 %v1085_v27, %v1084_v22  ;;  %v1167_v31 = vpop.f32.mrf.mxu1 }
 0x11f   :  { %v1087_v32 = vpop.f32.mrf.mxu0  ;;  %v1168_v35 = vadd.f32 %v1167_v31, %v1166_v26 }
 0x120   :  { %893 = vst.msk [vmem:[%s1640_s3 + $0x30] sm:$0xf] %vm880_vm0, %v1017_v28  ;;  %v787_v33 = vmax.f32 %v740_v29, 0.0  ;;  %v625_v34 = vadd.f32 %v1086_v30, %v1531_v16  ;;  %v1169_v36 = vpop.f32.mrf.mxu1 }
 0x121   :  { %v1088_v37 = vpop.f32.mrf.mxu0 }
 0x122   :  { %v1018_v38 = vpack.c.bf16 %v787_v33, %v787_v33  ;;  %v745_v39 = vadd.f32 %v1168_v35, %v625_v34  ;;  %v1089_v40 = vadd.f32 %v1088_v37, %v1087_v32  ;;  %v1170_v41 = vpop.f32.mrf.mxu1 }
 0x123   :  { %v1090_v42 = vpop.f32.mrf.mxu0  ;;  %v1171_v45 = vadd.f32 %v1170_v41, %v1169_v36 }
 0x124   :  { %894 = vst.msk [vmem:[%s1640_s3 + $0x34] sm:$0xf] %vm880_vm0, %v1018_v38  ;;  %v788_v43 = vmax.f32 %v745_v39, 0.0  ;;  %v628_v44 = vadd.f32 %v1089_v40, %v1531_v16  ;;  %v1172_v46 = vpop.f32.mrf.mxu1 }
 0x125   :  { %v1091_v47 = vpop.f32.mrf.mxu0 }
 0x126   :  { %v1019_v48 = vpack.c.bf16 %v788_v43, %v788_v43  ;;  %v748_v49 = vadd.f32 %v1171_v45, %v628_v44  ;;  %v1092_v50 = vadd.f32 %v1091_v47, %v1090_v42  ;;  %v1173_v51 = vpop.f32.mrf.mxu1 }
 0x127   :  { %v1093_v52 = vpop.f32.mrf.mxu0  ;;  %v1174_v55 = vadd.f32 %v1173_v51, %v1172_v46 }
 0x128   :  { %895 = vst.msk [vmem:[%s1640_s3 + $0x38] sm:$0xf] %vm880_vm0, %v1019_v48  ;;  %v789_v53 = vmax.f32 %v748_v49, 0.0  ;;  %v633_v54 = vadd.f32 %v1092_v50, %v1531_v16  ;;  %v1175_v56 = vpop.f32.mrf.mxu1 }
 0x129   :  { %v1094_v57 = vpop.f32.mrf.mxu0 }
 0x12a   :  { %v1020_v58 = vpack.c.bf16 %v789_v53, %v789_v53  ;;  %v753_v59 = vadd.f32 %v1174_v55, %v633_v54  ;;  %v1095_v60 = vadd.f32 %v1094_v57, %v1093_v52  ;;  %v1176_v61 = vpop.f32.mrf.mxu1 }
 0x12b   :  { %v1096_v62 = vpop.f32.mrf.mxu0  ;;  %v1177_v1 = vadd.f32 %v1176_v61, %v1175_v56 }
 0x12c   :  { %896 = vst.msk [vmem:[%s1640_s3 + $0x3c] sm:$0xf] %vm880_vm0, %v1020_v58  ;;  %v790_v63 = vmax.f32 %v753_v59, 0.0  ;;  %v636_v0 = vadd.f32 %v1095_v60, %v1531_v16  ;;  %v1178_v2 = vpop.f32.mrf.mxu1 }
 0x12d   :  { %v1097_v3 = vpop.f32.mrf.mxu0 }
 0x12e   :  { %v1021_v4 = vpack.c.bf16 %v790_v63, %v790_v63  ;;  %v756_v5 = vadd.f32 %v1177_v1, %v636_v0  ;;  %v1098_v6 = vadd.f32 %v1097_v3, %v1096_v62  ;;  %v1179_v7 = vpop.f32.mrf.mxu1 }
 0x12f   :  { %v1099_v8 = vpop.f32.mrf.mxu0  ;;  %v1180_v11 = vadd.f32 %v1179_v7, %v1178_v2 }
 0x130   :  { %897 = vst.msk [vmem:[%s1640_s3 + $0x40] sm:$0xf] %vm880_vm0, %v1021_v4  ;;  %v791_v9 = vmax.f32 %v756_v5, 0.0  ;;  %v641_v10 = vadd.f32 %v1098_v6, %v1531_v16  ;;  %v1181_v12 = vpop.f32.mrf.mxu1 }
 0x131   :  { %v1100_v13 = vpop.f32.mrf.mxu0 }
 0x132   :  { %v1022_v14 = vpack.c.bf16 %v791_v9, %v791_v9  ;;  %v761_v15 = vadd.f32 %v1180_v11, %v641_v10  ;;  %v1101_v17 = vadd.f32 %v1100_v13, %v1099_v8  ;;  %v1182_v18 = vpop.f32.mrf.mxu1 }
 0x133   :  { %v1102_v19 = vpop.f32.mrf.mxu0  ;;  %v1183_v22 = vadd.f32 %v1182_v18, %v1181_v12 }
 0x134   :  { %898 = vst.msk [vmem:[%s1640_s3 + $0x44] sm:$0xf] %vm880_vm0, %v1022_v14  ;;  %v792_v20 = vmax.f32 %v761_v15, 0.0  ;;  %v644_v21 = vadd.f32 %v1101_v17, %v1531_v16  ;;  %v1184_v23 = vpop.f32.mrf.mxu1 }
 0x135   :  { %v1103_v24 = vpop.f32.mrf.mxu0 }
 0x136   :  { %v1023_v25 = vpack.c.bf16 %v792_v20, %v792_v20  ;;  %v764_v26 = vadd.f32 %v1183_v22, %v644_v21  ;;  %v1104_v27 = vadd.f32 %v1103_v24, %v1102_v19  ;;  %v1185_v28 = vpop.f32.mrf.mxu1 }
 0x137   :  { %v1105_v29 = vpop.f32.mrf.mxu0  ;;  %v1186_v32 = vadd.f32 %v1185_v28, %v1184_v23 }
 0x138   :  { %899 = vst.msk [vmem:[%s1640_s3 + $0x48] sm:$0xf] %vm880_vm0, %v1023_v25  ;;  %v793_v30 = vmax.f32 %v764_v26, 0.0  ;;  %v649_v31 = vadd.f32 %v1104_v27, %v1531_v16  ;;  %v1187_v33 = vpop.f32.mrf.mxu1 }
 0x139   :  { %v1106_v34 = vpop.f32.mrf.mxu0 }
 0x13a   :  { %v1024_v35 = vpack.c.bf16 %v793_v30, %v793_v30  ;;  %v769_v36 = vadd.f32 %v1186_v32, %v649_v31  ;;  %v1188_v37 = vpop.f32.mrf.mxu1 }
 0x13c   :  { %900 = vst.msk [vmem:[%s1640_s3 + $0x4c] sm:$0xf] %vm880_vm0, %v1024_v35  ;;  %v794_v38 = vmax.f32 %v769_v36, 0.0 }
 0x13e   :  { %v1025_v39 = vpack.c.bf16 %v794_v38, %v794_v38 }
 0x140   :  { %902 = vst.msk [vmem:[%s1640_s3 + $0x50] sm:$0x1] %vm901_vm1, %v1025_v39 }

// kernel: dqn_forward.6
= control target key start
LH: loop header
LB: loop body
LE: loop exit
PB: predicated region body
PF: predicated region fallthrough
CT: control target
= control target key end

     0   :  { %v1248_v34 = vmov 0.0   ;;  %vm1249_vm0 = vmmov 0   ;;  %vm516_vm1 = vcmask 523264   ;;  %vm868_vm2 = vcmask 519168   ;;  %s1647_s1 = inlined_call_operand.vmem [shape: bf16[576,64], index: 1, kind: input, shape index: {}]   ;;  %s1648_s0 = inlined_call_operand.vmem [shape: bf16[98,576], index: 0, kind: input, shape index: {}]   ;;  %s1649_s2 = inlined_call_operand.vmem [shape: f32[1,64], index: 2, kind: input, shape index: {}]   ;;  %s1650_s3 = inlined_call_operand.vmem [shape: bf16[98,64], index: 3, kind: output, shape index: {}]  }
   0x1   :  { %v1165_v0 = vld [vmem:[%s1647_s1 + $0x78] sm:$0xff]   ;;  %v1169_v4 = vld [vmem:[%s1647_s1 + $0x70] sm:$0xff]   ;;  %v1173_v8 = vld [vmem:[%s1647_s1 + $0x68] sm:$0xff]   ;;  %vm881_vm3 = vcmask 516096  }
   0x2   :  { %v1166_v1 = vld [vmem:[%s1647_s1 + $0xf8] sm:$0xff]   ;;  %992 = vmatprep.subr.bf16.mxu0 %v1165_v0  ;;  %v1170_v5 = vld [vmem:[%s1647_s1 + $0xf0] sm:$0xff]   ;;  %v1174_v9 = vld [vmem:[%s1647_s1 + $0xe8] sm:$0xff]  }
   0x3   :  { %v1167_v2 = vld [vmem:[%s1647_s1 + $0x38] sm:$0xff]   ;;  %1050 = vmatprep.subr.bf16.mxu1 %v1166_v1  ;;  %v1171_v6 = vld [vmem:[%s1647_s1 + $0x30] sm:$0xff]   ;;  %v1175_v10 = vld [vmem:[%s1647_s1 + $0x28] sm:$0xff]  }
   0x4   :  { %v1168_v3 = vld [vmem:[%s1647_s1 + $0xb8] sm:$0xff]   ;;  %993 = vmatpush3.bf16.msra.mxu0 %v1167_v2  ;;  %v1172_v7 = vld [vmem:[%s1647_s1 + $0xb0] sm:$0xff]   ;;  %v1176_v11 = vld [vmem:[%s1647_s1 + $0xa8] sm:$0xff]  }
   0x5   :  { %1051 = vmatpush3.bf16.msra.mxu1 %v1168_v3  ;;  %994 = vmatprep.subr.bf16.mxu0 %v1169_v4  ;;  %v1177_v12 = vld [vmem:[%s1647_s1 + $0x60] sm:$0xff]   ;;  %v1181_v16 = vld [vmem:[%s1647_s1 + $0x58] sm:$0xff]   ;;  %v1185_v20 = vld [vmem:[%s1647_s1 + $0x50] sm:$0xff]  }
   0x6   :  { %1052 = vmatprep.subr.bf16.mxu1 %v1170_v5  ;;  %v1178_v13 = vld [vmem:[%s1647_s1 + $0xe0] sm:$0xff]   ;;  %v1182_v17 = vld [vmem:[%s1647_s1 + $0xd8] sm:$0xff]   ;;  %v1186_v21 = vld [vmem:[%s1647_s1 + $0xd0] sm:$0xff]  }
   0x7   :  { %v1179_v14 = vld [vmem:[%s1647_s1 + $0x20] sm:$0xff]   ;;  %v1183_v18 = vld [vmem:[%s1647_s1 + $0x18] sm:$0xff]   ;;  %v1187_v22 = vld [vmem:[%s1647_s1 + $0x10] sm:$0xff]  }
   0x8   :  { %995 = vmatpush3.bf16.msra.mxu0 %v1171_v6  ;;  %v1180_v15 = vld [vmem:[%s1647_s1 + $0xa0] sm:$0xff]   ;;  %v1184_v19 = vld [vmem:[%s1647_s1 + $0x98] sm:$0xff]   ;;  %v1188_v23 = vld [vmem:[%s1647_s1 + $0x90] sm:$0xff]  }
   0x9   :  { %1053 = vmatpush3.bf16.msra.mxu1 %v1172_v7  ;;  %996 = vmatprep.subr.bf16.mxu0 %v1173_v8  ;;  %v1189_v24 = vld [vmem:[%s1647_s1 + $0x48] sm:$0xff]   ;;  %v1193_v28 = vld [vmem:[%s1647_s1 + $0x40] sm:$0xff]   ;;  %v1203_v37 = vld [vmem:[%s1647_s1 + $0x118] sm:$0xff]  }
   0xa   :  { %1054 = vmatprep.subr.bf16.mxu1 %v1174_v9  ;;  %v1190_v25 = vld [vmem:[%s1647_s1 + $0xc8] sm:$0xff]   ;;  %v1194_v29 = vld [vmem:[%s1647_s1 + $0xc0] sm:$0xff]   ;;  %v1214_v43 = vld [vmem:[%s1647_s1 + $0x110] sm:$0xff]  }
   0xb   :  { %v1191_v26 = vld [vmem:[%s1647_s1 + $0x8] sm:$0xff]   ;;  %v1195_v30 = vld [vmem:[%s1647_s1] sm:$0xff]   ;;  %v1212_v44 = vld [vmem:[%s1648_s0 + $0x5c] ss:$20 sps:$4 sm:$0xff]  }
   0xc   :  { %997 = vmatpush3.bf16.msra.mxu0 %v1175_v10  ;;  %v1192_v27 = vld [vmem:[%s1647_s1 + $0x88] sm:$0xff]   ;;  %v1196_v31 = vld [vmem:[%s1647_s1 + $0x80] sm:$0xff]   ;;  %v1217_v48 = vld [vmem:[%s1648_s0 + $0x7c] ss:$20 sps:$4 sm:$0xff]  }
   0xd   :  { %1055 = vmatpush3.bf16.msra.mxu1 %v1176_v11  ;;  %998 = vmatprep.subr.bf16.mxu0 %v1177_v12  ;;  %v1197_v32 = vld [vmem:[%s1648_s0] ss:$20 sps:$4 sm:$0xff]   ;;  %v1199_v33 = vld [vmem:[%s1648_s0 + $0x4] ss:$20 sps:$4 sm:$0xff]   ;;  %v1200_v35 = vld [vmem:[%s1648_s0 + $0x8] ss:$20 sps:$4 sm:$0xff]  }
   0xe   :  { %1056 = vmatprep.subr.bf16.mxu1 %v1178_v13  ;;  %v1202_v36 = vld [vmem:[%s1648_s0 + $0xc] ss:$20 sps:$4 sm:$0xff]   ;;  %570 = vmatprep.mubr.bf16.mxu0 %v1199_v33  ;;  %v1206_v39 = vld [vmem:[%s1648_s0 + $0x34] ss:$20 sps:$4 sm:$0xff]   ;;  %v1209_v41 = vld [vmem:[%s1648_s0 + $0x30] ss:$20 sps:$4 sm:$0xff]  }
   0xf   :  { %658 = vmatprep.mubr.bf16.mxu1 %v1202_v36  ;;  %v1204_v38 = vld [vmem:[%s1648_s0 + $0x2c] ss:$20 sps:$4 sm:$0xff]   ;;  %v1208_v40 = vld [vmem:[%s1648_s0 + $0x28] ss:$20 sps:$4 sm:$0xff]   ;;  %v1215_v46 = vld [vmem:[%s1648_s0 + $0x50] ss:$20 sps:$4 sm:$0xff]  }
  0x10   :  { %999 = vmatpush3.bf16.msra.mxu0 %v1179_v14  ;;  %v1210_v42 = vld [vmem:[%s1648_s0 + $0x54] ss:$20 sps:$4 sm:$0xff]   ;;  %v1216_v47 = vld [vmem:[%s1648_s0 + $0x58] ss:$20 sps:$4 sm:$0xff]   ;;  %v1236_v50 = vld [vmem:[%s1647_s1 + $0x100] sm:$0xff]  }
  0x11   :  { %1057 = vmatpush3.bf16.msra.mxu1 %v1180_v15  ;;  %1000 = vmatprep.subr.bf16.mxu0 %v1181_v16  ;;  %v1223_v45 = vld [vmem:[%s1647_s1 + $0x108] sm:$0xff]   ;;  %v1219_v49 = vld [vmem:[%s1648_s0 + $0x84] ss:$20 sps:$4 sm:$0xff]   ;;  %v1222_v52 = vld [vmem:[%s1648_s0 + $0x80] ss:$20 sps:$4 sm:$0xff]  }
  0x12   :  { %1058 = vmatprep.subr.bf16.mxu1 %v1182_v17  ;;  %v1221_v51 = vld [vmem:[%s1648_s0 + $0x78] ss:$20 sps:$4 sm:$0xff]   ;;  %v1228_v55 = vld [vmem:[%s1648_s0 + $0xa0] ss:$20 sps:$4 sm:$0xff]   ;;  %v1229_v56 = vld [vmem:[%s1648_s0 + $0xa8] ss:$20 sps:$4 sm:$0xff]  }
  0x13   :  { %v1224_v53 = vld [vmem:[%s1648_s0 + $0xa4] ss:$20 sps:$4 sm:$0xff]   ;;  %v1226_v54 = vld [vmem:[%s1648_s0 + $0xac] ss:$20 sps:$4 sm:$0xff]   ;;  %v1232_v58 = vld [vmem:[%s1648_s0 + $0xd4] ss:$20 sps:$4 sm:$0xff]  }
  0x14   :  { %1001 = vmatpush3.bf16.msra.mxu0 %v1183_v18  ;;  %v1230_v57 = vld [vmem:[%s1648_s0 + $0xcc] ss:$20 sps:$4 sm:$0xff]   ;;  %v51_v59 = vld [vmem:[%s1648_s0 + $0xf0] sm:$0x11]  ;;  %v52_v60 = vld [vmem:[%s1648_s0 + $0xf8] sm:$0x11] }
  0x15   :  { %1059 = vmatpush3.bf16.msra.mxu1 %v1184_v19  ;;  %1002 = vmatprep.subr.bf16.mxu0 %v1185_v20  ;;  %v1234_v61 = vld [vmem:[%s1648_s0 + $0xc8] ss:$20 sps:$4 sm:$0xff]   ;;  %v1235_v62 = vld [vmem:[%s1648_s0 + $0xd0] ss:$20 sps:$4 sm:$0xff]   ;;  %v919_v63 = vcombine.high %v51_v59, %v51_v59  ;;  %v921_v0 = vcombine.high %v52_v60, %v52_v60  ;;  %v918_v1 = vcombine.low %v51_v59, %v51_v59  ;;  %v1243_v5 = vld [vmem:[%s1648_s0 + $0x38] ss:$20 sps:$4 sm:$0xff]  }
  0x16   :  { %1060 = vmatprep.subr.bf16.mxu1 %v1186_v21  ;;  %v920_v2 = vcombine.low %v52_v60, %v52_v60  ;;  %v1241_v3 = vld [vmem:[%s1648_s0 + $0x10] ss:$20 sps:$4 sm:$0xff]   ;;  %v1244_v6 = vld [vmem:[%s1648_s0 + $0xd8] ss:$20 sps:$4 sm:$0xff]   ;;  %v1245_v7 = vld [vmem:[%s1648_s0 + $0x60] ss:$20 sps:$4 sm:$0xff]  }
  0x17   :  { %v1242_v4 = vld [vmem:[%s1648_s0 + $0xb0] ss:$20 sps:$4 sm:$0xff]   ;;  %v1246_v8 = vld [vmem:[%s1648_s0 + $0x100] ss:$0 sps:$4 sm:$0x11]  }
  0x18   :  { %1003 = vmatpush3.bf16.msra.mxu0 %v1187_v22  ;;  %v1247_v9 = vld [vmem:[%s1648_s0 + $0x88] ss:$20 sps:$4 sm:$0xff]   ;;  %v1553_v59 = vld [vmem:[%s1649_s2] ss:$0 sm:$0xff] }
  0x19   :  { %1061 = vmatpush3.bf16.msra.mxu1 %v1188_v23  ;;  %1004 = vmatprep.subr.bf16.mxu0 %v1189_v24 }
  0x1a   :  { %1062 = vmatprep.subr.bf16.mxu1 %v1190_v25 }
  0x1c   :  { %1005 = vmatpush3.bf16.msra.mxu0 %v1191_v26 }
  0x1d   :  { %1063 = vmatpush3.bf16.msra.mxu1 %v1192_v27  ;;  %1006 = vmatprep.subr.bf16.mxu0 %v1193_v28 }
  0x1e   :  { %1064 = vmatprep.subr.bf16.mxu1 %v1194_v29 }
  0x20   :  { %1007 = vmatpush3.bf16.msra.mxu0 %v1195_v30 }
  0x21   :  { %1065 = vmatpush3.bf16.msra.mxu1 %v1196_v31  ;;  %1119 = vmatprep.subr.bf16.mxu0 %v1248_v34 }
  0x22   :  { %1155 = vmatprep.subr.bf16.mxu1 %v1248_v34 }
  0x23   :  { %571 = vmatmul.mubr.bf16.vlgmr.msra.gmra.mxu0 %v1197_v32 }
  0x24   :  { %659 = vmatmul.mubr.bf16.vlgmr.msra.gmra.mxu1 %v1200_v35  ;;  %1120 = vmatpush3.bf16.msra.mxu0 %v1203_v37 }
  0x25   :  { %578 = vmatprep.mubr.bf16.mxu0 %v1204_v38  ;;  %1159 = vmatpush3.bf16.msra.mxu1 %v1203_v37 }
  0x26   :  { %666 = vmatprep.mubr.bf16.mxu1 %v1206_v39  ;;  %1121 = vmatprep.subr.bf16.mxu0 %v1248_v34 }
  0x27   :  { %1156 = vmatprep.subr.bf16.mxu1 %v1248_v34 }
  0x28   :  { %1122 = vmatpush3.bf16.msra.mxu0 %v1214_v43 }
  0x29   :  { %1160 = vmatpush3.bf16.msra.mxu1 %v1214_v43  ;;  %1123 = vmatprep.subr.bf16.mxu0 %v1248_v34 }
  0x2a   :  { %1157 = vmatprep.subr.bf16.mxu1 %v1248_v34 }
  0x2b   :  { %579 = vmatmul.mubr.bf16.gmra.mxu0 %v1208_v40 }
  0x2c   :  { %667 = vmatmul.mubr.bf16.gmra.mxu1 %v1209_v41  ;;  %586 = vmatprep.mubr.bf16.mxu0 %v1210_v42 }
  0x2d   :  { %674 = vmatprep.mubr.bf16.mxu1 %v1212_v44  ;;  %1124 = vmatpush3.bf16.msra.mxu0 %v1223_v45 }
  0x2e   :  { %1161 = vmatpush3.bf16.msra.mxu1 %v1223_v45  ;;  %1125 = vmatprep.subr.bf16.mxu0 %v1248_v34 }
  0x2f   :  { %1158 = vmatprep.subr.bf16.mxu1 %v1248_v34 }
  0x31   :  { %1126 = vmatpush3.bf16.msra.mxu0 %v1236_v50 }
  0x32   :  { %1162 = vmatpush3.bf16.msra.mxu1 %v1236_v50 }
  0x33   :  { %587 = vmatmul.mubr.bf16.gmra.mxu0 %v1215_v46 }
  0x34   :  { %675 = vmatmul.mubr.bf16.gmra.mxu1 %v1216_v47  ;;  %594 = vmatprep.mubr.bf16.mxu0 %v1217_v48 }
  0x35   :  { %682 = vmatprep.mubr.bf16.mxu1 %v1219_v49 }
  0x3b   :  { %595 = vmatmul.mubr.bf16.gmra.mxu0 %v1221_v51 }
  0x3c   :  { %683 = vmatmul.mubr.bf16.gmra.mxu1 %v1222_v52  ;;  %602 = vmatprep.mubr.bf16.mxu0 %v1224_v53 }
  0x3d   :  { %690 = vmatprep.mubr.bf16.mxu1 %v1226_v54 }
  0x43   :  { %603 = vmatmul.mubr.bf16.gmra.mxu0 %v1228_v55 }
  0x44   :  { %691 = vmatmul.mubr.bf16.gmra.mxu1 %v1229_v56  ;;  %610 = vmatprep.mubr.bf16.mxu0 %v1230_v57 }
  0x45   :  { %698 = vmatprep.mubr.bf16.mxu1 %v1232_v58 }
  0x4b   :  { %611 = vmatmul.mubr.bf16.gmra.mxu0 %v1234_v61 }
  0x4c   :  { %699 = vmatmul.mubr.bf16.gmra.mxu1 %v1235_v62  ;;  %618 = vmatprep.mubr.bf16.mxu0 %v919_v63 }
  0x4d   :  { %706 = vmatprep.mubr.bf16.mxu1 %v921_v0 }
  0x53   :  { %619 = vmatmul.mubr.bf16.gmra.mxu0 %v918_v1 }
  0x54   :  { %707 = vmatmul.mubr.bf16.gmra.mxu1 %v920_v2  ;;  %1127 = vmatprep.mubr.msk.bf16.mxu0 %vm1249_vm0, %v1248_v34 }
  0x55   :  { %1143 = vmatprep.mubr.msk.bf16.mxu1 %vm1249_vm0, %v1248_v34 }
  0x5b   :  { %1128 = vmatmul.mubr.msk.bf16.vlgmr.msra.gmra.mxu0 %vm516_vm1, %v1241_v3 }
  0x5c   :  { %1144 = vmatmul.mubr.msk.bf16.vlgmr.msra.gmra.mxu1 %vm516_vm1, %v1242_v4  ;;  %1131 = vmatprep.mubr.msk.bf16.mxu0 %vm1249_vm0, %v1248_v34 }
  0x5d   :  { %1147 = vmatprep.mubr.msk.bf16.mxu1 %vm1249_vm0, %v1248_v34 }
  0x63   :  { %1132 = vmatmul.mubr.msk.bf16.gmra.mxu0 %vm516_vm1, %v1243_v5 }
  0x64   :  { %1148 = vmatmul.mubr.msk.bf16.gmra.mxu1 %vm516_vm1, %v1244_v6  ;;  %1135 = vmatprep.mubr.msk.bf16.mxu0 %vm1249_vm0, %v1248_v34 }
  0x65   :  { %1151 = vmatprep.mubr.msk.bf16.mxu1 %vm1249_vm0, %v1248_v34 }
  0x6b   :  { %1136 = vmatmul.mubr.msk.bf16.gmra.mxu0 %vm516_vm1, %v1245_v7 }
  0x6c   :  { %1152 = vmatmul.mubr.msk.bf16.gmra.mxu1 %vm516_vm1, %v1246_v8  ;;  %1139 = vmatprep.mubr.msk.bf16.mxu0 %vm1249_vm0, %v1248_v34 }
  0x73   :  { %1140 = vmatmul.mubr.msk.bf16.gmra.mxu0 %vm516_vm1, %v1247_v9 }
  0xe3   :  { %v1008_v10 = vpop.f32.mrf.mxu0 }
  0xe4   :  { %v1066_v11 = vpop.f32.mrf.mxu1 }
  0xe5   :  { %v1009_v12 = vpop.f32.mrf.mxu0 }
  0xe6   :  { %v1067_v13 = vpop.f32.mrf.mxu1  ;;  %v1010_v57 = vadd.f32 %v1009_v12, %v1008_v10 }
  0xe7   :  { %v1011_v14 = vpop.f32.mrf.mxu0  ;;  %v1068_v2 = vadd.f32 %v1067_v13, %v1066_v11 }
  0xe8   :  { %v1069_v15 = vpop.f32.mrf.mxu1  ;;  %v573_v1 = vadd.f32 %v1010_v57, %v1553_v59 }
  0xe9   :  { %v1012_v16 = vpop.f32.mrf.mxu0 }
  0xea   :  { %v1070_v17 = vpop.f32.mrf.mxu1  ;;  %v1013_v63 = vadd.f32 %v1012_v16, %v1011_v14  ;;  %v661_v14 = vadd.f32 %v1068_v2, %v573_v1 }
  0xeb   :  { %v1014_v18 = vpop.f32.mrf.mxu0  ;;  %v1071_v10 = vadd.f32 %v1070_v17, %v1069_v15 }
  0xec   :  { %v1506_v19 = vpop.f32.mrf.mxu1  ;;  %v576_v9 = vadd.f32 %v1013_v63, %v1553_v59 }
  0xed   :  { %v1015_v20 = vpop.f32.mrf.mxu0 }
  0xee   :  { %v1508_v21 = vpop.f32.mrf.mxu1  ;;  %v1016_v12 = vadd.f32 %v1015_v20, %v1014_v18  ;;  %v664_v15 = vadd.f32 %v1071_v10, %v576_v9 }
  0xef   :  { %v1510_v22 = vpop.f32.mrf.mxu0 }
  0xf0   :  { %v1512_v23 = vpop.f32.mrf.mxu1 }
  0xf1   :  { %v1514_v24 = vpop.f32.mrf.mxu0 }
  0xf2   :  { %v1516_v25 = vpop.f32.mrf.mxu1  ;;  %v1019_v17 = vadd.f32 %v1514_v24, %v1510_v22 }
  0xf3   :  { %v1518_v26 = vpop.f32.mrf.mxu0 }
  0xf4   :  { %v1520_v27 = vpop.f32.mrf.mxu1  ;;  %v584_v24 = vadd.f32 %v1019_v17, %v1553_v59 }
  0xf5   :  { %v1522_v28 = vpop.f32.mrf.mxu0 }
  0xf6   :  { %v1524_v29 = vpop.f32.mrf.mxu1 }
  0xf7   :  { %v1526_v30 = vpop.f32.mrf.mxu0 }
  0xf8   :  { %v1528_v31 = vpop.f32.mrf.mxu1 }
  0xf9   :  { %v1530_v32 = vpop.f32.mrf.mxu0 }
  0xfa   :  { %v1532_v33 = vpop.f32.mrf.mxu1 }
  0xfb   :  { %v1534_v34 = vpop.f32.mrf.mxu0 }
  0xfc   :  { %v1536_v35 = vpop.f32.mrf.mxu1 }
  0xfd   :  { %v1538_v36 = vpop.f32.mrf.mxu0 }
  0xfe   :  { %v1540_v37 = vpop.f32.mrf.mxu1 }
  0xff   :  { %v1542_v38 = vpop.f32.mrf.mxu0 }
 0x100   :  { %v1544_v39 = vpop.f32.mrf.mxu1 }
 0x101   :  { %1651 = vst [vmem:[#allocation2_spill] sm:$0xff] %v1544_v39  ;;  %v1546_v40 = vpop.f32.mrf.mxu0 }
 0x102   :  { %1652 = vst [vmem:[#allocation3_spill] sm:$0xff] %v1546_v40  ;;  %v1548_v41 = vpop.f32.mrf.mxu1 }
 0x103   :  { %1653 = vst [vmem:[#allocation4_spill] sm:$0xff] %v1548_v41  ;;  %v1032_v42 = vpop.f32.mrf.mxu0 }
 0x104   :  { %v1090_v43 = vpop.f32.mrf.mxu1 }
 0x105   :  { %v1033_v44 = vpop.f32.mrf.mxu0 }
 0x106   :  { %v1091_v45 = vpop.f32.mrf.mxu1  ;;  %v1034_v60 = vadd.f32 %v1033_v44, %v1032_v42 }
 0x107   :  { %v1035_v46 = vpop.f32.mrf.mxu0  ;;  %v1092_v5 = vadd.f32 %v1091_v45, %v1090_v43  ;;  %v581_v43 = vadd.f32 %v1016_v12, %v1553_v59  ;;  %v1074_v45 = vadd.f32 %v1508_v21, %v1506_v19  ;;  %v1077_v19 = vadd.f32 %v1516_v25, %v1512_v23 }
 0x108   :  { %v1093_v47 = vpop.f32.mrf.mxu1  ;;  %v605_v4 = vadd.f32 %v1034_v60, %v1553_v59 }
 0x109   :  { %v1036_v48 = vpop.f32.mrf.mxu0  ;;  %v669_v22 = vadd.f32 %v1074_v45, %v581_v43 }
 0x10a   :  { %v1094_v49 = vpop.f32.mrf.mxu1  ;;  %v1037_v6 = vadd.f32 %v1036_v48, %v1035_v46  ;;  %v693_v13 = vadd.f32 %v1092_v5, %v605_v4 }
 0x10b   :  { %v1038_v50 = vpop.f32.mrf.mxu0  ;;  %v1095_v57 = vadd.f32 %v1094_v49, %v1093_v47 }
 0x10c   :  { %v1096_v51 = vpop.f32.mrf.mxu1  ;;  %v608_v16 = vadd.f32 %v1037_v6, %v1553_v59 }
 0x10d   :  { %v1039_v52 = vpop.f32.mrf.mxu0 }
 0x10e   :  { %v1097_v53 = vpop.f32.mrf.mxu1  ;;  %v1040_v44 = vadd.f32 %v1039_v52, %v1038_v50  ;;  %v696_v60 = vadd.f32 %v1095_v57, %v608_v16 }
 0x10f   :  { %v1041_v54 = vpop.f32.mrf.mxu0  ;;  %v1098_v20 = vadd.f32 %v1097_v53, %v1096_v51 }
 0x110   :  { %v1099_v55 = vpop.f32.mrf.mxu1  ;;  %v613_v18 = vadd.f32 %v1040_v44, %v1553_v59 }
 0x111   :  { %v1042_v56 = vpop.f32.mrf.mxu0 }
 0x112   :  { %v1100_v58 = vpop.f32.mrf.mxu1  ;;  %v1043_v49 = vadd.f32 %v1042_v56, %v1041_v54  ;;  %v701_v54 = vadd.f32 %v1098_v20, %v613_v18 }
 0x113   :  { %v1044_v61 = vpop.f32.mrf.mxu0  ;;  %v1101_v23 = vadd.f32 %v1100_v58, %v1099_v55  ;;  %v1080_v55 = vadd.f32 %v1524_v29, %v1520_v27 }
 0x114   :  { %v1555_v62 = vpop.f32.mrf.mxu1  ;;  %v616_v56 = vadd.f32 %v1043_v49, %v1553_v59 }
 0x115   :  { %v1045_v0 = vpop.f32.mrf.mxu0 }
 0x116   :  { %v1558_v3 = vpop.f32.mrf.mxu1  ;;  %v1046_v25 = vadd.f32 %v1045_v0, %v1044_v61  ;;  %v672_v0 = vadd.f32 %v1077_v19, %v584_v24  ;;  %v704_v29 = vadd.f32 %v1101_v23, %v616_v56  ;;  %v1655_v24 = vld [vmem:[#allocation2_spill] sm:$0xff] }
 0x117   :  { %v1047_v7 = vpop.f32.mrf.mxu0 }
 0x118   :  { %v1105_v8 = vpop.f32.mrf.mxu1  ;;  %v621_v44 = vadd.f32 %v1046_v25, %v1553_v59 }
 0x119   :  { %v1048_v42 = vpop.f32.mrf.mxu0  ;;  %v1025_v8 = vadd.f32 %v1530_v32, %v1526_v30  ;;  %v1104_v30 = vadd.f32 %v1558_v3, %v1555_v62  ;;  %v1028_v62 = vadd.f32 %v1538_v36, %v1534_v34 }
 0x11a   :  { %v1106_v41 = vpop.f32.mrf.mxu1 }
 0x11b   :  { %v748_v11 = vpop.f32.mrf.mxu0  ;;  %v709_v17 = vadd.f32 %v1104_v30, %v621_v44 }
 0x11c   :  { %v749_v39 = vadd.f32 %v748_v11, %v661_v14  ;;  %v780_v40 = vpop.f32.mrf.mxu1  ;;  %v592_v11 = vadd.f32 %v1025_v8, %v1553_v59 }
 0x11d   :  { %v781_v46 = vadd.f32 %v780_v40, %v693_v13  ;;  %v1129_v48 = vpop.f32.mrf.mxu0  ;;  %v1083_v13 = vadd.f32 %v1532_v33, %v1528_v31 }
 0x11e   :  { %v802_v41 = vmax.f32 %v749_v39, 0.0  ;;  %v1145_v47 = vpop.f32.mrf.mxu1  ;;  %v1022_v39 = vadd.f32 %v1522_v28, %v1518_v26 }
 0x11f   :  { %v810_v50 = vmax.f32 %v781_v46, 0.0  ;;  %v751_v52 = vpop.f32.mrf.mxu0  ;;  %v680_v49 = vadd.f32 %v1083_v13, %v592_v11 }
 0x120   :  { %v979_v63 = vpack.c.bf16 %v802_v41, %v802_v41  ;;  %v752_v1 = vadd.f32 %v751_v52, %v664_v15  ;;  %v783_v2 = vpop.f32.mrf.mxu1  ;;  %v589_v42 = vadd.f32 %v1022_v39, %v1553_v59  ;;  %v1086_v52 = vadd.f32 %v1540_v37, %v1536_v35  ;;  %v1656_v39 = vld [vmem:[#allocation4_spill] sm:$0xff] }
 0x121   :  { %v987_v21 = vpack.c.bf16 %v810_v50, %v810_v50  ;;  %v784_v40 = vadd.f32 %v783_v2, %v696_v60  ;;  %v1130_v4 = vpop.f32.mrf.mxu0  ;;  %v597_v50 = vadd.f32 %v1028_v62, %v1553_v59  ;;  %v1654_v60 = vld [vmem:[#allocation3_spill] sm:$0xff] }
 0x122   :  { %869 = vst.msk [vmem:[%s1650_s3] sm:$0xf] %vm868_vm2, %v979_v63  ;;  %v803_v51 = vmax.f32 %v752_v1, 0.0  ;;  %v1146_v53 = vpop.f32.mrf.mxu1  ;;  %v677_v15 = vadd.f32 %v1080_v55, %v589_v42  ;;  %v1031_v63 = vadd.f32 %v1654_v60, %v1542_v38 }
 0x123   :  { %877 = vst.msk [vmem:[%s1650_s3 + $0x20] sm:$0xf] %vm868_vm2, %v987_v21  ;;  %v811_v5 = vmax.f32 %v784_v40, 0.0  ;;  %v756_v6 = vpop.f32.mrf.mxu0 }
 0x124   :  { %v980_v26 = vpack.c.bf16 %v803_v51, %v803_v51  ;;  %v757_v28 = vadd.f32 %v756_v6, %v669_v22  ;;  %v788_v7 = vpop.f32.mrf.mxu1  ;;  %v600_v22 = vadd.f32 %v1031_v63, %v1553_v59  ;;  %v1089_v51 = vadd.f32 %v1656_v39, %v1655_v24 }
 0x125   :  { %v988_v9 = vpack.c.bf16 %v811_v5, %v811_v5  ;;  %v789_v10 = vadd.f32 %v788_v7, %v701_v54  ;;  %v1133_v12 = vpop.f32.mrf.mxu0  ;;  %v685_v54 = vadd.f32 %v1086_v52, %v597_v50 }
 0x126   :  { %870 = vst.msk [vmem:[%s1650_s3 + $0x4] sm:$0xf] %vm868_vm2, %v980_v26  ;;  %v804_v58 = vmax.f32 %v757_v28, 0.0  ;;  %v1149_v61 = vpop.f32.mrf.mxu1  ;;  %v688_v26 = vadd.f32 %v1089_v51, %v600_v22 }
 0x127   :  { %878 = vst.msk [vmem:[%s1650_s3 + $0x24] sm:$0xf] %vm868_vm2, %v988_v9  ;;  %v812_v32 = vmax.f32 %v789_v10, 0.0  ;;  %v759_v27 = vpop.f32.mrf.mxu0 }
 0x128   :  { %v981_v14 = vpack.c.bf16 %v804_v58, %v804_v58  ;;  %v760_v16 = vadd.f32 %v759_v27, %v672_v0  ;;  %v791_v57 = vpop.f32.mrf.mxu1 }
 0x129   :  { %v989_v43 = vpack.c.bf16 %v812_v32, %v812_v32  ;;  %v792_v45 = vadd.f32 %v791_v57, %v704_v29  ;;  %v1134_v46 = vpop.f32.mrf.mxu0 }
 0x12a   :  { %871 = vst.msk [vmem:[%s1650_s3 + $0x8] sm:$0xf] %vm868_vm2, %v981_v14  ;;  %v805_v3 = vmax.f32 %v760_v16, 0.0  ;;  %v1150_v48 = vpop.f32.mrf.mxu1 }
 0x12b   :  { %879 = vst.msk [vmem:[%s1650_s3 + $0x28] sm:$0xf] %vm868_vm2, %v989_v43  ;;  %v813_v31 = vmax.f32 %v792_v45, 0.0  ;;  %v764_v33 = vpop.f32.mrf.mxu0 }
 0x12c   :  { %v982_v18 = vpack.c.bf16 %v805_v3, %v805_v3  ;;  %v765_v20 = vadd.f32 %v764_v33, %v677_v15  ;;  %v796_v41 = vpop.f32.mrf.mxu1 }
 0x12d   :  { %v990_v34 = vpack.c.bf16 %v813_v31, %v813_v31  ;;  %v797_v36 = vadd.f32 %v796_v41, %v709_v17  ;;  %v1137_v47 = vpop.f32.mrf.mxu0 }
 0x12e   :  { %872 = vst.msk [vmem:[%s1650_s3 + $0xc] sm:$0xf] %vm868_vm2, %v982_v18  ;;  %v806_v1 = vmax.f32 %v765_v20, 0.0  ;;  %v1153_v2 = vpop.f32.mrf.mxu1 }
 0x12f   :  { %880 = vst.msk [vmem:[%s1650_s3 + $0x2c] sm:$0xf] %vm868_vm2, %v990_v34  ;;  %v814_v19 = vmax.f32 %v797_v36, 0.0  ;;  %v767_v21 = vpop.f32.mrf.mxu0 }
 0x130   :  { %v983_v40 = vpack.c.bf16 %v806_v1, %v806_v1  ;;  %v768_v35 = vadd.f32 %v767_v21, %v680_v49  ;;  %v799_v37 = vpop.f32.mrf.mxu1 }
 0x131   :  { %v991_v4 = vpack.c.bf16 %v814_v19, %v814_v19  ;;  %v1138_v38 = vpop.f32.mrf.mxu0 }
 0x132   :  { %873 = vst.msk [vmem:[%s1650_s3 + $0x10] sm:$0xf] %vm868_vm2, %v983_v40  ;;  %v807_v53 = vmax.f32 %v768_v35, 0.0  ;;  %v1154_v56 = vpop.f32.mrf.mxu1 }
 0x133   :  { %882 = vst.msk [vmem:[%s1650_s3 + $0x30] sm:$0x1] %vm881_vm3, %v991_v4  ;;  %v772_v23 = vpop.f32.mrf.mxu0 }
 0x134   :  { %v984_v25 = vpack.c.bf16 %v807_v53, %v807_v53  ;;  %v773_v5 = vadd.f32 %v772_v23, %v685_v54 }
 0x135   :  { %v1141_v6 = vpop.f32.mrf.mxu0 }
 0x136   :  { %874 = vst.msk [vmem:[%s1650_s3 + $0x14] sm:$0xf] %vm868_vm2, %v984_v25  ;;  %v808_v59 = vmax.f32 %v773_v5, 0.0 }
 0x137   :  { %v775_v28 = vpop.f32.mrf.mxu0 }
 0x138   :  { %v985_v7 = vpack.c.bf16 %v808_v59, %v808_v59  ;;  %v776_v8 = vadd.f32 %v775_v28, %v688_v26 }
 0x139   :  { %v1142_v9 = vpop.f32.mrf.mxu0 }
 0x13a   :  { %875 = vst.msk [vmem:[%s1650_s3 + $0x18] sm:$0xf] %vm868_vm2, %v985_v7  ;;  %v809_v10 = vmax.f32 %v776_v8, 0.0 }
 0x13c   :  { %v986_v12 = vpack.c.bf16 %v809_v10, %v809_v10 }
 0x13e   :  { %876 = vst.msk [vmem:[%s1650_s3 + $0x1c] sm:$0xf] %vm868_vm2, %v986_v12 }

// kernel: dqn_forward.7
= control target key start
LH: loop header
LB: loop body
LE: loop exit
PB: predicated region body
PF: predicated region fallthrough
CT: control target
= control target key end

     0   :  { %v1596_v32 = vlaneseq  ;;  %v14364_v33 = vmov 1966171168   ;;  %s19713_s0 = inlined_call_operand.vmem [shape: bf16[2,3136], index: 0, kind: input, shape index: {}]   ;;  %s19714_s1 = inlined_call_operand.vmem [shape: bf16[3136,1024], index: 1, kind: input, shape index: {}]   ;;  %s19715_s2 = inlined_call_operand.vmem [shape: f32[1,1024], index: 2, kind: input, shape index: {}]   ;;  %s19716_s3 = inlined_call_operand.vmem [shape: bf16[1024,5], index: 3, kind: input, shape index: {}]   ;;  %s19717_s4 = inlined_call_operand.vmem [shape: f32[1,5], index: 4, kind: input, shape index: {}]   ;;  %s19718_s5 = inlined_call_operand.hbm [shape: f32[2,4], index: 5, kind: output, shape index: {}]  }
   0x1   :  { %v82_v0 = vld [vmem:[%s19714_s1 + $0x1c0] sm:$0xff]  ;;  %v1642_v34 = vunpack.c.l.s4 %v14364_v33 }
   0x2   :  { %v86_v1 = vld [vmem:[%s19714_s1 + $0x1e0] sm:$0xff]  ;;  %v14464_v43 = vshrl.u32 %v1596_v32, 7 }
   0x3   :  { %v210_v2 = vld [vmem:[%s19714_s1 + $0x5c0] sm:$0xff]  ;;  %v12596_v3 = vcombine.high %v82_v0, %v86_v1  ;;  %v12595_v5 = vcombine.low %v82_v0, %v86_v1  ;;  %v1643_v44 = vunpack.c.0.s8 %v1642_v34 }
   0x4   :  { %v214_v4 = vld [vmem:[%s19714_s1 + $0x5e0] sm:$0xff] }
   0x5   :  { %v74_v6 = vld [vmem:[%s19714_s1 + $0x180] sm:$0xff]  ;;  %v12724_v8 = vcombine.high %v210_v2, %v214_v4  ;;  %v12723_v9 = vcombine.low %v210_v2, %v214_v4  ;;  %9669 = vmatprep.subr.bf16.mxu0 %v12596_v3  ;;  %v14479_v53 = vsub.s32 %v1643_v44, %v14464_v43 }
   0x6   :  { %v78_v7 = vld [vmem:[%s19714_s1 + $0x1a0] sm:$0xff]  ;;  %9670 = vmatpush1.bf16.msra.mxu0 %v12595_v5 }
   0x7   :  { %v12588_v10 = vcombine.high %v74_v6, %v78_v7  ;;  %v202_v11 = vld [vmem:[%s19714_s1 + $0x580] sm:$0xff]  ;;  %9710 = vmatprep.subr.bf16.mxu1 %v12724_v8  ;;  %v12587_v18 = vcombine.low %v74_v6, %v78_v7 }
   0x8   :  { %v206_v12 = vld [vmem:[%s19714_s1 + $0x5a0] sm:$0xff]  ;;  %9711 = vmatpush1.bf16.msra.mxu1 %v12723_v9 }
   0x9   :  { %v66_v13 = vld [vmem:[%s19714_s1 + $0x140] sm:$0xff]  ;;  %v12716_v14 = vcombine.high %v202_v11, %v206_v12  ;;  %9671 = vmatprep.subr.bf16.mxu0 %v12588_v10  ;;  %v12715_v19 = vcombine.low %v202_v11, %v206_v12 }
   0xa   :  { %v70_v15 = vld [vmem:[%s19714_s1 + $0x160] sm:$0xff]  ;;  %9672 = vmatpush1.bf16.msra.mxu0 %v12587_v18 }
   0xb   :  { %v194_v16 = vld [vmem:[%s19714_s1 + $0x540] sm:$0xff]  ;;  %v12580_v20 = vcombine.high %v66_v13, %v70_v15  ;;  %9712 = vmatprep.subr.bf16.mxu1 %v12716_v14  ;;  %v12579_v26 = vcombine.low %v66_v13, %v70_v15 }
   0xc   :  { %v198_v17 = vld [vmem:[%s19714_s1 + $0x560] sm:$0xff]  ;;  %9713 = vmatpush1.bf16.msra.mxu1 %v12715_v19 }
   0xd   :  { %v12708_v21 = vcombine.high %v194_v16, %v198_v17  ;;  %v58_v22 = vld [vmem:[%s19714_s1 + $0x100] sm:$0xff]  ;;  %9673 = vmatprep.subr.bf16.mxu0 %v12580_v20  ;;  %v12707_v27 = vcombine.low %v194_v16, %v198_v17 }
   0xe   :  { %v62_v23 = vld [vmem:[%s19714_s1 + $0x120] sm:$0xff]  ;;  %9674 = vmatpush1.bf16.msra.mxu0 %v12579_v26 }
   0xf   :  { %v186_v24 = vld [vmem:[%s19714_s1 + $0x500] sm:$0xff]  ;;  %v12572_v28 = vcombine.high %v58_v22, %v62_v23  ;;  %9714 = vmatprep.subr.bf16.mxu1 %v12708_v21  ;;  %v12571_v37 = vcombine.low %v58_v22, %v62_v23 }
  0x10   :  { %v190_v25 = vld [vmem:[%s19714_s1 + $0x520] sm:$0xff]  ;;  %9715 = vmatpush1.bf16.msra.mxu1 %v12707_v27 }
  0x11   :  { %v12700_v29 = vcombine.high %v186_v24, %v190_v25  ;;  %v50_v30 = vld [vmem:[%s19714_s1 + $0xc0] sm:$0xff]  ;;  %9675 = vmatprep.subr.bf16.mxu0 %v12572_v28  ;;  %v12699_v38 = vcombine.low %v186_v24, %v190_v25 }
  0x12   :  { %v54_v31 = vld [vmem:[%s19714_s1 + $0xe0] sm:$0xff]  ;;  %9676 = vmatpush1.bf16.msra.mxu0 %v12571_v37 }
  0x13   :  { %v178_v35 = vld [vmem:[%s19714_s1 + $0x4c0] sm:$0xff]  ;;  %v12564_v39 = vcombine.high %v50_v30, %v54_v31  ;;  %9716 = vmatprep.subr.bf16.mxu1 %v12700_v29  ;;  %v12563_v47 = vcombine.low %v50_v30, %v54_v31 }
  0x14   :  { %v182_v36 = vld [vmem:[%s19714_s1 + $0x4e0] sm:$0xff]  ;;  %9717 = vmatpush1.bf16.msra.mxu1 %v12699_v38 }
  0x15   :  { %v12692_v40 = vcombine.high %v178_v35, %v182_v36  ;;  %v42_v41 = vld [vmem:[%s19714_s1 + $0x80] sm:$0xff]  ;;  %9677 = vmatprep.subr.bf16.mxu0 %v12564_v39  ;;  %v12691_v48 = vcombine.low %v178_v35, %v182_v36 }
  0x16   :  { %v46_v42 = vld [vmem:[%s19714_s1 + $0xa0] sm:$0xff]  ;;  %9678 = vmatpush1.bf16.msra.mxu0 %v12563_v47 }
  0x17   :  { %v170_v45 = vld [vmem:[%s19714_s1 + $0x480] sm:$0xff]  ;;  %v12556_v49 = vcombine.high %v42_v41, %v46_v42  ;;  %9718 = vmatprep.subr.bf16.mxu1 %v12692_v40  ;;  %v12555_v56 = vcombine.low %v42_v41, %v46_v42 }
  0x18   :  { %v174_v46 = vld [vmem:[%s19714_s1 + $0x4a0] sm:$0xff]  ;;  %9719 = vmatpush1.bf16.msra.mxu1 %v12691_v48 }
  0x19   :  { %v12684_v50 = vcombine.high %v170_v45, %v174_v46  ;;  %v34_v51 = vld [vmem:[%s19714_s1 + $0x40] sm:$0xff]  ;;  %9679 = vmatprep.subr.bf16.mxu0 %v12556_v49  ;;  %v12683_v57 = vcombine.low %v170_v45, %v174_v46 }
  0x1a   :  { %v38_v52 = vld [vmem:[%s19714_s1 + $0x60] sm:$0xff]  ;;  %9680 = vmatpush1.bf16.msra.mxu0 %v12555_v56 }
  0x1b   :  { %v162_v54 = vld [vmem:[%s19714_s1 + $0x440] sm:$0xff]  ;;  %v12548_v58 = vcombine.high %v34_v51, %v38_v52  ;;  %9720 = vmatprep.subr.bf16.mxu1 %v12684_v50  ;;  %v12547_v2 = vcombine.low %v34_v51, %v38_v52 }
  0x1c   :  { %v166_v55 = vld [vmem:[%s19714_s1 + $0x460] sm:$0xff]  ;;  %9721 = vmatpush1.bf16.msra.mxu1 %v12683_v57 }
  0x1d   :  { %v14490_v59 = vld [vmem:[%s19713_s0] sm:$0xff]  ;;  %v12676_v60 = vcombine.high %v162_v54, %v166_v55  ;;  %9681 = vmatprep.subr.bf16.mxu0 %v12548_v58  ;;  %v12675_v4 = vcombine.low %v162_v54, %v166_v55 }
  0x1e   :  { %v26_v61 = vld [vmem:[%s19714_s1] sm:$0xff]  ;;  %v14500_v63 = vrot.slane %v14490_v59, %v14479_v53  ;;  %9682 = vmatpush1.bf16.msra.mxu0 %v12547_v2 }
  0x1f   :  { %v30_v62 = vld [vmem:[%s19714_s1 + $0x20] sm:$0xff]  ;;  %9722 = vmatprep.subr.bf16.mxu1 %v12676_v60 }
  0x20   :  { %v154_v0 = vld [vmem:[%s19714_s1 + $0x400] sm:$0xff]  ;;  %v1655_v3 = vcombine.high %v14500_v63, %v14500_v63  ;;  %v12540_v5 = vcombine.high %v26_v61, %v30_v62  ;;  %v12539_v12 = vcombine.low %v26_v61, %v30_v62  ;;  %9723 = vmatpush1.bf16.msra.mxu1 %v12675_v4 }
  0x21   :  { %v158_v1 = vld [vmem:[%s19714_s1 + $0x420] sm:$0xff] }
  0x22   :  { %v12668_v6 = vcombine.high %v154_v0, %v158_v1  ;;  %v146_v7 = vld [vmem:[%s19714_s1 + $0x3c0] sm:$0xff]  ;;  %v14517_v9 = vrot.slane %v1655_v3, %v14479_v53  ;;  %9683 = vmatprep.subr.bf16.mxu0 %v12540_v5  ;;  %v12667_v14 = vcombine.low %v154_v0, %v158_v1  ;;  %v1640_v1 = vcombine.high %v14490_v59, %v14490_v59 }
  0x23   :  { %v150_v8 = vld [vmem:[%s19714_s1 + $0x3e0] sm:$0xff]  ;;  %9684 = vmatpush1.bf16.msra.mxu0 %v12539_v12 }
  0x24   :  { %v274_v10 = vld [vmem:[%s19714_s1 + $0x7c0] sm:$0xff]  ;;  %9701 = vmatprep.mubr.bf16.mxu0 %v14517_v9  ;;  %v14528_v13 = vcombine.high %v14517_v9, %v14517_v9  ;;  %v12660_v15 = vcombine.high %v146_v7, %v150_v8  ;;  %9724 = vmatprep.subr.bf16.mxu1 %v12668_v6  ;;  %v12659_v21 = vcombine.low %v146_v7, %v150_v8 }
  0x25   :  { %v278_v11 = vld [vmem:[%s19714_s1 + $0x7e0] sm:$0xff]  ;;  %9725 = vmatpush1.bf16.msra.mxu1 %v12667_v14 }
  0x26   :  { %v12788_v16 = vcombine.high %v274_v10, %v278_v11  ;;  %v138_v17 = vld [vmem:[%s19714_s1 + $0x380] sm:$0xff]  ;;  %9742 = vmatprep.mubr.bf16.mxu1 %v14528_v13  ;;  %9685 = vmatprep.subr.bf16.mxu0 %v12660_v15  ;;  %v12787_v22 = vcombine.low %v274_v10, %v278_v11  ;;  %v14618_v10 = vrot.slane %v1640_v1, %v14479_v53 }
  0x27   :  { %v142_v18 = vld [vmem:[%s19714_s1 + $0x3a0] sm:$0xff]  ;;  %9686 = vmatpush2.bf16.msra.mxu0 %v12659_v21 }
  0x28   :  { %v266_v19 = vld [vmem:[%s19714_s1 + $0x780] sm:$0xff]  ;;  %v12652_v23 = vcombine.high %v138_v17, %v142_v18  ;;  %9726 = vmatprep.subr.bf16.mxu1 %v12788_v16  ;;  %v12651_v29 = vcombine.low %v138_v17, %v142_v18 }
  0x29   :  { %v270_v20 = vld [vmem:[%s19714_s1 + $0x7a0] sm:$0xff]  ;;  %9727 = vmatpush2.bf16.msra.mxu1 %v12787_v22  ;;  %v14636_v22 = vrot.slane %v14500_v63, %v14479_v53 }
  0x2a   :  { %v12780_v24 = vcombine.high %v266_v19, %v270_v20  ;;  %v130_v25 = vld [vmem:[%s19714_s1 + $0x340] sm:$0xff]  ;;  %9687 = vmatprep.subr.bf16.mxu0 %v12652_v23  ;;  %v12779_v30 = vcombine.low %v266_v19, %v270_v20  ;;  %v1656_v20 = vcombine.high %v14618_v10, %v14618_v10 }
  0x2b   :  { %v134_v26 = vld [vmem:[%s19714_s1 + $0x360] sm:$0xff]  ;;  %9688 = vmatpush2.bf16.msra.mxu0 %v12651_v29 }
  0x2c   :  { %v258_v27 = vld [vmem:[%s19714_s1 + $0x740] sm:$0xff]  ;;  %v12644_v31 = vcombine.high %v130_v25, %v134_v26  ;;  %9728 = vmatprep.subr.bf16.mxu1 %v12780_v24  ;;  %v12643_v37 = vcombine.low %v130_v25, %v134_v26  ;;  %v14651_v29 = vrot.slane %v1656_v20, %v14479_v53 }
  0x2d   :  { %v262_v28 = vld [vmem:[%s19714_s1 + $0x760] sm:$0xff]  ;;  %9729 = vmatpush2.bf16.msra.mxu1 %v12779_v30  ;;  %v14655_v30 = vcombine.high %v14636_v22, %v14636_v22 }
  0x2e   :  { %v12772_v32 = vcombine.high %v258_v27, %v262_v28  ;;  %v122_v33 = vld [vmem:[%s19714_s1 + $0x300] sm:$0xff]  ;;  %9689 = vmatprep.subr.bf16.mxu0 %v12644_v31  ;;  %v12771_v38 = vcombine.low %v258_v27, %v262_v28 }
  0x2f   :  { %v126_v34 = vld [vmem:[%s19714_s1 + $0x320] sm:$0xff]  ;;  %9690 = vmatpush2.bf16.msra.mxu0 %v12643_v37 }
  0x30   :  { %v250_v35 = vld [vmem:[%s19714_s1 + $0x700] sm:$0xff]  ;;  %v12636_v39 = vcombine.high %v122_v33, %v126_v34  ;;  %9730 = vmatprep.subr.bf16.mxu1 %v12772_v32  ;;  %v12635_v46 = vcombine.low %v122_v33, %v126_v34 }
  0x31   :  { %v254_v36 = vld [vmem:[%s19714_s1 + $0x720] sm:$0xff]  ;;  %9731 = vmatpush2.bf16.msra.mxu1 %v12771_v38 }
  0x32   :  { %v12764_v40 = vcombine.high %v250_v35, %v254_v36  ;;  %v114_v41 = vld [vmem:[%s19714_s1 + $0x2c0] sm:$0xff]  ;;  %9691 = vmatprep.subr.bf16.mxu0 %v12636_v39  ;;  %v12763_v47 = vcombine.low %v250_v35, %v254_v36  ;;  %v14672_v39 = vcombine.high %v14651_v29, %v14651_v29 }
  0x33   :  { %v118_v42 = vld [vmem:[%s19714_s1 + $0x2e0] sm:$0xff]  ;;  %9692 = vmatpush2.bf16.msra.mxu0 %v12635_v46 }
  0x34   :  { %v242_v44 = vld [vmem:[%s19714_s1 + $0x6c0] sm:$0xff]  ;;  %v12628_v48 = vcombine.high %v114_v41, %v118_v42  ;;  %9732 = vmatprep.subr.bf16.mxu1 %v12764_v40  ;;  %v12627_v55 = vcombine.low %v114_v41, %v118_v42 }
  0x35   :  { %v246_v45 = vld [vmem:[%s19714_s1 + $0x6e0] sm:$0xff]  ;;  %9733 = vmatpush2.bf16.msra.mxu1 %v12763_v47 }
  0x36   :  { %v12756_v49 = vcombine.high %v242_v44, %v246_v45  ;;  %v106_v50 = vld [vmem:[%s19714_s1 + $0x280] sm:$0xff]  ;;  %9693 = vmatprep.subr.bf16.mxu0 %v12628_v48  ;;  %v12755_v56 = vcombine.low %v242_v44, %v246_v45 }
  0x37   :  { %v110_v51 = vld [vmem:[%s19714_s1 + $0x2a0] sm:$0xff]  ;;  %9694 = vmatpush2.bf16.msra.mxu0 %v12627_v55 }
  0x38   :  { %v234_v52 = vld [vmem:[%s19714_s1 + $0x680] sm:$0xff]  ;;  %v12620_v57 = vcombine.high %v106_v50, %v110_v51  ;;  %9734 = vmatprep.subr.bf16.mxu1 %v12756_v49  ;;  %v12619_v2 = vcombine.low %v106_v50, %v110_v51 }
  0x39   :  { %v238_v54 = vld [vmem:[%s19714_s1 + $0x6a0] sm:$0xff]  ;;  %9735 = vmatpush2.bf16.msra.mxu1 %v12755_v56 }
  0x3a   :  { %v12748_v58 = vcombine.high %v234_v52, %v238_v54  ;;  %v98_v60 = vld [vmem:[%s19714_s1 + $0x240] sm:$0xff]  ;;  %9695 = vmatprep.subr.bf16.mxu0 %v12620_v57  ;;  %v12747_v3 = vcombine.low %v234_v52, %v238_v54 }
  0x3b   :  { %v102_v61 = vld [vmem:[%s19714_s1 + $0x260] sm:$0xff]  ;;  %9696 = vmatpush2.bf16.msra.mxu0 %v12619_v2 }
  0x3c   :  { %v226_v62 = vld [vmem:[%s19714_s1 + $0x640] sm:$0xff]  ;;  %v12612_v4 = vcombine.high %v98_v60, %v102_v61  ;;  %9736 = vmatprep.subr.bf16.mxu1 %v12748_v58  ;;  %v12611_v11 = vcombine.low %v98_v60, %v102_v61 }
  0x3d   :  { %v230_v0 = vld [vmem:[%s19714_s1 + $0x660] sm:$0xff]  ;;  %9737 = vmatpush2.bf16.msra.mxu1 %v12747_v3 }
  0x3e   :  { %v12740_v5 = vcombine.high %v226_v62, %v230_v0  ;;  %v90_v6 = vld [vmem:[%s19714_s1 + $0x200] sm:$0xff]  ;;  %9697 = vmatprep.subr.bf16.mxu0 %v12612_v4  ;;  %v12739_v12 = vcombine.low %v226_v62, %v230_v0 }
  0x3f   :  { %v94_v7 = vld [vmem:[%s19714_s1 + $0x220] sm:$0xff]  ;;  %9698 = vmatpush2.bf16.msra.mxu0 %v12611_v11 }
  0x40   :  { %v218_v59 = vld [vmem:[%s19714_s1 + $0x600] sm:$0xff]  ;;  %v12604_v14 = vcombine.high %v90_v6, %v94_v7  ;;  %9738 = vmatprep.subr.bf16.mxu1 %v12740_v5  ;;  %v12603_v21 = vcombine.low %v90_v6, %v94_v7 }
  0x41   :  { %v222_v8 = vld [vmem:[%s19714_s1 + $0x620] sm:$0xff]  ;;  %9739 = vmatpush2.bf16.msra.mxu1 %v12739_v12 }
  0x42   :  { %v12732_v15 = vcombine.high %v218_v59, %v222_v8  ;;  %v338_v16 = vld [vmem:[%s19714_s1 + $0x9c0] sm:$0xff]  ;;  %9699 = vmatprep.subr.bf16.mxu0 %v12604_v14  ;;  %v12731_v23 = vcombine.low %v218_v59, %v222_v8 }
  0x43   :  { %v342_v17 = vld [vmem:[%s19714_s1 + $0x9e0] sm:$0xff]  ;;  %9700 = vmatpush2.bf16.msra.mxu0 %v12603_v21 }
  0x44   :  { %v466_v18 = vld [vmem:[%s19714_s1 + $0xdc0] sm:$0xff]  ;;  %v12852_v24 = vcombine.high %v338_v16, %v342_v17  ;;  %9740 = vmatprep.subr.bf16.mxu1 %v12732_v15  ;;  %v12851_v31 = vcombine.low %v338_v16, %v342_v17 }
  0x45   :  { %v470_v19 = vld [vmem:[%s19714_s1 + $0xde0] sm:$0xff]  ;;  %9741 = vmatpush2.bf16.msra.mxu1 %v12731_v23 }
  0x46   :  { %v12980_v25 = vcombine.high %v466_v18, %v470_v19  ;;  %v330_v26 = vld [vmem:[%s19714_s1 + $0x980] sm:$0xff]  ;;  %9751 = vmatprep.subr.bf16.mxu0 %v12852_v24  ;;  %v12979_v32 = vcombine.low %v466_v18, %v470_v19  ;;  %9702 = vmatmul.mubr.bf16.vlgmr.msra.gmra.mxu0 %v14636_v22 }
  0x47   :  { %v334_v27 = vld [vmem:[%s19714_s1 + $0x9a0] sm:$0xff]  ;;  %9752 = vmatpush1.bf16.msra.mxu0 %v12851_v31  ;;  %9783 = vmatprep.mubr.bf16.mxu0 %v14651_v29 }
  0x48   :  { %v458_v28 = vld [vmem:[%s19714_s1 + $0xd80] sm:$0xff]  ;;  %v12844_v33 = vcombine.high %v330_v26, %v334_v27  ;;  %9792 = vmatprep.subr.bf16.mxu1 %v12980_v25  ;;  %9743 = vmatmul.mubr.bf16.vlgmr.msra.gmra.mxu1 %v14655_v30  ;;  %v12843_v40 = vcombine.low %v330_v26, %v334_v27 }
  0x49   :  { %v462_v63 = vld [vmem:[%s19714_s1 + $0xda0] sm:$0xff]  ;;  %9793 = vmatpush1.bf16.msra.mxu1 %v12979_v32  ;;  %9824 = vmatprep.mubr.bf16.mxu1 %v14672_v39 }
  0x4a   :  { %v322_v34 = vld [vmem:[%s19714_s1 + $0x940] sm:$0xff]  ;;  %v12972_v37 = vcombine.high %v458_v28, %v462_v63  ;;  %9753 = vmatprep.subr.bf16.mxu0 %v12844_v33  ;;  %v12971_v41 = vcombine.low %v458_v28, %v462_v63 }
  0x4b   :  { %v326_v35 = vld [vmem:[%s19714_s1 + $0x960] sm:$0xff]  ;;  %9754 = vmatpush1.bf16.msra.mxu0 %v12843_v40 }
  0x4c   :  { %v450_v36 = vld [vmem:[%s19714_s1 + $0xd40] sm:$0xff]  ;;  %v12836_v42 = vcombine.high %v322_v34, %v326_v35  ;;  %9794 = vmatprep.subr.bf16.mxu1 %v12972_v37  ;;  %v12835_v49 = vcombine.low %v322_v34, %v326_v35 }
  0x4d   :  { %v454_v38 = vld [vmem:[%s19714_s1 + $0xd60] sm:$0xff]  ;;  %9795 = vmatpush1.bf16.msra.mxu1 %v12971_v41 }
  0x4e   :  { %v314_v44 = vld [vmem:[%s19714_s1 + $0x900] sm:$0xff]  ;;  %v12964_v47 = vcombine.high %v450_v36, %v454_v38  ;;  %9755 = vmatprep.subr.bf16.mxu0 %v12836_v42  ;;  %v12963_v50 = vcombine.low %v450_v36, %v454_v38 }
  0x4f   :  { %v318_v45 = vld [vmem:[%s19714_s1 + $0x920] sm:$0xff]  ;;  %9756 = vmatpush1.bf16.msra.mxu0 %v12835_v49 }
  0x50   :  { %v442_v46 = vld [vmem:[%s19714_s1 + $0xd00] sm:$0xff]  ;;  %v12828_v51 = vcombine.high %v314_v44, %v318_v45  ;;  %9796 = vmatprep.subr.bf16.mxu1 %v12964_v47  ;;  %v12827_v58 = vcombine.low %v314_v44, %v318_v45 }
  0x51   :  { %v446_v48 = vld [vmem:[%s19714_s1 + $0xd20] sm:$0xff]  ;;  %9797 = vmatpush1.bf16.msra.mxu1 %v12963_v50 }
  0x52   :  { %v306_v52 = vld [vmem:[%s19714_s1 + $0x8c0] sm:$0xff]  ;;  %v12956_v56 = vcombine.high %v442_v46, %v446_v48  ;;  %9757 = vmatprep.subr.bf16.mxu0 %v12828_v51  ;;  %v12955_v60 = vcombine.low %v442_v46, %v446_v48 }
  0x53   :  { %v310_v54 = vld [vmem:[%s19714_s1 + $0x8e0] sm:$0xff]  ;;  %9758 = vmatpush1.bf16.msra.mxu0 %v12827_v58 }
  0x54   :  { %v434_v55 = vld [vmem:[%s19714_s1 + $0xcc0] sm:$0xff]  ;;  %v12820_v61 = vcombine.high %v306_v52, %v310_v54  ;;  %9798 = vmatprep.subr.bf16.mxu1 %v12956_v56  ;;  %v12819_v4 = vcombine.low %v306_v52, %v310_v54 }
  0x55   :  { %v438_v57 = vld [vmem:[%s19714_s1 + $0xce0] sm:$0xff]  ;;  %9799 = vmatpush1.bf16.msra.mxu1 %v12955_v60 }
  0x56   :  { %v298_v62 = vld [vmem:[%s19714_s1 + $0x880] sm:$0xff]  ;;  %v12948_v2 = vcombine.high %v434_v55, %v438_v57  ;;  %9759 = vmatprep.subr.bf16.mxu0 %v12820_v61  ;;  %v12947_v5 = vcombine.low %v434_v55, %v438_v57 }
  0x57   :  { %v302_v0 = vld [vmem:[%s19714_s1 + $0x8a0] sm:$0xff]  ;;  %9760 = vmatpush1.bf16.msra.mxu0 %v12819_v4 }
  0x58   :  { %v426_v1 = vld [vmem:[%s19714_s1 + $0xc80] sm:$0xff]  ;;  %v12812_v6 = vcombine.high %v298_v62, %v302_v0  ;;  %9800 = vmatprep.subr.bf16.mxu1 %v12948_v2  ;;  %v12811_v14 = vcombine.low %v298_v62, %v302_v0 }
  0x59   :  { %v430_v3 = vld [vmem:[%s19714_s1 + $0xca0] sm:$0xff]  ;;  %9801 = vmatpush1.bf16.msra.mxu1 %v12947_v5 }
  0x5a   :  { %v290_v7 = vld [vmem:[%s19714_s1 + $0x840] sm:$0xff]  ;;  %v12940_v11 = vcombine.high %v426_v1, %v430_v3  ;;  %9761 = vmatprep.subr.bf16.mxu0 %v12812_v6  ;;  %v12939_v15 = vcombine.low %v426_v1, %v430_v3 }
  0x5b   :  { %v294_v59 = vld [vmem:[%s19714_s1 + $0x860] sm:$0xff]  ;;  %9762 = vmatpush1.bf16.msra.mxu0 %v12811_v14 }
  0x5c   :  { %v418_v8 = vld [vmem:[%s19714_s1 + $0xc40] sm:$0xff]  ;;  %v12804_v16 = vcombine.high %v290_v7, %v294_v59  ;;  %9802 = vmatprep.subr.bf16.mxu1 %v12940_v11  ;;  %v12803_v23 = vcombine.low %v290_v7, %v294_v59 }
  0x5d   :  { %v422_v12 = vld [vmem:[%s19714_s1 + $0xc60] sm:$0xff]  ;;  %9803 = vmatpush1.bf16.msra.mxu1 %v12939_v15 }
  0x5e   :  { %v282_v17 = vld [vmem:[%s19714_s1 + $0x800] sm:$0xff]  ;;  %v12932_v20 = vcombine.high %v418_v8, %v422_v12  ;;  %9763 = vmatprep.subr.bf16.mxu0 %v12804_v16  ;;  %v12931_v24 = vcombine.low %v418_v8, %v422_v12 }
  0x5f   :  { %v286_v18 = vld [vmem:[%s19714_s1 + $0x820] sm:$0xff]  ;;  %9764 = vmatpush1.bf16.msra.mxu0 %v12803_v23 }
  0x60   :  { %v410_v19 = vld [vmem:[%s19714_s1 + $0xc00] sm:$0xff]  ;;  %v12796_v25 = vcombine.high %v282_v17, %v286_v18  ;;  %9804 = vmatprep.subr.bf16.mxu1 %v12932_v20  ;;  %v12795_v32 = vcombine.low %v282_v17, %v286_v18 }
  0x61   :  { %v414_v21 = vld [vmem:[%s19714_s1 + $0xc20] sm:$0xff]  ;;  %9805 = vmatpush1.bf16.msra.mxu1 %v12931_v24  ;;  %v14824_v24 = vld [vmem:[%s19713_s0 + $0x8] sm:$0xff] }
  0x62   :  { %v402_v26 = vld [vmem:[%s19714_s1 + $0xbc0] sm:$0xff]  ;;  %v12924_v63 = vcombine.high %v410_v19, %v414_v21  ;;  %9765 = vmatprep.subr.bf16.mxu0 %v12796_v25  ;;  %v12923_v33 = vcombine.low %v410_v19, %v414_v21 }
  0x63   :  { %v406_v27 = vld [vmem:[%s19714_s1 + $0xbe0] sm:$0xff]  ;;  %9766 = vmatpush1.bf16.msra.mxu0 %v12795_v32 }
  0x64   :  { %v530_v28 = vld [vmem:[%s19714_s1 + $0xfc0] sm:$0xff]  ;;  %v12916_v34 = vcombine.high %v402_v26, %v406_v27  ;;  %9806 = vmatprep.subr.bf16.mxu1 %v12924_v63  ;;  %v12915_v41 = vcombine.low %v402_v26, %v406_v27 }
  0x65   :  { %v534_v31 = vld [vmem:[%s19714_s1 + $0xfe0] sm:$0xff]  ;;  %9807 = vmatpush1.bf16.msra.mxu1 %v12923_v33 }
  0x66   :  { %v394_v35 = vld [vmem:[%s19714_s1 + $0xb80] sm:$0xff]  ;;  %v13044_v38 = vcombine.high %v530_v28, %v534_v31  ;;  %9767 = vmatprep.subr.bf16.mxu0 %v12916_v34  ;;  %v13043_v42 = vcombine.low %v530_v28, %v534_v31  ;;  %v14840_v34 = vrot.slane %v14824_v24, %v14479_v53 }
  0x67   :  { %v398_v36 = vld [vmem:[%s19714_s1 + $0xba0] sm:$0xff]  ;;  %9768 = vmatpush2.bf16.msra.mxu0 %v12915_v41 }
  0x68   :  { %v522_v37 = vld [vmem:[%s19714_s1 + $0xf80] sm:$0xff]  ;;  %v12908_v44 = vcombine.high %v394_v35, %v398_v36  ;;  %9808 = vmatprep.subr.bf16.mxu1 %v13044_v38  ;;  %v12907_v50 = vcombine.low %v394_v35, %v398_v36 }
  0x69   :  { %v526_v40 = vld [vmem:[%s19714_s1 + $0xfa0] sm:$0xff]  ;;  %9809 = vmatpush2.bf16.msra.mxu1 %v13043_v42 }
  0x6a   :  { %v386_v45 = vld [vmem:[%s19714_s1 + $0xb40] sm:$0xff]  ;;  %v13036_v48 = vcombine.high %v522_v37, %v526_v40  ;;  %9769 = vmatprep.subr.bf16.mxu0 %v12908_v44  ;;  %v13035_v51 = vcombine.low %v522_v37, %v526_v40 }
  0x6b   :  { %v390_v46 = vld [vmem:[%s19714_s1 + $0xb60] sm:$0xff]  ;;  %9770 = vmatpush2.bf16.msra.mxu0 %v12907_v50 }
  0x6c   :  { %v514_v47 = vld [vmem:[%s19714_s1 + $0xf40] sm:$0xff]  ;;  %v12900_v52 = vcombine.high %v386_v45, %v390_v46  ;;  %9810 = vmatprep.subr.bf16.mxu1 %v13036_v48  ;;  %v12899_v60 = vcombine.low %v386_v45, %v390_v46  ;;  %v1704_v45 = vcombine.high %v14840_v34, %v14840_v34 }
  0x6d   :  { %v518_v49 = vld [vmem:[%s19714_s1 + $0xf60] sm:$0xff]  ;;  %9811 = vmatpush2.bf16.msra.mxu1 %v13035_v51 }
  0x6e   :  { %v378_v54 = vld [vmem:[%s19714_s1 + $0xb00] sm:$0xff]  ;;  %v13028_v57 = vcombine.high %v514_v47, %v518_v49  ;;  %9771 = vmatprep.subr.bf16.mxu0 %v12900_v52  ;;  %v13027_v61 = vcombine.low %v514_v47, %v518_v49  ;;  %v14858_v47 = vrot.slane %v14618_v10, %v14479_v53 }
  0x6f   :  { %v382_v55 = vld [vmem:[%s19714_s1 + $0xb20] sm:$0xff]  ;;  %9772 = vmatpush2.bf16.msra.mxu0 %v12899_v60 }
  0x70   :  { %v506_v56 = vld [vmem:[%s19714_s1 + $0xf00] sm:$0xff]  ;;  %v12892_v62 = vcombine.high %v378_v54, %v382_v55  ;;  %9812 = vmatprep.subr.bf16.mxu1 %v13028_v57  ;;  %v12891_v5 = vcombine.low %v378_v54, %v382_v55  ;;  %v14873_v55 = vrot.slane %v1704_v45, %v14479_v53 }
  0x71   :  { %v510_v58 = vld [vmem:[%s19714_s1 + $0xf20] sm:$0xff]  ;;  %9813 = vmatpush2.bf16.msra.mxu1 %v13027_v61 }
  0x72   :  { %v370_v0 = vld [vmem:[%s19714_s1 + $0xac0] sm:$0xff]  ;;  %v13020_v3 = vcombine.high %v506_v56, %v510_v58  ;;  %9773 = vmatprep.subr.bf16.mxu0 %v12892_v62  ;;  %v13019_v6 = vcombine.low %v506_v56, %v510_v58  ;;  %v14877_v56 = vcombine.high %v14858_v47, %v14858_v47 }
  0x73   :  { %v374_v1 = vld [vmem:[%s19714_s1 + $0xae0] sm:$0xff]  ;;  %9774 = vmatpush2.bf16.msra.mxu0 %v12891_v5 }
  0x74   :  { %v498_v2 = vld [vmem:[%s19714_s1 + $0xec0] sm:$0xff]  ;;  %v12884_v7 = vcombine.high %v370_v0, %v374_v1  ;;  %9814 = vmatprep.subr.bf16.mxu1 %v13020_v3  ;;  %v12883_v15 = vcombine.low %v370_v0, %v374_v1 }
  0x75   :  { %v502_v4 = vld [vmem:[%s19714_s1 + $0xee0] sm:$0xff]  ;;  %9815 = vmatpush2.bf16.msra.mxu1 %v13019_v6 }
  0x76   :  { %v362_v59 = vld [vmem:[%s19714_s1 + $0xa80] sm:$0xff]  ;;  %v13012_v12 = vcombine.high %v498_v2, %v502_v4  ;;  %9775 = vmatprep.subr.bf16.mxu0 %v12884_v7  ;;  %v13011_v17 = vcombine.low %v498_v2, %v502_v4 }
  0x77   :  { %v366_v8 = vld [vmem:[%s19714_s1 + $0xaa0] sm:$0xff]  ;;  %9776 = vmatpush2.bf16.msra.mxu0 %v12883_v15 }
  0x78   :  { %v490_v11 = vld [vmem:[%s19714_s1 + $0xe80] sm:$0xff]  ;;  %v12876_v18 = vcombine.high %v362_v59, %v366_v8  ;;  %9816 = vmatprep.subr.bf16.mxu1 %v13012_v12  ;;  %v12875_v25 = vcombine.low %v362_v59, %v366_v8 }
  0x79   :  { %v494_v14 = vld [vmem:[%s19714_s1 + $0xea0] sm:$0xff]  ;;  %9817 = vmatpush2.bf16.msra.mxu1 %v13011_v17 }
  0x7a   :  { %v354_v16 = vld [vmem:[%s19714_s1 + $0xa40] sm:$0xff]  ;;  %v13004_v23 = vcombine.high %v490_v11, %v494_v14  ;;  %9777 = vmatprep.subr.bf16.mxu0 %v12876_v18  ;;  %v13003_v26 = vcombine.low %v490_v11, %v494_v14 }
  0x7b   :  { %v358_v19 = vld [vmem:[%s19714_s1 + $0xa60] sm:$0xff]  ;;  %9778 = vmatpush2.bf16.msra.mxu0 %v12875_v25 }
  0x7c   :  { %v482_v20 = vld [vmem:[%s19714_s1 + $0xe40] sm:$0xff]  ;;  %v12868_v27 = vcombine.high %v354_v16, %v358_v19  ;;  %9818 = vmatprep.subr.bf16.mxu1 %v13004_v23  ;;  %v12867_v35 = vcombine.low %v354_v16, %v358_v19 }
  0x7d   :  { %v486_v21 = vld [vmem:[%s19714_s1 + $0xe60] sm:$0xff]  ;;  %9819 = vmatpush2.bf16.msra.mxu1 %v13003_v26 }
  0x7e   :  { %v346_v28 = vld [vmem:[%s19714_s1 + $0xa00] sm:$0xff]  ;;  %v12996_v32 = vcombine.high %v482_v20, %v486_v21  ;;  %9779 = vmatprep.subr.bf16.mxu0 %v12868_v27  ;;  %v12995_v36 = vcombine.low %v482_v20, %v486_v21 }
  0x7f   :  { %v350_v63 = vld [vmem:[%s19714_s1 + $0xa20] sm:$0xff]  ;;  %9780 = vmatpush2.bf16.msra.mxu0 %v12867_v35 }
  0x80   :  { %v474_v31 = vld [vmem:[%s19714_s1 + $0xe00] sm:$0xff]  ;;  %v12860_v37 = vcombine.high %v346_v28, %v350_v63  ;;  %9820 = vmatprep.subr.bf16.mxu1 %v12996_v32  ;;  %v12859_v46 = vcombine.low %v346_v28, %v350_v63 }
  0x81   :  { %v478_v33 = vld [vmem:[%s19714_s1 + $0xe20] sm:$0xff]  ;;  %9821 = vmatpush2.bf16.msra.mxu1 %v12995_v36 }
  0x82   :  { %v594_v38 = vld [vmem:[%s19714_s1 + $0x11c0] sm:$0xff]  ;;  %v12988_v42 = vcombine.high %v474_v31, %v478_v33  ;;  %9781 = vmatprep.subr.bf16.mxu0 %v12860_v37  ;;  %v12987_v48 = vcombine.low %v474_v31, %v478_v33 }
  0x83   :  { %v598_v40 = vld [vmem:[%s19714_s1 + $0x11e0] sm:$0xff]  ;;  %9782 = vmatpush2.bf16.msra.mxu0 %v12859_v46 }
  0x84   :  { %v722_v41 = vld [vmem:[%s19714_s1 + $0x15c0] sm:$0xff]  ;;  %v13108_v49 = vcombine.high %v594_v38, %v598_v40  ;;  %9822 = vmatprep.subr.bf16.mxu1 %v12988_v42  ;;  %v13107_v57 = vcombine.low %v594_v38, %v598_v40 }
  0x85   :  { %v726_v44 = vld [vmem:[%s19714_s1 + $0x15e0] sm:$0xff] }
  0x86   :  { %v586_v50 = vld [vmem:[%s19714_s1 + $0x1180] sm:$0xff]  ;;  %v13236_v54 = vcombine.high %v722_v41, %v726_v44 }
  0x87   :  { %v590_v51 = vld [vmem:[%s19714_s1 + $0x11a0] sm:$0xff] }
  0x88   :  { %v714_v52 = vld [vmem:[%s19714_s1 + $0x1580] sm:$0xff] }
  0x89   :  { %v718_v10 = vld [vmem:[%s19714_s1 + $0x15a0] sm:$0xff] }
  0x8a   :  { %10 = vsyncpa [#allocation3], 0  ;;  %9823 = vmatpush2.bf16.msra.mxu1 %v12987_v48  ;;  %9833 = vmatprep.subr.bf16.mxu0 %v13108_v49  ;;  %v13235_v58 = vcombine.low %v722_v41, %v726_v44  ;;  %v13100_v60 = vcombine.high %v586_v50, %v590_v51  ;;  %v13228_v61 = vcombine.high %v714_v52, %v718_v10  ;;  %v578_v62 = vld [vmem:[%s19714_s1 + $0x1140] sm:$0xff]  ;;  %vm9665_vm0 = vcmask 523264   ;;  %s14367_s13 = smov [#allocation2]  }
  0x8b   :  { %9874 = vmatprep.subr.bf16.mxu1 %v13236_v54  ;;  %v582_v0 = vld [vmem:[%s19714_s1 + $0x1160] sm:$0xff]  ;;  %9784 = vmatmul.mubr.bf16.vlgmr.msra.gmra.mxu0 %v14858_v47  ;;  %v14894_v3 = vcombine.high %v14873_v55, %v14873_v55  ;;  %v13099_v4 = vcombine.low %v586_v50, %v590_v51  ;;  %v13227_v5 = vcombine.low %v714_v52, %v718_v10  ;;  %vm12500_vm1 = vcmask 25600   ;;  %s12530_s14 = sshll.u32 %s14367_s13, 4  ;;  %s12531_s14 = int_to_ptr.vmem [resolvable:$true] %s12530_s14 }
  0x8c   :  { %v706_v1 = vld [vmem:[%s19714_s1 + $0x1540] sm:$0xff]  ;;  %9834 = vmatpush1.bf16.msra.mxu0 %v13107_v57  ;;  %v13092_v6 = vcombine.high %v578_v62, %v582_v0  ;;  %9865 = vmatprep.mubr.bf16.mxu0 %v14873_v55  ;;  %v13091_v14 = vcombine.low %v578_v62, %v582_v0  ;;  %s14342_s15 = scalar_lea.vmem %s12531_s14, 32  ;;  %p14347_p1 = scmp.lt.s32.totalorder %s12531_s14, %s12531_s14 }
  0x8d   :  { %v710_v2 = vld [vmem:[%s19714_s1 + $0x1560] sm:$0xff]  ;;  %9825 = vmatmul.mubr.bf16.vlgmr.msra.gmra.mxu1 %v14877_v56  ;;  %9835 = vmatprep.subr.bf16.mxu0 %v13100_v60  ;;  %p14343_p0 = scmp.ne.s32.totalorder %s12531_s14, %s14342_s15  ;;  %p14348_p2 = scmp.lt.s32.totalorder %s14342_s15, %s14342_s15 }
  0x8e   :  { %9875 = vmatpush1.bf16.msra.mxu1 %v13235_v58  ;;  %v13220_v7 = vcombine.high %v706_v1, %v710_v2  ;;  %v570_v59 = vld [vmem:[%s19714_s1 + $0x1100] sm:$0xff]  ;;  %9906 = vmatprep.mubr.bf16.mxu1 %v14894_v3  ;;  %v13219_v15 = vcombine.low %v706_v1, %v710_v2 }
  0x8f   :  { %9876 = vmatprep.subr.bf16.mxu1 %v13228_v61  ;;  %v574_v8 = vld [vmem:[%s19714_s1 + $0x1120] sm:$0xff]  ;;  %p14349_p3 = por %p14348_p2, %p14347_p1 }
  0x90   :  { %v698_v11 = vld [vmem:[%s19714_s1 + $0x1500] sm:$0xff]  ;;  %9836 = vmatpush1.bf16.msra.mxu0 %v13099_v4  ;;  %v13084_v16 = vcombine.high %v570_v59, %v574_v8  ;;  %v13083_v23 = vcombine.low %v570_v59, %v574_v8 }
  0x91   :  { %v702_v12 = vld [vmem:[%s19714_s1 + $0x1520] sm:$0xff]  ;;  %9837 = vmatprep.subr.bf16.mxu0 %v13092_v6  ;;  %p14350_p4 = pnand %p14349_p3, %p14343_p0 }
  0x92   :  { %9877 = vmatpush1.bf16.msra.mxu1 %v13227_v5  ;;  %v13212_v17 = vcombine.high %v698_v11, %v702_v12  ;;  %v562_v18 = vld [vmem:[%s19714_s1 + $0x10c0] sm:$0xff]  ;;  %v13211_v25 = vcombine.low %v698_v11, %v702_v12 }
  0x93   :  { %9878 = vmatprep.subr.bf16.mxu1 %v13220_v7  ;;  %v566_v19 = vld [vmem:[%s19714_s1 + $0x10e0] sm:$0xff] }
  0x94   :  { %v690_v20 = vld [vmem:[%s19714_s1 + $0x14c0] sm:$0xff]  ;;  %9838 = vmatpush1.bf16.msra.mxu0 %v13091_v14  ;;  %v13076_v26 = vcombine.high %v562_v18, %v566_v19  ;;  %v13075_v33 = vcombine.low %v562_v18, %v566_v19 }
  0x95   :  { %v694_v21 = vld [vmem:[%s19714_s1 + $0x14e0] sm:$0xff]  ;;  %9839 = vmatprep.subr.bf16.mxu0 %v13084_v16 }
  0x96   :  { %9879 = vmatpush1.bf16.msra.mxu1 %v13219_v15  ;;  %v13204_v27 = vcombine.high %v690_v20, %v694_v21  ;;  %v554_v28 = vld [vmem:[%s19714_s1 + $0x1080] sm:$0xff]  ;;  %v13203_v35 = vcombine.low %v690_v20, %v694_v21 }
  0x97   :  { %9880 = vmatprep.subr.bf16.mxu1 %v13212_v17  ;;  %v558_v63 = vld [vmem:[%s19714_s1 + $0x10a0] sm:$0xff] }
  0x98   :  { %v682_v31 = vld [vmem:[%s19714_s1 + $0x1480] sm:$0xff]  ;;  %9840 = vmatpush1.bf16.msra.mxu0 %v13083_v23  ;;  %v13068_v36 = vcombine.high %v554_v28, %v558_v63  ;;  %v13067_v44 = vcombine.low %v554_v28, %v558_v63 }
  0x99   :  { %v686_v32 = vld [vmem:[%s19714_s1 + $0x14a0] sm:$0xff]  ;;  %9841 = vmatprep.subr.bf16.mxu0 %v13076_v26 }
  0x9a   :  { %9881 = vmatpush1.bf16.msra.mxu1 %v13211_v25  ;;  %v13196_v37 = vcombine.high %v682_v31, %v686_v32  ;;  %v546_v38 = vld [vmem:[%s19714_s1 + $0x1040] sm:$0xff]  ;;  %v13195_v45 = vcombine.low %v682_v31, %v686_v32 }
  0x9b   :  { %9882 = vmatprep.subr.bf16.mxu1 %v13204_v27  ;;  %v550_v40 = vld [vmem:[%s19714_s1 + $0x1060] sm:$0xff] }
  0x9c   :  { %v674_v41 = vld [vmem:[%s19714_s1 + $0x1440] sm:$0xff]  ;;  %9842 = vmatpush1.bf16.msra.mxu0 %v13075_v33  ;;  %v13060_v46 = vcombine.high %v546_v38, %v550_v40  ;;  %v13059_v54 = vcombine.low %v546_v38, %v550_v40 }
  0x9d   :  { %v678_v42 = vld [vmem:[%s19714_s1 + $0x1460] sm:$0xff]  ;;  %9843 = vmatprep.subr.bf16.mxu0 %v13068_v36 }
  0x9e   :  { %9883 = vmatpush1.bf16.msra.mxu1 %v13203_v35  ;;  %v13188_v48 = vcombine.high %v674_v41, %v678_v42  ;;  %v538_v49 = vld [vmem:[%s19714_s1 + $0x1000] sm:$0xff]  ;;  %v13187_v10 = vcombine.low %v674_v41, %v678_v42 }
  0x9f   :  { %9884 = vmatprep.subr.bf16.mxu1 %v13196_v37  ;;  %v542_v50 = vld [vmem:[%s19714_s1 + $0x1020] sm:$0xff] }
  0xa0   :  { %v666_v51 = vld [vmem:[%s19714_s1 + $0x1400] sm:$0xff]  ;;  %9844 = vmatpush1.bf16.msra.mxu0 %v13067_v44  ;;  %v13052_v57 = vcombine.high %v538_v49, %v542_v50  ;;  %v13051_v1 = vcombine.low %v538_v49, %v542_v50 }
  0xa1   :  { %v670_v52 = vld [vmem:[%s19714_s1 + $0x1420] sm:$0xff]  ;;  %9845 = vmatprep.subr.bf16.mxu0 %v13060_v46 }
  0xa2   :  { %9885 = vmatpush1.bf16.msra.mxu1 %v13195_v45  ;;  %v13180_v58 = vcombine.high %v666_v51, %v670_v52  ;;  %v658_v60 = vld [vmem:[%s19714_s1 + $0x13c0] sm:$0xff]  ;;  %v13179_v2 = vcombine.low %v666_v51, %v670_v52 }
  0xa3   :  { %9886 = vmatprep.subr.bf16.mxu1 %v13188_v48  ;;  %v662_v61 = vld [vmem:[%s19714_s1 + $0x13e0] sm:$0xff] }
  0xa4   :  { %v786_v62 = vld [vmem:[%s19714_s1 + $0x17c0] sm:$0xff]  ;;  %9846 = vmatpush1.bf16.msra.mxu0 %v13059_v54  ;;  %v13172_v4 = vcombine.high %v658_v60, %v662_v61  ;;  %v13171_v11 = vcombine.low %v658_v60, %v662_v61 }
  0xa5   :  { %v790_v0 = vld [vmem:[%s19714_s1 + $0x17e0] sm:$0xff]  ;;  %9847 = vmatprep.subr.bf16.mxu0 %v13052_v57 }
  0xa6   :  { %9887 = vmatpush1.bf16.msra.mxu1 %v13187_v10  ;;  %v13300_v5 = vcombine.high %v786_v62, %v790_v0  ;;  %v650_v6 = vld [vmem:[%s19714_s1 + $0x1380] sm:$0xff]  ;;  %v13299_v12 = vcombine.low %v786_v62, %v790_v0  ;;  %v1689_v62 = vcombine.high %v14824_v24, %v14824_v24 }
  0xa7   :  { %9888 = vmatprep.subr.bf16.mxu1 %v13180_v58  ;;  %v654_v7 = vld [vmem:[%s19714_s1 + $0x13a0] sm:$0xff] }
  0xa8   :  { %v778_v59 = vld [vmem:[%s19714_s1 + $0x1780] sm:$0xff]  ;;  %9848 = vmatpush1.bf16.msra.mxu0 %v13051_v1  ;;  %v13164_v14 = vcombine.high %v650_v6, %v654_v7  ;;  %v13163_v20 = vcombine.low %v650_v6, %v654_v7 }
  0xa9   :  { %v782_v8 = vld [vmem:[%s19714_s1 + $0x17a0] sm:$0xff]  ;;  %9849 = vmatprep.subr.bf16.mxu0 %v13172_v4 }
  0xaa   :  { %9889 = vmatpush1.bf16.msra.mxu1 %v13179_v2  ;;  %v13292_v15 = vcombine.high %v778_v59, %v782_v8  ;;  %v642_v16 = vld [vmem:[%s19714_s1 + $0x1340] sm:$0xff]  ;;  %v13291_v21 = vcombine.low %v778_v59, %v782_v8  ;;  %v15058_v59 = vrot.slane %v1689_v62, %v14479_v53 }
  0xab   :  { %9890 = vmatprep.subr.bf16.mxu1 %v13300_v5  ;;  %v646_v17 = vld [vmem:[%s19714_s1 + $0x1360] sm:$0xff] }
  0xac   :  { %v770_v18 = vld [vmem:[%s19714_s1 + $0x1740] sm:$0xff]  ;;  %9850 = vmatpush2.bf16.msra.mxu0 %v13171_v11  ;;  %v13156_v23 = vcombine.high %v642_v16, %v646_v17  ;;  %v13155_v31 = vcombine.low %v642_v16, %v646_v17 }
  0xad   :  { %v774_v19 = vld [vmem:[%s19714_s1 + $0x1760] sm:$0xff]  ;;  %9851 = vmatprep.subr.bf16.mxu0 %v13164_v14 }
  0xae   :  { %9891 = vmatpush2.bf16.msra.mxu1 %v13299_v12  ;;  %v13284_v25 = vcombine.high %v770_v18, %v774_v19  ;;  %v634_v26 = vld [vmem:[%s19714_s1 + $0x1300] sm:$0xff]  ;;  %v13283_v32 = vcombine.low %v770_v18, %v774_v19  ;;  %v1705_v19 = vcombine.high %v15058_v59, %v15058_v59 }
  0xaf   :  { %9892 = vmatprep.subr.bf16.mxu1 %v13292_v15  ;;  %v638_v27 = vld [vmem:[%s19714_s1 + $0x1320] sm:$0xff] }
  0xb0   :  { %v762_v28 = vld [vmem:[%s19714_s1 + $0x1700] sm:$0xff]  ;;  %9852 = vmatpush2.bf16.msra.mxu0 %v13163_v20  ;;  %v13148_v33 = vcombine.high %v634_v26, %v638_v27  ;;  %v13147_v41 = vcombine.low %v634_v26, %v638_v27 }
  0xb1   :  { %v766_v63 = vld [vmem:[%s19714_s1 + $0x1720] sm:$0xff]  ;;  %9853 = vmatprep.subr.bf16.mxu0 %v13156_v23 }
  0xb2   :  { %9893 = vmatpush2.bf16.msra.mxu1 %v13291_v21  ;;  %v13276_v35 = vcombine.high %v762_v28, %v766_v63  ;;  %v626_v36 = vld [vmem:[%s19714_s1 + $0x12c0] sm:$0xff]  ;;  %v13275_v42 = vcombine.low %v762_v28, %v766_v63  ;;  %v15076_v21 = vrot.slane %v14840_v34, %v14479_v53 }
  0xb3   :  { %9894 = vmatprep.subr.bf16.mxu1 %v13284_v25  ;;  %v630_v37 = vld [vmem:[%s19714_s1 + $0x12e0] sm:$0xff] }
  0xb4   :  { %v754_v38 = vld [vmem:[%s19714_s1 + $0x16c0] sm:$0xff]  ;;  %9854 = vmatpush2.bf16.msra.mxu0 %v13155_v31  ;;  %v13140_v44 = vcombine.high %v626_v36, %v630_v37  ;;  %v13139_v51 = vcombine.low %v626_v36, %v630_v37  ;;  %v15091_v31 = vrot.slane %v1705_v19, %v14479_v53 }
  0xb5   :  { %v758_v40 = vld [vmem:[%s19714_s1 + $0x16e0] sm:$0xff]  ;;  %9855 = vmatprep.subr.bf16.mxu0 %v13148_v33 }
  0xb6   :  { %9895 = vmatpush2.bf16.msra.mxu1 %v13283_v32  ;;  %v13268_v45 = vcombine.high %v754_v38, %v758_v40  ;;  %v618_v46 = vld [vmem:[%s19714_s1 + $0x1280] sm:$0xff]  ;;  %v13267_v52 = vcombine.low %v754_v38, %v758_v40  ;;  %v15095_v32 = vcombine.high %v15076_v21, %v15076_v21 }
  0xb7   :  { %9896 = vmatprep.subr.bf16.mxu1 %v13276_v35  ;;  %v622_v48 = vld [vmem:[%s19714_s1 + $0x12a0] sm:$0xff] }
  0xb8   :  { %v746_v49 = vld [vmem:[%s19714_s1 + $0x1680] sm:$0xff]  ;;  %9856 = vmatpush2.bf16.msra.mxu0 %v13147_v41  ;;  %v13132_v54 = vcombine.high %v618_v46, %v622_v48  ;;  %v13131_v0 = vcombine.low %v618_v46, %v622_v48 }
  0xb9   :  { %v750_v50 = vld [vmem:[%s19714_s1 + $0x16a0] sm:$0xff]  ;;  %9857 = vmatprep.subr.bf16.mxu0 %v13140_v44  ;;  %v15112_v44 = vcombine.high %v15091_v31, %v15091_v31 }
  0xba   :  { %9897 = vmatpush2.bf16.msra.mxu1 %v13275_v42  ;;  %v13260_v10 = vcombine.high %v746_v49, %v750_v50  ;;  %v610_v57 = vld [vmem:[%s19714_s1 + $0x1240] sm:$0xff]  ;;  %v13259_v1 = vcombine.low %v746_v49, %v750_v50 }
  0xbb   :  { %9898 = vmatprep.subr.bf16.mxu1 %v13268_v45  ;;  %v614_v58 = vld [vmem:[%s19714_s1 + $0x1260] sm:$0xff] }
  0xbc   :  { %v738_v60 = vld [vmem:[%s19714_s1 + $0x1640] sm:$0xff]  ;;  %9858 = vmatpush2.bf16.msra.mxu0 %v13139_v51  ;;  %v13124_v2 = vcombine.high %v610_v57, %v614_v58  ;;  %v13123_v8 = vcombine.low %v610_v57, %v614_v58 }
  0xbd   :  { %v742_v61 = vld [vmem:[%s19714_s1 + $0x1660] sm:$0xff]  ;;  %9859 = vmatprep.subr.bf16.mxu0 %v13132_v54 }
  0xbe   :  { %9899 = vmatpush2.bf16.msra.mxu1 %v13267_v52  ;;  %v13252_v4 = vcombine.high %v738_v60, %v742_v61  ;;  %v602_v5 = vld [vmem:[%s19714_s1 + $0x1200] sm:$0xff]  ;;  %v13251_v11 = vcombine.low %v738_v60, %v742_v61 }
  0xbf   :  { %9900 = vmatprep.subr.bf16.mxu1 %v13260_v10  ;;  %v606_v6 = vld [vmem:[%s19714_s1 + $0x1220] sm:$0xff] }
  0xc0   :  { %v730_v24 = vld [vmem:[%s19714_s1 + $0x1600] sm:$0xff]  ;;  %9860 = vmatpush2.bf16.msra.mxu0 %v13131_v0  ;;  %v13116_v12 = vcombine.high %v602_v5, %v606_v6  ;;  %v13115_v20 = vcombine.low %v602_v5, %v606_v6 }
  0xc1   :  { %v734_v7 = vld [vmem:[%s19714_s1 + $0x1620] sm:$0xff]  ;;  %9861 = vmatprep.subr.bf16.mxu0 %v13124_v2 }
  0xc2   :  { %9901 = vmatpush2.bf16.msra.mxu1 %v13259_v1  ;;  %v13244_v14 = vcombine.high %v730_v24, %v734_v7  ;;  %v850_v15 = vld [vmem:[%s19714_s1 + $0x19c0] sm:$0xff]  ;;  %v13243_v23 = vcombine.low %v730_v24, %v734_v7 }
  0xc3   :  { %9902 = vmatprep.subr.bf16.mxu1 %v13252_v4  ;;  %v854_v16 = vld [vmem:[%s19714_s1 + $0x19e0] sm:$0xff] }
  0xc4   :  { %v978_v17 = vld [vmem:[%s19714_s1 + $0x1dc0] sm:$0xff]  ;;  %9862 = vmatpush2.bf16.msra.mxu0 %v13123_v8  ;;  %v13364_v25 = vcombine.high %v850_v15, %v854_v16  ;;  %v13363_v33 = vcombine.low %v850_v15, %v854_v16 }
  0xc5   :  { %v982_v18 = vld [vmem:[%s19714_s1 + $0x1de0] sm:$0xff]  ;;  %9863 = vmatprep.subr.bf16.mxu0 %v13116_v12 }
  0xc6   :  { %9903 = vmatpush2.bf16.msra.mxu1 %v13251_v11  ;;  %v13492_v26 = vcombine.high %v978_v17, %v982_v18  ;;  %v842_v27 = vld [vmem:[%s19714_s1 + $0x1980] sm:$0xff]  ;;  %v13491_v35 = vcombine.low %v978_v17, %v982_v18 }
  0xc7   :  { %9904 = vmatprep.subr.bf16.mxu1 %v13244_v14  ;;  %v846_v28 = vld [vmem:[%s19714_s1 + $0x19a0] sm:$0xff] }
  0xc8   :  { %v970_v63 = vld [vmem:[%s19714_s1 + $0x1d80] sm:$0xff]  ;;  %9864 = vmatpush2.bf16.msra.mxu0 %v13115_v20  ;;  %v13356_v36 = vcombine.high %v842_v27, %v846_v28  ;;  %v13355_v45 = vcombine.low %v842_v27, %v846_v28 }
  0xc9   :  { %v974_v34 = vld [vmem:[%s19714_s1 + $0x1da0] sm:$0xff]  ;;  %9915 = vmatprep.subr.bf16.mxu0 %v13364_v25 }
  0xca   :  { %9905 = vmatpush2.bf16.msra.mxu1 %v13243_v23  ;;  %v13484_v37 = vcombine.high %v970_v63, %v974_v34  ;;  %v834_v38 = vld [vmem:[%s19714_s1 + $0x1940] sm:$0xff]  ;;  %v13483_v46 = vcombine.low %v970_v63, %v974_v34 }
  0xcb   :  { %9956 = vmatprep.subr.bf16.mxu1 %v13492_v26  ;;  %v838_v40 = vld [vmem:[%s19714_s1 + $0x1960] sm:$0xff]  ;;  %9866 = vmatmul.mubr.bf16.vlgmr.msra.gmra.mxu0 %v15076_v21 }
  0xcc   :  { %v962_v41 = vld [vmem:[%s19714_s1 + $0x1d40] sm:$0xff]  ;;  %9916 = vmatpush1.bf16.msra.mxu0 %v13363_v33  ;;  %v13348_v48 = vcombine.high %v834_v38, %v838_v40  ;;  %9947 = vmatprep.mubr.bf16.mxu0 %v15091_v31  ;;  %v13347_v10 = vcombine.low %v834_v38, %v838_v40 }
  0xcd   :  { %v966_v42 = vld [vmem:[%s19714_s1 + $0x1d60] sm:$0xff]  ;;  %9907 = vmatmul.mubr.bf16.vlgmr.msra.gmra.mxu1 %v15095_v32  ;;  %9917 = vmatprep.subr.bf16.mxu0 %v13356_v36 }
  0xce   :  { %9957 = vmatpush1.bf16.msra.mxu1 %v13491_v35  ;;  %v13476_v49 = vcombine.high %v962_v41, %v966_v42  ;;  %v826_v50 = vld [vmem:[%s19714_s1 + $0x1900] sm:$0xff]  ;;  %9988 = vmatprep.mubr.bf16.mxu1 %v15112_v44  ;;  %v13475_v57 = vcombine.low %v962_v41, %v966_v42 }
  0xcf   :  { %9958 = vmatprep.subr.bf16.mxu1 %v13484_v37  ;;  %v830_v51 = vld [vmem:[%s19714_s1 + $0x1920] sm:$0xff] }
  0xd0   :  { %v954_v52 = vld [vmem:[%s19714_s1 + $0x1d00] sm:$0xff]  ;;  %9918 = vmatpush1.bf16.msra.mxu0 %v13355_v45  ;;  %v13340_v58 = vcombine.high %v826_v50, %v830_v51  ;;  %v13339_v2 = vcombine.low %v826_v50, %v830_v51 }
  0xd1   :  { %v958_v54 = vld [vmem:[%s19714_s1 + $0x1d20] sm:$0xff]  ;;  %9919 = vmatprep.subr.bf16.mxu0 %v13348_v48 }
  0xd2   :  { %9959 = vmatpush1.bf16.msra.mxu1 %v13483_v46  ;;  %v13468_v60 = vcombine.high %v954_v52, %v958_v54  ;;  %v818_v61 = vld [vmem:[%s19714_s1 + $0x18c0] sm:$0xff]  ;;  %v13467_v4 = vcombine.low %v954_v52, %v958_v54 }
  0xd3   :  { %9960 = vmatprep.subr.bf16.mxu1 %v13476_v49  ;;  %v822_v62 = vld [vmem:[%s19714_s1 + $0x18e0] sm:$0xff] }
  0xd4   :  { %v946_v0 = vld [vmem:[%s19714_s1 + $0x1cc0] sm:$0xff]  ;;  %9920 = vmatpush1.bf16.msra.mxu0 %v13347_v10  ;;  %v13332_v5 = vcombine.high %v818_v61, %v822_v62  ;;  %v13331_v12 = vcombine.low %v818_v61, %v822_v62 }
  0xd5   :  { %v950_v1 = vld [vmem:[%s19714_s1 + $0x1ce0] sm:$0xff]  ;;  %9921 = vmatprep.subr.bf16.mxu0 %v13340_v58 }
  0xd6   :  { %9961 = vmatpush1.bf16.msra.mxu1 %v13475_v57  ;;  %v13460_v6 = vcombine.high %v946_v0, %v950_v1  ;;  %v810_v24 = vld [vmem:[%s19714_s1 + $0x1880] sm:$0xff]  ;;  %v13459_v14 = vcombine.low %v946_v0, %v950_v1 }
  0xd7   :  { %9962 = vmatprep.subr.bf16.mxu1 %v13468_v60  ;;  %v814_v7 = vld [vmem:[%s19714_s1 + $0x18a0] sm:$0xff] }
  0xd8   :  { %v938_v8 = vld [vmem:[%s19714_s1 + $0x1c80] sm:$0xff]  ;;  %9922 = vmatpush1.bf16.msra.mxu0 %v13339_v2  ;;  %v13324_v15 = vcombine.high %v810_v24, %v814_v7  ;;  %v13323_v23 = vcombine.low %v810_v24, %v814_v7 }
  0xd9   :  { %v942_v11 = vld [vmem:[%s19714_s1 + $0x1ca0] sm:$0xff]  ;;  %9923 = vmatprep.subr.bf16.mxu0 %v13332_v5 }
  0xda   :  { %9963 = vmatpush1.bf16.msra.mxu1 %v13467_v4  ;;  %v13452_v16 = vcombine.high %v938_v8, %v942_v11  ;;  %v802_v17 = vld [vmem:[%s19714_s1 + $0x1840] sm:$0xff]  ;;  %v13451_v25 = vcombine.low %v938_v8, %v942_v11 }
  0xdb   :  { %9964 = vmatprep.subr.bf16.mxu1 %v13460_v6  ;;  %v806_v18 = vld [vmem:[%s19714_s1 + $0x1860] sm:$0xff] }
  0xdc   :  { %v930_v19 = vld [vmem:[%s19714_s1 + $0x1c40] sm:$0xff]  ;;  %9924 = vmatpush1.bf16.msra.mxu0 %v13331_v12  ;;  %v13316_v26 = vcombine.high %v802_v17, %v806_v18  ;;  %v13315_v35 = vcombine.low %v802_v17, %v806_v18 }
  0xdd   :  { %v934_v20 = vld [vmem:[%s19714_s1 + $0x1c60] sm:$0xff]  ;;  %9925 = vmatprep.subr.bf16.mxu0 %v13324_v15 }
  0xde   :  { %9965 = vmatpush1.bf16.msra.mxu1 %v13459_v14  ;;  %v13444_v27 = vcombine.high %v930_v19, %v934_v20  ;;  %v794_v28 = vld [vmem:[%s19714_s1 + $0x1800] sm:$0xff]  ;;  %v13443_v36 = vcombine.low %v930_v19, %v934_v20 }
  0xdf   :  { %9966 = vmatprep.subr.bf16.mxu1 %v13452_v16  ;;  %v798_v63 = vld [vmem:[%s19714_s1 + $0x1820] sm:$0xff] }
  0xe0   :  { %v922_v34 = vld [vmem:[%s19714_s1 + $0x1c00] sm:$0xff]  ;;  %9926 = vmatpush1.bf16.msra.mxu0 %v13323_v23  ;;  %v13308_v37 = vcombine.high %v794_v28, %v798_v63  ;;  %v13307_v46 = vcombine.low %v794_v28, %v798_v63 }
  0xe1   :  { %v926_v33 = vld [vmem:[%s19714_s1 + $0x1c20] sm:$0xff]  ;;  %9927 = vmatprep.subr.bf16.mxu0 %v13316_v26 }
  0xe2   :  { %9967 = vmatpush1.bf16.msra.mxu1 %v13451_v25  ;;  %v13436_v38 = vcombine.high %v922_v34, %v926_v33  ;;  %v914_v40 = vld [vmem:[%s19714_s1 + $0x1bc0] sm:$0xff]  ;;  %v13435_v48 = vcombine.low %v922_v34, %v926_v33 }
  0xe3   :  { %9968 = vmatprep.subr.bf16.mxu1 %v13444_v27  ;;  %v918_v41 = vld [vmem:[%s19714_s1 + $0x1be0] sm:$0xff] }
  0xe4   :  { %v1042_v42 = vld [vmem:[%s19714_s1 + $0x1fc0] sm:$0xff]  ;;  %9928 = vmatpush1.bf16.msra.mxu0 %v13315_v35  ;;  %v13428_v49 = vcombine.high %v914_v40, %v918_v41  ;;  %v13427_v57 = vcombine.low %v914_v40, %v918_v41 }
  0xe5   :  { %v1046_v45 = vld [vmem:[%s19714_s1 + $0x1fe0] sm:$0xff]  ;;  %9929 = vmatprep.subr.bf16.mxu0 %v13308_v37 }
  0xe6   :  { %9969 = vmatpush1.bf16.msra.mxu1 %v13443_v36  ;;  %v13556_v50 = vcombine.high %v1042_v42, %v1046_v45  ;;  %v906_v51 = vld [vmem:[%s19714_s1 + $0x1b80] sm:$0xff]  ;;  %v13555_v58 = vcombine.low %v1042_v42, %v1046_v45 }
  0xe7   :  { %9970 = vmatprep.subr.bf16.mxu1 %v13436_v38  ;;  %v910_v52 = vld [vmem:[%s19714_s1 + $0x1ba0] sm:$0xff] }
  0xe8   :  { %v1034_v54 = vld [vmem:[%s19714_s1 + $0x1f80] sm:$0xff]  ;;  %9930 = vmatpush1.bf16.msra.mxu0 %v13307_v46  ;;  %v13420_v60 = vcombine.high %v906_v51, %v910_v52  ;;  %v13419_v4 = vcombine.low %v906_v51, %v910_v52 }
  0xe9   :  { %v1038_v10 = vld [vmem:[%s19714_s1 + $0x1fa0] sm:$0xff]  ;;  %9931 = vmatprep.subr.bf16.mxu0 %v13428_v49  ;;  %v15264_v49 = vld [vmem:[%s19713_s0 + $0x10] sm:$0xff] }
  0xea   :  { %9971 = vmatpush1.bf16.msra.mxu1 %v13435_v48  ;;  %v13548_v61 = vcombine.high %v1034_v54, %v1038_v10  ;;  %v898_v62 = vld [vmem:[%s19714_s1 + $0x1b40] sm:$0xff]  ;;  %v13547_v5 = vcombine.low %v1034_v54, %v1038_v10 }
  0xeb   :  { %9972 = vmatprep.subr.bf16.mxu1 %v13556_v50  ;;  %v902_v0 = vld [vmem:[%s19714_s1 + $0x1b60] sm:$0xff] }
  0xec   :  { %v1026_v1 = vld [vmem:[%s19714_s1 + $0x1f40] sm:$0xff]  ;;  %9932 = vmatpush2.bf16.msra.mxu0 %v13427_v57  ;;  %v13412_v6 = vcombine.high %v898_v62, %v902_v0  ;;  %v13411_v14 = vcombine.low %v898_v62, %v902_v0 }
  0xed   :  { %v1030_v2 = vld [vmem:[%s19714_s1 + $0x1f60] sm:$0xff]  ;;  %9933 = vmatprep.subr.bf16.mxu0 %v13420_v60  ;;  %v15280_v60 = vrot.slane %v15264_v49, %v14479_v53 }
  0xee   :  { %9973 = vmatpush2.bf16.msra.mxu1 %v13555_v58  ;;  %v13540_v24 = vcombine.high %v1026_v1, %v1030_v2  ;;  %v890_v7 = vld [vmem:[%s19714_s1 + $0x1b00] sm:$0xff]  ;;  %v13539_v15 = vcombine.low %v1026_v1, %v1030_v2 }
  0xef   :  { %9974 = vmatprep.subr.bf16.mxu1 %v13548_v61  ;;  %v894_v8 = vld [vmem:[%s19714_s1 + $0x1b20] sm:$0xff] }
  0xf0   :  { %v1018_v11 = vld [vmem:[%s19714_s1 + $0x1f00] sm:$0xff]  ;;  %9934 = vmatpush2.bf16.msra.mxu0 %v13419_v4  ;;  %v13404_v16 = vcombine.high %v890_v7, %v894_v8  ;;  %v13403_v25 = vcombine.low %v890_v7, %v894_v8  ;;  %v1598_v8 = vsub.s32 0, %v14464_v43 }
  0xf1   :  { %v1022_v12 = vld [vmem:[%s19714_s1 + $0x1f20] sm:$0xff]  ;;  %9935 = vmatprep.subr.bf16.mxu0 %v13412_v6 }
  0xf2   :  { %9975 = vmatpush2.bf16.msra.mxu1 %v13547_v5  ;;  %v13532_v17 = vcombine.high %v1018_v11, %v1022_v12  ;;  %v882_v18 = vld [vmem:[%s19714_s1 + $0x1ac0] sm:$0xff]  ;;  %v13531_v26 = vcombine.low %v1018_v11, %v1022_v12  ;;  %v15299_v11 = vrot.slane %v15058_v59, %v14479_v53 }
  0xf3   :  { %9976 = vmatprep.subr.bf16.mxu1 %v13540_v24  ;;  %v886_v19 = vld [vmem:[%s19714_s1 + $0x1ae0] sm:$0xff]  ;;  %v1753_v24 = vcombine.high %v15280_v60, %v15280_v60 }
  0xf4   :  { %v1010_v20 = vld [vmem:[%s19714_s1 + $0x1ec0] sm:$0xff]  ;;  %9936 = vmatpush2.bf16.msra.mxu0 %v13411_v14  ;;  %v13396_v27 = vcombine.high %v882_v18, %v886_v19  ;;  %v13395_v36 = vcombine.low %v882_v18, %v886_v19 }
  0xf5   :  { %v1014_v23 = vld [vmem:[%s19714_s1 + $0x1ee0] sm:$0xff]  ;;  %9937 = vmatprep.subr.bf16.mxu0 %v13404_v16 }
  0xf6   :  { %9977 = vmatpush2.bf16.msra.mxu1 %v13539_v15  ;;  %v13524_v28 = vcombine.high %v1010_v20, %v1014_v23  ;;  %v874_v63 = vld [vmem:[%s19714_s1 + $0x1a80] sm:$0xff]  ;;  %v13523_v37 = vcombine.low %v1010_v20, %v1014_v23  ;;  %v15318_v23 = vrot.slane %v1753_v24, %v14479_v53 }
  0xf7   :  { %9978 = vmatprep.subr.bf16.mxu1 %v13532_v17  ;;  %v878_v34 = vld [vmem:[%s19714_s1 + $0x1aa0] sm:$0xff]  ;;  %v1602_v17 = vsub.s32 1, %v14464_v43 }
  0xf8   :  { %v1002_v33 = vld [vmem:[%s19714_s1 + $0x1e80] sm:$0xff]  ;;  %9938 = vmatpush2.bf16.msra.mxu0 %v13403_v25  ;;  %v13388_v38 = vcombine.high %v874_v63, %v878_v34  ;;  %v13387_v48 = vcombine.low %v874_v63, %v878_v34 }
  0xf9   :  { %v1006_v35 = vld [vmem:[%s19714_s1 + $0x1ea0] sm:$0xff]  ;;  %9939 = vmatprep.subr.bf16.mxu0 %v13396_v27 }
  0xfa   :  { %9979 = vmatpush2.bf16.msra.mxu1 %v13531_v26  ;;  %v13516_v40 = vcombine.high %v1002_v33, %v1006_v35  ;;  %v866_v41 = vld [vmem:[%s19714_s1 + $0x1a40] sm:$0xff]  ;;  %v13515_v50 = vcombine.low %v1002_v33, %v1006_v35  ;;  %v15322_v26 = vcombine.high %v15299_v11, %v15299_v11 }
  0xfb   :  { %9980 = vmatprep.subr.bf16.mxu1 %v13524_v28  ;;  %v870_v42 = vld [vmem:[%s19714_s1 + $0x1a60] sm:$0xff] }
  0xfc   :  { %v994_v45 = vld [vmem:[%s19714_s1 + $0x1e40] sm:$0xff]  ;;  %9940 = vmatpush2.bf16.msra.mxu0 %v13395_v36  ;;  %v13380_v51 = vcombine.high %v866_v41, %v870_v42  ;;  %v13379_v61 = vcombine.low %v866_v41, %v870_v42  ;;  %v15339_v41 = vcombine.high %v15318_v23, %v15318_v23 }
  0xfd   :  { %v998_v46 = vld [vmem:[%s19714_s1 + $0x1e60] sm:$0xff]  ;;  %9941 = vmatprep.subr.bf16.mxu0 %v13388_v38 }
  0xfe   :  { %9981 = vmatpush2.bf16.msra.mxu1 %v13523_v37  ;;  %v13508_v52 = vcombine.high %v994_v45, %v998_v46  ;;  %v858_v54 = vld [vmem:[%s19714_s1 + $0x1a00] sm:$0xff]  ;;  %v13507_v62 = vcombine.low %v994_v45, %v998_v46 }
  0xff   :  { %9982 = vmatprep.subr.bf16.mxu1 %v13516_v40  ;;  %v862_v10 = vld [vmem:[%s19714_s1 + $0x1a20] sm:$0xff] }
 0x100   :  { %v986_v57 = vld [vmem:[%s19714_s1 + $0x1e00] sm:$0xff]  ;;  %9942 = vmatpush2.bf16.msra.mxu0 %v13387_v48  ;;  %v13372_v0 = vcombine.high %v858_v54, %v862_v10  ;;  %v13371_v7 = vcombine.low %v858_v54, %v862_v10 }
 0x101   :  { %v990_v58 = vld [vmem:[%s19714_s1 + $0x1e20] sm:$0xff]  ;;  %9943 = vmatprep.subr.bf16.mxu0 %v13380_v51 }
 0x102   :  { %9983 = vmatpush2.bf16.msra.mxu1 %v13515_v50  ;;  %v13500_v1 = vcombine.high %v986_v57, %v990_v58  ;;  %v1106_v2 = vld [vmem:[%s19714_s1 + $0x21c0] sm:$0xff]  ;;  %v13499_v12 = vcombine.low %v986_v57, %v990_v58 }
 0x103   :  { %9984 = vmatprep.subr.bf16.mxu1 %v13508_v52  ;;  %v1110_v4 = vld [vmem:[%s19714_s1 + $0x21e0] sm:$0xff] }
 0x104   :  { %v1234_v5 = vld [vmem:[%s19714_s1 + $0x25c0] sm:$0xff]  ;;  %9944 = vmatpush2.bf16.msra.mxu0 %v13379_v61  ;;  %v13620_v15 = vcombine.high %v1106_v2, %v1110_v4  ;;  %v13619_v27 = vcombine.low %v1106_v2, %v1110_v4 }
 0x105   :  { %v1238_v6 = vld [vmem:[%s19714_s1 + $0x25e0] sm:$0xff]  ;;  %9945 = vmatprep.subr.bf16.mxu0 %v13372_v0 }
 0x106   :  { %9985 = vmatpush2.bf16.msra.mxu1 %v13507_v62  ;;  %v1594_v14 = vld [vmem:[%s19715_s2] sm:$0xff]  ;;  %v13748_v16 = vcombine.high %v1234_v5, %v1238_v6  ;;  %v13747_v28 = vcombine.low %v1234_v5, %v1238_v6  ;;  %v9703_v37 = vpop.f32.mrf.mxu0 }
 0x107   :  { %9986 = vmatprep.subr.bf16.mxu1 %v13500_v1  ;;  %v1098_v18 = vld [vmem:[%s19714_s1 + $0x2180] sm:$0xff]  ;;  %v1599_v25 = vrot.slane %v1594_v14, %v1598_v8  ;;  %v1603_v34 = vrot.slane %v1594_v14, %v1602_v17 }
 0x108   :  { %v1102_v59 = vld [vmem:[%s19714_s1 + $0x21a0] sm:$0xff]  ;;  %9946 = vmatpush2.bf16.msra.mxu0 %v13371_v7  ;;  %v9744_v45 = vpop.f32.mrf.mxu1  ;;  %v9705_v48 = vpop.f32.mrf.mxu0 }
 0x109   :  { %v1226_v19 = vld [vmem:[%s19714_s1 + $0x2580] sm:$0xff]  ;;  %9997 = vmatprep.subr.bf16.mxu0 %v13620_v15  ;;  %v13612_v63 = vcombine.high %v1098_v18, %v1102_v59  ;;  %v9704_v42 = vadd.f32 %v9703_v37, %v1599_v25  ;;  %v13611_v46 = vcombine.low %v1098_v18, %v1102_v59  ;;  %v9706_v54 = vadd.f32 %v9705_v48, %v1603_v34 }
 0x10a   :  { %v1230_v20 = vld [vmem:[%s19714_s1 + $0x25a0] sm:$0xff]  ;;  %9987 = vmatpush2.bf16.msra.mxu1 %v13499_v12  ;;  %v9746_v10 = vpop.f32.mrf.mxu1  ;;  %v9707_v62 = vpop.f32.mrf.mxu0 }
 0x10b   :  { %10038 = vmatprep.subr.bf16.mxu1 %v13748_v16  ;;  %v13740_v33 = vcombine.high %v1226_v19, %v1230_v20  ;;  %v1090_v35 = vld [vmem:[%s19714_s1 + $0x2140] sm:$0xff]  ;;  %9948 = vmatmul.mubr.bf16.vlgmr.msra.gmra.mxu0 %v15299_v11  ;;  %v13739_v50 = vcombine.low %v1226_v19, %v1230_v20  ;;  %v15342_v52 = vadd.f32 %v9744_v45, %v9704_v42 }
 0x10c   :  { %v1094_v36 = vld [vmem:[%s19714_s1 + $0x2160] sm:$0xff]  ;;  %9998 = vmatpush1.bf16.msra.mxu0 %v13619_v27  ;;  %10029 = vmatprep.mubr.bf16.mxu0 %v15318_v23  ;;  %v15358_v2 = vadd.f32 %v9746_v10, %v9706_v54  ;;  %v9748_v4 = vpop.f32.mrf.mxu1  ;;  %v9708_v6 = vpop.f32.mrf.mxu0 }
 0x10d   :  { %v1218_v38 = vld [vmem:[%s19714_s1 + $0x2540] sm:$0xff]  ;;  %9989 = vmatmul.mubr.bf16.vlgmr.msra.gmra.mxu1 %v15322_v26  ;;  %9999 = vmatprep.subr.bf16.mxu0 %v13612_v63  ;;  %v13604_v51 = vcombine.high %v1090_v35, %v1094_v36  ;;  %v13603_v5 = vcombine.low %v1090_v35, %v1094_v36 }
 0x10e   :  { %v1222_v40 = vld [vmem:[%s19714_s1 + $0x2560] sm:$0xff]  ;;  %10039 = vmatpush1.bf16.msra.mxu1 %v13747_v28  ;;  %10070 = vmatprep.mubr.bf16.mxu1 %v15339_v41  ;;  %v9749_v8 = vpop.f32.mrf.mxu1 }
 0x10f   :  { %10040 = vmatprep.subr.bf16.mxu1 %v13740_v33  ;;  %v13732_v57 = vcombine.high %v1218_v38, %v1222_v40  ;;  %v1082_v58 = vld [vmem:[%s19714_s1 + $0x2100] sm:$0xff]  ;;  %v13731_v24 = vcombine.low %v1218_v38, %v1222_v40  ;;  %v14365_v40 = vmov 0  }
 0x110   :  { %v1086_v61 = vld [vmem:[%s19714_s1 + $0x2120] sm:$0xff]  ;;  %10000 = vmatpush1.bf16.msra.mxu0 %v13611_v46  ;;  %14270 = vset.pattern.permute.xlu1 %v14365_v40 }
 0x111   :  { %v1210_v0 = vld [vmem:[%s19714_s1 + $0x2500] sm:$0xff]  ;;  %10001 = vmatprep.subr.bf16.mxu0 %v13604_v51  ;;  %v13596_v7 = vcombine.high %v1082_v58, %v1086_v61  ;;  %v13595_v18 = vcombine.low %v1082_v58, %v1086_v61  ;;  %14271 = vset.pattern.permute.xlu0 %v14365_v40 }
 0x112   :  { %v1214_v1 = vld [vmem:[%s19714_s1 + $0x2520] sm:$0xff]  ;;  %10041 = vmatpush1.bf16.msra.mxu1 %v13739_v50 }
 0x113   :  { %10042 = vmatprep.subr.bf16.mxu1 %v13732_v57  ;;  %v13724_v12 = vcombine.high %v1210_v0, %v1214_v1  ;;  %v1074_v14 = vld [vmem:[%s19714_s1 + $0x20c0] sm:$0xff]  ;;  %v13723_v59 = vcombine.low %v1210_v0, %v1214_v1 }
 0x114   :  { %v1078_v15 = vld [vmem:[%s19714_s1 + $0x20e0] sm:$0xff]  ;;  %10002 = vmatpush1.bf16.msra.mxu0 %v13603_v5 }
 0x115   :  { %v1202_v16 = vld [vmem:[%s19714_s1 + $0x24c0] sm:$0xff]  ;;  %10003 = vmatprep.subr.bf16.mxu0 %v13596_v7  ;;  %v13588_v19 = vcombine.high %v1074_v14, %v1078_v15  ;;  %v13587_v34 = vcombine.low %v1074_v14, %v1078_v15 }
 0x116   :  { %v1206_v17 = vld [vmem:[%s19714_s1 + $0x24e0] sm:$0xff]  ;;  %10043 = vmatpush1.bf16.msra.mxu1 %v13731_v24 }
 0x117   :  { %10044 = vmatprep.subr.bf16.mxu1 %v13724_v12  ;;  %v13716_v20 = vcombine.high %v1202_v16, %v1206_v17  ;;  %v1066_v25 = vld [vmem:[%s19714_s1 + $0x2080] sm:$0xff]  ;;  %v13715_v33 = vcombine.low %v1202_v16, %v1206_v17 }
 0x118   :  { %v1070_v27 = vld [vmem:[%s19714_s1 + $0x20a0] sm:$0xff]  ;;  %10004 = vmatpush1.bf16.msra.mxu0 %v13595_v18 }
 0x119   :  { %v1194_v28 = vld [vmem:[%s19714_s1 + $0x2480] sm:$0xff]  ;;  %10005 = vmatprep.subr.bf16.mxu0 %v13588_v19  ;;  %v13580_v35 = vcombine.high %v1066_v25, %v1070_v27  ;;  %v13579_v46 = vcombine.low %v1066_v25, %v1070_v27 }
 0x11a   :  { %v1198_v63 = vld [vmem:[%s19714_s1 + $0x24a0] sm:$0xff]  ;;  %10045 = vmatpush1.bf16.msra.mxu1 %v13723_v59 }
 0x11b   :  { %10046 = vmatprep.subr.bf16.mxu1 %v13716_v20  ;;  %v13708_v36 = vcombine.high %v1194_v28, %v1198_v63  ;;  %v1058_v37 = vld [vmem:[%s19714_s1 + $0x2040] sm:$0xff]  ;;  %v13707_v48 = vcombine.low %v1194_v28, %v1198_v63 }
 0x11c   :  { %v1062_v38 = vld [vmem:[%s19714_s1 + $0x2060] sm:$0xff]  ;;  %10006 = vmatpush1.bf16.msra.mxu0 %v13587_v34 }
 0x11d   :  { %v1186_v42 = vld [vmem:[%s19714_s1 + $0x2440] sm:$0xff]  ;;  %10007 = vmatprep.subr.bf16.mxu0 %v13580_v35  ;;  %v13572_v50 = vcombine.high %v1058_v37, %v1062_v38  ;;  %v13571_v61 = vcombine.low %v1058_v37, %v1062_v38 }
 0x11e   :  { %v1190_v45 = vld [vmem:[%s19714_s1 + $0x2460] sm:$0xff]  ;;  %10047 = vmatpush1.bf16.msra.mxu1 %v13715_v33 }
 0x11f   :  { %10048 = vmatprep.subr.bf16.mxu1 %v13708_v36  ;;  %v13700_v51 = vcombine.high %v1186_v42, %v1190_v45  ;;  %v1050_v54 = vld [vmem:[%s19714_s1 + $0x2000] sm:$0xff]  ;;  %v13699_v62 = vcombine.low %v1186_v42, %v1190_v45 }
 0x120   :  { %v1054_v10 = vld [vmem:[%s19714_s1 + $0x2020] sm:$0xff]  ;;  %10008 = vmatpush1.bf16.msra.mxu0 %v13579_v46 }
 0x121   :  { %v1178_v57 = vld [vmem:[%s19714_s1 + $0x2400] sm:$0xff]  ;;  %10009 = vmatprep.subr.bf16.mxu0 %v13572_v50  ;;  %v13564_v0 = vcombine.high %v1050_v54, %v1054_v10  ;;  %v13563_v7 = vcombine.low %v1050_v54, %v1054_v10 }
 0x122   :  { %v1182_v58 = vld [vmem:[%s19714_s1 + $0x2420] sm:$0xff]  ;;  %10049 = vmatpush1.bf16.msra.mxu1 %v13707_v48 }
 0x123   :  { %10050 = vmatprep.subr.bf16.mxu1 %v13700_v51  ;;  %v13692_v1 = vcombine.high %v1178_v57, %v1182_v58  ;;  %v1170_v4 = vld [vmem:[%s19714_s1 + $0x23c0] sm:$0xff]  ;;  %v13691_v8 = vcombine.low %v1178_v57, %v1182_v58 }
 0x124   :  { %v1174_v5 = vld [vmem:[%s19714_s1 + $0x23e0] sm:$0xff]  ;;  %10010 = vmatpush1.bf16.msra.mxu0 %v13571_v61 }
 0x125   :  { %v1298_v6 = vld [vmem:[%s19714_s1 + $0x27c0] sm:$0xff]  ;;  %10011 = vmatprep.subr.bf16.mxu0 %v13564_v0  ;;  %v13684_v12 = vcombine.high %v1170_v4, %v1174_v5  ;;  %v13683_v59 = vcombine.low %v1170_v4, %v1174_v5 }
 0x126   :  { %v1302_v24 = vld [vmem:[%s19714_s1 + $0x27e0] sm:$0xff]  ;;  %10051 = vmatpush1.bf16.msra.mxu1 %v13699_v62 }
 0x127   :  { %10052 = vmatprep.subr.bf16.mxu1 %v13692_v1  ;;  %v13812_v14 = vcombine.high %v1298_v6, %v1302_v24  ;;  %v1162_v15 = vld [vmem:[%s19714_s1 + $0x2380] sm:$0xff]  ;;  %v13811_v19 = vcombine.low %v1298_v6, %v1302_v24 }
 0x128   :  { %v1166_v16 = vld [vmem:[%s19714_s1 + $0x23a0] sm:$0xff]  ;;  %10012 = vmatpush1.bf16.msra.mxu0 %v13563_v7 }
 0x129   :  { %v1290_v17 = vld [vmem:[%s19714_s1 + $0x2780] sm:$0xff]  ;;  %10013 = vmatprep.subr.bf16.mxu0 %v13684_v12  ;;  %v13676_v20 = vcombine.high %v1162_v15, %v1166_v16  ;;  %v13675_v33 = vcombine.low %v1162_v15, %v1166_v16 }
 0x12a   :  { %v1294_v18 = vld [vmem:[%s19714_s1 + $0x27a0] sm:$0xff]  ;;  %10053 = vmatpush1.bf16.msra.mxu1 %v13691_v8 }
 0x12b   :  { %10054 = vmatprep.subr.bf16.mxu1 %v13812_v14  ;;  %v13804_v25 = vcombine.high %v1290_v17, %v1294_v18  ;;  %v1154_v27 = vld [vmem:[%s19714_s1 + $0x2340] sm:$0xff]  ;;  %v13803_v35 = vcombine.low %v1290_v17, %v1294_v18 }
 0x12c   :  { %v1158_v28 = vld [vmem:[%s19714_s1 + $0x2360] sm:$0xff]  ;;  %10014 = vmatpush2.bf16.msra.mxu0 %v13683_v59 }
 0x12d   :  { %v1282_v63 = vld [vmem:[%s19714_s1 + $0x2740] sm:$0xff]  ;;  %10015 = vmatprep.subr.bf16.mxu0 %v13676_v20  ;;  %v13668_v36 = vcombine.high %v1154_v27, %v1158_v28  ;;  %v13667_v48 = vcombine.low %v1154_v27, %v1158_v28 }
 0x12e   :  { %v1286_v34 = vld [vmem:[%s19714_s1 + $0x2760] sm:$0xff]  ;;  %10055 = vmatpush2.bf16.msra.mxu1 %v13811_v19  ;;  %v1738_v19 = vcombine.high %v15264_v49, %v15264_v49 }
 0x12f   :  { %10056 = vmatprep.subr.bf16.mxu1 %v13804_v25  ;;  %v13796_v37 = vcombine.high %v1282_v63, %v1286_v34  ;;  %v1146_v38 = vld [vmem:[%s19714_s1 + $0x2300] sm:$0xff]  ;;  %v13795_v50 = vcombine.low %v1282_v63, %v1286_v34 }
 0x130   :  { %v1150_v42 = vld [vmem:[%s19714_s1 + $0x2320] sm:$0xff]  ;;  %10016 = vmatpush2.bf16.msra.mxu0 %v13675_v33 }
 0x131   :  { %v1274_v45 = vld [vmem:[%s19714_s1 + $0x2700] sm:$0xff]  ;;  %10017 = vmatprep.subr.bf16.mxu0 %v13668_v36  ;;  %v13660_v51 = vcombine.high %v1146_v38, %v1150_v42  ;;  %v13659_v62 = vcombine.low %v1146_v38, %v1150_v42 }
 0x132   :  { %v1278_v46 = vld [vmem:[%s19714_s1 + $0x2720] sm:$0xff]  ;;  %10057 = vmatpush2.bf16.msra.mxu1 %v13803_v35  ;;  %v15509_v35 = vrot.slane %v1738_v19, %v14479_v53 }
 0x133   :  { %10058 = vmatprep.subr.bf16.mxu1 %v13796_v37  ;;  %v13788_v54 = vcombine.high %v1274_v45, %v1278_v46  ;;  %v1138_v10 = vld [vmem:[%s19714_s1 + $0x22c0] sm:$0xff]  ;;  %v13787_v0 = vcombine.low %v1274_v45, %v1278_v46 }
 0x134   :  { %v1142_v57 = vld [vmem:[%s19714_s1 + $0x22e0] sm:$0xff]  ;;  %10018 = vmatpush2.bf16.msra.mxu0 %v13667_v48 }
 0x135   :  { %v1266_v58 = vld [vmem:[%s19714_s1 + $0x26c0] sm:$0xff]  ;;  %10019 = vmatprep.subr.bf16.mxu0 %v13660_v51  ;;  %v13652_v1 = vcombine.high %v1138_v10, %v1142_v57  ;;  %v13651_v8 = vcombine.low %v1138_v10, %v1142_v57  ;;  %v1754_v51 = vcombine.high %v15509_v35, %v15509_v35  ;;  %v15527_v10 = vrot.slane %v15280_v60, %v14479_v53 }
 0x136   :  { %v1270_v61 = vld [vmem:[%s19714_s1 + $0x26e0] sm:$0xff]  ;;  %10059 = vmatpush2.bf16.msra.mxu1 %v13795_v50 }
 0x137   :  { %10060 = vmatprep.subr.bf16.mxu1 %v13788_v54  ;;  %v13780_v4 = vcombine.high %v1266_v58, %v1270_v61  ;;  %v1130_v5 = vld [vmem:[%s19714_s1 + $0x2280] sm:$0xff]  ;;  %v13779_v12 = vcombine.low %v1266_v58, %v1270_v61 }
 0x138   :  { %v1134_v6 = vld [vmem:[%s19714_s1 + $0x22a0] sm:$0xff]  ;;  %10020 = vmatpush2.bf16.msra.mxu0 %v13659_v62 }
 0x139   :  { %v1258_v24 = vld [vmem:[%s19714_s1 + $0x2680] sm:$0xff]  ;;  %10021 = vmatprep.subr.bf16.mxu0 %v13652_v1  ;;  %v13644_v14 = vcombine.high %v1130_v5, %v1134_v6  ;;  %v13643_v20 = vcombine.low %v1130_v5, %v1134_v6  ;;  %v15546_v5 = vcombine.high %v15527_v10, %v15527_v10 }
 0x13a   :  { %v1262_v7 = vld [vmem:[%s19714_s1 + $0x26a0] sm:$0xff]  ;;  %10061 = vmatpush2.bf16.msra.mxu1 %v13787_v0 }
 0x13b   :  { %10062 = vmatprep.subr.bf16.mxu1 %v13780_v4  ;;  %v13772_v15 = vcombine.high %v1258_v24, %v1262_v7  ;;  %v1122_v16 = vld [vmem:[%s19714_s1 + $0x2240] sm:$0xff]  ;;  %v13771_v25 = vcombine.low %v1258_v24, %v1262_v7  ;;  %v15542_v4 = vrot.slane %v1754_v51, %v14479_v53 }
 0x13c   :  { %v1126_v17 = vld [vmem:[%s19714_s1 + $0x2260] sm:$0xff]  ;;  %10022 = vmatpush2.bf16.msra.mxu0 %v13651_v8 }
 0x13d   :  { %v1250_v18 = vld [vmem:[%s19714_s1 + $0x2640] sm:$0xff]  ;;  %10023 = vmatprep.subr.bf16.mxu0 %v13644_v14  ;;  %v13636_v27 = vcombine.high %v1122_v16, %v1126_v17  ;;  %v13635_v36 = vcombine.low %v1122_v16, %v1126_v17 }
 0x13e   :  { %v1254_v59 = vld [vmem:[%s19714_s1 + $0x2660] sm:$0xff]  ;;  %10063 = vmatpush2.bf16.msra.mxu1 %v13779_v12 }
 0x13f   :  { %10064 = vmatprep.subr.bf16.mxu1 %v13772_v15  ;;  %v13764_v28 = vcombine.high %v1250_v18, %v1254_v59  ;;  %v1114_v63 = vld [vmem:[%s19714_s1 + $0x2200] sm:$0xff]  ;;  %v13763_v37 = vcombine.low %v1250_v18, %v1254_v59  ;;  %v15563_v18 = vcombine.high %v15542_v4, %v15542_v4 }
 0x140   :  { %v1118_v34 = vld [vmem:[%s19714_s1 + $0x2220] sm:$0xff]  ;;  %10024 = vmatpush2.bf16.msra.mxu0 %v13643_v20 }
 0x141   :  { %v1242_v49 = vld [vmem:[%s19714_s1 + $0x2600] sm:$0xff]  ;;  %10025 = vmatprep.subr.bf16.mxu0 %v13636_v27  ;;  %v13628_v38 = vcombine.high %v1114_v63, %v1118_v34  ;;  %v13627_v54 = vcombine.low %v1114_v63, %v1118_v34 }
 0x142   :  { %v1246_v33 = vld [vmem:[%s19714_s1 + $0x2620] sm:$0xff]  ;;  %10065 = vmatpush2.bf16.msra.mxu1 %v13771_v25 }
 0x143   :  { %10066 = vmatprep.subr.bf16.mxu1 %v13764_v28  ;;  %v13756_v42 = vcombine.high %v1242_v49, %v1246_v33  ;;  %v1362_v45 = vld [vmem:[%s19714_s1 + $0x29c0] sm:$0xff]  ;;  %v13755_v57 = vcombine.low %v1242_v49, %v1246_v33 }
 0x144   :  { %v1366_v46 = vld [vmem:[%s19714_s1 + $0x29e0] sm:$0xff]  ;;  %10026 = vmatpush2.bf16.msra.mxu0 %v13635_v36 }
 0x145   :  { %v1490_v48 = vld [vmem:[%s19714_s1 + $0x2dc0] sm:$0xff]  ;;  %10027 = vmatprep.subr.bf16.mxu0 %v13628_v38  ;;  %v13876_v58 = vcombine.high %v1362_v45, %v1366_v46  ;;  %v13875_v6 = vcombine.low %v1362_v45, %v1366_v46 }
 0x146   :  { %v1494_v50 = vld [vmem:[%s19714_s1 + $0x2de0] sm:$0xff]  ;;  %10067 = vmatpush2.bf16.msra.mxu1 %v13763_v37 }
 0x147   :  { %10068 = vmatprep.subr.bf16.mxu1 %v13756_v42  ;;  %v14004_v61 = vcombine.high %v1490_v48, %v1494_v50  ;;  %v1354_v62 = vld [vmem:[%s19714_s1 + $0x2980] sm:$0xff]  ;;  %v14003_v24 = vcombine.low %v1490_v48, %v1494_v50 }
 0x148   :  { %v1358_v0 = vld [vmem:[%s19714_s1 + $0x29a0] sm:$0xff]  ;;  %10028 = vmatpush2.bf16.msra.mxu0 %v13627_v54 }
 0x149   :  { %v1482_v1 = vld [vmem:[%s19714_s1 + $0x2d80] sm:$0xff]  ;;  %10079 = vmatprep.subr.bf16.mxu0 %v13876_v58  ;;  %v13868_v7 = vcombine.high %v1354_v62, %v1358_v0  ;;  %v13867_v20 = vcombine.low %v1354_v62, %v1358_v0 }
 0x14a   :  { %v1486_v60 = vld [vmem:[%s19714_s1 + $0x2da0] sm:$0xff]  ;;  %10069 = vmatpush2.bf16.msra.mxu1 %v13755_v57 }
 0x14b   :  { %10120 = vmatprep.subr.bf16.mxu1 %v14004_v61  ;;  %v13996_v8 = vcombine.high %v1482_v1, %v1486_v60  ;;  %v1346_v12 = vld [vmem:[%s19714_s1 + $0x2940] sm:$0xff]  ;;  %v9785_v15 = vpop.f32.mrf.mxu0  ;;  %10030 = vmatmul.mubr.bf16.vlgmr.msra.gmra.mxu0 %v15527_v10  ;;  %v13995_v27 = vcombine.low %v1482_v1, %v1486_v60 }
 0x14c   :  { %v1350_v14 = vld [vmem:[%s19714_s1 + $0x2960] sm:$0xff]  ;;  %v9786_v59 = vadd.f32 %v9785_v15, %v15342_v52  ;;  %10080 = vmatpush1.bf16.msra.mxu0 %v13875_v6  ;;  %10111 = vmatprep.mubr.bf16.mxu0 %v15542_v4 }
 0x14d   :  { %v1474_v16 = vld [vmem:[%s19714_s1 + $0x2d40] sm:$0xff]  ;;  %v9826_v19 = vpop.f32.mrf.mxu1  ;;  %10071 = vmatmul.mubr.bf16.vlgmr.msra.gmra.mxu1 %v15546_v5  ;;  %v9787_v25 = vpop.f32.mrf.mxu0  ;;  %10081 = vmatprep.subr.bf16.mxu0 %v13868_v7  ;;  %v13860_v28 = vcombine.high %v1346_v12, %v1350_v14  ;;  %v13859_v46 = vcombine.low %v1346_v12, %v1350_v14 }
 0x14e   :  { %v1478_v17 = vld [vmem:[%s19714_s1 + $0x2d60] sm:$0xff]  ;;  %10121 = vmatpush1.bf16.msra.mxu1 %v14003_v24  ;;  %v15567_v63 = vadd.f32 %v9826_v19, %v9786_v59  ;;  %v9788_v34 = vadd.f32 %v9787_v25, %v15358_v2  ;;  %10152 = vmatprep.mubr.bf16.mxu1 %v15563_v18 }
 0x14f   :  { %v9828_v49 = vpop.f32.mrf.mxu1  ;;  %10122 = vmatprep.subr.bf16.mxu1 %v13996_v8  ;;  %v13988_v33 = vcombine.high %v1474_v16, %v1478_v17  ;;  %v1338_v52 = vld [vmem:[%s19714_s1 + $0x2900] sm:$0xff]  ;;  %v9789_v37 = vpop.f32.mrf.mxu0  ;;  %v13987_v50 = vcombine.low %v1474_v16, %v1478_v17 }
 0x150   :  { %v1342_v36 = vld [vmem:[%s19714_s1 + $0x2920] sm:$0xff]  ;;  %v15584_v42 = vadd.f32 %v9828_v49, %v9788_v34  ;;  %10082 = vmatpush1.bf16.msra.mxu0 %v13867_v20 }
 0x151   :  { %v1466_v38 = vld [vmem:[%s19714_s1 + $0x2d00] sm:$0xff]  ;;  %v9830_v45 = vpop.f32.mrf.mxu1  ;;  %v9790_v48 = vpop.f32.mrf.mxu0  ;;  %10083 = vmatprep.subr.bf16.mxu0 %v13860_v28  ;;  %v13852_v51 = vcombine.high %v1338_v52, %v1342_v36  ;;  %v13851_v1 = vcombine.low %v1338_v52, %v1342_v36 }
 0x152   :  { %v1470_v2 = vld [vmem:[%s19714_s1 + $0x2d20] sm:$0xff]  ;;  %10123 = vmatpush1.bf16.msra.mxu1 %v13995_v27 }
 0x153   :  { %v9831_v54 = vpop.f32.mrf.mxu1  ;;  %10124 = vmatprep.subr.bf16.mxu1 %v13988_v33  ;;  %v13980_v57 = vcombine.high %v1466_v38, %v1470_v2  ;;  %v1330_v58 = vld [vmem:[%s19714_s1 + $0x28c0] sm:$0xff]  ;;  %v13979_v60 = vcombine.low %v1466_v38, %v1470_v2 }
 0x154   :  { %v1334_v61 = vld [vmem:[%s19714_s1 + $0x28e0] sm:$0xff]  ;;  %10084 = vmatpush1.bf16.msra.mxu0 %v13859_v46 }
 0x155   :  { %v1458_v62 = vld [vmem:[%s19714_s1 + $0x2cc0] sm:$0xff]  ;;  %10085 = vmatprep.subr.bf16.mxu0 %v13852_v51  ;;  %v13844_v6 = vcombine.high %v1330_v58, %v1334_v61  ;;  %v13843_v15 = vcombine.low %v1330_v58, %v1334_v61 }
 0x156   :  { %v1462_v0 = vld [vmem:[%s19714_s1 + $0x2ce0] sm:$0xff]  ;;  %10125 = vmatpush1.bf16.msra.mxu1 %v13987_v50 }
 0x157   :  { %10126 = vmatprep.subr.bf16.mxu1 %v13980_v57  ;;  %v13972_v24 = vcombine.high %v1458_v62, %v1462_v0  ;;  %v1322_v7 = vld [vmem:[%s19714_s1 + $0x2880] sm:$0xff]  ;;  %v13971_v16 = vcombine.low %v1458_v62, %v1462_v0 }
 0x158   :  { %v1326_v8 = vld [vmem:[%s19714_s1 + $0x28a0] sm:$0xff]  ;;  %10086 = vmatpush1.bf16.msra.mxu0 %v13851_v1 }
 0x159   :  { %v1450_v12 = vld [vmem:[%s19714_s1 + $0x2c80] sm:$0xff]  ;;  %10087 = vmatprep.subr.bf16.mxu0 %v13844_v6  ;;  %v13836_v17 = vcombine.high %v1322_v7, %v1326_v8  ;;  %v13835_v28 = vcombine.low %v1322_v7, %v1326_v8 }
 0x15a   :  { %v1454_v14 = vld [vmem:[%s19714_s1 + $0x2ca0] sm:$0xff]  ;;  %10127 = vmatpush1.bf16.msra.mxu1 %v13979_v60 }
 0x15b   :  { %10128 = vmatprep.subr.bf16.mxu1 %v13972_v24  ;;  %v13964_v59 = vcombine.high %v1450_v12, %v1454_v14  ;;  %v1314_v19 = vld [vmem:[%s19714_s1 + $0x2840] sm:$0xff]  ;;  %v13963_v34 = vcombine.low %v1450_v12, %v1454_v14 }
 0x15c   :  { %v1318_v20 = vld [vmem:[%s19714_s1 + $0x2860] sm:$0xff]  ;;  %10088 = vmatpush1.bf16.msra.mxu0 %v13843_v15 }
 0x15d   :  { %v1442_v25 = vld [vmem:[%s19714_s1 + $0x2c40] sm:$0xff]  ;;  %10089 = vmatprep.subr.bf16.mxu0 %v13836_v17  ;;  %v13828_v49 = vcombine.high %v1314_v19, %v1318_v20  ;;  %v13827_v2 = vcombine.low %v1314_v19, %v1318_v20 }
 0x15e   :  { %v1446_v27 = vld [vmem:[%s19714_s1 + $0x2c60] sm:$0xff]  ;;  %10129 = vmatpush1.bf16.msra.mxu1 %v13971_v16 }
 0x15f   :  { %10130 = vmatprep.subr.bf16.mxu1 %v13964_v59  ;;  %v13956_v33 = vcombine.high %v1442_v25, %v1446_v27  ;;  %v1306_v52 = vld [vmem:[%s19714_s1 + $0x2800] sm:$0xff]  ;;  %v13955_v45 = vcombine.low %v1442_v25, %v1446_v27 }
 0x160   :  { %v1310_v36 = vld [vmem:[%s19714_s1 + $0x2820] sm:$0xff]  ;;  %10090 = vmatpush1.bf16.msra.mxu0 %v13835_v28 }
 0x161   :  { %v1434_v37 = vld [vmem:[%s19714_s1 + $0x2c00] sm:$0xff]  ;;  %10091 = vmatprep.subr.bf16.mxu0 %v13828_v49  ;;  %v13820_v46 = vcombine.high %v1306_v52, %v1310_v36  ;;  %v13819_v58 = vcombine.low %v1306_v52, %v1310_v36 }
 0x162   :  { %v1438_v38 = vld [vmem:[%s19714_s1 + $0x2c20] sm:$0xff]  ;;  %10131 = vmatpush1.bf16.msra.mxu1 %v13963_v34 }
 0x163   :  { %10132 = vmatprep.subr.bf16.mxu1 %v13956_v33  ;;  %v13948_v48 = vcombine.high %v1434_v37, %v1438_v38  ;;  %v1426_v50 = vld [vmem:[%s19714_s1 + $0x2bc0] sm:$0xff]  ;;  %v13947_v61 = vcombine.low %v1434_v37, %v1438_v38 }
 0x164   :  { %v1430_v51 = vld [vmem:[%s19714_s1 + $0x2be0] sm:$0xff]  ;;  %10092 = vmatpush1.bf16.msra.mxu0 %v13827_v2 }
 0x165   :  { %v1554_v54 = vld [vmem:[%s19714_s1 + $0x2fc0] sm:$0xff]  ;;  %10093 = vmatprep.subr.bf16.mxu0 %v13820_v46  ;;  %v13940_v62 = vcombine.high %v1426_v50, %v1430_v51  ;;  %v13939_v7 = vcombine.low %v1426_v50, %v1430_v51 }
 0x166   :  { %v1558_v57 = vld [vmem:[%s19714_s1 + $0x2fe0] sm:$0xff]  ;;  %10133 = vmatpush1.bf16.msra.mxu1 %v13955_v45 }
 0x167   :  { %10134 = vmatprep.subr.bf16.mxu1 %v13948_v48  ;;  %v14068_v0 = vcombine.high %v1554_v54, %v1558_v57  ;;  %v1418_v1 = vld [vmem:[%s19714_s1 + $0x2b80] sm:$0xff]  ;;  %v14067_v8 = vcombine.low %v1554_v54, %v1558_v57 }
 0x168   :  { %v1422_v60 = vld [vmem:[%s19714_s1 + $0x2ba0] sm:$0xff]  ;;  %10094 = vmatpush1.bf16.msra.mxu0 %v13819_v58 }
 0x169   :  { %v1546_v6 = vld [vmem:[%s19714_s1 + $0x2f80] sm:$0xff]  ;;  %10095 = vmatprep.subr.bf16.mxu0 %v13940_v62  ;;  %v13932_v12 = vcombine.high %v1418_v1, %v1422_v60  ;;  %v13931_v19 = vcombine.low %v1418_v1, %v1422_v60 }
 0x16a   :  { %v1550_v24 = vld [vmem:[%s19714_s1 + $0x2fa0] sm:$0xff]  ;;  %10135 = vmatpush1.bf16.msra.mxu1 %v13947_v61 }
 0x16b   :  { %10136 = vmatprep.subr.bf16.mxu1 %v14068_v0  ;;  %v14060_v14 = vcombine.high %v1546_v6, %v1550_v24  ;;  %v1410_v15 = vld [vmem:[%s19714_s1 + $0x2b40] sm:$0xff]  ;;  %v14059_v20 = vcombine.low %v1546_v6, %v1550_v24 }
 0x16c   :  { %v1414_v16 = vld [vmem:[%s19714_s1 + $0x2b60] sm:$0xff]  ;;  %10096 = vmatpush2.bf16.msra.mxu0 %v13939_v7 }
 0x16d   :  { %v1538_v17 = vld [vmem:[%s19714_s1 + $0x2f40] sm:$0xff]  ;;  %10097 = vmatprep.subr.bf16.mxu0 %v13932_v12  ;;  %v13924_v25 = vcombine.high %v1410_v15, %v1414_v16  ;;  %v13923_v52 = vcombine.low %v1410_v15, %v1414_v16 }
 0x16e   :  { %v1542_v59 = vld [vmem:[%s19714_s1 + $0x2f60] sm:$0xff]  ;;  %10137 = vmatpush2.bf16.msra.mxu1 %v14067_v8 }
 0x16f   :  { %10138 = vmatprep.subr.bf16.mxu1 %v14060_v14  ;;  %v14052_v27 = vcombine.high %v1538_v17, %v1542_v59  ;;  %v1402_v28 = vld [vmem:[%s19714_s1 + $0x2b00] sm:$0xff]  ;;  %v14051_v36 = vcombine.low %v1538_v17, %v1542_v59 }
 0x170   :  { %v1406_v34 = vld [vmem:[%s19714_s1 + $0x2b20] sm:$0xff]  ;;  %10098 = vmatpush2.bf16.msra.mxu0 %v13931_v19 }
 0x171   :  { %v1530_v49 = vld [vmem:[%s19714_s1 + $0x2f00] sm:$0xff]  ;;  %10099 = vmatprep.subr.bf16.mxu0 %v13924_v25  ;;  %v13916_v37 = vcombine.high %v1402_v28, %v1406_v34  ;;  %v13915_v50 = vcombine.low %v1402_v28, %v1406_v34 }
 0x172   :  { %v1534_v33 = vld [vmem:[%s19714_s1 + $0x2f20] sm:$0xff]  ;;  %10139 = vmatpush2.bf16.msra.mxu1 %v14059_v20 }
 0x173   :  { %10140 = vmatprep.subr.bf16.mxu1 %v14052_v27  ;;  %v14044_v38 = vcombine.high %v1530_v49, %v1534_v33  ;;  %v1394_v2 = vld [vmem:[%s19714_s1 + $0x2ac0] sm:$0xff]  ;;  %v14043_v51 = vcombine.low %v1530_v49, %v1534_v33 }
 0x174   :  { %v1398_v45 = vld [vmem:[%s19714_s1 + $0x2ae0] sm:$0xff]  ;;  %10100 = vmatpush2.bf16.msra.mxu0 %v13923_v52 }
 0x175   :  { %v1522_v46 = vld [vmem:[%s19714_s1 + $0x2ec0] sm:$0xff]  ;;  %10101 = vmatprep.subr.bf16.mxu0 %v13916_v37  ;;  %v13908_v54 = vcombine.high %v1394_v2, %v1398_v45  ;;  %v13907_v1 = vcombine.low %v1394_v2, %v1398_v45  ;;  %v83_v37 = vld [vmem:[%s19714_s1 + $0x1c8] sm:$0xff]  ;;  %v15744_v45 = vrot.slane %v15509_v35, %v14479_v53 }
 0x176   :  { %v1526_v48 = vld [vmem:[%s19714_s1 + $0x2ee0] sm:$0xff]  ;;  %10141 = vmatpush2.bf16.msra.mxu1 %v14051_v36  ;;  %v79_v35 = vld [vmem:[%s19714_s1 + $0x1a8] sm:$0xff] }
 0x177   :  { %10142 = vmatprep.subr.bf16.mxu1 %v14044_v38  ;;  %v14036_v57 = vcombine.high %v1522_v46, %v1526_v48  ;;  %v1386_v58 = vld [vmem:[%s19714_s1 + $0x2a80] sm:$0xff]  ;;  %v14035_v60 = vcombine.low %v1522_v46, %v1526_v48  ;;  %v87_v38 = vld [vmem:[%s19714_s1 + $0x1e8] sm:$0xff] }
 0x178   :  { %v1390_v61 = vld [vmem:[%s19714_s1 + $0x2aa0] sm:$0xff]  ;;  %10102 = vmatpush2.bf16.msra.mxu0 %v13915_v50  ;;  %v12598_v50 = vcombine.high %v83_v37, %v87_v38 }
 0x179   :  { %v1514_v62 = vld [vmem:[%s19714_s1 + $0x2e80] sm:$0xff]  ;;  %10103 = vmatprep.subr.bf16.mxu0 %v13908_v54  ;;  %v13900_v6 = vcombine.high %v1386_v58, %v1390_v61  ;;  %v13899_v15 = vcombine.low %v1386_v58, %v1390_v61  ;;  %v15760_v58 = vcombine.high %v15744_v45, %v15744_v45 }
 0x17a   :  { %v1518_v0 = vld [vmem:[%s19714_s1 + $0x2ea0] sm:$0xff]  ;;  %10143 = vmatpush2.bf16.msra.mxu1 %v14043_v51 }
 0x17b   :  { %10144 = vmatprep.subr.bf16.mxu1 %v14036_v57  ;;  %v14028_v24 = vcombine.high %v1514_v62, %v1518_v0  ;;  %v1378_v7 = vld [vmem:[%s19714_s1 + $0x2a40] sm:$0xff]  ;;  %v14027_v16 = vcombine.low %v1514_v62, %v1518_v0  ;;  %v75_v57 = vld [vmem:[%s19714_s1 + $0x188] sm:$0xff]  ;;  %v12597_v62 = vcombine.low %v83_v37, %v87_v38 }
 0x17c   :  { %v1382_v8 = vld [vmem:[%s19714_s1 + $0x2a60] sm:$0xff]  ;;  %10104 = vmatpush2.bf16.msra.mxu0 %v13907_v1  ;;  %v12590_v1 = vcombine.high %v75_v57, %v79_v35 }
 0x17d   :  { %v1506_v12 = vld [vmem:[%s19714_s1 + $0x2e40] sm:$0xff]  ;;  %10105 = vmatprep.subr.bf16.mxu0 %v13900_v6  ;;  %v13892_v17 = vcombine.high %v1378_v7, %v1382_v8  ;;  %v13891_v28 = vcombine.low %v1378_v7, %v1382_v8  ;;  %v67_v7 = vld [vmem:[%s19714_s1 + $0x148] sm:$0xff] }
 0x17e   :  { %v1510_v14 = vld [vmem:[%s19714_s1 + $0x2e60] sm:$0xff]  ;;  %10145 = vmatpush2.bf16.msra.mxu1 %v14035_v60  ;;  %v71_v8 = vld [vmem:[%s19714_s1 + $0x168] sm:$0xff] }
 0x17f   :  { %10146 = vmatprep.subr.bf16.mxu1 %v14028_v24  ;;  %v14020_v59 = vcombine.high %v1506_v12, %v1510_v14  ;;  %v1370_v19 = vld [vmem:[%s19714_s1 + $0x2a00] sm:$0xff]  ;;  %v14019_v34 = vcombine.low %v1506_v12, %v1510_v14  ;;  %v12581_v38 = vcombine.low %v67_v7, %v71_v8 }
 0x180   :  { %v1374_v20 = vld [vmem:[%s19714_s1 + $0x2a20] sm:$0xff]  ;;  %10106 = vmatpush2.bf16.msra.mxu0 %v13899_v15 }
 0x181   :  { %v1498_v25 = vld [vmem:[%s19714_s1 + $0x2e00] sm:$0xff]  ;;  %10107 = vmatprep.subr.bf16.mxu0 %v13892_v17  ;;  %v13884_v49 = vcombine.high %v1370_v19, %v1374_v20  ;;  %v13883_v2 = vcombine.low %v1370_v19, %v1374_v20  ;;  %v12589_v17 = vcombine.low %v75_v57, %v79_v35  ;;  %v55_v57 = vld [vmem:[%s19714_s1 + $0xe8] sm:$0xff] }
 0x182   :  { %v1502_v27 = vld [vmem:[%s19714_s1 + $0x2e20] sm:$0xff]  ;;  %10147 = vmatpush2.bf16.msra.mxu1 %v14027_v16 }
 0x183   :  { %10148 = vmatprep.subr.bf16.mxu1 %v14020_v59  ;;  %v14012_v33 = vcombine.high %v1498_v25, %v1502_v27  ;;  %v1586_v52 = vld [vmem:[%s19714_s1 + $0x30c0] sm:$0xff]  ;;  %v14011_v46 = vcombine.low %v1498_v25, %v1502_v27  ;;  %v12582_v27 = vcombine.high %v67_v7, %v71_v8  ;;  %v43_v7 = vld [vmem:[%s19714_s1 + $0x88] sm:$0xff] }
 0x184   :  { %v1590_v36 = vld [vmem:[%s19714_s1 + $0x30e0] sm:$0xff]  ;;  %10108 = vmatpush2.bf16.msra.mxu0 %v13891_v28  ;;  %v47_v8 = vld [vmem:[%s19714_s1 + $0xa8] sm:$0xff] }
 0x185   :  { %10109 = vmatprep.subr.bf16.mxu0 %v13884_v49  ;;  %v14100_v48 = vcombine.high %v1586_v52, %v1590_v36  ;;  %v1578_v51 = vld [vmem:[%s19714_s1 + $0x3080] sm:$0xff]  ;;  %v14099_v61 = vcombine.low %v1586_v52, %v1590_v36  ;;  %v59_v49 = vld [vmem:[%s19714_s1 + $0x108] sm:$0xff] }
 0x186   :  { %10149 = vmatpush2.bf16.msra.mxu1 %v14019_v34  ;;  %v1582_v54 = vld [vmem:[%s19714_s1 + $0x30a0] sm:$0xff] }
 0x187   :  { %10150 = vmatprep.subr.bf16.mxu1 %v14012_v33  ;;  %v14092_v0 = vcombine.high %v1578_v51, %v1582_v54  ;;  %v1570_v60 = vld [vmem:[%s19714_s1 + $0x3040] sm:$0xff]  ;;  %v14091_v15 = vcombine.low %v1578_v51, %v1582_v54  ;;  %v215_v51 = vld [vmem:[%s19714_s1 + $0x5e8] sm:$0xff] }
 0x188   :  { %10110 = vmatpush2.bf16.msra.mxu0 %v13883_v2  ;;  %v1574_v6 = vld [vmem:[%s19714_s1 + $0x3060] sm:$0xff]  ;;  %v51_v54 = vld [vmem:[%s19714_s1 + $0xc8] sm:$0xff] }
 0x189   :  { %10169 = vmatprep.subr.bf16.mxu0 %v14100_v48  ;;  %v14084_v59 = vcombine.high %v1570_v60, %v1574_v6  ;;  %v1566_v28 = vld [vmem:[%s19714_s1 + $0x3020] sm:$0xff]  ;;  %v14083_v36 = vcombine.low %v1570_v60, %v1574_v6  ;;  %v203_v60 = vld [vmem:[%s19714_s1 + $0x588] sm:$0xff] }
 0x18a   :  { %10151 = vmatpush2.bf16.msra.mxu1 %v14011_v46  ;;  %v207_v6 = vld [vmem:[%s19714_s1 + $0x5a8] sm:$0xff] }
 0x18b   :  { %10202 = vmatprep.subr.bf16.mxu1 %v12598_v50  ;;  %v9867_v24 = vpop.f32.mrf.mxu0  ;;  %10112 = vmatmul.mubr.bf16.vlgmr.msra.gmra.mxu0 %v15744_v45  ;;  %v211_v50 = vld [vmem:[%s19714_s1 + $0x5c8] sm:$0xff] }
 0x18c   :  { %v9868_v12 = vadd.f32 %v9867_v24, %v15567_v63  ;;  %10170 = vmatpush1.bf16.msra.mxu0 %v14099_v61  ;;  %v1562_v63 = vld [vmem:[%s19714_s1 + $0x3000] sm:$0xff]  ;;  %10193 = vmatprep.mubr.bf16.mxu0 %v14365_v40  ;;  %v12538_v61 = vld.sshfl [vmem:[%s19713_s0 + $0x18] sm:$0x1 pattern:$0x75316420] }
 0x18d   :  { %v9908_v14 = vpop.f32.mrf.mxu1  ;;  %10153 = vmatmul.mubr.bf16.vlgmr.msra.gmra.mxu1 %v15760_v58  ;;  %v9869_v16 = vpop.f32.mrf.mxu0  ;;  %10171 = vmatprep.subr.bf16.mxu0 %v14092_v0  ;;  %v14076_v2 = vcombine.high %v1562_v63, %v1566_v28  ;;  %v14075_v35 = vcombine.low %v1562_v63, %v1566_v28  ;;  %v12726_v0 = vcombine.high %v211_v50, %v215_v51 }
 0x18e   :  { %10203 = vmatpush1.bf16.msra.mxu1 %v12597_v62  ;;  %v15777_v19 = vadd.f32 %v9908_v14, %v9868_v12  ;;  %v9870_v20 = vadd.f32 %v9869_v16, %v15584_v42  ;;  %v63_v42 = vld [vmem:[%s19714_s1 + $0x128] sm:$0xff]  ;;  %10234 = vmatprep.mubr.bf16.mxu1 %v14517_v9  ;;  %v15818_v24 = vrot.slane %v12538_v61, %v14479_v53 }
 0x18f   :  { %v9910_v25 = vpop.f32.mrf.mxu1  ;;  %10204 = vmatprep.subr.bf16.mxu1 %v12590_v1  ;;  %v9871_v34 = vpop.f32.mrf.mxu0  ;;  %v12574_v48 = vcombine.high %v59_v49, %v63_v42  ;;  %v12573_v62 = vcombine.low %v59_v49, %v63_v42  ;;  %v12566_v1 = vcombine.high %v51_v54, %v55_v57  ;;  %v12725_v12 = vcombine.low %v211_v50, %v215_v51  ;;  %v195_v53 = vld [vmem:[%s19714_s1 + $0x548] sm:$0xff] }
 0x190   :  { %v15794_v33 = vadd.f32 %v9910_v25, %v9870_v20  ;;  %10172 = vmatpush1.bf16.msra.mxu0 %v14091_v15  ;;  %v12565_v14 = vcombine.low %v51_v54, %v55_v57  ;;  %v12718_v15 = vcombine.high %v203_v60, %v207_v6  ;;  %v12558_v16 = vcombine.high %v43_v7, %v47_v8  ;;  %v39_v20 = vld [vmem:[%s19714_s1 + $0x68] sm:$0xff] }
 0x191   :  { %v9912_v52 = vpop.f32.mrf.mxu1  ;;  %v9872_v37 = vpop.f32.mrf.mxu0  ;;  %10173 = vmatprep.subr.bf16.mxu0 %v14084_v59  ;;  %v35_v59 = vld [vmem:[%s19714_s1 + $0x48] sm:$0xff]  ;;  %v12717_v25 = vcombine.low %v203_v60, %v207_v6 }
 0x192   :  { %10205 = vmatpush1.bf16.msra.mxu1 %v12589_v17  ;;  %v199_v17 = vld [vmem:[%s19714_s1 + $0x568] sm:$0xff]  ;;  %v12550_v28 = vcombine.high %v35_v59, %v39_v20  ;;  %v12549_v37 = vcombine.low %v35_v59, %v39_v20 }
 0x193   :  { %v9913_v46 = vpop.f32.mrf.mxu1  ;;  %10206 = vmatprep.subr.bf16.mxu1 %v12582_v27  ;;  %v12557_v27 = vcombine.low %v43_v7, %v47_v8  ;;  %v12710_v63 = vcombine.high %v195_v53, %v199_v17  ;;  %v187_v34 = vld [vmem:[%s19714_s1 + $0x508] sm:$0xff] }
 0x194   :  { %10174 = vmatpush1.bf16.msra.mxu0 %v14083_v36  ;;  %v191_v49 = vld [vmem:[%s19714_s1 + $0x528] sm:$0xff]  ;;  %v12709_v36 = vcombine.low %v195_v53, %v199_v17 }
 0x195   :  { %10175 = vmatprep.subr.bf16.mxu0 %v14076_v2  ;;  %v27_v42 = vld [vmem:[%s19714_s1 + $0x8] sm:$0xff]  ;;  %v12701_v54 = vcombine.low %v187_v34, %v191_v49 }
 0x196   :  { %10207 = vmatpush1.bf16.msra.mxu1 %v12581_v38  ;;  %v31_v52 = vld [vmem:[%s19714_s1 + $0x28] sm:$0xff]  ;;  %v12702_v38 = vcombine.high %v187_v34, %v191_v49 }
 0x197   :  { %10208 = vmatprep.subr.bf16.mxu1 %v12574_v48  ;;  %v12542_v2 = vcombine.high %v27_v42, %v31_v52  ;;  %v179_v46 = vld [vmem:[%s19714_s1 + $0x4c8] sm:$0xff]  ;;  %v12541_v57 = vcombine.low %v27_v42, %v31_v52 }
 0x198   :  { %10176 = vmatpush1.bf16.msra.mxu0 %v14075_v35  ;;  %v183_v48 = vld [vmem:[%s19714_s1 + $0x4e8] sm:$0xff] }
 0x199   :  { %10243 = vmatprep.subr.bf16.mxu0 %v12726_v0  ;;  %v147_v50 = vld [vmem:[%s19714_s1 + $0x3c8] sm:$0xff]  ;;  %v12694_v35 = vcombine.high %v179_v46, %v183_v48  ;;  %v12693_v6 = vcombine.low %v179_v46, %v183_v48 }
 0x19a   :  { %10209 = vmatpush1.bf16.msra.mxu1 %v12573_v62  ;;  %v151_v51 = vld [vmem:[%s19714_s1 + $0x3e8] sm:$0xff] }
 0x19b   :  { %10210 = vmatprep.subr.bf16.mxu1 %v12566_v1  ;;  %14107 = vmatmul.mubr.msk.bf16.vlgmr.msra.gmra.mxu0 %vm9665_vm0, %v15818_v24  ;;  %v12662_v61 = vcombine.high %v147_v50, %v151_v51  ;;  %v171_v62 = vld [vmem:[%s19714_s1 + $0x488] sm:$0xff]  ;;  %v12661_v7 = vcombine.low %v147_v50, %v151_v51 }
 0x19c   :  { %10244 = vmatpush1.bf16.msra.mxu0 %v12725_v12  ;;  %10275 = vmatprep.mubr.bf16.mxu0 %v14528_v13  ;;  %v175_v0 = vld [vmem:[%s19714_s1 + $0x4a8] sm:$0xff] }
 0x19d   :  { %10245 = vmatprep.subr.bf16.mxu0 %v12718_v15  ;;  %v139_v1 = vld [vmem:[%s19714_s1 + $0x388] sm:$0xff]  ;;  %v12686_v8 = vcombine.high %v171_v62, %v175_v0  ;;  %v12685_v17 = vcombine.low %v171_v62, %v175_v0 }
 0x19e   :  { %10211 = vmatpush1.bf16.msra.mxu1 %v12565_v14  ;;  %v143_v60 = vld [vmem:[%s19714_s1 + $0x3a8] sm:$0xff] }
 0x19f   :  { %10212 = vmatprep.subr.bf16.mxu1 %v12558_v16  ;;  %v12654_v12 = vcombine.high %v139_v1, %v143_v60  ;;  %v163_v14 = vld [vmem:[%s19714_s1 + $0x448] sm:$0xff]  ;;  %v12653_v59 = vcombine.low %v139_v1, %v143_v60 }
 0x1a0   :  { %10246 = vmatpush1.bf16.msra.mxu0 %v12717_v25  ;;  %v167_v15 = vld [vmem:[%s19714_s1 + $0x468] sm:$0xff] }
 0x1a1   :  { %10247 = vmatprep.subr.bf16.mxu0 %v12710_v63  ;;  %v131_v16 = vld [vmem:[%s19714_s1 + $0x348] sm:$0xff]  ;;  %v12678_v20 = vcombine.high %v163_v14, %v167_v15  ;;  %v12677_v49 = vcombine.low %v163_v14, %v167_v15 }
 0x1a2   :  { %10213 = vmatpush1.bf16.msra.mxu1 %v12557_v27  ;;  %v135_v53 = vld [vmem:[%s19714_s1 + $0x368] sm:$0xff] }
 0x1a3   :  { %10214 = vmatprep.subr.bf16.mxu1 %v12550_v28  ;;  %v12646_v25 = vcombine.high %v131_v16, %v135_v53  ;;  %v155_v27 = vld [vmem:[%s19714_s1 + $0x408] sm:$0xff]  ;;  %v12645_v42 = vcombine.low %v131_v16, %v135_v53 }
 0x1a4   :  { %10248 = vmatpush1.bf16.msra.mxu0 %v12709_v36  ;;  %v159_v63 = vld [vmem:[%s19714_s1 + $0x428] sm:$0xff] }
 0x1a5   :  { %10249 = vmatprep.subr.bf16.mxu0 %v12702_v38  ;;  %v123_v28 = vld [vmem:[%s19714_s1 + $0x308] sm:$0xff]  ;;  %v12670_v52 = vcombine.high %v155_v27, %v159_v63  ;;  %v12669_v48 = vcombine.low %v155_v27, %v159_v63 }
 0x1a6   :  { %10215 = vmatpush1.bf16.msra.mxu1 %v12549_v37  ;;  %v127_v34 = vld [vmem:[%s19714_s1 + $0x328] sm:$0xff] }
 0x1a7   :  { %10216 = vmatprep.subr.bf16.mxu1 %v12542_v2  ;;  %v12638_v36 = vcombine.high %v123_v28, %v127_v34  ;;  %v275_v37 = vld [vmem:[%s19714_s1 + $0x7c8] sm:$0xff]  ;;  %v12637_v50 = vcombine.low %v123_v28, %v127_v34 }
 0x1a8   :  { %10250 = vmatpush1.bf16.msra.mxu0 %v12701_v54  ;;  %v279_v38 = vld [vmem:[%s19714_s1 + $0x7e8] sm:$0xff] }
 0x1a9   :  { %10251 = vmatprep.subr.bf16.mxu0 %v12694_v35  ;;  %v115_v2 = vld [vmem:[%s19714_s1 + $0x2c8] sm:$0xff]  ;;  %v12790_v51 = vcombine.high %v275_v37, %v279_v38  ;;  %v12789_v0 = vcombine.low %v275_v37, %v279_v38 }
 0x1aa   :  { %10217 = vmatpush1.bf16.msra.mxu1 %v12541_v57  ;;  %v119_v46 = vld [vmem:[%s19714_s1 + $0x2e8] sm:$0xff] }
 0x1ab   :  { %10218 = vmatprep.subr.bf16.mxu1 %v12662_v61  ;;  %v12630_v54 = vcombine.high %v115_v2, %v119_v46  ;;  %v267_v57 = vld [vmem:[%s19714_s1 + $0x788] sm:$0xff]  ;;  %v12629_v1 = vcombine.low %v115_v2, %v119_v46 }
 0x1ac   :  { %10252 = vmatpush1.bf16.msra.mxu0 %v12693_v6  ;;  %v271_v35 = vld [vmem:[%s19714_s1 + $0x7a8] sm:$0xff] }
 0x1ad   :  { %10253 = vmatprep.subr.bf16.mxu0 %v12686_v8  ;;  %v107_v61 = vld [vmem:[%s19714_s1 + $0x288] sm:$0xff]  ;;  %v12782_v60 = vcombine.high %v267_v57, %v271_v35  ;;  %v12781_v15 = vcombine.low %v267_v57, %v271_v35 }
 0x1ae   :  { %10219 = vmatpush2.bf16.msra.mxu1 %v12661_v7  ;;  %v111_v62 = vld [vmem:[%s19714_s1 + $0x2a8] sm:$0xff] }
 0x1af   :  { %10220 = vmatprep.subr.bf16.mxu1 %v12654_v12  ;;  %v12622_v6 = vcombine.high %v107_v61, %v111_v62  ;;  %v259_v7 = vld [vmem:[%s19714_s1 + $0x748] sm:$0xff]  ;;  %v12621_v16 = vcombine.low %v107_v61, %v111_v62 }
 0x1b0   :  { %10254 = vmatpush1.bf16.msra.mxu0 %v12685_v17  ;;  %v263_v8 = vld [vmem:[%s19714_s1 + $0x768] sm:$0xff] }
 0x1b1   :  { %10255 = vmatprep.subr.bf16.mxu0 %v12678_v20  ;;  %v99_v12 = vld [vmem:[%s19714_s1 + $0x248] sm:$0xff]  ;;  %v12774_v53 = vcombine.high %v259_v7, %v263_v8  ;;  %v12773_v63 = vcombine.low %v259_v7, %v263_v8 }
 0x1b2   :  { %10221 = vmatpush2.bf16.msra.mxu1 %v12653_v59  ;;  %v103_v14 = vld [vmem:[%s19714_s1 + $0x268] sm:$0xff] }
 0x1b3   :  { %10222 = vmatprep.subr.bf16.mxu1 %v12646_v25  ;;  %v12614_v17 = vcombine.high %v99_v12, %v103_v14  ;;  %v251_v59 = vld [vmem:[%s19714_s1 + $0x708] sm:$0xff]  ;;  %v12613_v28 = vcombine.low %v99_v12, %v103_v14 }
 0x1b4   :  { %10256 = vmatpush1.bf16.msra.mxu0 %v12677_v49  ;;  %v255_v20 = vld [vmem:[%s19714_s1 + $0x728] sm:$0xff] }
 0x1b5   :  { %10257 = vmatprep.subr.bf16.mxu0 %v12670_v52  ;;  %v91_v25 = vld [vmem:[%s19714_s1 + $0x208] sm:$0xff]  ;;  %v12766_v34 = vcombine.high %v251_v59, %v255_v20  ;;  %v12765_v38 = vcombine.low %v251_v59, %v255_v20 }
 0x1b6   :  { %10223 = vmatpush2.bf16.msra.mxu1 %v12645_v42  ;;  %v95_v27 = vld [vmem:[%s19714_s1 + $0x228] sm:$0xff] }
 0x1b7   :  { %10224 = vmatprep.subr.bf16.mxu1 %v12638_v36  ;;  %v12606_v49 = vcombine.high %v91_v25, %v95_v27  ;;  %v243_v42 = vld [vmem:[%s19714_s1 + $0x6c8] sm:$0xff]  ;;  %v12605_v2 = vcombine.low %v91_v25, %v95_v27 }
 0x1b8   :  { %10258 = vmatpush1.bf16.msra.mxu0 %v12669_v48  ;;  %v247_v52 = vld [vmem:[%s19714_s1 + $0x6e8] sm:$0xff] }
 0x1b9   :  { %10259 = vmatprep.subr.bf16.mxu0 %v12790_v51  ;;  %v339_v36 = vld [vmem:[%s19714_s1 + $0x9c8] sm:$0xff]  ;;  %v12758_v46 = vcombine.high %v243_v42, %v247_v52  ;;  %v12757_v35 = vcombine.low %v243_v42, %v247_v52 }
 0x1ba   :  { %10225 = vmatpush2.bf16.msra.mxu1 %v12637_v50  ;;  %v343_v37 = vld [vmem:[%s19714_s1 + $0x9e8] sm:$0xff] }
 0x1bb   :  { %10226 = vmatprep.subr.bf16.mxu1 %v12630_v54  ;;  %v12854_v48 = vcombine.high %v339_v36, %v343_v37  ;;  %v235_v50 = vld [vmem:[%s19714_s1 + $0x688] sm:$0xff]  ;;  %v12853_v61 = vcombine.low %v339_v36, %v343_v37 }
 0x1bc   :  { %10260 = vmatpush2.bf16.msra.mxu0 %v12789_v0  ;;  %v239_v51 = vld [vmem:[%s19714_s1 + $0x6a8] sm:$0xff] }
 0x1bd   :  { %10261 = vmatprep.subr.bf16.mxu0 %v12782_v60  ;;  %v331_v54 = vld [vmem:[%s19714_s1 + $0x988] sm:$0xff]  ;;  %v12750_v62 = vcombine.high %v235_v50, %v239_v51 }
 0x1be   :  { %10227 = vmatpush2.bf16.msra.mxu1 %v12629_v1  ;;  %v335_v57 = vld [vmem:[%s19714_s1 + $0x9a8] sm:$0xff] }
 0x1bf   :  { %10228 = vmatprep.subr.bf16.mxu1 %v12622_v6  ;;  %v12846_v0 = vcombine.high %v331_v54, %v335_v57  ;;  %v227_v1 = vld [vmem:[%s19714_s1 + $0x648] sm:$0xff] }
 0x1c0   :  { %10262 = vmatpush2.bf16.msra.mxu0 %v12781_v15  ;;  %v231_v60 = vld [vmem:[%s19714_s1 + $0x668] sm:$0xff]  ;;  %v12749_v15 = vcombine.low %v235_v50, %v239_v51 }
 0x1c1   :  { %10263 = vmatprep.subr.bf16.mxu0 %v12774_v53  ;;  %v323_v7 = vld [vmem:[%s19714_s1 + $0x948] sm:$0xff]  ;;  %v12845_v53 = vcombine.low %v331_v54, %v335_v57  ;;  %v12741_v52 = vcombine.low %v227_v1, %v231_v60 }
 0x1c2   :  { %10229 = vmatpush2.bf16.msra.mxu1 %v12621_v16  ;;  %v327_v8 = vld [vmem:[%s19714_s1 + $0x968] sm:$0xff] }
 0x1c3   :  { %10230 = vmatprep.subr.bf16.mxu1 %v12614_v17  ;;  %v12742_v17 = vcombine.high %v227_v1, %v231_v60  ;;  %v12838_v27 = vcombine.high %v323_v7, %v327_v8  ;;  %v12837_v37 = vcombine.low %v323_v7, %v327_v8  ;;  %v471_v50 = vld [vmem:[%s19714_s1 + $0xde8] sm:$0xff] }
 0x1c4   :  { %10264 = vmatpush2.bf16.msra.mxu0 %v12773_v63  ;;  %v223_v63 = vld [vmem:[%s19714_s1 + $0x628] sm:$0xff] }
 0x1c5   :  { %10265 = vmatprep.subr.bf16.mxu0 %v12766_v34  ;;  %v315_v34 = vld [vmem:[%s19714_s1 + $0x908] sm:$0xff] }
 0x1c6   :  { %10231 = vmatpush2.bf16.msra.mxu1 %v12613_v28  ;;  %v307_v51 = vld [vmem:[%s19714_s1 + $0x8c8] sm:$0xff] }
 0x1c7   :  { %10232 = vmatprep.subr.bf16.mxu1 %v12606_v49  ;;  %v311_v54 = vld [vmem:[%s19714_s1 + $0x8e8] sm:$0xff] }
 0x1c8   :  { %10266 = vmatpush2.bf16.msra.mxu0 %v12765_v38  ;;  %v463_v1 = vld [vmem:[%s19714_s1 + $0xda8] sm:$0xff]  ;;  %v12821_v8 = vcombine.low %v307_v51, %v311_v54 }
 0x1c9   :  { %10267 = vmatprep.subr.bf16.mxu0 %v12758_v46  ;;  %v299_v60 = vld [vmem:[%s19714_s1 + $0x888] sm:$0xff] }
 0x1ca   :  { %10233 = vmatpush2.bf16.msra.mxu1 %v12605_v2 }
 0x1cb   :  { %10284 = vmatprep.subr.bf16.mxu1 %v12854_v48  ;;  %v9949_v6 = vpop.f32.mrf.mxu0  ;;  %v467_v48 = vld [vmem:[%s19714_s1 + $0xdc8] sm:$0xff] }
 0x1cc   :  { %v9950_v12 = vadd.f32 %v9949_v6, %v15777_v19  ;;  %10268 = vmatpush2.bf16.msra.mxu0 %v12757_v35  ;;  %v219_v19 = vld [vmem:[%s19714_s1 + $0x608] sm:$0xff]  ;;  %v12981_v7 = vcombine.low %v467_v48, %v471_v50 }
 0x1cd   :  { %v9990_v14 = vpop.f32.mrf.mxu1  ;;  %10235 = vmatmul.mubr.bf16.vlgmr.msra.gmra.mxu1 %v14636_v22  ;;  %v9951_v16 = vpop.f32.mrf.mxu0  ;;  %10269 = vmatprep.subr.bf16.mxu0 %v12750_v62  ;;  %v12734_v38 = vcombine.high %v219_v19, %v223_v63  ;;  %v12733_v57 = vcombine.low %v219_v19, %v223_v63  ;;  %v12822_v62 = vcombine.high %v307_v51, %v311_v54  ;;  %v303_v6 = vld [vmem:[%s19714_s1 + $0x8a8] sm:$0xff] }
 0x1ce   :  { %10285 = vmatpush1.bf16.msra.mxu1 %v12853_v61  ;;  %v15987_v59 = vadd.f32 %v9990_v14, %v9950_v12  ;;  %v9952_v20 = vadd.f32 %v9951_v16, %v15794_v33  ;;  %10316 = vmatprep.mubr.bf16.mxu1 %v14651_v29  ;;  %v319_v33 = vld [vmem:[%s19714_s1 + $0x928] sm:$0xff]  ;;  %v12982_v61 = vcombine.high %v467_v48, %v471_v50 }
 0x1cf   :  { %v9992_v25 = vpop.f32.mrf.mxu1  ;;  %10286 = vmatprep.subr.bf16.mxu1 %v12846_v0  ;;  %v9953_v28 = vpop.f32.mrf.mxu0  ;;  %v12830_v46 = vcombine.high %v315_v34, %v319_v33  ;;  %v12829_v35 = vcombine.low %v315_v34, %v319_v33  ;;  %v459_v0 = vld [vmem:[%s19714_s1 + $0xd88] sm:$0xff]  ;;  %v12814_v14 = vcombine.high %v299_v60, %v303_v6 }
 0x1d0   :  { %v16003_v49 = vadd.f32 %v9992_v25, %v9952_v20  ;;  %10270 = vmatpush2.bf16.msra.mxu0 %v12749_v15  ;;  %v12974_v12 = vcombine.high %v459_v0, %v463_v1  ;;  %v451_v15 = vld [vmem:[%s19714_s1 + $0xd48] sm:$0xff]  ;;  %v12973_v20 = vcombine.low %v459_v0, %v463_v1  ;;  %v12813_v25 = vcombine.low %v299_v60, %v303_v6 }
 0x1d1   :  { %v9994_v42 = vpop.f32.mrf.mxu1  ;;  %v9954_v36 = vpop.f32.mrf.mxu0  ;;  %10271 = vmatprep.subr.bf16.mxu0 %v12742_v17  ;;  %v455_v16 = vld [vmem:[%s19714_s1 + $0xd68] sm:$0xff] }
 0x1d2   :  { %10287 = vmatpush1.bf16.msra.mxu1 %v12845_v53  ;;  %v291_v53 = vld [vmem:[%s19714_s1 + $0x848] sm:$0xff]  ;;  %v12965_v42 = vcombine.low %v451_v15, %v455_v16 }
 0x1d3   :  { %v9995_v2 = vpop.f32.mrf.mxu1  ;;  %10288 = vmatprep.subr.bf16.mxu1 %v12838_v27  ;;  %v295_v17 = vld [vmem:[%s19714_s1 + $0x868] sm:$0xff]  ;;  %v12966_v27 = vcombine.high %v451_v15, %v455_v16 }
 0x1d4   :  { %10272 = vmatpush2.bf16.msra.mxu0 %v12741_v52  ;;  %v12806_v19 = vcombine.high %v291_v53, %v295_v17  ;;  %v443_v63 = vld [vmem:[%s19714_s1 + $0xd08] sm:$0xff]  ;;  %v12805_v52 = vcombine.low %v291_v53, %v295_v17 }
 0x1d5   :  { %10273 = vmatprep.subr.bf16.mxu0 %v12734_v38  ;;  %v447_v28 = vld [vmem:[%s19714_s1 + $0xd28] sm:$0xff] }
 0x1d6   :  { %10289 = vmatpush1.bf16.msra.mxu1 %v12837_v37  ;;  %v283_v34 = vld [vmem:[%s19714_s1 + $0x808] sm:$0xff]  ;;  %v12958_v36 = vcombine.high %v443_v63, %v447_v28  ;;  %v12957_v50 = vcombine.low %v443_v63, %v447_v28 }
 0x1d7   :  { %10290 = vmatprep.subr.bf16.mxu1 %v12830_v46  ;;  %v287_v33 = vld [vmem:[%s19714_s1 + $0x828] sm:$0xff] }
 0x1d8   :  { %10274 = vmatpush2.bf16.msra.mxu0 %v12733_v57  ;;  %v12798_v37 = vcombine.high %v283_v34, %v287_v33  ;;  %v435_v38 = vld [vmem:[%s19714_s1 + $0xcc8] sm:$0xff]  ;;  %v12797_v51 = vcombine.low %v283_v34, %v287_v33 }
 0x1d9   :  { %10325 = vmatprep.subr.bf16.mxu0 %v12982_v61  ;;  %v439_v2 = vld [vmem:[%s19714_s1 + $0xce8] sm:$0xff] }
 0x1da   :  { %10291 = vmatpush1.bf16.msra.mxu1 %v12829_v35  ;;  %v403_v46 = vld [vmem:[%s19714_s1 + $0xbc8] sm:$0xff]  ;;  %v12950_v54 = vcombine.high %v435_v38, %v439_v2  ;;  %v12949_v1 = vcombine.low %v435_v38, %v439_v2 }
 0x1db   :  { %10292 = vmatprep.subr.bf16.mxu1 %v12822_v62  ;;  %10276 = vmatmul.mubr.bf16.vlgmr.msra.gmra.mxu0 %v14655_v30  ;;  %v407_v48 = vld [vmem:[%s19714_s1 + $0xbe8] sm:$0xff] }
 0x1dc   :  { %10326 = vmatpush1.bf16.msra.mxu0 %v12981_v7  ;;  %10357 = vmatprep.mubr.bf16.mxu0 %v14672_v39  ;;  %v12918_v57 = vcombine.high %v403_v46, %v407_v48  ;;  %v427_v35 = vld [vmem:[%s19714_s1 + $0xc88] sm:$0xff]  ;;  %v12917_v60 = vcombine.low %v403_v46, %v407_v48 }
 0x1dd   :  { %10327 = vmatprep.subr.bf16.mxu0 %v12974_v12  ;;  %v431_v61 = vld [vmem:[%s19714_s1 + $0xca8] sm:$0xff] }
 0x1de   :  { %10293 = vmatpush1.bf16.msra.mxu1 %v12821_v8  ;;  %v395_v62 = vld [vmem:[%s19714_s1 + $0xb88] sm:$0xff]  ;;  %v12942_v6 = vcombine.high %v427_v35, %v431_v61  ;;  %v12941_v16 = vcombine.low %v427_v35, %v431_v61 }
 0x1df   :  { %10294 = vmatprep.subr.bf16.mxu1 %v12814_v14  ;;  %v399_v0 = vld [vmem:[%s19714_s1 + $0xba8] sm:$0xff] }
 0x1e0   :  { %10328 = vmatpush1.bf16.msra.mxu0 %v12973_v20  ;;  %v12910_v7 = vcombine.high %v395_v62, %v399_v0  ;;  %v419_v8 = vld [vmem:[%s19714_s1 + $0xc48] sm:$0xff]  ;;  %v12909_v53 = vcombine.low %v395_v62, %v399_v0 }
 0x1e1   :  { %10329 = vmatprep.subr.bf16.mxu0 %v12966_v27  ;;  %v423_v12 = vld [vmem:[%s19714_s1 + $0xc68] sm:$0xff] }
 0x1e2   :  { %10295 = vmatpush1.bf16.msra.mxu1 %v12813_v25  ;;  %v387_v14 = vld [vmem:[%s19714_s1 + $0xb48] sm:$0xff]  ;;  %v12934_v17 = vcombine.high %v419_v8, %v423_v12  ;;  %v12933_v28 = vcombine.low %v419_v8, %v423_v12 }
 0x1e3   :  { %10296 = vmatprep.subr.bf16.mxu1 %v12806_v19  ;;  %v391_v15 = vld [vmem:[%s19714_s1 + $0xb68] sm:$0xff] }
 0x1e4   :  { %10330 = vmatpush1.bf16.msra.mxu0 %v12965_v42  ;;  %v12902_v20 = vcombine.high %v387_v14, %v391_v15  ;;  %v411_v25 = vld [vmem:[%s19714_s1 + $0xc08] sm:$0xff]  ;;  %v12901_v34 = vcombine.low %v387_v14, %v391_v15 }
 0x1e5   :  { %10331 = vmatprep.subr.bf16.mxu0 %v12958_v36  ;;  %v415_v27 = vld [vmem:[%s19714_s1 + $0xc28] sm:$0xff] }
 0x1e6   :  { %10297 = vmatpush1.bf16.msra.mxu1 %v12805_v52  ;;  %v379_v19 = vld [vmem:[%s19714_s1 + $0xb08] sm:$0xff]  ;;  %v12926_v33 = vcombine.high %v411_v25, %v415_v27  ;;  %v12925_v2 = vcombine.low %v411_v25, %v415_v27 }
 0x1e7   :  { %10298 = vmatprep.subr.bf16.mxu1 %v12798_v37  ;;  %v383_v63 = vld [vmem:[%s19714_s1 + $0xb28] sm:$0xff] }
 0x1e8   :  { %10332 = vmatpush1.bf16.msra.mxu0 %v12957_v50  ;;  %v12894_v42 = vcombine.high %v379_v19, %v383_v63  ;;  %v531_v52 = vld [vmem:[%s19714_s1 + $0xfc8] sm:$0xff]  ;;  %v12893_v46 = vcombine.low %v379_v19, %v383_v63 }
 0x1e9   :  { %10333 = vmatprep.subr.bf16.mxu0 %v12950_v54  ;;  %v535_v36 = vld [vmem:[%s19714_s1 + $0xfe8] sm:$0xff] }
 0x1ea   :  { %10299 = vmatpush1.bf16.msra.mxu1 %v12797_v51  ;;  %v371_v37 = vld [vmem:[%s19714_s1 + $0xac8] sm:$0xff]  ;;  %v13046_v48 = vcombine.high %v531_v52, %v535_v36  ;;  %v13045_v61 = vcombine.low %v531_v52, %v535_v36 }
 0x1eb   :  { %10300 = vmatprep.subr.bf16.mxu1 %v12918_v57  ;;  %v375_v38 = vld [vmem:[%s19714_s1 + $0xae8] sm:$0xff] }
 0x1ec   :  { %10334 = vmatpush1.bf16.msra.mxu0 %v12949_v1  ;;  %v12886_v50 = vcombine.high %v371_v37, %v375_v38  ;;  %v523_v51 = vld [vmem:[%s19714_s1 + $0xf88] sm:$0xff]  ;;  %v12885_v62 = vcombine.low %v371_v37, %v375_v38 }
 0x1ed   :  { %10335 = vmatprep.subr.bf16.mxu0 %v12942_v6  ;;  %v527_v54 = vld [vmem:[%s19714_s1 + $0xfa8] sm:$0xff] }
 0x1ee   :  { %10301 = vmatpush2.bf16.msra.mxu1 %v12917_v60  ;;  %v363_v57 = vld [vmem:[%s19714_s1 + $0xa88] sm:$0xff]  ;;  %v13038_v0 = vcombine.high %v523_v51, %v527_v54  ;;  %v13037_v12 = vcombine.low %v523_v51, %v527_v54 }
 0x1ef   :  { %10302 = vmatprep.subr.bf16.mxu1 %v12910_v7  ;;  %v367_v35 = vld [vmem:[%s19714_s1 + $0xaa8] sm:$0xff] }
 0x1f0   :  { %10336 = vmatpush1.bf16.msra.mxu0 %v12941_v16  ;;  %v12878_v1 = vcombine.high %v363_v57, %v367_v35  ;;  %v515_v60 = vld [vmem:[%s19714_s1 + $0xf48] sm:$0xff]  ;;  %v12877_v14 = vcombine.low %v363_v57, %v367_v35 }
 0x1f1   :  { %10337 = vmatprep.subr.bf16.mxu0 %v12934_v17  ;;  %v519_v6 = vld [vmem:[%s19714_s1 + $0xf68] sm:$0xff] }
 0x1f2   :  { %10303 = vmatpush2.bf16.msra.mxu1 %v12909_v53  ;;  %v355_v7 = vld [vmem:[%s19714_s1 + $0xa48] sm:$0xff]  ;;  %v13030_v15 = vcombine.high %v515_v60, %v519_v6  ;;  %v13029_v27 = vcombine.low %v515_v60, %v519_v6 }
 0x1f3   :  { %10304 = vmatprep.subr.bf16.mxu1 %v12902_v20  ;;  %v359_v8 = vld [vmem:[%s19714_s1 + $0xa68] sm:$0xff] }
 0x1f4   :  { %10338 = vmatpush1.bf16.msra.mxu0 %v12933_v28  ;;  %v12870_v16 = vcombine.high %v355_v7, %v359_v8  ;;  %v507_v53 = vld [vmem:[%s19714_s1 + $0xf08] sm:$0xff]  ;;  %v12869_v19 = vcombine.low %v355_v7, %v359_v8 }
 0x1f5   :  { %10339 = vmatprep.subr.bf16.mxu0 %v12926_v33  ;;  %v511_v17 = vld [vmem:[%s19714_s1 + $0xf28] sm:$0xff] }
 0x1f6   :  { %10305 = vmatpush2.bf16.msra.mxu1 %v12901_v34  ;;  %v347_v20 = vld [vmem:[%s19714_s1 + $0xa08] sm:$0xff]  ;;  %v13022_v63 = vcombine.high %v507_v53, %v511_v17  ;;  %v13021_v36 = vcombine.low %v507_v53, %v511_v17 }
 0x1f7   :  { %10306 = vmatprep.subr.bf16.mxu1 %v12894_v42  ;;  %v351_v25 = vld [vmem:[%s19714_s1 + $0xa28] sm:$0xff] }
 0x1f8   :  { %10340 = vmatpush1.bf16.msra.mxu0 %v12925_v2  ;;  %v12862_v28 = vcombine.high %v347_v20, %v351_v25  ;;  %v499_v34 = vld [vmem:[%s19714_s1 + $0xec8] sm:$0xff]  ;;  %v12861_v37 = vcombine.low %v347_v20, %v351_v25 }
 0x1f9   :  { %10341 = vmatprep.subr.bf16.mxu0 %v13046_v48  ;;  %v503_v33 = vld [vmem:[%s19714_s1 + $0xee8] sm:$0xff] }
 0x1fa   :  { %10307 = vmatpush2.bf16.msra.mxu1 %v12893_v46  ;;  %v595_v42 = vld [vmem:[%s19714_s1 + $0x11c8] sm:$0xff]  ;;  %v13014_v38 = vcombine.high %v499_v34, %v503_v33  ;;  %v13013_v54 = vcombine.low %v499_v34, %v503_v33 }
 0x1fb   :  { %10308 = vmatprep.subr.bf16.mxu1 %v12886_v50  ;;  %v599_v52 = vld [vmem:[%s19714_s1 + $0x11e8] sm:$0xff] }
 0x1fc   :  { %10342 = vmatpush2.bf16.msra.mxu0 %v13045_v61  ;;  %v13110_v2 = vcombine.high %v595_v42, %v599_v52  ;;  %v491_v46 = vld [vmem:[%s19714_s1 + $0xe88] sm:$0xff]  ;;  %v13109_v57 = vcombine.low %v595_v42, %v599_v52 }
 0x1fd   :  { %10343 = vmatprep.subr.bf16.mxu0 %v13038_v0  ;;  %v495_v48 = vld [vmem:[%s19714_s1 + $0xea8] sm:$0xff] }
 0x1fe   :  { %10309 = vmatpush2.bf16.msra.mxu1 %v12885_v62  ;;  %v587_v50 = vld [vmem:[%s19714_s1 + $0x1188] sm:$0xff]  ;;  %v13006_v35 = vcombine.high %v491_v46, %v495_v48 }
 0x1ff   :  { %10310 = vmatprep.subr.bf16.mxu1 %v12878_v1  ;;  %v591_v51 = vld [vmem:[%s19714_s1 + $0x11a8] sm:$0xff] }
 0x200   :  { %10344 = vmatpush2.bf16.msra.mxu0 %v13037_v12  ;;  %v13102_v61 = vcombine.high %v587_v50, %v591_v51  ;;  %v483_v62 = vld [vmem:[%s19714_s1 + $0xe48] sm:$0xff]  ;;  %v13005_v12 = vcombine.low %v491_v46, %v495_v48 }
 0x201   :  { %10345 = vmatprep.subr.bf16.mxu0 %v13030_v15  ;;  %v487_v0 = vld [vmem:[%s19714_s1 + $0xe68] sm:$0xff]  ;;  %v13101_v15 = vcombine.low %v587_v50, %v591_v51 }
 0x202   :  { %10311 = vmatpush2.bf16.msra.mxu1 %v12877_v14  ;;  %v579_v60 = vld [vmem:[%s19714_s1 + $0x1148] sm:$0xff]  ;;  %v12997_v33 = vcombine.low %v483_v62, %v487_v0 }
 0x203   :  { %10312 = vmatprep.subr.bf16.mxu1 %v12870_v16  ;;  %v583_v6 = vld [vmem:[%s19714_s1 + $0x1168] sm:$0xff]  ;;  %v12998_v16 = vcombine.high %v483_v62, %v487_v0 }
 0x204   :  { %10346 = vmatpush2.bf16.msra.mxu0 %v13029_v27  ;;  %v13094_v25 = vcombine.high %v579_v60, %v583_v6  ;;  %v479_v27 = vld [vmem:[%s19714_s1 + $0xe28] sm:$0xff]  ;;  %v13093_v52 = vcombine.low %v579_v60, %v583_v6 }
 0x205   :  { %10347 = vmatprep.subr.bf16.mxu0 %v13022_v63  ;;  %v571_v63 = vld [vmem:[%s19714_s1 + $0x1108] sm:$0xff] }
 0x206   :  { %10313 = vmatpush2.bf16.msra.mxu1 %v12869_v19  ;;  %v727_v46 = vld [vmem:[%s19714_s1 + $0x15e8] sm:$0xff] }
 0x207   :  { %10314 = vmatprep.subr.bf16.mxu1 %v12862_v28  ;;  %v563_v48 = vld [vmem:[%s19714_s1 + $0x10c8] sm:$0xff] }
 0x208   :  { %10348 = vmatpush2.bf16.msra.mxu0 %v13021_v36  ;;  %v567_v50 = vld [vmem:[%s19714_s1 + $0x10e8] sm:$0xff] }
 0x209   :  { %10349 = vmatprep.subr.bf16.mxu0 %v13014_v38  ;;  %v719_v62 = vld [vmem:[%s19714_s1 + $0x15a8] sm:$0xff]  ;;  %v13077_v6 = vcombine.low %v563_v48, %v567_v50 }
 0x20a   :  { %10315 = vmatpush2.bf16.msra.mxu1 %v12861_v37  ;;  %v555_v0 = vld [vmem:[%s19714_s1 + $0x1088] sm:$0xff] }
 0x20b   :  { %10366 = vmatprep.subr.bf16.mxu1 %v13110_v2  ;;  %v10031_v1 = vpop.f32.mrf.mxu0  ;;  %v723_v2 = vld [vmem:[%s19714_s1 + $0x15c8] sm:$0xff] }
 0x20c   :  { %v10032_v7 = vadd.f32 %v10031_v1, %v15987_v59  ;;  %10350 = vmatpush2.bf16.msra.mxu0 %v13013_v54  ;;  %v475_v59 = vld [vmem:[%s19714_s1 + $0xe08] sm:$0xff]  ;;  %v13237_v60 = vcombine.low %v723_v2, %v727_v46 }
 0x20d   :  { %v10072_v8 = vpop.f32.mrf.mxu1  ;;  %10317 = vmatmul.mubr.bf16.vlgmr.msra.gmra.mxu1 %v14858_v47  ;;  %v10033_v14 = vpop.f32.mrf.mxu0  ;;  %10351 = vmatprep.subr.bf16.mxu0 %v13006_v35  ;;  %v12990_v36 = vcombine.high %v475_v59, %v479_v27  ;;  %v12989_v51 = vcombine.low %v475_v59, %v479_v27  ;;  %v13078_v35 = vcombine.high %v563_v48, %v567_v50  ;;  %v559_v1 = vld [vmem:[%s19714_s1 + $0x10a8] sm:$0xff] }
 0x20e   :  { %10367 = vmatpush1.bf16.msra.mxu1 %v13109_v57  ;;  %v16189_v53 = vadd.f32 %v10072_v8, %v10032_v7  ;;  %v10034_v17 = vadd.f32 %v10033_v14, %v16003_v49  ;;  %10398 = vmatprep.mubr.bf16.mxu1 %v14873_v55  ;;  %v575_v49 = vld [vmem:[%s19714_s1 + $0x1128] sm:$0xff]  ;;  %v13238_v57 = vcombine.high %v723_v2, %v727_v46 }
 0x20f   :  { %v10074_v20 = vpop.f32.mrf.mxu1  ;;  %10368 = vmatprep.subr.bf16.mxu1 %v13102_v61  ;;  %v10035_v19 = vpop.f32.mrf.mxu0  ;;  %v13086_v38 = vcombine.high %v571_v63, %v575_v49  ;;  %v13085_v54 = vcombine.low %v571_v63, %v575_v49  ;;  %v715_v61 = vld [vmem:[%s19714_s1 + $0x1588] sm:$0xff]  ;;  %v13070_v8 = vcombine.high %v555_v0, %v559_v1 }
 0x210   :  { %v16205_v28 = vadd.f32 %v10074_v20, %v10034_v17  ;;  %10352 = vmatpush2.bf16.msra.mxu0 %v13005_v12  ;;  %v13230_v7 = vcombine.high %v715_v61, %v719_v62  ;;  %v707_v12 = vld [vmem:[%s19714_s1 + $0x1548] sm:$0xff]  ;;  %v13229_v17 = vcombine.low %v715_v61, %v719_v62  ;;  %v13069_v20 = vcombine.low %v555_v0, %v559_v1 }
 0x211   :  { %v10076_v34 = vpop.f32.mrf.mxu1  ;;  %v10036_v42 = vpop.f32.mrf.mxu0  ;;  %10353 = vmatprep.subr.bf16.mxu0 %v12998_v16  ;;  %v711_v14 = vld [vmem:[%s19714_s1 + $0x1568] sm:$0xff] }
 0x212   :  { %10369 = vmatpush1.bf16.msra.mxu1 %v13101_v15  ;;  %v547_v15 = vld [vmem:[%s19714_s1 + $0x1048] sm:$0xff]  ;;  %v13221_v34 = vcombine.low %v707_v12, %v711_v14 }
 0x213   :  { %v10077_v37 = vpop.f32.mrf.mxu1  ;;  %10370 = vmatprep.subr.bf16.mxu1 %v13094_v25  ;;  %v551_v16 = vld [vmem:[%s19714_s1 + $0x1068] sm:$0xff]  ;;  %v13222_v25 = vcombine.high %v707_v12, %v711_v14 }
 0x214   :  { %10354 = vmatpush2.bf16.msra.mxu0 %v12997_v33  ;;  %v13062_v59 = vcombine.high %v547_v15, %v551_v16  ;;  %v699_v27 = vld [vmem:[%s19714_s1 + $0x1508] sm:$0xff]  ;;  %v13061_v33 = vcombine.low %v547_v15, %v551_v16 }
 0x215   :  { %10355 = vmatprep.subr.bf16.mxu0 %v12990_v36  ;;  %v703_v19 = vld [vmem:[%s19714_s1 + $0x1528] sm:$0xff] }
 0x216   :  { %10371 = vmatpush1.bf16.msra.mxu1 %v13093_v52  ;;  %v539_v63 = vld [vmem:[%s19714_s1 + $0x1008] sm:$0xff]  ;;  %v13214_v42 = vcombine.high %v699_v27, %v703_v19  ;;  %v13213_v46 = vcombine.low %v699_v27, %v703_v19 }
 0x217   :  { %10372 = vmatprep.subr.bf16.mxu1 %v13086_v38  ;;  %v543_v49 = vld [vmem:[%s19714_s1 + $0x1028] sm:$0xff] }
 0x218   :  { %10356 = vmatpush2.bf16.msra.mxu0 %v12989_v51  ;;  %v13054_v52 = vcombine.high %v539_v63, %v543_v49  ;;  %v691_v36 = vld [vmem:[%s19714_s1 + $0x14c8] sm:$0xff]  ;;  %v13053_v48 = vcombine.low %v539_v63, %v543_v49 }
 0x219   :  { %10407 = vmatprep.subr.bf16.mxu0 %v13238_v57  ;;  %v695_v37 = vld [vmem:[%s19714_s1 + $0x14e8] sm:$0xff] }
 0x21a   :  { %10373 = vmatpush1.bf16.msra.mxu1 %v13085_v54  ;;  %v659_v38 = vld [vmem:[%s19714_s1 + $0x13c8] sm:$0xff]  ;;  %v13206_v50 = vcombine.high %v691_v36, %v695_v37  ;;  %v13205_v62 = vcombine.low %v691_v36, %v695_v37 }
 0x21b   :  { %10374 = vmatprep.subr.bf16.mxu1 %v13078_v35  ;;  %10358 = vmatmul.mubr.bf16.vlgmr.msra.gmra.mxu0 %v14877_v56  ;;  %v663_v2 = vld [vmem:[%s19714_s1 + $0x13e8] sm:$0xff] }
 0x21c   :  { %10408 = vmatpush1.bf16.msra.mxu0 %v13237_v60  ;;  %10439 = vmatprep.mubr.bf16.mxu0 %v14894_v3  ;;  %v13174_v51 = vcombine.high %v659_v38, %v663_v2  ;;  %v683_v54 = vld [vmem:[%s19714_s1 + $0x1488] sm:$0xff]  ;;  %v13173_v0 = vcombine.low %v659_v38, %v663_v2 }
 0x21d   :  { %10409 = vmatprep.subr.bf16.mxu0 %v13230_v7  ;;  %v687_v57 = vld [vmem:[%s19714_s1 + $0x14a8] sm:$0xff] }
 0x21e   :  { %10375 = vmatpush1.bf16.msra.mxu1 %v13077_v6  ;;  %v651_v35 = vld [vmem:[%s19714_s1 + $0x1388] sm:$0xff]  ;;  %v13198_v1 = vcombine.high %v683_v54, %v687_v57  ;;  %v13197_v14 = vcombine.low %v683_v54, %v687_v57 }
 0x21f   :  { %10376 = vmatprep.subr.bf16.mxu1 %v13070_v8  ;;  %v655_v61 = vld [vmem:[%s19714_s1 + $0x13a8] sm:$0xff] }
 0x220   :  { %10410 = vmatpush1.bf16.msra.mxu0 %v13229_v17  ;;  %v13166_v60 = vcombine.high %v651_v35, %v655_v61  ;;  %v675_v6 = vld [vmem:[%s19714_s1 + $0x1448] sm:$0xff]  ;;  %v13165_v15 = vcombine.low %v651_v35, %v655_v61 }
 0x221   :  { %10411 = vmatprep.subr.bf16.mxu0 %v13222_v25  ;;  %v679_v7 = vld [vmem:[%s19714_s1 + $0x1468] sm:$0xff] }
 0x222   :  { %10377 = vmatpush1.bf16.msra.mxu1 %v13069_v20  ;;  %v643_v8 = vld [vmem:[%s19714_s1 + $0x1348] sm:$0xff]  ;;  %v13190_v16 = vcombine.high %v675_v6, %v679_v7  ;;  %v13189_v19 = vcombine.low %v675_v6, %v679_v7 }
 0x223   :  { %10378 = vmatprep.subr.bf16.mxu1 %v13062_v59  ;;  %v647_v12 = vld [vmem:[%s19714_s1 + $0x1368] sm:$0xff] }
 0x224   :  { %10412 = vmatpush1.bf16.msra.mxu0 %v13221_v34  ;;  %v13158_v17 = vcombine.high %v643_v8, %v647_v12  ;;  %v667_v20 = vld [vmem:[%s19714_s1 + $0x1408] sm:$0xff]  ;;  %v13157_v63 = vcombine.low %v643_v8, %v647_v12 }
 0x225   :  { %10413 = vmatprep.subr.bf16.mxu0 %v13214_v42  ;;  %v671_v25 = vld [vmem:[%s19714_s1 + $0x1428] sm:$0xff] }
 0x226   :  { %10379 = vmatpush1.bf16.msra.mxu1 %v13061_v33  ;;  %v635_v59 = vld [vmem:[%s19714_s1 + $0x1308] sm:$0xff]  ;;  %v13182_v49 = vcombine.high %v667_v20, %v671_v25  ;;  %v13181_v37 = vcombine.low %v667_v20, %v671_v25 }
 0x227   :  { %10380 = vmatprep.subr.bf16.mxu1 %v13054_v52  ;;  %v639_v27 = vld [vmem:[%s19714_s1 + $0x1328] sm:$0xff] }
 0x228   :  { %10414 = vmatpush1.bf16.msra.mxu0 %v13213_v46  ;;  %v13150_v34 = vcombine.high %v635_v59, %v639_v27  ;;  %v787_v33 = vld [vmem:[%s19714_s1 + $0x17c8] sm:$0xff]  ;;  %v13149_v38 = vcombine.low %v635_v59, %v639_v27 }
 0x229   :  { %10415 = vmatprep.subr.bf16.mxu0 %v13206_v50  ;;  %v791_v42 = vld [vmem:[%s19714_s1 + $0x17e8] sm:$0xff] }
 0x22a   :  { %10381 = vmatpush1.bf16.msra.mxu1 %v13053_v48  ;;  %v627_v52 = vld [vmem:[%s19714_s1 + $0x12c8] sm:$0xff]  ;;  %v13302_v2 = vcombine.high %v787_v33, %v791_v42  ;;  %v13301_v57 = vcombine.low %v787_v33, %v791_v42 }
 0x22b   :  { %10382 = vmatprep.subr.bf16.mxu1 %v13174_v51  ;;  %v631_v36 = vld [vmem:[%s19714_s1 + $0x12e8] sm:$0xff] }
 0x22c   :  { %10416 = vmatpush1.bf16.msra.mxu0 %v13205_v62  ;;  %v13142_v46 = vcombine.high %v627_v52, %v631_v36  ;;  %v779_v48 = vld [vmem:[%s19714_s1 + $0x1788] sm:$0xff]  ;;  %v13141_v35 = vcombine.low %v627_v52, %v631_v36 }
 0x22d   :  { %10417 = vmatprep.subr.bf16.mxu0 %v13198_v1  ;;  %v783_v50 = vld [vmem:[%s19714_s1 + $0x17a8] sm:$0xff] }
 0x22e   :  { %10383 = vmatpush2.bf16.msra.mxu1 %v13173_v0  ;;  %v619_v51 = vld [vmem:[%s19714_s1 + $0x1288] sm:$0xff]  ;;  %v13294_v61 = vcombine.high %v779_v48, %v783_v50  ;;  %v13293_v7 = vcombine.low %v779_v48, %v783_v50 }
 0x22f   :  { %10384 = vmatprep.subr.bf16.mxu1 %v13166_v60  ;;  %v623_v54 = vld [vmem:[%s19714_s1 + $0x12a8] sm:$0xff] }
 0x230   :  { %10418 = vmatpush1.bf16.msra.mxu0 %v13197_v14  ;;  %v13134_v62 = vcombine.high %v619_v51, %v623_v54  ;;  %v771_v0 = vld [vmem:[%s19714_s1 + $0x1748] sm:$0xff]  ;;  %v13133_v8 = vcombine.low %v619_v51, %v623_v54 }
 0x231   :  { %10419 = vmatprep.subr.bf16.mxu0 %v13190_v16  ;;  %v775_v1 = vld [vmem:[%s19714_s1 + $0x1768] sm:$0xff] }
 0x232   :  { %10385 = vmatpush2.bf16.msra.mxu1 %v13165_v15  ;;  %v611_v60 = vld [vmem:[%s19714_s1 + $0x1248] sm:$0xff]  ;;  %v13286_v12 = vcombine.high %v771_v0, %v775_v1  ;;  %v13285_v25 = vcombine.low %v771_v0, %v775_v1 }
 0x233   :  { %10386 = vmatprep.subr.bf16.mxu1 %v13158_v17  ;;  %v615_v6 = vld [vmem:[%s19714_s1 + $0x1268] sm:$0xff] }
 0x234   :  { %10420 = vmatpush1.bf16.msra.mxu0 %v13189_v19  ;;  %v13126_v14 = vcombine.high %v611_v60, %v615_v6  ;;  %v763_v15 = vld [vmem:[%s19714_s1 + $0x1708] sm:$0xff]  ;;  %v13125_v59 = vcombine.low %v611_v60, %v615_v6 }
 0x235   :  { %10421 = vmatprep.subr.bf16.mxu0 %v13182_v49  ;;  %v767_v16 = vld [vmem:[%s19714_s1 + $0x1728] sm:$0xff] }
 0x236   :  { %10387 = vmatpush2.bf16.msra.mxu1 %v13157_v63  ;;  %v603_v17 = vld [vmem:[%s19714_s1 + $0x1208] sm:$0xff]  ;;  %v13278_v27 = vcombine.high %v763_v15, %v767_v16  ;;  %v13277_v42 = vcombine.low %v763_v15, %v767_v16 }
 0x237   :  { %10388 = vmatprep.subr.bf16.mxu1 %v13150_v34  ;;  %v607_v20 = vld [vmem:[%s19714_s1 + $0x1228] sm:$0xff] }
 0x238   :  { %10422 = vmatpush1.bf16.msra.mxu0 %v13181_v37  ;;  %v13118_v19 = vcombine.high %v603_v17, %v607_v20  ;;  %v755_v63 = vld [vmem:[%s19714_s1 + $0x16c8] sm:$0xff]  ;;  %v13117_v52 = vcombine.low %v603_v17, %v607_v20 }
 0x239   :  { %10423 = vmatprep.subr.bf16.mxu0 %v13302_v2  ;;  %v759_v49 = vld [vmem:[%s19714_s1 + $0x16e8] sm:$0xff] }
 0x23a   :  { %10389 = vmatpush2.bf16.msra.mxu1 %v13149_v38  ;;  %v851_v34 = vld [vmem:[%s19714_s1 + $0x19c8] sm:$0xff]  ;;  %v13270_v36 = vcombine.high %v755_v63, %v759_v49  ;;  %v13269_v50 = vcombine.low %v755_v63, %v759_v49 }
 0x23b   :  { %10390 = vmatprep.subr.bf16.mxu1 %v13142_v46  ;;  %v855_v33 = vld [vmem:[%s19714_s1 + $0x19e8] sm:$0xff] }
 0x23c   :  { %10424 = vmatpush2.bf16.msra.mxu0 %v13301_v57  ;;  %v13366_v37 = vcombine.high %v851_v34, %v855_v33  ;;  %v747_v38 = vld [vmem:[%s19714_s1 + $0x1688] sm:$0xff]  ;;  %v13365_v51 = vcombine.low %v851_v34, %v855_v33 }
 0x23d   :  { %10425 = vmatprep.subr.bf16.mxu0 %v13294_v61  ;;  %v751_v2 = vld [vmem:[%s19714_s1 + $0x16a8] sm:$0xff] }
 0x23e   :  { %10391 = vmatpush2.bf16.msra.mxu1 %v13141_v35  ;;  %v843_v46 = vld [vmem:[%s19714_s1 + $0x1988] sm:$0xff]  ;;  %v13262_v54 = vcombine.high %v747_v38, %v751_v2 }
 0x23f   :  { %10392 = vmatprep.subr.bf16.mxu1 %v13134_v62  ;;  %v847_v48 = vld [vmem:[%s19714_s1 + $0x19a8] sm:$0xff] }
 0x240   :  { %10426 = vmatpush2.bf16.msra.mxu0 %v13293_v7  ;;  %v13358_v57 = vcombine.high %v843_v46, %v847_v48  ;;  %v739_v35 = vld [vmem:[%s19714_s1 + $0x1648] sm:$0xff]  ;;  %v13261_v7 = vcombine.low %v747_v38, %v751_v2 }
 0x241   :  { %10427 = vmatprep.subr.bf16.mxu0 %v13286_v12  ;;  %v743_v61 = vld [vmem:[%s19714_s1 + $0x1668] sm:$0xff]  ;;  %v13357_v12 = vcombine.low %v843_v46, %v847_v48 }
 0x242   :  { %10393 = vmatpush2.bf16.msra.mxu1 %v13133_v8  ;;  %v835_v0 = vld [vmem:[%s19714_s1 + $0x1948] sm:$0xff]  ;;  %v13253_v49 = vcombine.low %v739_v35, %v743_v61 }
 0x243   :  { %10394 = vmatprep.subr.bf16.mxu1 %v13126_v14  ;;  %v839_v1 = vld [vmem:[%s19714_s1 + $0x1968] sm:$0xff]  ;;  %v13254_v14 = vcombine.high %v739_v35, %v743_v61 }
 0x244   :  { %10428 = vmatpush2.bf16.msra.mxu0 %v13285_v25  ;;  %v13350_v20 = vcombine.high %v835_v0, %v839_v1  ;;  %v735_v25 = vld [vmem:[%s19714_s1 + $0x1628] sm:$0xff]  ;;  %v13349_v33 = vcombine.low %v835_v0, %v839_v1 }
 0x245   :  { %10429 = vmatprep.subr.bf16.mxu0 %v13278_v27  ;;  %v827_v27 = vld [vmem:[%s19714_s1 + $0x1908] sm:$0xff] }
 0x246   :  { %10395 = vmatpush2.bf16.msra.mxu1 %v13125_v59  ;;  %v983_v38 = vld [vmem:[%s19714_s1 + $0x1de8] sm:$0xff] }
 0x247   :  { %10396 = vmatprep.subr.bf16.mxu1 %v13118_v19  ;;  %v819_v2 = vld [vmem:[%s19714_s1 + $0x18c8] sm:$0xff] }
 0x248   :  { %10430 = vmatpush2.bf16.msra.mxu0 %v13277_v42  ;;  %v823_v46 = vld [vmem:[%s19714_s1 + $0x18e8] sm:$0xff] }
 0x249   :  { %10431 = vmatprep.subr.bf16.mxu0 %v13270_v36  ;;  %v975_v35 = vld [vmem:[%s19714_s1 + $0x1da8] sm:$0xff]  ;;  %v13333_v1 = vcombine.low %v819_v2, %v823_v46 }
 0x24a   :  { %10397 = vmatpush2.bf16.msra.mxu1 %v13117_v52  ;;  %v811_v61 = vld [vmem:[%s19714_s1 + $0x1888] sm:$0xff] }
 0x24b   :  { %10448 = vmatprep.subr.bf16.mxu1 %v13366_v37  ;;  %v10113_v62 = vpop.f32.mrf.mxu0  ;;  %v979_v37 = vld [vmem:[%s19714_s1 + $0x1dc8] sm:$0xff] }
 0x24c   :  { %v10114_v60 = vadd.f32 %v10113_v62, %v16189_v53  ;;  %10432 = vmatpush2.bf16.msra.mxu0 %v13269_v50  ;;  %v731_v53 = vld [vmem:[%s19714_s1 + $0x1608] sm:$0xff]  ;;  %v13493_v0 = vcombine.low %v979_v37, %v983_v38 }
 0x24d   :  { %v10154_v6 = vpop.f32.mrf.mxu1  ;;  %10399 = vmatmul.mubr.bf16.vlgmr.msra.gmra.mxu1 %v15076_v21  ;;  %v10115_v8 = vpop.f32.mrf.mxu0  ;;  %10433 = vmatprep.subr.bf16.mxu0 %v13262_v54  ;;  %v13246_v42 = vcombine.high %v731_v53, %v735_v25  ;;  %v13245_v48 = vcombine.low %v731_v53, %v735_v25  ;;  %v13334_v54 = vcombine.high %v819_v2, %v823_v46  ;;  %v815_v62 = vld [vmem:[%s19714_s1 + $0x18a8] sm:$0xff] }
 0x24e   :  { %10449 = vmatpush1.bf16.msra.mxu1 %v13365_v51  ;;  %v10155_v15 = vadd.f32 %v10154_v6, %v10114_v60  ;;  %v10116_v16 = vadd.f32 %v10115_v8, %v16205_v28  ;;  %10480 = vmatprep.mubr.bf16.mxu1 %v15091_v31  ;;  %v831_v28 = vld [vmem:[%s19714_s1 + $0x1928] sm:$0xff]  ;;  %v13494_v51 = vcombine.high %v979_v37, %v983_v38 }
 0x24f   :  { %v10156_v17 = vpop.f32.mrf.mxu1  ;;  %10450 = vmatprep.subr.bf16.mxu1 %v13358_v57  ;;  %v10117_v59 = vpop.f32.mrf.mxu0  ;;  %v13342_v36 = vcombine.high %v827_v27, %v831_v28  ;;  %v13341_v50 = vcombine.low %v827_v27, %v831_v28  ;;  %v971_v57 = vld [vmem:[%s19714_s1 + $0x1d88] sm:$0xff]  ;;  %v13326_v6 = vcombine.high %v811_v61, %v815_v62  ;;  %v13325_v25 = vcombine.low %v811_v61, %v815_v62 }
 0x250   :  { %v10157_v19 = vadd.f32 %v10156_v17, %v10116_v16  ;;  %10434 = vmatpush2.bf16.msra.mxu0 %v13261_v7  ;;  %v13486_v60 = vcombine.high %v971_v57, %v975_v35  ;;  %v963_v7 = vld [vmem:[%s19714_s1 + $0x1d48] sm:$0xff] }
 0x251   :  { %v10158_v63 = vpop.f32.mrf.mxu1  ;;  %v10118_v34 = vpop.f32.mrf.mxu0  ;;  %10435 = vmatprep.subr.bf16.mxu0 %v13254_v14  ;;  %v967_v8 = vld [vmem:[%s19714_s1 + $0x1d68] sm:$0xff] }
 0x252   :  { %10451 = vmatpush1.bf16.msra.mxu1 %v13357_v12  ;;  %v803_v14 = vld [vmem:[%s19714_s1 + $0x1848] sm:$0xff]  ;;  %v13478_v59 = vcombine.high %v963_v7, %v967_v8 }
 0x253   :  { %v10159_v52 = vpop.f32.mrf.mxu1  ;;  %10452 = vmatprep.subr.bf16.mxu1 %v13350_v20  ;;  %v807_v16 = vld [vmem:[%s19714_s1 + $0x1868] sm:$0xff]  ;;  %v13485_v20 = vcombine.low %v971_v57, %v975_v35 }
 0x254   :  { %10436 = vmatpush2.bf16.msra.mxu0 %v13253_v49  ;;  %v13318_v28 = vcombine.high %v803_v14, %v807_v16  ;;  %v955_v63 = vld [vmem:[%s19714_s1 + $0x1d08] sm:$0xff]  ;;  %v13317_v52 = vcombine.low %v803_v14, %v807_v16 }
 0x255   :  { %10437 = vmatprep.subr.bf16.mxu0 %v13246_v42  ;;  %v795_v34 = vld [vmem:[%s19714_s1 + $0x1808] sm:$0xff] }
 0x256   :  { %10453 = vmatpush1.bf16.msra.mxu1 %v13349_v33  ;;  %v13477_v33 = vcombine.low %v963_v7, %v967_v8  ;;  %v947_v38 = vld [vmem:[%s19714_s1 + $0x1cc8] sm:$0xff] }
 0x257   :  { %10454 = vmatprep.subr.bf16.mxu1 %v13342_v36  ;;  %v951_v2 = vld [vmem:[%s19714_s1 + $0x1ce8] sm:$0xff] }
 0x258   :  { %10438 = vmatpush2.bf16.msra.mxu0 %v13245_v48  ;;  %v915_v46 = vld [vmem:[%s19714_s1 + $0x1bc8] sm:$0xff] }
 0x259   :  { %10489 = vmatprep.subr.bf16.mxu0 %v13494_v51  ;;  %v919_v48 = vld [vmem:[%s19714_s1 + $0x1be8] sm:$0xff] }
 0x25a   :  { %10455 = vmatpush1.bf16.msra.mxu1 %v13341_v50  ;;  %v13430_v57 = vcombine.high %v915_v46, %v919_v48  ;;  %v939_v35 = vld [vmem:[%s19714_s1 + $0x1c88] sm:$0xff] }
 0x25b   :  { %10456 = vmatprep.subr.bf16.mxu1 %v13334_v54  ;;  %v10195_v12 = vpop.f32.mrf.mxu0  ;;  %10440 = vmatmul.mubr.bf16.vlgmr.msra.gmra.mxu0 %v15095_v32  ;;  %v13462_v54 = vcombine.high %v947_v38, %v951_v2  ;;  %v943_v61 = vld [vmem:[%s19714_s1 + $0x1ca8] sm:$0xff] }
 0x25c   :  { %v16442_v17 = vadd.f32 %v10195_v12, %v10155_v15  ;;  %10490 = vmatpush1.bf16.msra.mxu0 %v13493_v0  ;;  %10521 = vmatprep.mubr.bf16.mxu0 %v15112_v44  ;;  %v959_v15 = vld [vmem:[%s19714_s1 + $0x1d28] sm:$0xff] }
 0x25d   :  { %v10197_v53 = vpop.f32.mrf.mxu0  ;;  %10491 = vmatprep.subr.bf16.mxu0 %v13486_v60  ;;  %v13470_v36 = vcombine.high %v955_v63, %v959_v15  ;;  %v13469_v50 = vcombine.low %v955_v63, %v959_v15  ;;  %v907_v62 = vld [vmem:[%s19714_s1 + $0x1b88] sm:$0xff]  ;;  %v13429_v60 = vcombine.low %v915_v46, %v919_v48 }
 0x25e   :  { %10457 = vmatpush1.bf16.msra.mxu1 %v13333_v1  ;;  %v16445_v27 = vadd.f32 %v10197_v53, %v10157_v19  ;;  %v799_v19 = vld [vmem:[%s19714_s1 + $0x1828] sm:$0xff]  ;;  %v13461_v1 = vcombine.low %v947_v38, %v951_v2 }
 0x25f   :  { %10458 = vmatprep.subr.bf16.mxu1 %v13326_v6  ;;  %v10199_v49 = vpop.f32.mrf.mxu0  ;;  %v13310_v37 = vcombine.high %v795_v34, %v799_v19  ;;  %v13309_v51 = vcombine.low %v795_v34, %v799_v19  ;;  %v911_v0 = vld [vmem:[%s19714_s1 + $0x1ba8] sm:$0xff]  ;;  %v13454_v6 = vcombine.high %v939_v35, %v943_v61 }
 0x260   :  { %10492 = vmatpush1.bf16.msra.mxu0 %v13485_v20  ;;  %v13422_v7 = vcombine.high %v907_v62, %v911_v0  ;;  %v931_v8 = vld [vmem:[%s19714_s1 + $0x1c48] sm:$0xff]  ;;  %v13453_v20 = vcombine.low %v939_v35, %v943_v61  ;;  %v13421_v53 = vcombine.low %v907_v62, %v911_v0 }
 0x261   :  { %v10200_v42 = vpop.f32.mrf.mxu0  ;;  %10493 = vmatprep.subr.bf16.mxu0 %v13478_v59  ;;  %v935_v12 = vld [vmem:[%s19714_s1 + $0x1c68] sm:$0xff] }
 0x262   :  { %10459 = vmatpush1.bf16.msra.mxu1 %v13325_v25  ;;  %v899_v14 = vld [vmem:[%s19714_s1 + $0x1b48] sm:$0xff]  ;;  %v13446_v25 = vcombine.high %v931_v8, %v935_v12  ;;  %v13445_v34 = vcombine.low %v931_v8, %v935_v12 }
 0x263   :  { %10460 = vmatprep.subr.bf16.mxu1 %v13318_v28  ;;  %v903_v16 = vld [vmem:[%s19714_s1 + $0x1b68] sm:$0xff] }
 0x264   :  { %10494 = vmatpush1.bf16.msra.mxu0 %v13477_v33  ;;  %v13414_v59 = vcombine.high %v899_v14, %v903_v16  ;;  %v923_v28 = vld [vmem:[%s19714_s1 + $0x1c08] sm:$0xff]  ;;  %v13413_v19 = vcombine.low %v899_v14, %v903_v16 }
 0x265   :  { %10495 = vmatprep.subr.bf16.mxu0 %v13470_v36  ;;  %v927_v63 = vld [vmem:[%s19714_s1 + $0x1c28] sm:$0xff] }
 0x266   :  { %10461 = vmatpush1.bf16.msra.mxu1 %v13317_v52  ;;  %v891_v15 = vld [vmem:[%s19714_s1 + $0x1b08] sm:$0xff]  ;;  %v13438_v33 = vcombine.high %v923_v28, %v927_v63  ;;  %v13437_v2 = vcombine.low %v923_v28, %v927_v63 }
 0x267   :  { %10462 = vmatprep.subr.bf16.mxu1 %v13310_v37  ;;  %v895_v49 = vld [vmem:[%s19714_s1 + $0x1b28] sm:$0xff] }
 0x268   :  { %10496 = vmatpush1.bf16.msra.mxu0 %v13469_v50  ;;  %v13406_v42 = vcombine.high %v891_v15, %v895_v49  ;;  %v1043_v52 = vld [vmem:[%s19714_s1 + $0x1fc8] sm:$0xff]  ;;  %v13405_v46 = vcombine.low %v891_v15, %v895_v49 }
 0x269   :  { %10497 = vmatprep.subr.bf16.mxu0 %v13462_v54  ;;  %v1047_v36 = vld [vmem:[%s19714_s1 + $0x1fe8] sm:$0xff] }
 0x26a   :  { %10463 = vmatpush1.bf16.msra.mxu1 %v13309_v51  ;;  %v883_v37 = vld [vmem:[%s19714_s1 + $0x1ac8] sm:$0xff]  ;;  %v13558_v48 = vcombine.high %v1043_v52, %v1047_v36  ;;  %v13557_v61 = vcombine.low %v1043_v52, %v1047_v36 }
 0x26b   :  { %10464 = vmatprep.subr.bf16.mxu1 %v13430_v57  ;;  %v887_v38 = vld [vmem:[%s19714_s1 + $0x1ae8] sm:$0xff] }
 0x26c   :  { %10498 = vmatpush1.bf16.msra.mxu0 %v13461_v1  ;;  %v13398_v50 = vcombine.high %v883_v37, %v887_v38  ;;  %v1035_v51 = vld [vmem:[%s19714_s1 + $0x1f88] sm:$0xff]  ;;  %v13397_v62 = vcombine.low %v883_v37, %v887_v38 }
 0x26d   :  { %10499 = vmatprep.subr.bf16.mxu0 %v13454_v6  ;;  %v1039_v54 = vld [vmem:[%s19714_s1 + $0x1fa8] sm:$0xff] }
 0x26e   :  { %10465 = vmatpush2.bf16.msra.mxu1 %v13429_v60  ;;  %v875_v57 = vld [vmem:[%s19714_s1 + $0x1a88] sm:$0xff]  ;;  %v13550_v0 = vcombine.high %v1035_v51, %v1039_v54  ;;  %v13549_v12 = vcombine.low %v1035_v51, %v1039_v54 }
 0x26f   :  { %10466 = vmatprep.subr.bf16.mxu1 %v13422_v7  ;;  %v879_v35 = vld [vmem:[%s19714_s1 + $0x1aa8] sm:$0xff] }
 0x270   :  { %10500 = vmatpush1.bf16.msra.mxu0 %v13453_v20  ;;  %v13390_v1 = vcombine.high %v875_v57, %v879_v35  ;;  %v1027_v60 = vld [vmem:[%s19714_s1 + $0x1f48] sm:$0xff]  ;;  %v13389_v14 = vcombine.low %v875_v57, %v879_v35 }
 0x271   :  { %10501 = vmatprep.subr.bf16.mxu0 %v13446_v25  ;;  %v1031_v6 = vld [vmem:[%s19714_s1 + $0x1f68] sm:$0xff] }
 0x272   :  { %10467 = vmatpush2.bf16.msra.mxu1 %v13421_v53  ;;  %v867_v7 = vld [vmem:[%s19714_s1 + $0x1a48] sm:$0xff]  ;;  %v13542_v16 = vcombine.high %v1027_v60, %v1031_v6  ;;  %v13541_v63 = vcombine.low %v1027_v60, %v1031_v6 }
 0x273   :  { %10468 = vmatprep.subr.bf16.mxu1 %v13414_v59  ;;  %v871_v8 = vld [vmem:[%s19714_s1 + $0x1a68] sm:$0xff] }
 0x274   :  { %10502 = vmatpush1.bf16.msra.mxu0 %v13445_v34  ;;  %v13382_v20 = vcombine.high %v867_v7, %v871_v8  ;;  %v1019_v53 = vld [vmem:[%s19714_s1 + $0x1f08] sm:$0xff]  ;;  %v13381_v15 = vcombine.low %v867_v7, %v871_v8 }
 0x275   :  { %10503 = vmatprep.subr.bf16.mxu0 %v13438_v33  ;;  %v1023_v25 = vld [vmem:[%s19714_s1 + $0x1f28] sm:$0xff] }
 0x276   :  { %10469 = vmatpush2.bf16.msra.mxu1 %v13413_v19  ;;  %v859_v59 = vld [vmem:[%s19714_s1 + $0x1a08] sm:$0xff]  ;;  %v13534_v49 = vcombine.high %v1019_v53, %v1023_v25  ;;  %v13533_v36 = vcombine.low %v1019_v53, %v1023_v25 }
 0x277   :  { %10470 = vmatprep.subr.bf16.mxu1 %v13406_v42  ;;  %v863_v28 = vld [vmem:[%s19714_s1 + $0x1a28] sm:$0xff] }
 0x278   :  { %10504 = vmatpush1.bf16.msra.mxu0 %v13437_v2  ;;  %v13374_v34 = vcombine.high %v859_v59, %v863_v28  ;;  %v1011_v19 = vld [vmem:[%s19714_s1 + $0x1ec8] sm:$0xff]  ;;  %v13373_v37 = vcombine.low %v859_v59, %v863_v28 }
 0x279   :  { %10505 = vmatprep.subr.bf16.mxu0 %v13558_v48  ;;  %v1015_v33 = vld [vmem:[%s19714_s1 + $0x1ee8] sm:$0xff] }
 0x27a   :  { %10471 = vmatpush2.bf16.msra.mxu1 %v13405_v46  ;;  %v1107_v42 = vld [vmem:[%s19714_s1 + $0x21c8] sm:$0xff]  ;;  %v13526_v38 = vcombine.high %v1011_v19, %v1015_v33  ;;  %v13525_v54 = vcombine.low %v1011_v19, %v1015_v33 }
 0x27b   :  { %10472 = vmatprep.subr.bf16.mxu1 %v13398_v50  ;;  %v1111_v52 = vld [vmem:[%s19714_s1 + $0x21e8] sm:$0xff] }
 0x27c   :  { %10506 = vmatpush2.bf16.msra.mxu0 %v13557_v61  ;;  %v13622_v2 = vcombine.high %v1107_v42, %v1111_v52  ;;  %v1003_v46 = vld [vmem:[%s19714_s1 + $0x1e88] sm:$0xff]  ;;  %v13621_v57 = vcombine.low %v1107_v42, %v1111_v52 }
 0x27d   :  { %10507 = vmatprep.subr.bf16.mxu0 %v13550_v0  ;;  %v1007_v48 = vld [vmem:[%s19714_s1 + $0x1ea8] sm:$0xff] }
 0x27e   :  { %10473 = vmatpush2.bf16.msra.mxu1 %v13397_v62  ;;  %v1099_v50 = vld [vmem:[%s19714_s1 + $0x2188] sm:$0xff]  ;;  %v13518_v35 = vcombine.high %v1003_v46, %v1007_v48  ;;  %v13517_v7 = vcombine.low %v1003_v46, %v1007_v48 }
 0x27f   :  { %10474 = vmatprep.subr.bf16.mxu1 %v13390_v1  ;;  %v1103_v51 = vld [vmem:[%s19714_s1 + $0x21a8] sm:$0xff] }
 0x280   :  { %10508 = vmatpush2.bf16.msra.mxu0 %v13549_v12  ;;  %v13614_v61 = vcombine.high %v1099_v50, %v1103_v51  ;;  %v995_v62 = vld [vmem:[%s19714_s1 + $0x1e48] sm:$0xff]  ;;  %v13613_v8 = vcombine.low %v1099_v50, %v1103_v51  ;;  %v14339_v50 = vld [vmem:[%s19715_s2] sm:$0xff] }
 0x281   :  { %10509 = vmatprep.subr.bf16.mxu0 %v13542_v16  ;;  %v999_v0 = vld [vmem:[%s19714_s1 + $0x1e68] sm:$0xff] }
 0x282   :  { %10475 = vmatpush2.bf16.msra.mxu1 %v13389_v14  ;;  %v1091_v1 = vld [vmem:[%s19714_s1 + $0x2148] sm:$0xff]  ;;  %v13510_v12 = vcombine.high %v995_v62, %v999_v0 }
 0x283   :  { %10476 = vmatprep.subr.bf16.mxu1 %v13382_v20  ;;  %v1095_v60 = vld [vmem:[%s19714_s1 + $0x2168] sm:$0xff] }
 0x284   :  { %10510 = vmatpush2.bf16.msra.mxu0 %v13541_v63  ;;  %v13606_v16 = vcombine.high %v1091_v1, %v1095_v60  ;;  %v987_v20 = vld [vmem:[%s19714_s1 + $0x1e08] sm:$0xff]  ;;  %v13509_v63 = vcombine.low %v995_v62, %v999_v0 }
 0x285   :  { %10511 = vmatprep.subr.bf16.mxu0 %v13534_v49  ;;  %v991_v53 = vld [vmem:[%s19714_s1 + $0x1e28] sm:$0xff] }
 0x286   :  { %10477 = vmatpush2.bf16.msra.mxu1 %v13381_v15  ;;  %v1083_v25 = vld [vmem:[%s19714_s1 + $0x2108] sm:$0xff]  ;;  %v13605_v15 = vcombine.low %v1091_v1, %v1095_v60  ;;  %v13502_v49 = vcombine.high %v987_v20, %v991_v53 }
 0x287   :  { %10478 = vmatprep.subr.bf16.mxu1 %v13374_v34  ;;  %v1087_v59 = vld [vmem:[%s19714_s1 + $0x2128] sm:$0xff]  ;;  %v1606_v34 = vsub.s32 2, %v14464_v43 }
 0x288   :  { %10512 = vmatpush2.bf16.msra.mxu0 %v13533_v36  ;;  %v13598_v33 = vcombine.high %v1083_v25, %v1087_v59  ;;  %v1235_v42 = vld [vmem:[%s19714_s1 + $0x25c8] sm:$0xff]  ;;  %v13597_v46 = vcombine.low %v1083_v25, %v1087_v59 }
 0x289   :  { %10513 = vmatprep.subr.bf16.mxu0 %v13526_v38  ;;  %v1239_v52 = vld [vmem:[%s19714_s1 + $0x25e8] sm:$0xff]  ;;  %v1610_v38 = vsub.s32 3, %v14464_v43  ;;  %v1607_v51 = vrot.slane %v14339_v50, %v1606_v34 }
 0x28a   :  { %10479 = vmatpush2.bf16.msra.mxu1 %v13373_v37  ;;  %v1075_v36 = vld [vmem:[%s19714_s1 + $0x20c8] sm:$0xff]  ;;  %v13750_v48 = vcombine.high %v1235_v42, %v1239_v52  ;;  %v13749_v1 = vcombine.low %v1235_v42, %v1239_v52 }
 0x28b   :  { %10530 = vmatprep.subr.bf16.mxu1 %v13622_v2  ;;  %v1079_v37 = vld [vmem:[%s19714_s1 + $0x20e8] sm:$0xff]  ;;  %v13501_v2 = vcombine.low %v987_v20, %v991_v53  ;;  %v1611_v0 = vrot.slane %v14339_v50, %v1610_v38 }
 0x28c   :  { %10514 = vmatpush2.bf16.msra.mxu0 %v13525_v54  ;;  %v13590_v54 = vcombine.high %v1075_v36, %v1079_v37  ;;  %v1071_v62 = vld [vmem:[%s19714_s1 + $0x20a8] sm:$0xff]  ;;  %v13589_v60 = vcombine.low %v1075_v36, %v1079_v37 }
 0x28d   :  { %v10236_v6 = vpop.f32.mrf.mxu1  ;;  %10481 = vmatmul.mubr.bf16.vlgmr.msra.gmra.mxu1 %v15299_v11  ;;  %10515 = vmatprep.subr.bf16.mxu0 %v13518_v35  ;;  %v1231_v35 = vld [vmem:[%s19714_s1 + $0x25a8] sm:$0xff] }
 0x28e   :  { %10531 = vmatpush1.bf16.msra.mxu1 %v13621_v57  ;;  %10562 = vmatprep.mubr.bf16.mxu1 %v15318_v23  ;;  %v1227_v57 = vld [vmem:[%s19714_s1 + $0x2588] sm:$0xff] }
 0x28f   :  { %v10238_v14 = vpop.f32.mrf.mxu1  ;;  %10532 = vmatprep.subr.bf16.mxu1 %v13614_v61  ;;  %v1067_v61 = vld [vmem:[%s19714_s1 + $0x2088] sm:$0xff] }
 0x290   :  { %10516 = vmatpush2.bf16.msra.mxu0 %v13517_v7  ;;  %v13742_v7 = vcombine.high %v1227_v57, %v1231_v35  ;;  %v1223_v20 = vld [vmem:[%s19714_s1 + $0x2568] sm:$0xff]  ;;  %v10239_v59 = vadd.f32 %v10238_v14, %v1611_v0 }
 0x291   :  { %v10240_v28 = vpop.f32.mrf.mxu1  ;;  %10517 = vmatprep.subr.bf16.mxu0 %v13510_v12  ;;  %v13582_v12 = vcombine.high %v1067_v61, %v1071_v62  ;;  %v1059_v25 = vld [vmem:[%s19714_s1 + $0x2048] sm:$0xff] }
 0x292   :  { %10533 = vmatpush1.bf16.msra.mxu1 %v13613_v8  ;;  %v10237_v8 = vadd.f32 %v10236_v6, %v1607_v51  ;;  %v1063_v6 = vld [vmem:[%s19714_s1 + $0x2068] sm:$0xff] }
 0x293   :  { %v10241_v19 = vpop.f32.mrf.mxu1  ;;  %10534 = vmatprep.subr.bf16.mxu1 %v13606_v16  ;;  %v1219_v16 = vld [vmem:[%s19714_s1 + $0x2548] sm:$0xff] }
 0x294   :  { %10518 = vmatpush2.bf16.msra.mxu0 %v13509_v63  ;;  %v13741_v63 = vcombine.low %v1227_v57, %v1231_v35  ;;  %v13734_v34 = vcombine.high %v1219_v16, %v1223_v20  ;;  %v1211_v42 = vld [vmem:[%s19714_s1 + $0x2508] sm:$0xff]  ;;  %v13733_v38 = vcombine.low %v1219_v16, %v1223_v20 }
 0x295   :  { %10519 = vmatprep.subr.bf16.mxu0 %v13502_v49  ;;  %v13581_v49 = vcombine.low %v1067_v61, %v1071_v62  ;;  %v1215_v14 = vld [vmem:[%s19714_s1 + $0x2528] sm:$0xff] }
 0x296   :  { %10535 = vmatpush1.bf16.msra.mxu1 %v13605_v15  ;;  %v1051_v36 = vld [vmem:[%s19714_s1 + $0x2008] sm:$0xff]  ;;  %v13725_v61 = vcombine.low %v1211_v42, %v1215_v14 }
 0x297   :  { %10536 = vmatprep.subr.bf16.mxu1 %v13598_v33  ;;  %v13574_v33 = vcombine.high %v1059_v25, %v1063_v6  ;;  %v1055_v37 = vld [vmem:[%s19714_s1 + $0x2028] sm:$0xff] }
 0x298   :  { %10520 = vmatpush2.bf16.msra.mxu0 %v13501_v2  ;;  %v13566_v50 = vcombine.high %v1051_v36, %v1055_v37  ;;  %v1203_v51 = vld [vmem:[%s19714_s1 + $0x24c8] sm:$0xff]  ;;  %v13565_v62 = vcombine.low %v1051_v36, %v1055_v37 }
 0x299   :  { %10571 = vmatprep.subr.bf16.mxu0 %v13750_v48  ;;  %v13726_v48 = vcombine.high %v1211_v42, %v1215_v14  ;;  %v1171_v57 = vld [vmem:[%s19714_s1 + $0x23c8] sm:$0xff] }
 0x29a   :  { %10537 = vmatpush1.bf16.msra.mxu1 %v13597_v46  ;;  %v13573_v46 = vcombine.low %v1059_v25, %v1063_v6  ;;  %v1175_v35 = vld [vmem:[%s19714_s1 + $0x23e8] sm:$0xff] }
 0x29b   :  { %10538 = vmatprep.subr.bf16.mxu1 %v13590_v54  ;;  %v10277_v53 = vpop.f32.mrf.mxu0  ;;  %10522 = vmatmul.mubr.bf16.vlgmr.msra.gmra.mxu0 %v15322_v26  ;;  %v1207_v54 = vld [vmem:[%s19714_s1 + $0x24e8] sm:$0xff]  ;;  %v13685_v20 = vcombine.low %v1171_v57, %v1175_v35 }
 0x29c   :  { %v16647_v28 = vadd.f32 %v10277_v53, %v10237_v8  ;;  %10572 = vmatpush1.bf16.msra.mxu0 %v13749_v1  ;;  %10603 = vmatprep.mubr.bf16.mxu0 %v15339_v41  ;;  %v13718_v0 = vcombine.high %v1203_v51, %v1207_v54  ;;  %v13686_v1 = vcombine.high %v1171_v57, %v1175_v35  ;;  %v1163_v8 = vld [vmem:[%s19714_s1 + $0x2388] sm:$0xff] }
 0x29d   :  { %v10279_v15 = vpop.f32.mrf.mxu0  ;;  %10573 = vmatprep.subr.bf16.mxu0 %v13742_v7  ;;  %v1199_v7 = vld [vmem:[%s19714_s1 + $0x24a8] sm:$0xff]  ;;  %v13717_v16 = vcombine.low %v1203_v51, %v1207_v54 }
 0x29e   :  { %10539 = vmatpush1.bf16.msra.mxu1 %v13589_v60  ;;  %v16650_v19 = vadd.f32 %v10279_v15, %v10239_v59  ;;  %v1195_v60 = vld [vmem:[%s19714_s1 + $0x2488] sm:$0xff] }
 0x29f   :  { %10540 = vmatprep.subr.bf16.mxu1 %v13582_v12  ;;  %v10281_v52 = vpop.f32.mrf.mxu0  ;;  %v1167_v12 = vld [vmem:[%s19714_s1 + $0x23a8] sm:$0xff]  ;;  %v13710_v53 = vcombine.high %v1195_v60, %v1199_v7 }
 0x2a0   :  { %10574 = vmatpush1.bf16.msra.mxu0 %v13741_v63  ;;  %v13678_v25 = vcombine.high %v1163_v8, %v1167_v12  ;;  %v1187_v6 = vld [vmem:[%s19714_s1 + $0x2448] sm:$0xff] }
 0x2a1   :  { %v10282_v2 = vpop.f32.mrf.mxu0  ;;  %10575 = vmatprep.subr.bf16.mxu0 %v13734_v34  ;;  %v1191_v59 = vld [vmem:[%s19714_s1 + $0x2468] sm:$0xff]  ;;  %v13677_v34 = vcombine.low %v1163_v8, %v1167_v12 }
 0x2a2   :  { %10541 = vmatpush1.bf16.msra.mxu1 %v13581_v49  ;;  %v1155_v63 = vld [vmem:[%s19714_s1 + $0x2348] sm:$0xff]  ;;  %v13709_v49 = vcombine.low %v1195_v60, %v1199_v7 }
 0x2a3   :  { %10542 = vmatprep.subr.bf16.mxu1 %v13574_v33  ;;  %v1159_v15 = vld [vmem:[%s19714_s1 + $0x2368] sm:$0xff]  ;;  %v13702_v33 = vcombine.high %v1187_v6, %v1191_v59 }
 0x2a4   :  { %10576 = vmatpush1.bf16.msra.mxu0 %v13733_v38  ;;  %v13670_v42 = vcombine.high %v1155_v63, %v1159_v15  ;;  %v1179_v14 = vld [vmem:[%s19714_s1 + $0x2408] sm:$0xff]  ;;  %v13701_v38 = vcombine.low %v1187_v6, %v1191_v59  ;;  %v13669_v2 = vcombine.low %v1155_v63, %v1159_v15 }
 0x2a5   :  { %10577 = vmatprep.subr.bf16.mxu0 %v13726_v48  ;;  %v1183_v52 = vld [vmem:[%s19714_s1 + $0x2428] sm:$0xff] }
 0x2a6   :  { %10543 = vmatpush1.bf16.msra.mxu1 %v13573_v46  ;;  %v1147_v36 = vld [vmem:[%s19714_s1 + $0x2308] sm:$0xff]  ;;  %v13694_v46 = vcombine.high %v1179_v14, %v1183_v52  ;;  %v13693_v35 = vcombine.low %v1179_v14, %v1183_v52 }
 0x2a7   :  { %10544 = vmatprep.subr.bf16.mxu1 %v13566_v50  ;;  %v1151_v37 = vld [vmem:[%s19714_s1 + $0x2328] sm:$0xff] }
 0x2a8   :  { %10578 = vmatpush1.bf16.msra.mxu0 %v13725_v61  ;;  %v13662_v48 = vcombine.high %v1147_v36, %v1151_v37  ;;  %v1299_v50 = vld [vmem:[%s19714_s1 + $0x27c8] sm:$0xff]  ;;  %v13661_v61 = vcombine.low %v1147_v36, %v1151_v37 }
 0x2a9   :  { %10579 = vmatprep.subr.bf16.mxu0 %v13718_v0  ;;  %v1303_v51 = vld [vmem:[%s19714_s1 + $0x27e8] sm:$0xff] }
 0x2aa   :  { %10545 = vmatpush1.bf16.msra.mxu1 %v13565_v62  ;;  %v1139_v54 = vld [vmem:[%s19714_s1 + $0x22c8] sm:$0xff]  ;;  %v13814_v62 = vcombine.high %v1299_v50, %v1303_v51  ;;  %v13813_v12 = vcombine.low %v1299_v50, %v1303_v51 }
 0x2ab   :  { %10546 = vmatprep.subr.bf16.mxu1 %v13686_v1  ;;  %v1143_v57 = vld [vmem:[%s19714_s1 + $0x22e8] sm:$0xff] }
 0x2ac   :  { %10580 = vmatpush1.bf16.msra.mxu0 %v13717_v16  ;;  %v13654_v0 = vcombine.high %v1139_v54, %v1143_v57  ;;  %v1291_v1 = vld [vmem:[%s19714_s1 + $0x2788] sm:$0xff]  ;;  %v13653_v16 = vcombine.low %v1139_v54, %v1143_v57 }
 0x2ad   :  { %10581 = vmatprep.subr.bf16.mxu0 %v13710_v53  ;;  %v1295_v60 = vld [vmem:[%s19714_s1 + $0x27a8] sm:$0xff] }
 0x2ae   :  { %10547 = vmatpush2.bf16.msra.mxu1 %v13685_v20  ;;  %v1131_v7 = vld [vmem:[%s19714_s1 + $0x2288] sm:$0xff]  ;;  %v13806_v20 = vcombine.high %v1291_v1, %v1295_v60  ;;  %v13805_v15 = vcombine.low %v1291_v1, %v1295_v60 }
 0x2af   :  { %10548 = vmatprep.subr.bf16.mxu1 %v13678_v25  ;;  %v1135_v8 = vld [vmem:[%s19714_s1 + $0x22a8] sm:$0xff] }
 0x2b0   :  { %10582 = vmatpush1.bf16.msra.mxu0 %v13709_v49  ;;  %v13646_v53 = vcombine.high %v1131_v7, %v1135_v8  ;;  %v1283_v25 = vld [vmem:[%s19714_s1 + $0x2748] sm:$0xff]  ;;  %v13645_v49 = vcombine.low %v1131_v7, %v1135_v8 }
 0x2b1   :  { %10583 = vmatprep.subr.bf16.mxu0 %v13702_v33  ;;  %v1287_v6 = vld [vmem:[%s19714_s1 + $0x2768] sm:$0xff] }
 0x2b2   :  { %10549 = vmatpush2.bf16.msra.mxu1 %v13677_v34  ;;  %v1123_v59 = vld [vmem:[%s19714_s1 + $0x2248] sm:$0xff]  ;;  %v13798_v34 = vcombine.high %v1283_v25, %v1287_v6  ;;  %v13797_v37 = vcombine.low %v1283_v25, %v1287_v6 }
 0x2b3   :  { %10550 = vmatprep.subr.bf16.mxu1 %v13670_v42  ;;  %v1127_v63 = vld [vmem:[%s19714_s1 + $0x2268] sm:$0xff] }
 0x2b4   :  { %10584 = vmatpush1.bf16.msra.mxu0 %v13701_v38  ;;  %v13638_v33 = vcombine.high %v1123_v59, %v1127_v63  ;;  %v1275_v42 = vld [vmem:[%s19714_s1 + $0x2708] sm:$0xff]  ;;  %v13637_v38 = vcombine.low %v1123_v59, %v1127_v63 }
 0x2b5   :  { %10585 = vmatprep.subr.bf16.mxu0 %v13694_v46  ;;  %v1279_v14 = vld [vmem:[%s19714_s1 + $0x2728] sm:$0xff] }
 0x2b6   :  { %10551 = vmatpush2.bf16.msra.mxu1 %v13669_v2  ;;  %v1115_v52 = vld [vmem:[%s19714_s1 + $0x2208] sm:$0xff]  ;;  %v13790_v2 = vcombine.high %v1275_v42, %v1279_v14  ;;  %v13789_v57 = vcombine.low %v1275_v42, %v1279_v14 }
 0x2b7   :  { %10552 = vmatprep.subr.bf16.mxu1 %v13662_v48  ;;  %v1119_v36 = vld [vmem:[%s19714_s1 + $0x2228] sm:$0xff] }
 0x2b8   :  { %10586 = vmatpush1.bf16.msra.mxu0 %v13693_v35  ;;  %v13630_v46 = vcombine.high %v1115_v52, %v1119_v36  ;;  %v1267_v48 = vld [vmem:[%s19714_s1 + $0x26c8] sm:$0xff]  ;;  %v13629_v35 = vcombine.low %v1115_v52, %v1119_v36 }
 0x2b9   :  { %10587 = vmatprep.subr.bf16.mxu0 %v13814_v62  ;;  %v1271_v50 = vld [vmem:[%s19714_s1 + $0x26e8] sm:$0xff] }
 0x2ba   :  { %10553 = vmatpush2.bf16.msra.mxu1 %v13661_v61  ;;  %v1363_v51 = vld [vmem:[%s19714_s1 + $0x29c8] sm:$0xff]  ;;  %v13782_v61 = vcombine.high %v1267_v48, %v1271_v50  ;;  %v13781_v8 = vcombine.low %v1267_v48, %v1271_v50 }
 0x2bb   :  { %10554 = vmatprep.subr.bf16.mxu1 %v13654_v0  ;;  %v1367_v54 = vld [vmem:[%s19714_s1 + $0x29e8] sm:$0xff] }
 0x2bc   :  { %10588 = vmatpush2.bf16.msra.mxu0 %v13813_v12  ;;  %v13878_v62 = vcombine.high %v1363_v51, %v1367_v54  ;;  %v1259_v0 = vld [vmem:[%s19714_s1 + $0x2688] sm:$0xff]  ;;  %v13877_v12 = vcombine.low %v1363_v51, %v1367_v54 }
 0x2bd   :  { %10589 = vmatprep.subr.bf16.mxu0 %v13806_v20  ;;  %v1263_v1 = vld [vmem:[%s19714_s1 + $0x26a8] sm:$0xff] }
 0x2be   :  { %10555 = vmatpush2.bf16.msra.mxu1 %v13653_v16  ;;  %v1355_v60 = vld [vmem:[%s19714_s1 + $0x2988] sm:$0xff]  ;;  %v13774_v16 = vcombine.high %v1259_v0, %v1263_v1 }
 0x2bf   :  { %10556 = vmatprep.subr.bf16.mxu1 %v13646_v53  ;;  %v1359_v7 = vld [vmem:[%s19714_s1 + $0x29a8] sm:$0xff] }
 0x2c0   :  { %10590 = vmatpush2.bf16.msra.mxu0 %v13805_v15  ;;  %v13870_v20 = vcombine.high %v1355_v60, %v1359_v7  ;;  %v1251_v53 = vld [vmem:[%s19714_s1 + $0x2648] sm:$0xff]  ;;  %v13773_v15 = vcombine.low %v1259_v0, %v1263_v1 }
 0x2c1   :  { %10591 = vmatprep.subr.bf16.mxu0 %v13798_v34  ;;  %v1255_v25 = vld [vmem:[%s19714_s1 + $0x2668] sm:$0xff]  ;;  %v13869_v34 = vcombine.low %v1355_v60, %v1359_v7 }
 0x2c2   :  { %10557 = vmatpush2.bf16.msra.mxu1 %v13645_v49  ;;  %v1347_v6 = vld [vmem:[%s19714_s1 + $0x2948] sm:$0xff] }
 0x2c3   :  { %10558 = vmatprep.subr.bf16.mxu1 %v13638_v33  ;;  %v1351_v59 = vld [vmem:[%s19714_s1 + $0x2968] sm:$0xff]  ;;  %v13766_v33 = vcombine.high %v1251_v53, %v1255_v25 }
 0x2c4   :  { %10592 = vmatpush2.bf16.msra.mxu0 %v13797_v37  ;;  %v13862_v14 = vcombine.high %v1347_v6, %v1351_v59  ;;  %v1243_v52 = vld [vmem:[%s19714_s1 + $0x2608] sm:$0xff]  ;;  %v13861_v48 = vcombine.low %v1347_v6, %v1351_v59 }
 0x2c5   :  { %10593 = vmatprep.subr.bf16.mxu0 %v13790_v2  ;;  %v1247_v36 = vld [vmem:[%s19714_s1 + $0x2628] sm:$0xff] }
 0x2c6   :  { %10559 = vmatpush2.bf16.msra.mxu1 %v13637_v38  ;;  %v1343_v38 = vld [vmem:[%s19714_s1 + $0x2928] sm:$0xff]  ;;  %v13758_v50 = vcombine.high %v1243_v52, %v1247_v36 }
 0x2c7   :  { %10560 = vmatprep.subr.bf16.mxu1 %v13630_v46  ;;  %v13765_v46 = vcombine.low %v1251_v53, %v1255_v25  ;;  %v1483_v7 = vld [vmem:[%s19714_s1 + $0x2d88] sm:$0xff] }
 0x2c8   :  { %10594 = vmatpush2.bf16.msra.mxu0 %v13789_v57  ;;  %v1495_v57 = vld [vmem:[%s19714_s1 + $0x2de8] sm:$0xff] }
 0x2c9   :  { %10595 = vmatprep.subr.bf16.mxu0 %v13782_v61  ;;  %v1335_v61 = vld [vmem:[%s19714_s1 + $0x28e8] sm:$0xff] }
 0x2ca   :  { %10561 = vmatpush2.bf16.msra.mxu1 %v13629_v35  ;;  %v1331_v35 = vld [vmem:[%s19714_s1 + $0x28c8] sm:$0xff] }
 0x2cb   :  { %10612 = vmatprep.subr.bf16.mxu1 %v13878_v62  ;;  %v13757_v62 = vcombine.low %v1243_v52, %v1247_v36  ;;  %v13846_v60 = vcombine.high %v1331_v35, %v1335_v61  ;;  %v13845_v53 = vcombine.low %v1331_v35, %v1335_v61  ;;  %v1475_v59 = vld [vmem:[%s19714_s1 + $0x2d48] sm:$0xff] }
 0x2cc   :  { %10596 = vmatpush2.bf16.msra.mxu0 %v13781_v8  ;;  %v1487_v8 = vld [vmem:[%s19714_s1 + $0x2da8] sm:$0xff] }
 0x2cd   :  { %v10318_v63 = vpop.f32.mrf.mxu1  ;;  %10563 = vmatmul.mubr.bf16.vlgmr.msra.gmra.mxu1 %v15527_v10  ;;  %10597 = vmatprep.subr.bf16.mxu0 %v13774_v16  ;;  %v1327_v16 = vld [vmem:[%s19714_s1 + $0x28a8] sm:$0xff]  ;;  %v13998_v25 = vcombine.high %v1483_v7, %v1487_v8 }
 0x2ce   :  { %v10319_v49 = vadd.f32 %v10318_v63, %v16647_v28  ;;  %10613 = vmatpush1.bf16.msra.mxu1 %v13877_v12  ;;  %10644 = vmatprep.mubr.bf16.mxu1 %v15542_v4  ;;  %v1339_v28 = vld [vmem:[%s19714_s1 + $0x2908] sm:$0xff] }
 0x2cf   :  { %v10320_v42 = vpop.f32.mrf.mxu1  ;;  %10614 = vmatprep.subr.bf16.mxu1 %v13870_v20  ;;  %v13854_v54 = vcombine.high %v1339_v28, %v1343_v38  ;;  %v13853_v0 = vcombine.low %v1339_v28, %v1343_v38  ;;  %v1323_v12 = vld [vmem:[%s19714_s1 + $0x2888] sm:$0xff] }
 0x2d0   :  { %v10321_v37 = vadd.f32 %v10320_v42, %v16650_v19  ;;  %10598 = vmatpush2.bf16.msra.mxu0 %v13773_v15  ;;  %v1491_v19 = vld [vmem:[%s19714_s1 + $0x2dc8] sm:$0xff]  ;;  %v13838_v6 = vcombine.high %v1323_v12, %v1327_v16  ;;  %v13837_v36 = vcombine.low %v1323_v12, %v1327_v16 }
 0x2d1   :  { %v10322_v2 = vpop.f32.mrf.mxu1  ;;  %10599 = vmatprep.subr.bf16.mxu0 %v13766_v33  ;;  %v14006_v1 = vcombine.high %v1491_v19, %v1495_v57  ;;  %v14005_v20 = vcombine.low %v1491_v19, %v1495_v57  ;;  %v1479_v63 = vld [vmem:[%s19714_s1 + $0x2d68] sm:$0xff] }
 0x2d2   :  { %10615 = vmatpush1.bf16.msra.mxu1 %v13869_v34  ;;  %v1315_v34 = vld [vmem:[%s19714_s1 + $0x2848] sm:$0xff]  ;;  %v13990_v28 = vcombine.high %v1475_v59, %v1479_v63 }
 0x2d3   :  { %v10323_v51 = vpop.f32.mrf.mxu1  ;;  %10616 = vmatprep.subr.bf16.mxu1 %v13862_v14  ;;  %v1319_v33 = vld [vmem:[%s19714_s1 + $0x2868] sm:$0xff]  ;;  %v13997_v14 = vcombine.low %v1483_v7, %v1487_v8 }
 0x2d4   :  { %10600 = vmatpush2.bf16.msra.mxu0 %v13765_v46  ;;  %v13830_v2 = vcombine.high %v1315_v34, %v1319_v33  ;;  %v1467_v46 = vld [vmem:[%s19714_s1 + $0x2d08] sm:$0xff]  ;;  %v13989_v51 = vcombine.low %v1475_v59, %v1479_v63  ;;  %v13829_v19 = vcombine.low %v1315_v34, %v1319_v33 }
 0x2d5   :  { %10601 = vmatprep.subr.bf16.mxu0 %v13758_v50  ;;  %v1307_v50 = vld [vmem:[%s19714_s1 + $0x2808] sm:$0xff] }
 0x2d6   :  { %10617 = vmatpush1.bf16.msra.mxu1 %v13861_v48  ;;  %v1459_v61 = vld [vmem:[%s19714_s1 + $0x2cc8] sm:$0xff] }
 0x2d7   :  { %10618 = vmatprep.subr.bf16.mxu1 %v13854_v54  ;;  %v1451_v16 = vld [vmem:[%s19714_s1 + $0x2c88] sm:$0xff] }
 0x2d8   :  { %10602 = vmatpush2.bf16.msra.mxu0 %v13757_v62  ;;  %v1463_v62 = vld [vmem:[%s19714_s1 + $0x2ce8] sm:$0xff] }
 0x2d9   :  { %10653 = vmatprep.subr.bf16.mxu0 %v14006_v1  ;;  %v1431_v1 = vld [vmem:[%s19714_s1 + $0x2be8] sm:$0xff]  ;;  %v13974_v8 = vcombine.high %v1459_v61, %v1463_v62 }
 0x2da   :  { %10619 = vmatpush1.bf16.msra.mxu1 %v13853_v0  ;;  %v1427_v0 = vld [vmem:[%s19714_s1 + $0x2bc8] sm:$0xff] }
 0x2db   :  { %10620 = vmatprep.subr.bf16.mxu1 %v13846_v60  ;;  %v10359_v15 = vpop.f32.mrf.mxu0  ;;  %10604 = vmatmul.mubr.bf16.vlgmr.msra.gmra.mxu0 %v15546_v5  ;;  %v13942_v12 = vcombine.high %v1427_v0, %v1431_v1  ;;  %v13941_v59 = vcombine.low %v1427_v0, %v1431_v1  ;;  %v1443_v34 = vld [vmem:[%s19714_s1 + $0x2c48] sm:$0xff] }
 0x2dc   :  { %v16849_v42 = vadd.f32 %v10359_v15, %v10319_v49  ;;  %10654 = vmatpush1.bf16.msra.mxu0 %v14005_v20  ;;  %10685 = vmatprep.mubr.bf16.mxu0 %v15563_v18  ;;  %v1471_v49 = vld [vmem:[%s19714_s1 + $0x2d28] sm:$0xff] }
 0x2dd   :  { %v10361_v52 = vpop.f32.mrf.mxu0  ;;  %10655 = vmatprep.subr.bf16.mxu0 %v13998_v25  ;;  %v13982_v57 = vcombine.high %v1467_v46, %v1471_v49  ;;  %v13981_v60 = vcombine.low %v1467_v46, %v1471_v49  ;;  %v1455_v20 = vld [vmem:[%s19714_s1 + $0x2ca8] sm:$0xff] }
 0x2de   :  { %10621 = vmatpush1.bf16.msra.mxu1 %v13845_v53  ;;  %v16852_v38 = vadd.f32 %v10361_v52, %v10321_v37  ;;  %v1311_v37 = vld [vmem:[%s19714_s1 + $0x2828] sm:$0xff]  ;;  %v13966_v63 = vcombine.high %v1451_v16, %v1455_v20 }
 0x2df   :  { %10622 = vmatprep.subr.bf16.mxu1 %v13838_v6  ;;  %v10363_v48 = vpop.f32.mrf.mxu0  ;;  %v13822_v35 = vcombine.high %v1307_v50, %v1311_v37  ;;  %v13821_v7 = vcombine.low %v1307_v50, %v1311_v37  ;;  %v1419_v53 = vld [vmem:[%s19714_s1 + $0x2b88] sm:$0xff]  ;;  %v13973_v6 = vcombine.low %v1459_v61, %v1463_v62 }
 0x2e0   :  { %10656 = vmatpush1.bf16.msra.mxu0 %v13997_v14  ;;  %v1423_v25 = vld [vmem:[%s19714_s1 + $0x2ba8] sm:$0xff] }
 0x2e1   :  { %v10364_v54 = vpop.f32.mrf.mxu0  ;;  %10657 = vmatprep.subr.bf16.mxu0 %v13990_v28  ;;  %v13934_v15 = vcombine.high %v1419_v53, %v1423_v25  ;;  %v1447_v33 = vld [vmem:[%s19714_s1 + $0x2c68] sm:$0xff]  ;;  %v13933_v28 = vcombine.low %v1419_v53, %v1423_v25 }
 0x2e2   :  { %10623 = vmatpush1.bf16.msra.mxu1 %v13837_v36  ;;  %v1411_v14 = vld [vmem:[%s19714_s1 + $0x2b48] sm:$0xff]  ;;  %v13965_v36 = vcombine.low %v1451_v16, %v1455_v20 }
 0x2e3   :  { %10624 = vmatprep.subr.bf16.mxu1 %v13830_v2  ;;  %v1415_v52 = vld [vmem:[%s19714_s1 + $0x2b68] sm:$0xff]  ;;  %v13958_v2 = vcombine.high %v1443_v34, %v1447_v33 }
 0x2e4   :  { %10658 = vmatpush1.bf16.msra.mxu0 %v13989_v51  ;;  %v13926_v46 = vcombine.high %v1411_v14, %v1415_v52  ;;  %v1435_v49 = vld [vmem:[%s19714_s1 + $0x2c08] sm:$0xff]  ;;  %v13957_v51 = vcombine.low %v1443_v34, %v1447_v33  ;;  %v13925_v54 = vcombine.low %v1411_v14, %v1415_v52 }
 0x2e5   :  { %10659 = vmatprep.subr.bf16.mxu0 %v13982_v57  ;;  %v1439_v48 = vld [vmem:[%s19714_s1 + $0x2c28] sm:$0xff] }
 0x2e6   :  { %10625 = vmatpush1.bf16.msra.mxu1 %v13829_v19  ;;  %v1403_v50 = vld [vmem:[%s19714_s1 + $0x2b08] sm:$0xff]  ;;  %v13950_v19 = vcombine.high %v1435_v49, %v1439_v48  ;;  %v13949_v1 = vcombine.low %v1435_v49, %v1439_v48 }
 0x2e7   :  { %10626 = vmatprep.subr.bf16.mxu1 %v13822_v35  ;;  %v1407_v37 = vld [vmem:[%s19714_s1 + $0x2b28] sm:$0xff] }
 0x2e8   :  { %10660 = vmatpush1.bf16.msra.mxu0 %v13981_v60  ;;  %v13918_v57 = vcombine.high %v1403_v50, %v1407_v37  ;;  %v1555_v35 = vld [vmem:[%s19714_s1 + $0x2fc8] sm:$0xff]  ;;  %v13917_v60 = vcombine.low %v1403_v50, %v1407_v37 }
 0x2e9   :  { %10661 = vmatprep.subr.bf16.mxu0 %v13974_v8  ;;  %v1559_v61 = vld [vmem:[%s19714_s1 + $0x2fe8] sm:$0xff] }
 0x2ea   :  { %10627 = vmatpush1.bf16.msra.mxu1 %v13821_v7  ;;  %v1395_v62 = vld [vmem:[%s19714_s1 + $0x2ac8] sm:$0xff]  ;;  %v14070_v7 = vcombine.high %v1555_v35, %v1559_v61  ;;  %v14069_v25 = vcombine.low %v1555_v35, %v1559_v61 }
 0x2eb   :  { %10628 = vmatprep.subr.bf16.mxu1 %v13942_v12  ;;  %v1399_v0 = vld [vmem:[%s19714_s1 + $0x2ae8] sm:$0xff] }
 0x2ec   :  { %10662 = vmatpush1.bf16.msra.mxu0 %v13973_v6  ;;  %v13910_v8 = vcombine.high %v1395_v62, %v1399_v0  ;;  %v1547_v12 = vld [vmem:[%s19714_s1 + $0x2f88] sm:$0xff]  ;;  %v13909_v6 = vcombine.low %v1395_v62, %v1399_v0 }
 0x2ed   :  { %10663 = vmatprep.subr.bf16.mxu0 %v13966_v63  ;;  %v1551_v16 = vld [vmem:[%s19714_s1 + $0x2fa8] sm:$0xff] }
 0x2ee   :  { %10629 = vmatpush2.bf16.msra.mxu1 %v13941_v59  ;;  %v1387_v20 = vld [vmem:[%s19714_s1 + $0x2a88] sm:$0xff]  ;;  %v14062_v59 = vcombine.high %v1547_v12, %v1551_v16  ;;  %v14061_v52 = vcombine.low %v1547_v12, %v1551_v16 }
 0x2ef   :  { %10630 = vmatprep.subr.bf16.mxu1 %v13934_v15  ;;  %v1391_v53 = vld [vmem:[%s19714_s1 + $0x2aa8] sm:$0xff] }
 0x2f0   :  { %10664 = vmatpush1.bf16.msra.mxu0 %v13965_v36  ;;  %v13902_v63 = vcombine.high %v1387_v20, %v1391_v53  ;;  %v1539_v15 = vld [vmem:[%s19714_s1 + $0x2f48] sm:$0xff]  ;;  %v13901_v36 = vcombine.low %v1387_v20, %v1391_v53 }
 0x2f1   :  { %10665 = vmatprep.subr.bf16.mxu0 %v13958_v2  ;;  %v1543_v34 = vld [vmem:[%s19714_s1 + $0x2f68] sm:$0xff] }
 0x2f2   :  { %10631 = vmatpush2.bf16.msra.mxu1 %v13933_v28  ;;  %v1379_v33 = vld [vmem:[%s19714_s1 + $0x2a48] sm:$0xff]  ;;  %v14054_v28 = vcombine.high %v1539_v15, %v1543_v34  ;;  %v14053_v37 = vcombine.low %v1539_v15, %v1543_v34 }
 0x2f3   :  { %10632 = vmatprep.subr.bf16.mxu1 %v13926_v46  ;;  %v1383_v14 = vld [vmem:[%s19714_s1 + $0x2a68] sm:$0xff] }
 0x2f4   :  { %10666 = vmatpush1.bf16.msra.mxu0 %v13957_v51  ;;  %v13894_v2 = vcombine.high %v1379_v33, %v1383_v14  ;;  %v1531_v46 = vld [vmem:[%s19714_s1 + $0x2f08] sm:$0xff]  ;;  %v13893_v51 = vcombine.low %v1379_v33, %v1383_v14 }
 0x2f5   :  { %10667 = vmatprep.subr.bf16.mxu0 %v13950_v19  ;;  %v1535_v49 = vld [vmem:[%s19714_s1 + $0x2f28] sm:$0xff] }
 0x2f6   :  { %10633 = vmatpush2.bf16.msra.mxu1 %v13925_v54  ;;  %v1371_v48 = vld [vmem:[%s19714_s1 + $0x2a08] sm:$0xff]  ;;  %v14046_v54 = vcombine.high %v1531_v46, %v1535_v49  ;;  %v14045_v0 = vcombine.low %v1531_v46, %v1535_v49 }
 0x2f7   :  { %10634 = vmatprep.subr.bf16.mxu1 %v13918_v57  ;;  %v1375_v50 = vld [vmem:[%s19714_s1 + $0x2a28] sm:$0xff] }
 0x2f8   :  { %10668 = vmatpush1.bf16.msra.mxu0 %v13949_v1  ;;  %v13886_v19 = vcombine.high %v1371_v48, %v1375_v50  ;;  %v1523_v57 = vld [vmem:[%s19714_s1 + $0x2ec8] sm:$0xff]  ;;  %v13885_v1 = vcombine.low %v1371_v48, %v1375_v50 }
 0x2f9   :  { %10669 = vmatprep.subr.bf16.mxu0 %v14070_v7  ;;  %v1527_v35 = vld [vmem:[%s19714_s1 + $0x2ee8] sm:$0xff] }
 0x2fa   :  { %10635 = vmatpush2.bf16.msra.mxu1 %v13917_v60  ;;  %v1587_v61 = vld [vmem:[%s19714_s1 + $0x30c8] sm:$0xff]  ;;  %v14038_v60 = vcombine.high %v1523_v57, %v1527_v35  ;;  %v14037_v53 = vcombine.low %v1523_v57, %v1527_v35 }
 0x2fb   :  { %10636 = vmatprep.subr.bf16.mxu1 %v13910_v8  ;;  %v1591_v62 = vld [vmem:[%s19714_s1 + $0x30e8] sm:$0xff] }
 0x2fc   :  { %10670 = vmatpush2.bf16.msra.mxu0 %v14069_v25  ;;  %v14102_v7 = vcombine.high %v1587_v61, %v1591_v62  ;;  %v1515_v8 = vld [vmem:[%s19714_s1 + $0x2e88] sm:$0xff]  ;;  %v14101_v25 = vcombine.low %v1587_v61, %v1591_v62 }
 0x2fd   :  { %10671 = vmatprep.subr.bf16.mxu0 %v14062_v59  ;;  %v1519_v12 = vld [vmem:[%s19714_s1 + $0x2ea8] sm:$0xff] }
 0x2fe   :  { %10637 = vmatpush2.bf16.msra.mxu1 %v13909_v6  ;;  %v1579_v16 = vld [vmem:[%s19714_s1 + $0x3088] sm:$0xff]  ;;  %v14030_v6 = vcombine.high %v1515_v8, %v1519_v12 }
 0x2ff   :  { %10638 = vmatprep.subr.bf16.mxu1 %v13902_v63  ;;  %v1583_v20 = vld [vmem:[%s19714_s1 + $0x30a8] sm:$0xff] }
 0x300   :  { %10672 = vmatpush2.bf16.msra.mxu0 %v14061_v52  ;;  %v14094_v59 = vcombine.high %v1579_v16, %v1583_v20  ;;  %v1507_v63 = vld [vmem:[%s19714_s1 + $0x2e48] sm:$0xff]  ;;  %v14029_v52 = vcombine.low %v1515_v8, %v1519_v12 }
 0x301   :  { %10673 = vmatprep.subr.bf16.mxu0 %v14054_v28  ;;  %v1511_v15 = vld [vmem:[%s19714_s1 + $0x2e68] sm:$0xff]  ;;  %v14093_v28 = vcombine.low %v1579_v16, %v1583_v20  ;;  %v76_v20 = vld [vmem:[%s19714_s1 + $0x190] sm:$0xff] }
 0x302   :  { %10639 = vmatpush2.bf16.msra.mxu1 %v13901_v36  ;;  %v1571_v34 = vld [vmem:[%s19714_s1 + $0x3048] sm:$0xff] }
 0x303   :  { %10640 = vmatprep.subr.bf16.mxu1 %v13894_v2  ;;  %v1575_v33 = vld [vmem:[%s19714_s1 + $0x3068] sm:$0xff]  ;;  %v14022_v2 = vcombine.high %v1507_v63, %v1511_v15 }
 0x304   :  { %10674 = vmatpush2.bf16.msra.mxu0 %v14053_v37  ;;  %v14086_v49 = vcombine.high %v1571_v34, %v1575_v33  ;;  %v1499_v48 = vld [vmem:[%s19714_s1 + $0x2e08] sm:$0xff]  ;;  %v14085_v57 = vcombine.low %v1571_v34, %v1575_v33  ;;  %v68_v33 = vld [vmem:[%s19714_s1 + $0x150] sm:$0xff] }
 0x305   :  { %10675 = vmatprep.subr.bf16.mxu0 %v14046_v54  ;;  %v1503_v50 = vld [vmem:[%s19714_s1 + $0x2e28] sm:$0xff] }
 0x306   :  { %10641 = vmatpush2.bf16.msra.mxu1 %v13893_v51  ;;  %v1567_v51 = vld [vmem:[%s19714_s1 + $0x3028] sm:$0xff]  ;;  %v14014_v35 = vcombine.high %v1499_v48, %v1503_v50 }
 0x307   :  { %10642 = vmatprep.subr.bf16.mxu1 %v13886_v19  ;;  %v14021_v19 = vcombine.low %v1507_v63, %v1511_v15 }
 0x308   :  { %10676 = vmatpush2.bf16.msra.mxu0 %v14045_v0  ;;  %v88_v0 = vld [vmem:[%s19714_s1 + $0x1f0] sm:$0xff] }
 0x309   :  { %10677 = vmatprep.subr.bf16.mxu0 %v14038_v60  ;;  %v216_v60 = vld [vmem:[%s19714_s1 + $0x5f0] sm:$0xff] }
 0x30a   :  { %10643 = vmatpush2.bf16.msra.mxu1 %v13885_v1  ;;  %v212_v1 = vld [vmem:[%s19714_s1 + $0x5d0] sm:$0xff] }
 0x30b   :  { %10702 = vmatprep.subr.bf16.mxu1 %v14102_v7  ;;  %v14013_v7 = vcombine.low %v1499_v48, %v1503_v50  ;;  %v12728_v16 = vcombine.high %v212_v1, %v216_v60  ;;  %v12727_v63 = vcombine.low %v212_v1, %v216_v60  ;;  %v52_v60 = vld [vmem:[%s19714_s1 + $0xd0] sm:$0xff] }
 0x30c   :  { %10678 = vmatpush2.bf16.msra.mxu0 %v14037_v53  ;;  %v80_v53 = vld [vmem:[%s19714_s1 + $0x1b0] sm:$0xff] }
 0x30d   :  { %v10400_v14 = vpop.f32.mrf.mxu1  ;;  %10645 = vmatmul.mubr.bf16.vlgmr.msra.gmra.mxu1 %v15744_v45  ;;  %10679 = vmatprep.subr.bf16.mxu0 %v14030_v6  ;;  %v208_v6 = vld [vmem:[%s19714_s1 + $0x5b0] sm:$0xff]  ;;  %v12592_v15 = vcombine.high %v76_v20, %v80_v53 }
 0x30e   :  { %v10401_v36 = vadd.f32 %v10400_v14, %v16849_v42  ;;  %10703 = vmatpush1.bf16.msra.mxu1 %v14101_v25  ;;  %10726 = vmatprep.mubr.bf16.mxu1 %v14365_v40  ;;  %v1563_v42 = vld [vmem:[%s19714_s1 + $0x3008] sm:$0xff]  ;;  %v204_v25 = vld [vmem:[%s19714_s1 + $0x590] sm:$0xff] }
 0x30f   :  { %v10402_v46 = vpop.f32.mrf.mxu1  ;;  %10704 = vmatprep.subr.bf16.mxu1 %v14094_v59  ;;  %v14078_v62 = vcombine.high %v1563_v42, %v1567_v51  ;;  %v14077_v8 = vcombine.low %v1563_v42, %v1567_v51  ;;  %v12720_v34 = vcombine.high %v204_v25, %v208_v6  ;;  %v72_v14 = vld [vmem:[%s19714_s1 + $0x170] sm:$0xff]  ;;  %v12719_v50 = vcombine.low %v204_v25, %v208_v6 }
 0x310   :  { %v10403_v37 = vadd.f32 %v10402_v46, %v16852_v38  ;;  %10680 = vmatpush2.bf16.msra.mxu0 %v14029_v52  ;;  %v84_v38 = vld [vmem:[%s19714_s1 + $0x1d0] sm:$0xff]  ;;  %v12584_v42 = vcombine.high %v68_v33, %v72_v14 }
 0x311   :  { %v10404_v54 = vpop.f32.mrf.mxu1  ;;  %10681 = vmatprep.subr.bf16.mxu0 %v14022_v2  ;;  %v12600_v12 = vcombine.high %v84_v38, %v88_v0  ;;  %v12599_v59 = vcombine.low %v84_v38, %v88_v0  ;;  %v200_v2 = vld [vmem:[%s19714_s1 + $0x570] sm:$0xff] }
 0x312   :  { %10705 = vmatpush1.bf16.msra.mxu1 %v14093_v28  ;;  %v196_v28 = vld [vmem:[%s19714_s1 + $0x550] sm:$0xff] }
 0x313   :  { %v10405_v61 = vpop.f32.mrf.mxu1  ;;  %10706 = vmatprep.subr.bf16.mxu1 %v14086_v49  ;;  %v12591_v49 = vcombine.low %v76_v20, %v80_v53  ;;  %v12712_v54 = vcombine.high %v196_v28, %v200_v2  ;;  %v12711_v38 = vcombine.low %v196_v28, %v200_v2  ;;  %v44_v6 = vld [vmem:[%s19714_s1 + $0x90] sm:$0xff] }
 0x314   :  { %10682 = vmatpush2.bf16.msra.mxu0 %v14021_v19  ;;  %v60_v19 = vld [vmem:[%s19714_s1 + $0x110] sm:$0xff]  ;;  %v12583_v61 = vcombine.low %v68_v33, %v72_v14 }
 0x315   :  { %10683 = vmatprep.subr.bf16.mxu0 %v14014_v35  ;;  %v188_v35 = vld [vmem:[%s19714_s1 + $0x510] sm:$0xff] }
 0x316   :  { %10707 = vmatpush1.bf16.msra.mxu1 %v14085_v57  ;;  %v36_v28 = vld [vmem:[%s19714_s1 + $0x50] sm:$0xff] }
 0x317   :  { %10708 = vmatprep.subr.bf16.mxu1 %v14078_v62  ;;  %v40_v2 = vld [vmem:[%s19714_s1 + $0x70] sm:$0xff] }
 0x318   :  { %10684 = vmatpush2.bf16.msra.mxu0 %v14013_v7  ;;  %v56_v7 = vld [vmem:[%s19714_s1 + $0xf0] sm:$0xff] }
 0x319   :  { %10735 = vmatprep.subr.bf16.mxu0 %v12600_v12  ;;  %v184_v12 = vld [vmem:[%s19714_s1 + $0x4f0] sm:$0xff]  ;;  %v12568_v53 = vcombine.high %v52_v60, %v56_v7 }
 0x31a   :  { %10709 = vmatpush1.bf16.msra.mxu1 %v14077_v8  ;;  %v180_v8 = vld [vmem:[%s19714_s1 + $0x4d0] sm:$0xff] }
 0x31b   :  { %10776 = vmatprep.subr.bf16.mxu1 %v12728_v16  ;;  %v10441_v52 = vpop.f32.mrf.mxu0  ;;  %10686 = vmatmul.mubr.bf16.vlgmr.msra.gmra.mxu0 %v15760_v58  ;;  %v12696_v25 = vcombine.high %v180_v8, %v184_v12  ;;  %v12695_v33 = vcombine.low %v180_v8, %v184_v12  ;;  %v280_v8 = vld [vmem:[%s19714_s1 + $0x7f0] sm:$0xff] }
 0x31c   :  { %v17051_v46 = vadd.f32 %v10441_v52, %v10401_v36  ;;  %10736 = vmatpush1.bf16.msra.mxu0 %v12599_v59  ;;  %v64_v36 = vld [vmem:[%s19714_s1 + $0x130] sm:$0xff]  ;;  %10767 = vmatprep.mubr.bf16.mxu0 %v14517_v9 }
 0x31d   :  { %14108 = vmatmul.mubr.msk.bf16.vlgmr.msra.gmra.mxu1 %vm9665_vm0, %v15818_v24  ;;  %v10443_v48 = vpop.f32.mrf.mxu0  ;;  %10737 = vmatprep.subr.bf16.mxu0 %v12592_v15  ;;  %v12576_v0 = vcombine.high %v60_v19, %v64_v36  ;;  %v12575_v16 = vcombine.low %v60_v19, %v64_v36  ;;  %v48_v59 = vld [vmem:[%s19714_s1 + $0xb0] sm:$0xff] }
 0x31e   :  { %10777 = vmatpush1.bf16.msra.mxu1 %v12727_v63  ;;  %v17055_v51 = vadd.f32 %v10443_v48, %v10403_v37  ;;  %v192_v37 = vld [vmem:[%s19714_s1 + $0x530] sm:$0xff]  ;;  %10808 = vmatprep.mubr.bf16.mxu1 %v14528_v13  ;;  %v12560_v14 = vcombine.high %v44_v6, %v48_v59 }
 0x31f   :  { %10778 = vmatprep.subr.bf16.mxu1 %v12720_v34  ;;  %v10445_v57 = vpop.f32.mrf.mxu0  ;;  %v12704_v1 = vcombine.high %v188_v35, %v192_v37  ;;  %v12703_v20 = vcombine.low %v188_v35, %v192_v37  ;;  %v172_v63 = vld [vmem:[%s19714_s1 + $0x490] sm:$0xff]  ;;  %v12567_v34 = vcombine.low %v52_v60, %v56_v7 }
 0x320   :  { %10738 = vmatpush1.bf16.msra.mxu0 %v12591_v49  ;;  %v176_v15 = vld [vmem:[%s19714_s1 + $0x4b0] sm:$0xff] }
 0x321   :  { %v10446_v62 = vpop.f32.mrf.mxu0  ;;  %10739 = vmatprep.subr.bf16.mxu0 %v12584_v42  ;;  %v12688_v52 = vcombine.high %v172_v63, %v176_v15  ;;  %v164_v49 = vld [vmem:[%s19714_s1 + $0x450] sm:$0xff]  ;;  %v12687_v42 = vcombine.low %v172_v63, %v176_v15 }
 0x322   :  { %10779 = vmatpush1.bf16.msra.mxu1 %v12719_v50  ;;  %v168_v48 = vld [vmem:[%s19714_s1 + $0x470] sm:$0xff]  ;;  %v12559_v50 = vcombine.low %v44_v6, %v48_v59 }
 0x323   :  { %10780 = vmatprep.subr.bf16.mxu1 %v12712_v54  ;;  %v12552_v54 = vcombine.high %v36_v28, %v40_v2  ;;  %v12680_v19 = vcombine.high %v164_v49, %v168_v48  ;;  %v28_v36 = vld [vmem:[%s19714_s1 + $0x10] sm:$0xff]  ;;  %v12679_v62 = vcombine.low %v164_v49, %v168_v48 }
 0x324   :  { %10740 = vmatpush1.bf16.msra.mxu0 %v12583_v61  ;;  %v32_v57 = vld [vmem:[%s19714_s1 + $0x30] sm:$0xff]  ;;  %v12551_v61 = vcombine.low %v36_v28, %v40_v2 }
 0x325   :  { %10741 = vmatprep.subr.bf16.mxu0 %v12576_v0  ;;  %v156_v35 = vld [vmem:[%s19714_s1 + $0x410] sm:$0xff]  ;;  %v12543_v12 = vcombine.low %v28_v36, %v32_v57 }
 0x326   :  { %10781 = vmatpush1.bf16.msra.mxu1 %v12711_v38  ;;  %v160_v37 = vld [vmem:[%s19714_s1 + $0x430] sm:$0xff]  ;;  %v12544_v38 = vcombine.high %v28_v36, %v32_v57 }
 0x327   :  { %10782 = vmatprep.subr.bf16.mxu1 %v12704_v1  ;;  %v12672_v0 = vcombine.high %v156_v35, %v160_v37  ;;  %v148_v1 = vld [vmem:[%s19714_s1 + $0x3d0] sm:$0xff] }
 0x328   :  { %10742 = vmatpush1.bf16.msra.mxu0 %v12575_v16  ;;  %v152_v60 = vld [vmem:[%s19714_s1 + $0x3f0] sm:$0xff]  ;;  %v12671_v16 = vcombine.low %v156_v35, %v160_v37 }
 0x329   :  { %10743 = vmatprep.subr.bf16.mxu0 %v12568_v53  ;;  %v276_v7 = vld [vmem:[%s19714_s1 + $0x7d0] sm:$0xff]  ;;  %v12663_v15 = vcombine.low %v148_v1, %v152_v60 }
 0x32a   :  { %10783 = vmatpush1.bf16.msra.mxu1 %v12703_v20  ;;  %v12664_v20 = vcombine.high %v148_v1, %v152_v60  ;;  %v12792_v53 = vcombine.high %v276_v7, %v280_v8  ;;  %v144_v6 = vld [vmem:[%s19714_s1 + $0x3b0] sm:$0xff] }
 0x32b   :  { %10784 = vmatprep.subr.bf16.mxu1 %v12696_v25  ;;  %v140_v25 = vld [vmem:[%s19714_s1 + $0x390] sm:$0xff] }
 0x32c   :  { %10744 = vmatpush1.bf16.msra.mxu0 %v12567_v34  ;;  %v268_v59 = vld [vmem:[%s19714_s1 + $0x790] sm:$0xff]  ;;  %v12791_v34 = vcombine.low %v276_v7, %v280_v8  ;;  %v12655_v48 = vcombine.low %v140_v25, %v144_v6 }
 0x32d   :  { %10745 = vmatprep.subr.bf16.mxu0 %v12560_v14  ;;  %v272_v63 = vld [vmem:[%s19714_s1 + $0x7b0] sm:$0xff] }
 0x32e   :  { %10785 = vmatpush1.bf16.msra.mxu1 %v12695_v33  ;;  %v12656_v33 = vcombine.high %v140_v25, %v144_v6  ;;  %v12784_v14 = vcombine.high %v268_v59, %v272_v63  ;;  %v136_v28 = vld [vmem:[%s19714_s1 + $0x370] sm:$0xff] }
 0x32f   :  { %10786 = vmatprep.subr.bf16.mxu1 %v12688_v52  ;;  %v132_v52 = vld [vmem:[%s19714_s1 + $0x350] sm:$0xff] }
 0x330   :  { %10746 = vmatpush1.bf16.msra.mxu0 %v12559_v50  ;;  %v260_v2 = vld [vmem:[%s19714_s1 + $0x750] sm:$0xff]  ;;  %v12783_v50 = vcombine.low %v268_v59, %v272_v63  ;;  %v12647_v37 = vcombine.low %v132_v52, %v136_v28 }
 0x331   :  { %10747 = vmatprep.subr.bf16.mxu0 %v12552_v54  ;;  %v264_v49 = vld [vmem:[%s19714_s1 + $0x770] sm:$0xff] }
 0x332   :  { %10787 = vmatpush1.bf16.msra.mxu1 %v12687_v42  ;;  %v12648_v42 = vcombine.high %v132_v52, %v136_v28  ;;  %v12776_v54 = vcombine.high %v260_v2, %v264_v49  ;;  %v128_v36 = vld [vmem:[%s19714_s1 + $0x330] sm:$0xff] }
 0x333   :  { %10788 = vmatprep.subr.bf16.mxu1 %v12680_v19  ;;  %v124_v19 = vld [vmem:[%s19714_s1 + $0x310] sm:$0xff] }
 0x334   :  { %10748 = vmatpush1.bf16.msra.mxu0 %v12551_v61  ;;  %v252_v57 = vld [vmem:[%s19714_s1 + $0x710] sm:$0xff]  ;;  %v12775_v61 = vcombine.low %v260_v2, %v264_v49  ;;  %v12639_v8 = vcombine.low %v124_v19, %v128_v36 }
 0x335   :  { %10749 = vmatprep.subr.bf16.mxu0 %v12544_v38  ;;  %v256_v35 = vld [vmem:[%s19714_s1 + $0x730] sm:$0xff] }
 0x336   :  { %10789 = vmatpush1.bf16.msra.mxu1 %v12679_v62  ;;  %v12640_v62 = vcombine.high %v124_v19, %v128_v36  ;;  %v12768_v38 = vcombine.high %v252_v57, %v256_v35  ;;  %v120_v1 = vld [vmem:[%s19714_s1 + $0x2f0] sm:$0xff] }
 0x337   :  { %10790 = vmatprep.subr.bf16.mxu1 %v12672_v0  ;;  %v116_v0 = vld [vmem:[%s19714_s1 + $0x2d0] sm:$0xff] }
 0x338   :  { %10750 = vmatpush1.bf16.msra.mxu0 %v12543_v12  ;;  %v244_v60 = vld [vmem:[%s19714_s1 + $0x6d0] sm:$0xff]  ;;  %v12767_v12 = vcombine.low %v252_v57, %v256_v35  ;;  %v12631_v63 = vcombine.low %v116_v0, %v120_v1 }
 0x339   :  { %10751 = vmatprep.subr.bf16.mxu0 %v12664_v20  ;;  %v248_v7 = vld [vmem:[%s19714_s1 + $0x6f0] sm:$0xff] }
 0x33a   :  { %10791 = vmatpush1.bf16.msra.mxu1 %v12671_v16  ;;  %v12632_v16 = vcombine.high %v116_v0, %v120_v1  ;;  %v12760_v20 = vcombine.high %v244_v60, %v248_v7  ;;  %v112_v25 = vld [vmem:[%s19714_s1 + $0x2b0] sm:$0xff] }
 0x33b   :  { %10792 = vmatprep.subr.bf16.mxu1 %v12792_v53  ;;  %v108_v53 = vld [vmem:[%s19714_s1 + $0x290] sm:$0xff] }
 0x33c   :  { %10752 = vmatpush2.bf16.msra.mxu0 %v12663_v15  ;;  %v236_v6 = vld [vmem:[%s19714_s1 + $0x690] sm:$0xff]  ;;  %v12759_v15 = vcombine.low %v244_v60, %v248_v7 }
 0x33d   :  { %10753 = vmatprep.subr.bf16.mxu0 %v12656_v33  ;;  %v240_v59 = vld [vmem:[%s19714_s1 + $0x6b0] sm:$0xff] }
 0x33e   :  { %10793 = vmatpush2.bf16.msra.mxu1 %v12791_v34  ;;  %v12624_v34 = vcombine.high %v108_v53, %v112_v25  ;;  %v12752_v33 = vcombine.high %v236_v6, %v240_v59  ;;  %v104_v52 = vld [vmem:[%s19714_s1 + $0x270] sm:$0xff] }
 0x33f   :  { %10794 = vmatprep.subr.bf16.mxu1 %v12784_v14  ;;  %v100_v14 = vld [vmem:[%s19714_s1 + $0x250] sm:$0xff] }
 0x340   :  { %10754 = vmatpush2.bf16.msra.mxu0 %v12655_v48  ;;  %v228_v28 = vld [vmem:[%s19714_s1 + $0x650] sm:$0xff]  ;;  %v12623_v48 = vcombine.low %v108_v53, %v112_v25 }
 0x341   :  { %10755 = vmatprep.subr.bf16.mxu0 %v12648_v42  ;;  %v232_v2 = vld [vmem:[%s19714_s1 + $0x670] sm:$0xff]  ;;  %v12751_v42 = vcombine.low %v236_v6, %v240_v59 }
 0x342   :  { %10795 = vmatpush2.bf16.msra.mxu1 %v12783_v50  ;;  %v12744_v36 = vcombine.high %v228_v28, %v232_v2  ;;  %v92_v57 = vld [vmem:[%s19714_s1 + $0x210] sm:$0xff]  ;;  %v12743_v0 = vcombine.low %v228_v28, %v232_v2 }
 0x343   :  { %10796 = vmatprep.subr.bf16.mxu1 %v12776_v54  ;;  %v12616_v54 = vcombine.high %v100_v14, %v104_v52  ;;  %v96_v35 = vld [vmem:[%s19714_s1 + $0x230] sm:$0xff] }
 0x344   :  { %10756 = vmatpush2.bf16.msra.mxu0 %v12647_v37  ;;  %v12608_v1 = vcombine.high %v92_v57, %v96_v35  ;;  %v332_v59 = vld [vmem:[%s19714_s1 + $0x990] sm:$0xff] }
 0x345   :  { %10757 = vmatprep.subr.bf16.mxu0 %v12640_v62  ;;  %v324_v2 = vld [vmem:[%s19714_s1 + $0x950] sm:$0xff] }
 0x346   :  { %10797 = vmatpush2.bf16.msra.mxu1 %v12775_v61  ;;  %v224_v61 = vld [vmem:[%s19714_s1 + $0x630] sm:$0xff] }
 0x347   :  { %10798 = vmatprep.subr.bf16.mxu1 %v12768_v38  ;;  %v12615_v38 = vcombine.low %v100_v14, %v104_v52 }
 0x348   :  { %10758 = vmatpush2.bf16.msra.mxu0 %v12639_v8  ;;  %v344_v8 = vld [vmem:[%s19714_s1 + $0x9f0] sm:$0xff] }
 0x349   :  { %10759 = vmatprep.subr.bf16.mxu0 %v12632_v16  ;;  %v472_v16 = vld [vmem:[%s19714_s1 + $0xdf0] sm:$0xff] }
 0x34a   :  { %10799 = vmatpush2.bf16.msra.mxu1 %v12767_v12  ;;  %v468_v12 = vld [vmem:[%s19714_s1 + $0xdd0] sm:$0xff] }
 0x34b   :  { %10800 = vmatprep.subr.bf16.mxu1 %v12760_v20  ;;  %v12607_v20 = vcombine.low %v92_v57, %v96_v35  ;;  %v12984_v6 = vcombine.high %v468_v12, %v472_v16  ;;  %v12983_v14 = vcombine.low %v468_v12, %v472_v16  ;;  %v308_v16 = vld [vmem:[%s19714_s1 + $0x8d0] sm:$0xff] }
 0x34c   :  { %10760 = vmatpush2.bf16.msra.mxu0 %v12631_v63  ;;  %v336_v63 = vld [vmem:[%s19714_s1 + $0x9b0] sm:$0xff] }
 0x34d   :  { %v10482_v49 = vpop.f32.mrf.mxu1  ;;  %10761 = vmatprep.subr.bf16.mxu0 %v12624_v34  ;;  %v464_v34 = vld [vmem:[%s19714_s1 + $0xdb0] sm:$0xff]  ;;  %v12848_v52 = vcombine.high %v332_v59, %v336_v63 }
 0x34e   :  { %v10483_v50 = vadd.f32 %v10482_v49, %v17051_v46  ;;  %10801 = vmatpush2.bf16.msra.mxu1 %v12759_v15  ;;  %v220_v46 = vld [vmem:[%s19714_s1 + $0x610] sm:$0xff] }
 0x34f   :  { %v10484_v19 = vpop.f32.mrf.mxu1  ;;  %10802 = vmatprep.subr.bf16.mxu1 %v12752_v33  ;;  %v12736_v7 = vcombine.high %v220_v46, %v224_v61  ;;  %v12735_v53 = vcombine.low %v220_v46, %v224_v61  ;;  %v460_v15 = vld [vmem:[%s19714_s1 + $0xd90] sm:$0xff] }
 0x350   :  { %v10485_v37 = vadd.f32 %v10484_v19, %v17055_v51  ;;  %10762 = vmatpush2.bf16.msra.mxu0 %v12623_v48  ;;  %v340_v51 = vld [vmem:[%s19714_s1 + $0x9d0] sm:$0xff]  ;;  %v12976_v28 = vcombine.high %v460_v15, %v464_v34  ;;  %v12975_v35 = vcombine.low %v460_v15, %v464_v34 }
 0x351   :  { %v10486_v62 = vpop.f32.mrf.mxu1  ;;  %10763 = vmatprep.subr.bf16.mxu0 %v12616_v54  ;;  %v12856_v25 = vcombine.high %v340_v51, %v344_v8  ;;  %v12855_v33 = vcombine.low %v340_v51, %v344_v8  ;;  %v328_v49 = vld [vmem:[%s19714_s1 + $0x970] sm:$0xff] }
 0x352   :  { %10803 = vmatpush2.bf16.msra.mxu1 %v12751_v42  ;;  %v452_v42 = vld [vmem:[%s19714_s1 + $0xd50] sm:$0xff]  ;;  %v12840_v46 = vcombine.high %v324_v2, %v328_v49 }
 0x353   :  { %v10487_v60 = vpop.f32.mrf.mxu1  ;;  %10804 = vmatprep.subr.bf16.mxu1 %v12744_v36  ;;  %v456_v54 = vld [vmem:[%s19714_s1 + $0xd70] sm:$0xff]  ;;  %v12847_v36 = vcombine.low %v332_v59, %v336_v63 }
 0x354   :  { %10764 = vmatpush2.bf16.msra.mxu0 %v12615_v38  ;;  %v12968_v62 = vcombine.high %v452_v42, %v456_v54  ;;  %v316_v38 = vld [vmem:[%s19714_s1 + $0x910] sm:$0xff]  ;;  %v12839_v60 = vcombine.low %v324_v2, %v328_v49  ;;  %v12967_v51 = vcombine.low %v452_v42, %v456_v54 }
 0x355   :  { %10765 = vmatprep.subr.bf16.mxu0 %v12608_v1  ;;  %v444_v1 = vld [vmem:[%s19714_s1 + $0xd10] sm:$0xff] }
 0x356   :  { %10805 = vmatpush2.bf16.msra.mxu1 %v12743_v0  ;;  %v300_v34 = vld [vmem:[%s19714_s1 + $0x890] sm:$0xff] }
 0x357   :  { %10806 = vmatprep.subr.bf16.mxu1 %v12736_v7  ;;  %v292_v42 = vld [vmem:[%s19714_s1 + $0x850] sm:$0xff] }
 0x358   :  { %10766 = vmatpush2.bf16.msra.mxu0 %v12607_v20  ;;  %v312_v20 = vld [vmem:[%s19714_s1 + $0x8f0] sm:$0xff] }
 0x359   :  { %10817 = vmatprep.subr.bf16.mxu0 %v12856_v25  ;;  %v440_v25 = vld [vmem:[%s19714_s1 + $0xcf0] sm:$0xff]  ;;  %v12824_v63 = vcombine.high %v308_v16, %v312_v20 }
 0x35a   :  { %10807 = vmatpush2.bf16.msra.mxu1 %v12735_v53  ;;  %v436_v53 = vld [vmem:[%s19714_s1 + $0xcd0] sm:$0xff] }
 0x35b   :  { %10858 = vmatprep.subr.bf16.mxu1 %v12984_v6  ;;  %v10523_v48 = vpop.f32.mrf.mxu0  ;;  %10768 = vmatmul.mubr.bf16.vlgmr.msra.gmra.mxu0 %v14636_v22  ;;  %v12952_v15 = vcombine.high %v436_v53, %v440_v25  ;;  %v12951_v2 = vcombine.low %v436_v53, %v440_v25  ;;  %v296_v54 = vld [vmem:[%s19714_s1 + $0x870] sm:$0xff] }
 0x35c   :  { %v17254_v19 = vadd.f32 %v10523_v48, %v10483_v50  ;;  %10818 = vmatpush1.bf16.msra.mxu0 %v12855_v33  ;;  %v320_v50 = vld [vmem:[%s19714_s1 + $0x930] sm:$0xff]  ;;  %10849 = vmatprep.mubr.bf16.mxu0 %v14651_v29 }
 0x35d   :  { %10809 = vmatmul.mubr.bf16.vlgmr.msra.gmra.mxu1 %v14655_v30  ;;  %v10525_v57 = vpop.f32.mrf.mxu0  ;;  %10819 = vmatprep.subr.bf16.mxu0 %v12848_v52  ;;  %v12832_v8 = vcombine.high %v316_v38, %v320_v50  ;;  %v12831_v6 = vcombine.low %v316_v38, %v320_v50  ;;  %v304_v33 = vld [vmem:[%s19714_s1 + $0x8b0] sm:$0xff] }
 0x35e   :  { %10859 = vmatpush1.bf16.msra.mxu1 %v12983_v14  ;;  %v17257_v61 = vadd.f32 %v10525_v57, %v10485_v37  ;;  %v448_v37 = vld [vmem:[%s19714_s1 + $0xd30] sm:$0xff]  ;;  %10890 = vmatprep.mubr.bf16.mxu1 %v14672_v39  ;;  %v12816_v49 = vcombine.high %v300_v34, %v304_v33 }
 0x35f   :  { %10860 = vmatprep.subr.bf16.mxu1 %v12976_v28  ;;  %v10527_v0 = vpop.f32.mrf.mxu0  ;;  %v12960_v12 = vcombine.high %v444_v1, %v448_v37  ;;  %v12959_v59 = vcombine.low %v444_v1, %v448_v37  ;;  %v428_v14 = vld [vmem:[%s19714_s1 + $0xc90] sm:$0xff]  ;;  %v12823_v28 = vcombine.low %v308_v16, %v312_v20 }
 0x360   :  { %10820 = vmatpush1.bf16.msra.mxu0 %v12847_v36  ;;  %v432_v52 = vld [vmem:[%s19714_s1 + $0xcb0] sm:$0xff] }
 0x361   :  { %v10528_v7 = vpop.f32.mrf.mxu0  ;;  %10821 = vmatprep.subr.bf16.mxu0 %v12840_v46  ;;  %v12944_v48 = vcombine.high %v428_v14, %v432_v52  ;;  %v420_v36 = vld [vmem:[%s19714_s1 + $0xc50] sm:$0xff]  ;;  %v12943_v46 = vcombine.low %v428_v14, %v432_v52 }
 0x362   :  { %10861 = vmatpush1.bf16.msra.mxu1 %v12975_v35  ;;  %v424_v57 = vld [vmem:[%s19714_s1 + $0xc70] sm:$0xff]  ;;  %v12815_v35 = vcombine.low %v300_v34, %v304_v33 }
 0x363   :  { %10862 = vmatprep.subr.bf16.mxu1 %v12968_v62  ;;  %v12808_v62 = vcombine.high %v292_v42, %v296_v54  ;;  %v12936_v38 = vcombine.high %v420_v36, %v424_v57  ;;  %v284_v50 = vld [vmem:[%s19714_s1 + $0x810] sm:$0xff]  ;;  %v12935_v7 = vcombine.low %v420_v36, %v424_v57 }
 0x364   :  { %10822 = vmatpush1.bf16.msra.mxu0 %v12839_v60  ;;  %v288_v0 = vld [vmem:[%s19714_s1 + $0x830] sm:$0xff]  ;;  %v12807_v60 = vcombine.low %v292_v42, %v296_v54 }
 0x365   :  { %10823 = vmatprep.subr.bf16.mxu0 %v12832_v8  ;;  %v412_v1 = vld [vmem:[%s19714_s1 + $0xc10] sm:$0xff]  ;;  %v12799_v25 = vcombine.low %v284_v50, %v288_v0 }
 0x366   :  { %10863 = vmatpush1.bf16.msra.mxu1 %v12967_v51  ;;  %v416_v37 = vld [vmem:[%s19714_s1 + $0xc30] sm:$0xff]  ;;  %v12800_v51 = vcombine.high %v284_v50, %v288_v0 }
 0x367   :  { %10864 = vmatprep.subr.bf16.mxu1 %v12960_v12  ;;  %v12928_v8 = vcombine.high %v412_v1, %v416_v37  ;;  %v404_v12 = vld [vmem:[%s19714_s1 + $0xbd0] sm:$0xff] }
 0x368   :  { %10824 = vmatpush1.bf16.msra.mxu0 %v12831_v6  ;;  %v408_v16 = vld [vmem:[%s19714_s1 + $0xbf0] sm:$0xff]  ;;  %v12927_v6 = vcombine.low %v412_v1, %v416_v37 }
 0x369   :  { %10825 = vmatprep.subr.bf16.mxu0 %v12824_v63  ;;  %v532_v20 = vld [vmem:[%s19714_s1 + $0xfd0] sm:$0xff]  ;;  %v12919_v52 = vcombine.low %v404_v12, %v408_v16 }
 0x36a   :  { %10865 = vmatpush1.bf16.msra.mxu1 %v12959_v59  ;;  %v536_v53 = vld [vmem:[%s19714_s1 + $0xff0] sm:$0xff]  ;;  %v12920_v59 = vcombine.high %v404_v12, %v408_v16 }
 0x36b   :  { %10866 = vmatprep.subr.bf16.mxu1 %v12952_v15  ;;  %v13048_v63 = vcombine.high %v532_v20, %v536_v53  ;;  %v396_v15 = vld [vmem:[%s19714_s1 + $0xb90] sm:$0xff] }
 0x36c   :  { %10826 = vmatpush1.bf16.msra.mxu0 %v12823_v28  ;;  %v400_v34 = vld [vmem:[%s19714_s1 + $0xbb0] sm:$0xff]  ;;  %v13047_v28 = vcombine.low %v532_v20, %v536_v53 }
 0x36d   :  { %10827 = vmatprep.subr.bf16.mxu0 %v12816_v49  ;;  %v524_v33 = vld [vmem:[%s19714_s1 + $0xf90] sm:$0xff]  ;;  %v12911_v57 = vcombine.low %v396_v15, %v400_v34 }
 0x36e   :  { %10867 = vmatpush1.bf16.msra.mxu1 %v12951_v2  ;;  %v528_v14 = vld [vmem:[%s19714_s1 + $0xfb0] sm:$0xff]  ;;  %v12912_v2 = vcombine.high %v396_v15, %v400_v34 }
 0x36f   :  { %10868 = vmatprep.subr.bf16.mxu1 %v12944_v48  ;;  %v13040_v49 = vcombine.high %v524_v33, %v528_v14  ;;  %v388_v48 = vld [vmem:[%s19714_s1 + $0xb50] sm:$0xff] }
 0x370   :  { %10828 = vmatpush1.bf16.msra.mxu0 %v12815_v35  ;;  %v392_v42 = vld [vmem:[%s19714_s1 + $0xb70] sm:$0xff]  ;;  %v13039_v35 = vcombine.low %v524_v33, %v528_v14 }
 0x371   :  { %10829 = vmatprep.subr.bf16.mxu0 %v12808_v62  ;;  %v516_v54 = vld [vmem:[%s19714_s1 + $0xf50] sm:$0xff]  ;;  %v12903_v37 = vcombine.low %v388_v48, %v392_v42 }
 0x372   :  { %10869 = vmatpush1.bf16.msra.mxu1 %v12943_v46  ;;  %v520_v36 = vld [vmem:[%s19714_s1 + $0xf70] sm:$0xff]  ;;  %v12904_v46 = vcombine.high %v388_v48, %v392_v42 }
 0x373   :  { %10870 = vmatprep.subr.bf16.mxu1 %v12936_v38  ;;  %v13032_v62 = vcombine.high %v516_v54, %v520_v36  ;;  %v380_v38 = vld [vmem:[%s19714_s1 + $0xb10] sm:$0xff] }
 0x374   :  { %10830 = vmatpush1.bf16.msra.mxu0 %v12807_v60  ;;  %v384_v50 = vld [vmem:[%s19714_s1 + $0xb30] sm:$0xff]  ;;  %v13031_v60 = vcombine.low %v516_v54, %v520_v36 }
 0x375   :  { %10831 = vmatprep.subr.bf16.mxu0 %v12800_v51  ;;  %v508_v0 = vld [vmem:[%s19714_s1 + $0xf10] sm:$0xff]  ;;  %v12895_v53 = vcombine.low %v380_v38, %v384_v50 }
 0x376   :  { %10871 = vmatpush1.bf16.msra.mxu1 %v12935_v7  ;;  %v512_v1 = vld [vmem:[%s19714_s1 + $0xf30] sm:$0xff]  ;;  %v12896_v7 = vcombine.high %v380_v38, %v384_v50 }
 0x377   :  { %10872 = vmatprep.subr.bf16.mxu1 %v12928_v8  ;;  %v13024_v51 = vcombine.high %v508_v0, %v512_v1  ;;  %v372_v8 = vld [vmem:[%s19714_s1 + $0xad0] sm:$0xff] }
 0x378   :  { %10832 = vmatpush1.bf16.msra.mxu0 %v12799_v25  ;;  %v376_v12 = vld [vmem:[%s19714_s1 + $0xaf0] sm:$0xff]  ;;  %v13023_v25 = vcombine.low %v508_v0, %v512_v1 }
 0x379   :  { %10833 = vmatprep.subr.bf16.mxu0 %v12920_v59  ;;  %v500_v16 = vld [vmem:[%s19714_s1 + $0xed0] sm:$0xff]  ;;  %v12887_v14 = vcombine.low %v372_v8, %v376_v12 }
 0x37a   :  { %10873 = vmatpush1.bf16.msra.mxu1 %v12927_v6  ;;  %v504_v20 = vld [vmem:[%s19714_s1 + $0xef0] sm:$0xff]  ;;  %v12888_v6 = vcombine.high %v372_v8, %v376_v12 }
 0x37b   :  { %10874 = vmatprep.subr.bf16.mxu1 %v13048_v63  ;;  %v13016_v59 = vcombine.high %v500_v16, %v504_v20  ;;  %v364_v63 = vld [vmem:[%s19714_s1 + $0xa90] sm:$0xff] }
 0x37c   :  { %10834 = vmatpush2.bf16.msra.mxu0 %v12919_v52  ;;  %v368_v15 = vld [vmem:[%s19714_s1 + $0xab0] sm:$0xff]  ;;  %v13015_v52 = vcombine.low %v500_v16, %v504_v20 }
 0x37d   :  { %10835 = vmatprep.subr.bf16.mxu0 %v12912_v2  ;;  %v492_v34 = vld [vmem:[%s19714_s1 + $0xe90] sm:$0xff] }
 0x37e   :  { %10875 = vmatpush2.bf16.msra.mxu1 %v13047_v28  ;;  %v496_v33 = vld [vmem:[%s19714_s1 + $0xeb0] sm:$0xff]  ;;  %v12880_v28 = vcombine.high %v364_v63, %v368_v15 }
 0x37f   :  { %10876 = vmatprep.subr.bf16.mxu1 %v13040_v49  ;;  %v13008_v2 = vcombine.high %v492_v34, %v496_v33  ;;  %v356_v49 = vld [vmem:[%s19714_s1 + $0xa50] sm:$0xff] }
 0x380   :  { %10836 = vmatpush2.bf16.msra.mxu0 %v12911_v57  ;;  %v360_v48 = vld [vmem:[%s19714_s1 + $0xa70] sm:$0xff]  ;;  %v12879_v57 = vcombine.low %v364_v63, %v368_v15 }
 0x381   :  { %10837 = vmatprep.subr.bf16.mxu0 %v12904_v46  ;;  %v484_v42 = vld [vmem:[%s19714_s1 + $0xe50] sm:$0xff]  ;;  %v13007_v46 = vcombine.low %v492_v34, %v496_v33 }
 0x382   :  { %10877 = vmatpush2.bf16.msra.mxu1 %v13039_v35  ;;  %v488_v54 = vld [vmem:[%s19714_s1 + $0xe70] sm:$0xff] }
 0x383   :  { %10878 = vmatprep.subr.bf16.mxu1 %v13032_v62  ;;  %v12872_v62 = vcombine.high %v356_v49, %v360_v48  ;;  %v13000_v50 = vcombine.high %v484_v42, %v488_v54  ;;  %v348_v0 = vld [vmem:[%s19714_s1 + $0xa10] sm:$0xff]  ;;  %v12999_v8 = vcombine.low %v484_v42, %v488_v54 }
 0x384   :  { %10838 = vmatpush2.bf16.msra.mxu0 %v12903_v37  ;;  %v352_v1 = vld [vmem:[%s19714_s1 + $0xa30] sm:$0xff] }
 0x385   :  { %10839 = vmatprep.subr.bf16.mxu0 %v12896_v7  ;;  %v12864_v12 = vcombine.high %v348_v0, %v352_v1  ;;  %v588_v33 = vld [vmem:[%s19714_s1 + $0x1190] sm:$0xff] }
 0x386   :  { %10879 = vmatpush2.bf16.msra.mxu1 %v13031_v60  ;;  %v480_v60 = vld [vmem:[%s19714_s1 + $0xe30] sm:$0xff] }
 0x387   :  { %10880 = vmatprep.subr.bf16.mxu1 %v13024_v51  ;;  %v12871_v51 = vcombine.low %v356_v49, %v360_v48  ;;  %v580_v54 = vld [vmem:[%s19714_s1 + $0x1150] sm:$0xff] }
 0x388   :  { %10840 = vmatpush2.bf16.msra.mxu0 %v12895_v53  ;;  %v600_v53 = vld [vmem:[%s19714_s1 + $0x11f0] sm:$0xff] }
 0x389   :  { %10841 = vmatprep.subr.bf16.mxu0 %v12888_v6  ;;  %v728_v6 = vld [vmem:[%s19714_s1 + $0x15f0] sm:$0xff] }
 0x38a   :  { %10881 = vmatpush2.bf16.msra.mxu1 %v13023_v25  ;;  %v724_v25 = vld [vmem:[%s19714_s1 + $0x15d0] sm:$0xff] }
 0x38b   :  { %10882 = vmatprep.subr.bf16.mxu1 %v13016_v59  ;;  %v12863_v59 = vcombine.low %v348_v0, %v352_v1  ;;  %v13240_v34 = vcombine.high %v724_v25, %v728_v6  ;;  %v13239_v49 = vcombine.low %v724_v25, %v728_v6  ;;  %v564_v6 = vld [vmem:[%s19714_s1 + $0x10d0] sm:$0xff] }
 0x38c   :  { %10842 = vmatpush2.bf16.msra.mxu0 %v12887_v14  ;;  %v592_v14 = vld [vmem:[%s19714_s1 + $0x11b0] sm:$0xff] }
 0x38d   :  { %v10564_v36 = vpop.f32.mrf.mxu1  ;;  %10843 = vmatprep.subr.bf16.mxu0 %v12880_v28  ;;  %v720_v28 = vld [vmem:[%s19714_s1 + $0x15b0] sm:$0xff]  ;;  %v13104_v48 = vcombine.high %v588_v33, %v592_v14 }
 0x38e   :  { %v10565_v35 = vadd.f32 %v10564_v36, %v17254_v19  ;;  %10883 = vmatpush2.bf16.msra.mxu1 %v13015_v52  ;;  %v476_v19 = vld [vmem:[%s19714_s1 + $0xe10] sm:$0xff] }
 0x38f   :  { %v10566_v38 = vpop.f32.mrf.mxu1  ;;  %10884 = vmatprep.subr.bf16.mxu1 %v13008_v2  ;;  %v12992_v20 = vcombine.high %v476_v19, %v480_v60  ;;  %v12991_v63 = vcombine.low %v476_v19, %v480_v60  ;;  %v716_v52 = vld [vmem:[%s19714_s1 + $0x1590] sm:$0xff] }
 0x390   :  { %v10567_v37 = vadd.f32 %v10566_v38, %v17257_v61  ;;  %10844 = vmatpush2.bf16.msra.mxu0 %v12879_v57  ;;  %v596_v61 = vld [vmem:[%s19714_s1 + $0x11d0] sm:$0xff]  ;;  %v13232_v42 = vcombine.high %v716_v52, %v720_v28  ;;  %v13231_v1 = vcombine.low %v716_v52, %v720_v28 }
 0x391   :  { %v10568_v7 = vpop.f32.mrf.mxu1  ;;  %10845 = vmatprep.subr.bf16.mxu0 %v12872_v62  ;;  %v13112_v15 = vcombine.high %v596_v61, %v600_v53  ;;  %v13111_v2 = vcombine.low %v596_v61, %v600_v53  ;;  %v584_v36 = vld [vmem:[%s19714_s1 + $0x1170] sm:$0xff] }
 0x392   :  { %10885 = vmatpush2.bf16.msra.mxu1 %v13007_v46  ;;  %v708_v46 = vld [vmem:[%s19714_s1 + $0x1550] sm:$0xff]  ;;  %v13096_v19 = vcombine.high %v580_v54, %v584_v36 }
 0x393   :  { %v10569_v16 = vpop.f32.mrf.mxu1  ;;  %10886 = vmatprep.subr.bf16.mxu1 %v13000_v50  ;;  %v712_v62 = vld [vmem:[%s19714_s1 + $0x1570] sm:$0xff]  ;;  %v13103_v50 = vcombine.low %v588_v33, %v592_v14 }
 0x394   :  { %10846 = vmatpush2.bf16.msra.mxu0 %v12871_v51  ;;  %v13224_v7 = vcombine.high %v708_v46, %v712_v62  ;;  %v572_v51 = vld [vmem:[%s19714_s1 + $0x1110] sm:$0xff]  ;;  %v13095_v16 = vcombine.low %v580_v54, %v584_v36  ;;  %v13223_v61 = vcombine.low %v708_v46, %v712_v62 }
 0x395   :  { %10847 = vmatprep.subr.bf16.mxu0 %v12864_v12  ;;  %v700_v12 = vld [vmem:[%s19714_s1 + $0x1510] sm:$0xff] }
 0x396   :  { %10887 = vmatpush2.bf16.msra.mxu1 %v12999_v8  ;;  %v556_v28 = vld [vmem:[%s19714_s1 + $0x1090] sm:$0xff] }
 0x397   :  { %10888 = vmatprep.subr.bf16.mxu1 %v12992_v20  ;;  %v548_v46 = vld [vmem:[%s19714_s1 + $0x1050] sm:$0xff] }
 0x398   :  { %10848 = vmatpush2.bf16.msra.mxu0 %v12863_v59  ;;  %v568_v59 = vld [vmem:[%s19714_s1 + $0x10f0] sm:$0xff] }
 0x399   :  { %10899 = vmatprep.subr.bf16.mxu0 %v13112_v15  ;;  %v696_v15 = vld [vmem:[%s19714_s1 + $0x14f0] sm:$0xff]  ;;  %v13080_v14 = vcombine.high %v564_v6, %v568_v59 }
 0x39a   :  { %10889 = vmatpush2.bf16.msra.mxu1 %v12991_v63  ;;  %v692_v63 = vld [vmem:[%s19714_s1 + $0x14d0] sm:$0xff] }
 0x39b   :  { %10940 = vmatprep.subr.bf16.mxu1 %v13240_v34  ;;  %v10605_v57 = vpop.f32.mrf.mxu0  ;;  %10850 = vmatmul.mubr.bf16.vlgmr.msra.gmra.mxu0 %v14858_v47  ;;  %v13208_v52 = vcombine.high %v692_v63, %v696_v15  ;;  %v13207_v54 = vcombine.low %v692_v63, %v696_v15  ;;  %v552_v62 = vld [vmem:[%s19714_s1 + $0x1070] sm:$0xff] }
 0x39c   :  { %v17456_v38 = vadd.f32 %v10605_v57, %v10565_v35  ;;  %10900 = vmatpush1.bf16.msra.mxu0 %v13111_v2  ;;  %v576_v35 = vld [vmem:[%s19714_s1 + $0x1130] sm:$0xff]  ;;  %10931 = vmatprep.mubr.bf16.mxu0 %v14873_v55 }
 0x39d   :  { %10891 = vmatmul.mubr.bf16.vlgmr.msra.gmra.mxu1 %v14877_v56  ;;  %v10607_v0 = vpop.f32.mrf.mxu0  ;;  %10901 = vmatprep.subr.bf16.mxu0 %v13104_v48  ;;  %v13088_v53 = vcombine.high %v572_v51, %v576_v35  ;;  %v13087_v34 = vcombine.low %v572_v51, %v576_v35  ;;  %v560_v2 = vld [vmem:[%s19714_s1 + $0x10b0] sm:$0xff] }
 0x39e   :  { %10941 = vmatpush1.bf16.msra.mxu1 %v13239_v49  ;;  %v17459_v60 = vadd.f32 %v10607_v0, %v10567_v37  ;;  %v704_v37 = vld [vmem:[%s19714_s1 + $0x1530] sm:$0xff]  ;;  %10972 = vmatprep.mubr.bf16.mxu1 %v14894_v3  ;;  %v13072_v36 = vcombine.high %v556_v28, %v560_v2 }
 0x39f   :  { %10942 = vmatprep.subr.bf16.mxu1 %v13232_v42  ;;  %v10609_v8 = vpop.f32.mrf.mxu0  ;;  %v13216_v25 = vcombine.high %v700_v12, %v704_v37  ;;  %v13215_v33 = vcombine.low %v700_v12, %v704_v37  ;;  %v684_v49 = vld [vmem:[%s19714_s1 + $0x1490] sm:$0xff]  ;;  %v13079_v42 = vcombine.low %v564_v6, %v568_v59 }
 0x3a0   :  { %10902 = vmatpush1.bf16.msra.mxu0 %v13103_v50  ;;  %v688_v48 = vld [vmem:[%s19714_s1 + $0x14b0] sm:$0xff] }
 0x3a1   :  { %v10610_v20 = vpop.f32.mrf.mxu0  ;;  %10903 = vmatprep.subr.bf16.mxu0 %v13096_v19  ;;  %v13200_v57 = vcombine.high %v684_v49, %v688_v48  ;;  %v676_v50 = vld [vmem:[%s19714_s1 + $0x1450] sm:$0xff]  ;;  %v13199_v19 = vcombine.low %v684_v49, %v688_v48 }
 0x3a2   :  { %10943 = vmatpush1.bf16.msra.mxu1 %v13231_v1  ;;  %v680_v0 = vld [vmem:[%s19714_s1 + $0x1470] sm:$0xff]  ;;  %v13071_v1 = vcombine.low %v556_v28, %v560_v2 }
 0x3a3   :  { %10944 = vmatprep.subr.bf16.mxu1 %v13224_v7  ;;  %v13064_v7 = vcombine.high %v548_v46, %v552_v62  ;;  %v13192_v51 = vcombine.high %v676_v50, %v680_v0  ;;  %v540_v35 = vld [vmem:[%s19714_s1 + $0x1010] sm:$0xff]  ;;  %v13191_v20 = vcombine.low %v676_v50, %v680_v0 }
 0x3a4   :  { %10904 = vmatpush1.bf16.msra.mxu0 %v13095_v16  ;;  %v544_v8 = vld [vmem:[%s19714_s1 + $0x1030] sm:$0xff]  ;;  %v13063_v16 = vcombine.low %v548_v46, %v552_v62 }
 0x3a5   :  { %10905 = vmatprep.subr.bf16.mxu0 %v13088_v53  ;;  %v668_v12 = vld [vmem:[%s19714_s1 + $0x1410] sm:$0xff]  ;;  %v13055_v15 = vcombine.low %v540_v35, %v544_v8 }
 0x3a6   :  { %10945 = vmatpush1.bf16.msra.mxu1 %v13223_v61  ;;  %v672_v37 = vld [vmem:[%s19714_s1 + $0x1430] sm:$0xff]  ;;  %v13056_v61 = vcombine.high %v540_v35, %v544_v8 }
 0x3a7   :  { %10946 = vmatprep.subr.bf16.mxu1 %v13216_v25  ;;  %v13184_v53 = vcombine.high %v668_v12, %v672_v37  ;;  %v660_v25 = vld [vmem:[%s19714_s1 + $0x13d0] sm:$0xff] }
 0x3a8   :  { %10906 = vmatpush1.bf16.msra.mxu0 %v13087_v34  ;;  %v664_v6 = vld [vmem:[%s19714_s1 + $0x13f0] sm:$0xff]  ;;  %v13183_v34 = vcombine.low %v668_v12, %v672_v37 }
 0x3a9   :  { %10907 = vmatprep.subr.bf16.mxu0 %v13080_v14  ;;  %v788_v59 = vld [vmem:[%s19714_s1 + $0x17d0] sm:$0xff]  ;;  %v13175_v48 = vcombine.low %v660_v25, %v664_v6 }
 0x3aa   :  { %10947 = vmatpush1.bf16.msra.mxu1 %v13215_v33  ;;  %v792_v63 = vld [vmem:[%s19714_s1 + $0x17f0] sm:$0xff]  ;;  %v13176_v33 = vcombine.high %v660_v25, %v664_v6 }
 0x3ab   :  { %10948 = vmatprep.subr.bf16.mxu1 %v13208_v52  ;;  %v13304_v14 = vcombine.high %v788_v59, %v792_v63  ;;  %v652_v52 = vld [vmem:[%s19714_s1 + $0x1390] sm:$0xff] }
 0x3ac   :  { %10908 = vmatpush1.bf16.msra.mxu0 %v13079_v42  ;;  %v656_v28 = vld [vmem:[%s19714_s1 + $0x13b0] sm:$0xff]  ;;  %v13303_v42 = vcombine.low %v788_v59, %v792_v63 }
 0x3ad   :  { %10909 = vmatprep.subr.bf16.mxu0 %v13072_v36  ;;  %v780_v2 = vld [vmem:[%s19714_s1 + $0x1790] sm:$0xff]  ;;  %v13167_v0 = vcombine.low %v652_v52, %v656_v28 }
 0x3ae   :  { %10949 = vmatpush1.bf16.msra.mxu1 %v13207_v54  ;;  %v784_v49 = vld [vmem:[%s19714_s1 + $0x17b0] sm:$0xff]  ;;  %v13168_v54 = vcombine.high %v652_v52, %v656_v28 }
 0x3af   :  { %10950 = vmatprep.subr.bf16.mxu1 %v13200_v57  ;;  %v13296_v36 = vcombine.high %v780_v2, %v784_v49  ;;  %v644_v57 = vld [vmem:[%s19714_s1 + $0x1350] sm:$0xff] }
 0x3b0   :  { %10910 = vmatpush1.bf16.msra.mxu0 %v13071_v1  ;;  %v648_v46 = vld [vmem:[%s19714_s1 + $0x1370] sm:$0xff]  ;;  %v13295_v1 = vcombine.low %v780_v2, %v784_v49 }
 0x3b1   :  { %10911 = vmatprep.subr.bf16.mxu0 %v13064_v7  ;;  %v772_v62 = vld [vmem:[%s19714_s1 + $0x1750] sm:$0xff]  ;;  %v13159_v37 = vcombine.low %v644_v57, %v648_v46 }
 0x3b2   :  { %10951 = vmatpush1.bf16.msra.mxu1 %v13199_v19  ;;  %v776_v50 = vld [vmem:[%s19714_s1 + $0x1770] sm:$0xff]  ;;  %v13160_v19 = vcombine.high %v644_v57, %v648_v46 }
 0x3b3   :  { %10952 = vmatprep.subr.bf16.mxu1 %v13192_v51  ;;  %v13288_v7 = vcombine.high %v772_v62, %v776_v50  ;;  %v636_v51 = vld [vmem:[%s19714_s1 + $0x1310] sm:$0xff] }
 0x3b4   :  { %10912 = vmatpush1.bf16.msra.mxu0 %v13063_v16  ;;  %v640_v35 = vld [vmem:[%s19714_s1 + $0x1330] sm:$0xff]  ;;  %v13287_v16 = vcombine.low %v772_v62, %v776_v50 }
 0x3b5   :  { %10913 = vmatprep.subr.bf16.mxu0 %v13056_v61  ;;  %v764_v8 = vld [vmem:[%s19714_s1 + $0x1710] sm:$0xff]  ;;  %v13151_v63 = vcombine.low %v636_v51, %v640_v35 }
 0x3b6   :  { %10953 = vmatpush1.bf16.msra.mxu1 %v13191_v20  ;;  %v768_v12 = vld [vmem:[%s19714_s1 + $0x1730] sm:$0xff]  ;;  %v13152_v20 = vcombine.high %v636_v51, %v640_v35 }
 0x3b7   :  { %10954 = vmatprep.subr.bf16.mxu1 %v13184_v53  ;;  %v13280_v61 = vcombine.high %v764_v8, %v768_v12  ;;  %v628_v53 = vld [vmem:[%s19714_s1 + $0x12d0] sm:$0xff] }
 0x3b8   :  { %10914 = vmatpush1.bf16.msra.mxu0 %v13055_v15  ;;  %v632_v25 = vld [vmem:[%s19714_s1 + $0x12f0] sm:$0xff]  ;;  %v13279_v15 = vcombine.low %v764_v8, %v768_v12 }
 0x3b9   :  { %10915 = vmatprep.subr.bf16.mxu0 %v13176_v33  ;;  %v756_v6 = vld [vmem:[%s19714_s1 + $0x16d0] sm:$0xff]  ;;  %v13143_v49 = vcombine.low %v628_v53, %v632_v25 }
 0x3ba   :  { %10955 = vmatpush1.bf16.msra.mxu1 %v13183_v34  ;;  %v760_v59 = vld [vmem:[%s19714_s1 + $0x16f0] sm:$0xff]  ;;  %v13144_v34 = vcombine.high %v628_v53, %v632_v25 }
 0x3bb   :  { %10956 = vmatprep.subr.bf16.mxu1 %v13304_v14  ;;  %v13272_v33 = vcombine.high %v756_v6, %v760_v59  ;;  %v620_v14 = vld [vmem:[%s19714_s1 + $0x1290] sm:$0xff] }
 0x3bc   :  { %10916 = vmatpush2.bf16.msra.mxu0 %v13175_v48  ;;  %v624_v52 = vld [vmem:[%s19714_s1 + $0x12b0] sm:$0xff]  ;;  %v13271_v48 = vcombine.low %v756_v6, %v760_v59 }
 0x3bd   :  { %10917 = vmatprep.subr.bf16.mxu0 %v13168_v54  ;;  %v748_v28 = vld [vmem:[%s19714_s1 + $0x1690] sm:$0xff] }
 0x3be   :  { %10957 = vmatpush2.bf16.msra.mxu1 %v13303_v42  ;;  %v752_v2 = vld [vmem:[%s19714_s1 + $0x16b0] sm:$0xff]  ;;  %v13136_v42 = vcombine.high %v620_v14, %v624_v52 }
 0x3bf   :  { %10958 = vmatprep.subr.bf16.mxu1 %v13296_v36  ;;  %v13264_v54 = vcombine.high %v748_v28, %v752_v2  ;;  %v612_v36 = vld [vmem:[%s19714_s1 + $0x1250] sm:$0xff] }
 0x3c0   :  { %10918 = vmatpush2.bf16.msra.mxu0 %v13167_v0  ;;  %v616_v57 = vld [vmem:[%s19714_s1 + $0x1270] sm:$0xff]  ;;  %v13135_v0 = vcombine.low %v620_v14, %v624_v52 }
 0x3c1   :  { %10919 = vmatprep.subr.bf16.mxu0 %v13160_v19  ;;  %v740_v46 = vld [vmem:[%s19714_s1 + $0x1650] sm:$0xff]  ;;  %v13263_v19 = vcombine.low %v748_v28, %v752_v2 }
 0x3c2   :  { %10959 = vmatpush2.bf16.msra.mxu1 %v13295_v1  ;;  %v744_v62 = vld [vmem:[%s19714_s1 + $0x1670] sm:$0xff] }
 0x3c3   :  { %10960 = vmatprep.subr.bf16.mxu1 %v13288_v7  ;;  %v13128_v7 = vcombine.high %v612_v36, %v616_v57  ;;  %v13256_v35 = vcombine.high %v740_v46, %v744_v62  ;;  %v604_v8 = vld [vmem:[%s19714_s1 + $0x1210] sm:$0xff]  ;;  %v13255_v53 = vcombine.low %v740_v46, %v744_v62 }
 0x3c4   :  { %10920 = vmatpush2.bf16.msra.mxu0 %v13159_v37  ;;  %v608_v12 = vld [vmem:[%s19714_s1 + $0x1230] sm:$0xff] }
 0x3c5   :  { %10921 = vmatprep.subr.bf16.mxu0 %v13152_v20  ;;  %v13120_v25 = vcombine.high %v604_v8, %v608_v12  ;;  %v844_v2 = vld [vmem:[%s19714_s1 + $0x1990] sm:$0xff] }
 0x3c6   :  { %10961 = vmatpush2.bf16.msra.mxu1 %v13287_v16  ;;  %v736_v16 = vld [vmem:[%s19714_s1 + $0x1630] sm:$0xff] }
 0x3c7   :  { %10962 = vmatprep.subr.bf16.mxu1 %v13280_v61  ;;  %v13127_v61 = vcombine.low %v612_v36, %v616_v57  ;;  %v836_v62 = vld [vmem:[%s19714_s1 + $0x1950] sm:$0xff] }
 0x3c8   :  { %10922 = vmatpush2.bf16.msra.mxu0 %v13151_v63  ;;  %v856_v63 = vld [vmem:[%s19714_s1 + $0x19f0] sm:$0xff] }
 0x3c9   :  { %10923 = vmatprep.subr.bf16.mxu0 %v13144_v34  ;;  %v984_v34 = vld [vmem:[%s19714_s1 + $0x1df0] sm:$0xff] }
 0x3ca   :  { %10963 = vmatpush2.bf16.msra.mxu1 %v13279_v15  ;;  %v980_v15 = vld [vmem:[%s19714_s1 + $0x1dd0] sm:$0xff] }
 0x3cb   :  { %10964 = vmatprep.subr.bf16.mxu1 %v13272_v33  ;;  %v13119_v33 = vcombine.low %v604_v8, %v608_v12  ;;  %v13496_v28 = vcombine.high %v980_v15, %v984_v34  ;;  %v13495_v36 = vcombine.low %v980_v15, %v984_v34 }
 0x3cc   :  { %10924 = vmatpush2.bf16.msra.mxu0 %v13143_v49  ;;  %v848_v49 = vld [vmem:[%s19714_s1 + $0x19b0] sm:$0xff] }
 0x3cd   :  { %v10646_v50 = vpop.f32.mrf.mxu1  ;;  %10925 = vmatprep.subr.bf16.mxu0 %v13136_v42  ;;  %v976_v42 = vld [vmem:[%s19714_s1 + $0x1db0] sm:$0xff]  ;;  %v13360_v57 = vcombine.high %v844_v2, %v848_v49  ;;  %v13359_v8 = vcombine.low %v844_v2, %v848_v49 }
 0x3ce   :  { %v10647_v1 = vadd.f32 %v10646_v50, %v17456_v38  ;;  %10965 = vmatpush2.bf16.msra.mxu1 %v13271_v48  ;;  %v732_v38 = vld [vmem:[%s19714_s1 + $0x1610] sm:$0xff] }
 0x3cf   :  { %v10648_v51 = vpop.f32.mrf.mxu1  ;;  %10966 = vmatprep.subr.bf16.mxu1 %v13264_v54  ;;  %v13248_v59 = vcombine.high %v732_v38, %v736_v16  ;;  %v13247_v14 = vcombine.low %v732_v38, %v736_v16  ;;  %v972_v48 = vld [vmem:[%s19714_s1 + $0x1d90] sm:$0xff] }
 0x3d0   :  { %v10649_v37 = vadd.f32 %v10648_v51, %v17459_v60  ;;  %10926 = vmatpush2.bf16.msra.mxu0 %v13135_v0  ;;  %v852_v60 = vld [vmem:[%s19714_s1 + $0x19d0] sm:$0xff]  ;;  %v13488_v46 = vcombine.high %v972_v48, %v976_v42  ;;  %v13487_v38 = vcombine.low %v972_v48, %v976_v42 }
 0x3d1   :  { %v10650_v20 = vpop.f32.mrf.mxu1  ;;  %10927 = vmatprep.subr.bf16.mxu0 %v13128_v7  ;;  %v13368_v52 = vcombine.high %v852_v60, %v856_v63  ;;  %v13367_v54 = vcombine.low %v852_v60, %v856_v63  ;;  %v840_v50 = vld [vmem:[%s19714_s1 + $0x1970] sm:$0xff] }
 0x3d2   :  { %10967 = vmatpush2.bf16.msra.mxu1 %v13263_v19  ;;  %v964_v19 = vld [vmem:[%s19714_s1 + $0x1d50] sm:$0xff]  ;;  %v13352_v16 = vcombine.high %v836_v62, %v840_v50  ;;  %v13351_v34 = vcombine.low %v836_v62, %v840_v50 }
 0x3d3   :  { %v10651_v6 = vpop.f32.mrf.mxu1  ;;  %10968 = vmatprep.subr.bf16.mxu1 %v13256_v35  ;;  %v968_v7 = vld [vmem:[%s19714_s1 + $0x1d70] sm:$0xff] }
 0x3d4   :  { %10928 = vmatpush2.bf16.msra.mxu0 %v13127_v61  ;;  %v832_v6 = vld [vmem:[%s19714_s1 + $0x1930] sm:$0xff] }
 0x3d5   :  { %10929 = vmatprep.subr.bf16.mxu0 %v13120_v25  ;;  %v13480_v25 = vcombine.high %v964_v19, %v968_v7  ;;  %v956_v60 = vld [vmem:[%s19714_s1 + $0x1d10] sm:$0xff] }
 0x3d6   :  { %10969 = vmatpush2.bf16.msra.mxu1 %v13255_v53  ;;  %v820_v49 = vld [vmem:[%s19714_s1 + $0x18d0] sm:$0xff] }
 0x3d7   :  { %10970 = vmatprep.subr.bf16.mxu1 %v13248_v59  ;;  %v824_v48 = vld [vmem:[%s19714_s1 + $0x18f0] sm:$0xff] }
 0x3d8   :  { %10930 = vmatpush2.bf16.msra.mxu0 %v13119_v33  ;;  %v948_v42 = vld [vmem:[%s19714_s1 + $0x1cd0] sm:$0xff] }
 0x3d9   :  { %10981 = vmatprep.subr.bf16.mxu0 %v13368_v52  ;;  %v812_v50 = vld [vmem:[%s19714_s1 + $0x1890] sm:$0xff] }
 0x3da   :  { %10971 = vmatpush2.bf16.msra.mxu1 %v13247_v14  ;;  %v13479_v14 = vcombine.low %v964_v19, %v968_v7  ;;  %v940_v19 = vld [vmem:[%s19714_s1 + $0x1c90] sm:$0xff] }
 0x3db   :  { %11022 = vmatprep.subr.bf16.mxu1 %v13496_v28  ;;  %v10687_v0 = vpop.f32.mrf.mxu0  ;;  %10932 = vmatmul.mubr.bf16.vlgmr.msra.gmra.mxu0 %v15076_v21  ;;  %v944_v7 = vld [vmem:[%s19714_s1 + $0x1cb0] sm:$0xff] }
 0x3dc   :  { %v10688_v51 = vadd.f32 %v10687_v0, %v10647_v1  ;;  %10982 = vmatpush1.bf16.msra.mxu0 %v13367_v54  ;;  %v828_v1 = vld [vmem:[%s19714_s1 + $0x1910] sm:$0xff]  ;;  %11013 = vmatprep.mubr.bf16.mxu0 %v15091_v31 }
 0x3dd   :  { %v10728_v35 = vpop.f32.mrf.mxu1  ;;  %10973 = vmatmul.mubr.bf16.vlgmr.msra.gmra.mxu1 %v15095_v32  ;;  %v10689_v12 = vpop.f32.mrf.mxu0  ;;  %10983 = vmatprep.subr.bf16.mxu0 %v13360_v57  ;;  %v13344_v52 = vcombine.high %v828_v1, %v832_v6  ;;  %v952_v54 = vld [vmem:[%s19714_s1 + $0x1cf0] sm:$0xff] }
 0x3de   :  { %11023 = vmatpush1.bf16.msra.mxu1 %v13495_v36  ;;  %v17659_v20 = vadd.f32 %v10728_v35, %v10688_v51  ;;  %v10690_v61 = vadd.f32 %v10689_v12, %v10649_v37  ;;  %v960_v37 = vld [vmem:[%s19714_s1 + $0x1d30] sm:$0xff]  ;;  %11054 = vmatprep.mubr.bf16.mxu1 %v15112_v44  ;;  %v13343_v36 = vcombine.low %v828_v1, %v832_v6 }
 0x3df   :  { %v10730_v53 = vpop.f32.mrf.mxu1  ;;  %11024 = vmatprep.subr.bf16.mxu1 %v13488_v46  ;;  %v10691_v59 = vpop.f32.mrf.mxu0  ;;  %v13472_v2 = vcombine.high %v956_v60, %v960_v37  ;;  %v13471_v57 = vcombine.low %v956_v60, %v960_v37  ;;  %v13336_v46 = vcombine.high %v820_v49, %v824_v48  ;;  %v13464_v62 = vcombine.high %v948_v42, %v952_v54  ;;  %v816_v0 = vld [vmem:[%s19714_s1 + $0x18b0] sm:$0xff] }
 0x3e0   :  { %v17675_v63 = vadd.f32 %v10730_v53, %v10690_v61  ;;  %10984 = vmatpush1.bf16.msra.mxu0 %v13359_v8  ;;  %v13335_v51 = vcombine.low %v820_v49, %v824_v48  ;;  %v13463_v35 = vcombine.low %v948_v42, %v952_v54  ;;  %v13328_v8 = vcombine.high %v812_v50, %v816_v0  ;;  %v932_v61 = vld [vmem:[%s19714_s1 + $0x1c50] sm:$0xff] }
 0x3e1   :  { %v10732_v15 = vpop.f32.mrf.mxu1  ;;  %v10692_v33 = vpop.f32.mrf.mxu0  ;;  %10985 = vmatprep.subr.bf16.mxu0 %v13352_v16  ;;  %v13456_v12 = vcombine.high %v940_v19, %v944_v7  ;;  %v808_v16 = vld [vmem:[%s19714_s1 + $0x1870] sm:$0xff]  ;;  %v13455_v1 = vcombine.low %v940_v19, %v944_v7 }
 0x3e2   :  { %11025 = vmatpush1.bf16.msra.mxu1 %v13487_v38  ;;  %v804_v38 = vld [vmem:[%s19714_s1 + $0x1850] sm:$0xff] }
 0x3e3   :  { %v10733_v28 = vpop.f32.mrf.mxu1  ;;  %11026 = vmatprep.subr.bf16.mxu1 %v13480_v25  ;;  %v936_v53 = vld [vmem:[%s19714_s1 + $0x1c70] sm:$0xff]  ;;  %v13327_v25 = vcombine.low %v812_v50, %v816_v0  ;;  %v13320_v6 = vcombine.high %v804_v38, %v808_v16  ;;  %v13319_v33 = vcombine.low %v804_v38, %v808_v16 }
 0x3e4   :  { %10986 = vmatpush1.bf16.msra.mxu0 %v13351_v34  ;;  %v13448_v59 = vcombine.high %v932_v61, %v936_v53  ;;  %v796_v60 = vld [vmem:[%s19714_s1 + $0x1810] sm:$0xff] }
 0x3e5   :  { %10987 = vmatprep.subr.bf16.mxu0 %v13344_v52  ;;  %v800_v37 = vld [vmem:[%s19714_s1 + $0x1830] sm:$0xff] }
 0x3e6   :  { %11027 = vmatpush1.bf16.msra.mxu1 %v13479_v14  ;;  %v924_v15 = vld [vmem:[%s19714_s1 + $0x1c10] sm:$0xff]  ;;  %v13447_v14 = vcombine.low %v932_v61, %v936_v53  ;;  %v13312_v52 = vcombine.high %v796_v60, %v800_v37  ;;  %v13311_v54 = vcombine.low %v796_v60, %v800_v37 }
 0x3e7   :  { %11028 = vmatprep.subr.bf16.mxu1 %v13472_v2  ;;  %v928_v34 = vld [vmem:[%s19714_s1 + $0x1c30] sm:$0xff] }
 0x3e8   :  { %10988 = vmatpush1.bf16.msra.mxu0 %v13343_v36  ;;  %v13440_v28 = vcombine.high %v924_v15, %v928_v34  ;;  %v916_v2 = vld [vmem:[%s19714_s1 + $0x1bd0] sm:$0xff]  ;;  %v13439_v36 = vcombine.low %v924_v15, %v928_v34 }
 0x3e9   :  { %10989 = vmatprep.subr.bf16.mxu0 %v13336_v46  ;;  %v920_v49 = vld [vmem:[%s19714_s1 + $0x1bf0] sm:$0xff] }
 0x3ea   :  { %11029 = vmatpush1.bf16.msra.mxu1 %v13471_v57  ;;  %v1044_v48 = vld [vmem:[%s19714_s1 + $0x1fd0] sm:$0xff]  ;;  %v13432_v57 = vcombine.high %v916_v2, %v920_v49  ;;  %v13431_v7 = vcombine.low %v916_v2, %v920_v49 }
 0x3eb   :  { %11030 = vmatprep.subr.bf16.mxu1 %v13464_v62  ;;  %v1048_v42 = vld [vmem:[%s19714_s1 + $0x1ff0] sm:$0xff] }
 0x3ec   :  { %10990 = vmatpush1.bf16.msra.mxu0 %v13335_v51  ;;  %v13560_v46 = vcombine.high %v1044_v48, %v1048_v42  ;;  %v908_v62 = vld [vmem:[%s19714_s1 + $0x1b90] sm:$0xff]  ;;  %v13559_v51 = vcombine.low %v1044_v48, %v1048_v42 }
 0x3ed   :  { %10991 = vmatprep.subr.bf16.mxu0 %v13328_v8  ;;  %v912_v50 = vld [vmem:[%s19714_s1 + $0x1bb0] sm:$0xff] }
 0x3ee   :  { %11031 = vmatpush1.bf16.msra.mxu1 %v13463_v35  ;;  %v1036_v0 = vld [vmem:[%s19714_s1 + $0x1f90] sm:$0xff]  ;;  %v13424_v35 = vcombine.high %v908_v62, %v912_v50  ;;  %v13423_v53 = vcombine.low %v908_v62, %v912_v50 }
 0x3ef   :  { %11032 = vmatprep.subr.bf16.mxu1 %v13456_v12  ;;  %v1040_v19 = vld [vmem:[%s19714_s1 + $0x1fb0] sm:$0xff] }
 0x3f0   :  { %10992 = vmatpush1.bf16.msra.mxu0 %v13327_v25  ;;  %v13552_v8 = vcombine.high %v1036_v0, %v1040_v19  ;;  %v900_v12 = vld [vmem:[%s19714_s1 + $0x1b50] sm:$0xff]  ;;  %v13551_v25 = vcombine.low %v1036_v0, %v1040_v19 }
 0x3f1   :  { %10993 = vmatprep.subr.bf16.mxu0 %v13320_v6  ;;  %v904_v38 = vld [vmem:[%s19714_s1 + $0x1b70] sm:$0xff] }
 0x3f2   :  { %11033 = vmatpush1.bf16.msra.mxu1 %v13455_v1  ;;  %v1028_v16 = vld [vmem:[%s19714_s1 + $0x1f50] sm:$0xff]  ;;  %v13416_v1 = vcombine.high %v900_v12, %v904_v38  ;;  %v13415_v34 = vcombine.low %v900_v12, %v904_v38 }
 0x3f3   :  { %11034 = vmatprep.subr.bf16.mxu1 %v13448_v59  ;;  %v1032_v61 = vld [vmem:[%s19714_s1 + $0x1f70] sm:$0xff] }
 0x3f4   :  { %10994 = vmatpush1.bf16.msra.mxu0 %v13319_v33  ;;  %v13544_v6 = vcombine.high %v1028_v16, %v1032_v61  ;;  %v892_v59 = vld [vmem:[%s19714_s1 + $0x1b10] sm:$0xff]  ;;  %v13543_v33 = vcombine.low %v1028_v16, %v1032_v61 }
 0x3f5   :  { %10995 = vmatprep.subr.bf16.mxu0 %v13312_v52  ;;  %v896_v60 = vld [vmem:[%s19714_s1 + $0x1b30] sm:$0xff] }
 0x3f6   :  { %11035 = vmatpush1.bf16.msra.mxu1 %v13447_v14  ;;  %v1020_v37 = vld [vmem:[%s19714_s1 + $0x1f10] sm:$0xff]  ;;  %v13408_v14 = vcombine.high %v892_v59, %v896_v60  ;;  %v13407_v42 = vcombine.low %v892_v59, %v896_v60 }
 0x3f7   :  { %11036 = vmatprep.subr.bf16.mxu1 %v13440_v28  ;;  %v1024_v15 = vld [vmem:[%s19714_s1 + $0x1f30] sm:$0xff] }
 0x3f8   :  { %10996 = vmatpush1.bf16.msra.mxu0 %v13311_v54  ;;  %v13536_v52 = vcombine.high %v1020_v37, %v1024_v15  ;;  %v884_v28 = vld [vmem:[%s19714_s1 + $0x1ad0] sm:$0xff]  ;;  %v13535_v54 = vcombine.low %v1020_v37, %v1024_v15 }
 0x3f9   :  { %10997 = vmatprep.subr.bf16.mxu0 %v13432_v57  ;;  %v888_v2 = vld [vmem:[%s19714_s1 + $0x1af0] sm:$0xff] }
 0x3fa   :  { %11037 = vmatpush1.bf16.msra.mxu1 %v13439_v36  ;;  %v1012_v49 = vld [vmem:[%s19714_s1 + $0x1ed0] sm:$0xff]  ;;  %v13400_v36 = vcombine.high %v884_v28, %v888_v2  ;;  %v13399_v19 = vcombine.low %v884_v28, %v888_v2 }
 0x3fb   :  { %11038 = vmatprep.subr.bf16.mxu1 %v13560_v46  ;;  %v1016_v48 = vld [vmem:[%s19714_s1 + $0x1ef0] sm:$0xff] }
 0x3fc   :  { %10998 = vmatpush2.bf16.msra.mxu0 %v13431_v7  ;;  %v13528_v57 = vcombine.high %v1012_v49, %v1016_v48  ;;  %v876_v46 = vld [vmem:[%s19714_s1 + $0x1a90] sm:$0xff]  ;;  %v13527_v7 = vcombine.low %v1012_v49, %v1016_v48 }
 0x3fd   :  { %10999 = vmatprep.subr.bf16.mxu0 %v13424_v35  ;;  %v880_v62 = vld [vmem:[%s19714_s1 + $0x1ab0] sm:$0xff] }
 0x3fe   :  { %11039 = vmatpush2.bf16.msra.mxu1 %v13559_v51  ;;  %v1004_v50 = vld [vmem:[%s19714_s1 + $0x1e90] sm:$0xff]  ;;  %v13392_v51 = vcombine.high %v876_v46, %v880_v62  ;;  %v13391_v61 = vcombine.low %v876_v46, %v880_v62  ;;  %v1618_v46 = vsub.s32 5, %v14464_v43 }
 0x3ff   :  { %11040 = vmatprep.subr.bf16.mxu1 %v13552_v8  ;;  %v1008_v0 = vld [vmem:[%s19714_s1 + $0x1eb0] sm:$0xff] }
 0x400   :  { %11000 = vmatpush2.bf16.msra.mxu0 %v13423_v53  ;;  %v13520_v35 = vcombine.high %v1004_v50, %v1008_v0  ;;  %v868_v8 = vld [vmem:[%s19714_s1 + $0x1a50] sm:$0xff]  ;;  %v13519_v53 = vcombine.low %v1004_v50, %v1008_v0 }
 0x401   :  { %11001 = vmatprep.subr.bf16.mxu0 %v13416_v1  ;;  %v872_v12 = vld [vmem:[%s19714_s1 + $0x1a70] sm:$0xff] }
 0x402   :  { %11041 = vmatpush2.bf16.msra.mxu1 %v13551_v25  ;;  %v996_v38 = vld [vmem:[%s19714_s1 + $0x1e50] sm:$0xff]  ;;  %v13384_v25 = vcombine.high %v868_v8, %v872_v12  ;;  %v13383_v15 = vcombine.low %v868_v8, %v872_v12 }
 0x403   :  { %11042 = vmatprep.subr.bf16.mxu1 %v13544_v6  ;;  %v1000_v16 = vld [vmem:[%s19714_s1 + $0x1e70] sm:$0xff] }
 0x404   :  { %11002 = vmatpush2.bf16.msra.mxu0 %v13415_v34  ;;  %v13512_v1 = vcombine.high %v996_v38, %v1000_v16  ;;  %v860_v6 = vld [vmem:[%s19714_s1 + $0x1a10] sm:$0xff]  ;;  %v13511_v34 = vcombine.low %v996_v38, %v1000_v16 }
 0x405   :  { %11003 = vmatprep.subr.bf16.mxu0 %v13408_v14  ;;  %v864_v59 = vld [vmem:[%s19714_s1 + $0x1a30] sm:$0xff] }
 0x406   :  { %11043 = vmatpush2.bf16.msra.mxu1 %v13543_v33  ;;  %v988_v60 = vld [vmem:[%s19714_s1 + $0x1e10] sm:$0xff]  ;;  %v13376_v33 = vcombine.high %v860_v6, %v864_v59  ;;  %v13375_v48 = vcombine.low %v860_v6, %v864_v59 }
 0x407   :  { %11044 = vmatprep.subr.bf16.mxu1 %v13536_v52  ;;  %v992_v37 = vld [vmem:[%s19714_s1 + $0x1e30] sm:$0xff] }
 0x408   :  { %11004 = vmatpush2.bf16.msra.mxu0 %v13407_v42  ;;  %v13504_v14 = vcombine.high %v988_v60, %v992_v37  ;;  %v1108_v52 = vld [vmem:[%s19714_s1 + $0x21d0] sm:$0xff]  ;;  %v1614_v42 = vsub.s32 4, %v14464_v43 }
 0x409   :  { %11005 = vmatprep.subr.bf16.mxu0 %v13400_v36  ;;  %v1112_v28 = vld [vmem:[%s19714_s1 + $0x21f0] sm:$0xff] }
 0x40a   :  { %11045 = vmatpush2.bf16.msra.mxu1 %v13535_v54  ;;  %v1236_v2 = vld [vmem:[%s19714_s1 + $0x25d0] sm:$0xff]  ;;  %v13503_v54 = vcombine.low %v988_v60, %v992_v37  ;;  %v13624_v36 = vcombine.high %v1108_v52, %v1112_v28 }
 0x40b   :  { %11046 = vmatprep.subr.bf16.mxu1 %v13528_v57  ;;  %v1240_v49 = vld [vmem:[%s19714_s1 + $0x25f0] sm:$0xff] }
 0x40c   :  { %11006 = vmatpush2.bf16.msra.mxu0 %v13399_v19  ;;  %v13752_v57 = vcombine.high %v1236_v2, %v1240_v49  ;;  %v1100_v62 = vld [vmem:[%s19714_s1 + $0x2190] sm:$0xff]  ;;  %v13751_v8 = vcombine.low %v1236_v2, %v1240_v49 }
 0x40d   :  { %11007 = vmatprep.subr.bf16.mxu0 %v13392_v51  ;;  %v1104_v50 = vld [vmem:[%s19714_s1 + $0x21b0] sm:$0xff] }
 0x40e   :  { %11047 = vmatpush2.bf16.msra.mxu1 %v13527_v7  ;;  %v1228_v0 = vld [vmem:[%s19714_s1 + $0x2590] sm:$0xff]  ;;  %v14340_v7 = vld [vmem:[%s19715_s2] sm:$0xff]  ;;  %v13616_v12 = vcombine.high %v1100_v62, %v1104_v50  ;;  %v13615_v37 = vcombine.low %v1100_v62, %v1104_v50 }
 0x40f   :  { %11048 = vmatprep.subr.bf16.mxu1 %v13520_v35  ;;  %v1232_v19 = vld [vmem:[%s19714_s1 + $0x25b0] sm:$0xff]  ;;  %v1615_v51 = vrot.slane %v14340_v7, %v1614_v42  ;;  %v13623_v35 = vcombine.low %v1108_v52, %v1112_v28  ;;  %v1619_v38 = vrot.slane %v14340_v7, %v1618_v46 }
 0x410   :  { %11008 = vmatpush2.bf16.msra.mxu0 %v13391_v61  ;;  %v13744_v16 = vcombine.high %v1228_v0, %v1232_v19  ;;  %v1092_v61 = vld [vmem:[%s19714_s1 + $0x2150] sm:$0xff] }
 0x411   :  { %11009 = vmatprep.subr.bf16.mxu0 %v13384_v25  ;;  %v1224_v6 = vld [vmem:[%s19714_s1 + $0x2570] sm:$0xff] }
 0x412   :  { %11049 = vmatpush2.bf16.msra.mxu1 %v13519_v53  ;;  %v1096_v53 = vld [vmem:[%s19714_s1 + $0x2170] sm:$0xff] }
 0x413   :  { %11050 = vmatprep.subr.bf16.mxu1 %v13512_v1  ;;  %v1220_v1 = vld [vmem:[%s19714_s1 + $0x2550] sm:$0xff]  ;;  %v13607_v62 = vcombine.low %v1092_v61, %v1096_v53 }
 0x414   :  { %11010 = vmatpush2.bf16.msra.mxu0 %v13383_v15  ;;  %v13736_v2 = vcombine.high %v1220_v1, %v1224_v6  ;;  %v1084_v49 = vld [vmem:[%s19714_s1 + $0x2110] sm:$0xff] }
 0x415   :  { %11011 = vmatprep.subr.bf16.mxu0 %v13376_v33  ;;  %v13608_v33 = vcombine.high %v1092_v61, %v1096_v53 }
 0x416   :  { %11051 = vmatpush2.bf16.msra.mxu1 %v13511_v34  ;;  %v13743_v34 = vcombine.low %v1228_v0, %v1232_v19  ;;  %v13735_v0 = vcombine.low %v1220_v1, %v1224_v6  ;;  %v1068_v1 = vld [vmem:[%s19714_s1 + $0x2090] sm:$0xff] }
 0x417   :  { %11052 = vmatprep.subr.bf16.mxu1 %v13504_v14  ;;  %v1072_v6 = vld [vmem:[%s19714_s1 + $0x20b0] sm:$0xff] }
 0x418   :  { %11012 = vmatpush2.bf16.msra.mxu0 %v13375_v48  ;;  %v1088_v48 = vld [vmem:[%s19714_s1 + $0x2130] sm:$0xff] }
 0x419   :  { %11063 = vmatprep.subr.bf16.mxu0 %v13624_v36  ;;  %v1216_v36 = vld [vmem:[%s19714_s1 + $0x2530] sm:$0xff]  ;;  %v13600_v19 = vcombine.high %v1084_v49, %v1088_v48 }
 0x41a   :  { %11053 = vmatpush2.bf16.msra.mxu1 %v13503_v54  ;;  %v1212_v54 = vld [vmem:[%s19714_s1 + $0x2510] sm:$0xff] }
 0x41b   :  { %11104 = vmatprep.subr.bf16.mxu1 %v13752_v57  ;;  %v10769_v25 = vpop.f32.mrf.mxu0  ;;  %11014 = vmatmul.mubr.bf16.vlgmr.msra.gmra.mxu0 %v15299_v11  ;;  %v13727_v61 = vcombine.low %v1212_v54, %v1216_v36 }
 0x41c   :  { %v10770_v59 = vadd.f32 %v10769_v25, %v1615_v51  ;;  %11064 = vmatpush1.bf16.msra.mxu0 %v13623_v35  ;;  %11095 = vmatprep.mubr.bf16.mxu0 %v15318_v23  ;;  %v13728_v51 = vcombine.high %v1212_v54, %v1216_v36  ;;  %v1076_v35 = vld [vmem:[%s19714_s1 + $0x20d0] sm:$0xff] }
 0x41d   :  { %v10810_v60 = vpop.f32.mrf.mxu1  ;;  %11055 = vmatmul.mubr.bf16.vlgmr.msra.gmra.mxu1 %v15322_v26  ;;  %v10771_v15 = vpop.f32.mrf.mxu0  ;;  %11065 = vmatprep.subr.bf16.mxu0 %v13616_v12  ;;  %v1204_v12 = vld [vmem:[%s19714_s1 + $0x24d0] sm:$0xff] }
 0x41e   :  { %11105 = vmatpush1.bf16.msra.mxu1 %v13751_v8  ;;  %v17864_v14 = vadd.f32 %v10810_v60, %v10770_v59  ;;  %v10772_v52 = vadd.f32 %v10771_v15, %v1619_v38  ;;  %11136 = vmatprep.mubr.bf16.mxu1 %v15339_v41  ;;  %v1080_v8 = vld [vmem:[%s19714_s1 + $0x20f0] sm:$0xff] }
 0x41f   :  { %v10812_v28 = vpop.f32.mrf.mxu1  ;;  %11106 = vmatprep.subr.bf16.mxu1 %v13744_v16  ;;  %v10773_v42 = vpop.f32.mrf.mxu0  ;;  %v1208_v38 = vld [vmem:[%s19714_s1 + $0x24f0] sm:$0xff]  ;;  %v13599_v16 = vcombine.low %v1084_v49, %v1088_v48  ;;  %v13592_v53 = vcombine.high %v1076_v35, %v1080_v8  ;;  %v13583_v48 = vcombine.low %v1068_v1, %v1072_v6 }
 0x420   :  { %v17880_v57 = vadd.f32 %v10812_v28, %v10772_v52  ;;  %11066 = vmatpush1.bf16.msra.mxu0 %v13615_v37  ;;  %v13720_v25 = vcombine.high %v1204_v12, %v1208_v38  ;;  %v1196_v59 = vld [vmem:[%s19714_s1 + $0x2490] sm:$0xff]  ;;  %v13591_v37 = vcombine.low %v1076_v35, %v1080_v8  ;;  %v13719_v15 = vcombine.low %v1204_v12, %v1208_v38 }
 0x421   :  { %v10814_v46 = vpop.f32.mrf.mxu1  ;;  %v10774_v50 = vpop.f32.mrf.mxu0  ;;  %11067 = vmatprep.subr.bf16.mxu0 %v13608_v33  ;;  %v1200_v60 = vld [vmem:[%s19714_s1 + $0x24b0] sm:$0xff] }
 0x422   :  { %11107 = vmatpush1.bf16.msra.mxu1 %v13743_v34  ;;  %v13584_v34 = vcombine.high %v1068_v1, %v1072_v6  ;;  %v13712_v33 = vcombine.high %v1196_v59, %v1200_v60  ;;  %v1060_v52 = vld [vmem:[%s19714_s1 + $0x2050] sm:$0xff]  ;;  %v13711_v42 = vcombine.low %v1196_v59, %v1200_v60 }
 0x423   :  { %v10815_v7 = vpop.f32.mrf.mxu1  ;;  %11108 = vmatprep.subr.bf16.mxu1 %v13736_v2  ;;  %v1064_v28 = vld [vmem:[%s19714_s1 + $0x2070] sm:$0xff] }
 0x424   :  { %11068 = vmatpush1.bf16.msra.mxu0 %v13607_v62  ;;  %v1188_v2 = vld [vmem:[%s19714_s1 + $0x2450] sm:$0xff]  ;;  %v13576_v54 = vcombine.high %v1060_v52, %v1064_v28 }
 0x425   :  { %11069 = vmatprep.subr.bf16.mxu0 %v13600_v19  ;;  %v1192_v49 = vld [vmem:[%s19714_s1 + $0x2470] sm:$0xff]  ;;  %v13575_v19 = vcombine.low %v1060_v52, %v1064_v28 }
 0x426   :  { %11109 = vmatpush1.bf16.msra.mxu1 %v13735_v0  ;;  %v13704_v36 = vcombine.high %v1188_v2, %v1192_v49  ;;  %v1052_v46 = vld [vmem:[%s19714_s1 + $0x2010] sm:$0xff]  ;;  %v13703_v7 = vcombine.low %v1188_v2, %v1192_v49 }
 0x427   :  { %11110 = vmatprep.subr.bf16.mxu1 %v13728_v51  ;;  %v1056_v62 = vld [vmem:[%s19714_s1 + $0x2030] sm:$0xff] }
 0x428   :  { %11070 = vmatpush1.bf16.msra.mxu0 %v13599_v16  ;;  %v1180_v50 = vld [vmem:[%s19714_s1 + $0x2410] sm:$0xff]  ;;  %v13568_v51 = vcombine.high %v1052_v46, %v1056_v62 }
 0x429   :  { %11071 = vmatprep.subr.bf16.mxu0 %v13592_v53  ;;  %v1184_v0 = vld [vmem:[%s19714_s1 + $0x2430] sm:$0xff] }
 0x42a   :  { %11111 = vmatpush1.bf16.msra.mxu1 %v13727_v61  ;;  %v13696_v35 = vcombine.high %v1180_v50, %v1184_v0  ;;  %v1172_v8 = vld [vmem:[%s19714_s1 + $0x23d0] sm:$0xff]  ;;  %v13567_v61 = vcombine.low %v1052_v46, %v1056_v62  ;;  %v13695_v53 = vcombine.low %v1180_v50, %v1184_v0 }
 0x42b   :  { %11112 = vmatprep.subr.bf16.mxu1 %v13720_v25  ;;  %v1176_v12 = vld [vmem:[%s19714_s1 + $0x23f0] sm:$0xff] }
 0x42c   :  { %11072 = vmatpush1.bf16.msra.mxu0 %v13591_v37  ;;  %v1300_v38 = vld [vmem:[%s19714_s1 + $0x27d0] sm:$0xff]  ;;  %v13688_v25 = vcombine.high %v1172_v8, %v1176_v12 }
 0x42d   :  { %11073 = vmatprep.subr.bf16.mxu0 %v13584_v34  ;;  %v1304_v16 = vld [vmem:[%s19714_s1 + $0x27f0] sm:$0xff] }
 0x42e   :  { %11113 = vmatpush1.bf16.msra.mxu1 %v13719_v15  ;;  %v13816_v1 = vcombine.high %v1300_v38, %v1304_v16  ;;  %v1164_v6 = vld [vmem:[%s19714_s1 + $0x2390] sm:$0xff]  ;;  %v13687_v15 = vcombine.low %v1172_v8, %v1176_v12  ;;  %v13815_v34 = vcombine.low %v1300_v38, %v1304_v16 }
 0x42f   :  { %11114 = vmatprep.subr.bf16.mxu1 %v13712_v33  ;;  %v1168_v59 = vld [vmem:[%s19714_s1 + $0x23b0] sm:$0xff] }
 0x430   :  { %11074 = vmatpush1.bf16.msra.mxu0 %v13583_v48  ;;  %v1292_v60 = vld [vmem:[%s19714_s1 + $0x2790] sm:$0xff]  ;;  %v13680_v33 = vcombine.high %v1164_v6, %v1168_v59 }
 0x431   :  { %11075 = vmatprep.subr.bf16.mxu0 %v13576_v54  ;;  %v1296_v37 = vld [vmem:[%s19714_s1 + $0x27b0] sm:$0xff] }
 0x432   :  { %11115 = vmatpush1.bf16.msra.mxu1 %v13711_v42  ;;  %v13808_v52 = vcombine.high %v1292_v60, %v1296_v37  ;;  %v1156_v28 = vld [vmem:[%s19714_s1 + $0x2350] sm:$0xff]  ;;  %v13679_v42 = vcombine.low %v1164_v6, %v1168_v59  ;;  %v13807_v54 = vcombine.low %v1292_v60, %v1296_v37 }
 0x433   :  { %11116 = vmatprep.subr.bf16.mxu1 %v13704_v36  ;;  %v1160_v2 = vld [vmem:[%s19714_s1 + $0x2370] sm:$0xff] }
 0x434   :  { %11076 = vmatpush1.bf16.msra.mxu0 %v13575_v19  ;;  %v1284_v49 = vld [vmem:[%s19714_s1 + $0x2750] sm:$0xff]  ;;  %v13672_v36 = vcombine.high %v1156_v28, %v1160_v2 }
 0x435   :  { %11077 = vmatprep.subr.bf16.mxu0 %v13568_v51  ;;  %v1288_v48 = vld [vmem:[%s19714_s1 + $0x2770] sm:$0xff] }
 0x436   :  { %11117 = vmatpush1.bf16.msra.mxu1 %v13703_v7  ;;  %v13800_v46 = vcombine.high %v1284_v49, %v1288_v48  ;;  %v1148_v62 = vld [vmem:[%s19714_s1 + $0x2310] sm:$0xff]  ;;  %v13671_v7 = vcombine.low %v1156_v28, %v1160_v2  ;;  %v13799_v51 = vcombine.low %v1284_v49, %v1288_v48 }
 0x437   :  { %11118 = vmatprep.subr.bf16.mxu1 %v13696_v35  ;;  %v1152_v50 = vld [vmem:[%s19714_s1 + $0x2330] sm:$0xff] }
 0x438   :  { %11078 = vmatpush1.bf16.msra.mxu0 %v13567_v61  ;;  %v1276_v0 = vld [vmem:[%s19714_s1 + $0x2710] sm:$0xff]  ;;  %v13664_v35 = vcombine.high %v1148_v62, %v1152_v50 }
 0x439   :  { %11079 = vmatprep.subr.bf16.mxu0 %v13688_v25  ;;  %v1280_v19 = vld [vmem:[%s19714_s1 + $0x2730] sm:$0xff] }
 0x43a   :  { %11119 = vmatpush1.bf16.msra.mxu1 %v13695_v53  ;;  %v13792_v8 = vcombine.high %v1276_v0, %v1280_v19  ;;  %v1140_v12 = vld [vmem:[%s19714_s1 + $0x22d0] sm:$0xff]  ;;  %v13663_v53 = vcombine.low %v1148_v62, %v1152_v50  ;;  %v13791_v25 = vcombine.low %v1276_v0, %v1280_v19 }
 0x43b   :  { %11120 = vmatprep.subr.bf16.mxu1 %v13816_v1  ;;  %v1144_v38 = vld [vmem:[%s19714_s1 + $0x22f0] sm:$0xff] }
 0x43c   :  { %11080 = vmatpush2.bf16.msra.mxu0 %v13687_v15  ;;  %v1268_v16 = vld [vmem:[%s19714_s1 + $0x26d0] sm:$0xff]  ;;  %v13656_v1 = vcombine.high %v1140_v12, %v1144_v38 }
 0x43d   :  { %11081 = vmatprep.subr.bf16.mxu0 %v13680_v33  ;;  %v1272_v61 = vld [vmem:[%s19714_s1 + $0x26f0] sm:$0xff] }
 0x43e   :  { %11121 = vmatpush2.bf16.msra.mxu1 %v13815_v34  ;;  %v13784_v6 = vcombine.high %v1268_v16, %v1272_v61  ;;  %v1132_v59 = vld [vmem:[%s19714_s1 + $0x2290] sm:$0xff]  ;;  %v13655_v34 = vcombine.low %v1140_v12, %v1144_v38  ;;  %v13783_v33 = vcombine.low %v1268_v16, %v1272_v61 }
 0x43f   :  { %11122 = vmatprep.subr.bf16.mxu1 %v13808_v52  ;;  %v1136_v60 = vld [vmem:[%s19714_s1 + $0x22b0] sm:$0xff] }
 0x440   :  { %11082 = vmatpush2.bf16.msra.mxu0 %v13679_v42  ;;  %v1260_v37 = vld [vmem:[%s19714_s1 + $0x2690] sm:$0xff]  ;;  %v13648_v52 = vcombine.high %v1132_v59, %v1136_v60 }
 0x441   :  { %11083 = vmatprep.subr.bf16.mxu0 %v13672_v36  ;;  %v1264_v15 = vld [vmem:[%s19714_s1 + $0x26b0] sm:$0xff] }
 0x442   :  { %11123 = vmatpush2.bf16.msra.mxu1 %v13807_v54  ;;  %v13776_v28 = vcombine.high %v1260_v37, %v1264_v15  ;;  %v1124_v2 = vld [vmem:[%s19714_s1 + $0x2250] sm:$0xff]  ;;  %v13647_v54 = vcombine.low %v1132_v59, %v1136_v60  ;;  %v13775_v36 = vcombine.low %v1260_v37, %v1264_v15 }
 0x443   :  { %11124 = vmatprep.subr.bf16.mxu1 %v13800_v46  ;;  %v1128_v49 = vld [vmem:[%s19714_s1 + $0x2270] sm:$0xff] }
 0x444   :  { %11084 = vmatpush2.bf16.msra.mxu0 %v13671_v7  ;;  %v1252_v48 = vld [vmem:[%s19714_s1 + $0x2650] sm:$0xff]  ;;  %v13640_v46 = vcombine.high %v1124_v2, %v1128_v49 }
 0x445   :  { %11085 = vmatprep.subr.bf16.mxu0 %v13664_v35  ;;  %v1256_v42 = vld [vmem:[%s19714_s1 + $0x2670] sm:$0xff] }
 0x446   :  { %11125 = vmatpush2.bf16.msra.mxu1 %v13799_v51  ;;  %v13768_v62 = vcombine.high %v1252_v48, %v1256_v42  ;;  %v1116_v50 = vld [vmem:[%s19714_s1 + $0x2210] sm:$0xff]  ;;  %v13639_v51 = vcombine.low %v1124_v2, %v1128_v49  ;;  %v13767_v35 = vcombine.low %v1252_v48, %v1256_v42 }
 0x447   :  { %11126 = vmatprep.subr.bf16.mxu1 %v13792_v8  ;;  %v1120_v0 = vld [vmem:[%s19714_s1 + $0x2230] sm:$0xff] }
 0x448   :  { %11086 = vmatpush2.bf16.msra.mxu0 %v13663_v53  ;;  %v1244_v19 = vld [vmem:[%s19714_s1 + $0x2610] sm:$0xff]  ;;  %v13632_v8 = vcombine.high %v1116_v50, %v1120_v0 }
 0x449   :  { %11087 = vmatprep.subr.bf16.mxu0 %v13656_v1  ;;  %v1248_v7 = vld [vmem:[%s19714_s1 + $0x2630] sm:$0xff] }
 0x44a   :  { %11127 = vmatpush2.bf16.msra.mxu1 %v13791_v25  ;;  %v13760_v12 = vcombine.high %v1244_v19, %v1248_v7  ;;  %v1364_v38 = vld [vmem:[%s19714_s1 + $0x29d0] sm:$0xff]  ;;  %v13631_v25 = vcombine.low %v1116_v50, %v1120_v0  ;;  %v13759_v1 = vcombine.low %v1244_v19, %v1248_v7 }
 0x44b   :  { %11128 = vmatprep.subr.bf16.mxu1 %v13784_v6  ;;  %v1368_v16 = vld [vmem:[%s19714_s1 + $0x29f0] sm:$0xff] }
 0x44c   :  { %11088 = vmatpush2.bf16.msra.mxu0 %v13655_v34  ;;  %v1492_v61 = vld [vmem:[%s19714_s1 + $0x2dd0] sm:$0xff]  ;;  %v13880_v6 = vcombine.high %v1364_v38, %v1368_v16 }
 0x44d   :  { %11089 = vmatprep.subr.bf16.mxu0 %v13648_v52  ;;  %v1496_v53 = vld [vmem:[%s19714_s1 + $0x2df0] sm:$0xff] }
 0x44e   :  { %11129 = vmatpush2.bf16.msra.mxu1 %v13783_v33  ;;  %v14008_v59 = vcombine.high %v1492_v61, %v1496_v53  ;;  %v1356_v60 = vld [vmem:[%s19714_s1 + $0x2990] sm:$0xff]  ;;  %v13879_v33 = vcombine.low %v1364_v38, %v1368_v16  ;;  %v14007_v52 = vcombine.low %v1492_v61, %v1496_v53 }
 0x44f   :  { %11130 = vmatprep.subr.bf16.mxu1 %v13776_v28  ;;  %v1360_v37 = vld [vmem:[%s19714_s1 + $0x29b0] sm:$0xff] }
 0x450   :  { %11090 = vmatpush2.bf16.msra.mxu0 %v13647_v54  ;;  %v1484_v15 = vld [vmem:[%s19714_s1 + $0x2d90] sm:$0xff]  ;;  %v13872_v28 = vcombine.high %v1356_v60, %v1360_v37  ;;  %v13871_v50 = vcombine.low %v1356_v60, %v1360_v37 }
 0x451   :  { %11091 = vmatprep.subr.bf16.mxu0 %v13640_v46  ;;  %v1488_v34 = vld [vmem:[%s19714_s1 + $0x2db0] sm:$0xff] }
 0x452   :  { %11131 = vmatpush2.bf16.msra.mxu1 %v13775_v36  ;;  %v14000_v2 = vcombine.high %v1484_v15, %v1488_v34  ;;  %v1348_v49 = vld [vmem:[%s19714_s1 + $0x2950] sm:$0xff]  ;;  %v13999_v19 = vcombine.low %v1484_v15, %v1488_v34 }
 0x453   :  { %11132 = vmatprep.subr.bf16.mxu1 %v13768_v62  ;;  %v1352_v48 = vld [vmem:[%s19714_s1 + $0x2970] sm:$0xff] }
 0x454   :  { %11092 = vmatpush2.bf16.msra.mxu0 %v13639_v51  ;;  %v1476_v54 = vld [vmem:[%s19714_s1 + $0x2d50] sm:$0xff]  ;;  %v13864_v7 = vcombine.high %v1348_v49, %v1352_v48 }
 0x455   :  { %11093 = vmatprep.subr.bf16.mxu0 %v13632_v8  ;;  %v1480_v36 = vld [vmem:[%s19714_s1 + $0x2d70] sm:$0xff] }
 0x456   :  { %11133 = vmatpush2.bf16.msra.mxu1 %v13767_v35  ;;  %v1344_v38 = vld [vmem:[%s19714_s1 + $0x2930] sm:$0xff] }
 0x457   :  { %11134 = vmatprep.subr.bf16.mxu1 %v13760_v12  ;;  %v13992_v12 = vcombine.high %v1476_v54, %v1480_v36  ;;  %v1468_v61 = vld [vmem:[%s19714_s1 + $0x2d10] sm:$0xff] }
 0x458   :  { %11094 = vmatpush2.bf16.msra.mxu0 %v13631_v25  ;;  %v1332_v34 = vld [vmem:[%s19714_s1 + $0x28d0] sm:$0xff] }
 0x459   :  { %11145 = vmatprep.subr.bf16.mxu0 %v13880_v6 }
 0x45a   :  { %11135 = vmatpush2.bf16.msra.mxu1 %v13759_v1  ;;  %v13863_v1 = vcombine.low %v1348_v49, %v1352_v48 }
 0x45b   :  { %11186 = vmatprep.subr.bf16.mxu1 %v14008_v59  ;;  %v10851_v42 = vpop.f32.mrf.mxu0  ;;  %11096 = vmatmul.mubr.bf16.vlgmr.msra.gmra.mxu0 %v15527_v10  ;;  %v13991_v59 = vcombine.low %v1476_v54, %v1480_v36  ;;  %v1324_v54 = vld [vmem:[%s19714_s1 + $0x2890] sm:$0xff] }
 0x45c   :  { %v10852_v46 = vadd.f32 %v10851_v42, %v17864_v14  ;;  %11146 = vmatpush1.bf16.msra.mxu0 %v13879_v33  ;;  %v1340_v14 = vld [vmem:[%s19714_s1 + $0x2910] sm:$0xff]  ;;  %11177 = vmatprep.mubr.bf16.mxu0 %v15542_v4 }
 0x45d   :  { %v10892_v62 = vpop.f32.mrf.mxu1  ;;  %11137 = vmatmul.mubr.bf16.vlgmr.msra.gmra.mxu1 %v15546_v5  ;;  %v10853_v0 = vpop.f32.mrf.mxu0  ;;  %11147 = vmatprep.subr.bf16.mxu0 %v13872_v28  ;;  %v13856_v60 = vcombine.high %v1340_v14, %v1344_v38  ;;  %v1336_v33 = vld [vmem:[%s19714_s1 + $0x28f0] sm:$0xff] }
 0x45e   :  { %11187 = vmatpush1.bf16.msra.mxu1 %v14007_v52  ;;  %v18065_v51 = vadd.f32 %v10892_v62, %v10852_v46  ;;  %v10854_v35 = vadd.f32 %v10853_v0, %v17880_v57  ;;  %v1472_v57 = vld [vmem:[%s19714_s1 + $0x2d30] sm:$0xff]  ;;  %11218 = vmatprep.mubr.bf16.mxu1 %v15563_v18  ;;  %v13848_v48 = vcombine.high %v1332_v34, %v1336_v33 }
 0x45f   :  { %v10894_v8 = vpop.f32.mrf.mxu1  ;;  %11188 = vmatprep.subr.bf16.mxu1 %v14000_v2  ;;  %v10855_v16 = vpop.f32.mrf.mxu0  ;;  %v13984_v15 = vcombine.high %v1468_v61, %v1472_v57  ;;  %v1460_v52 = vld [vmem:[%s19714_s1 + $0x2cd0] sm:$0xff]  ;;  %v13855_v2 = vcombine.low %v1340_v14, %v1344_v38  ;;  %v13983_v49 = vcombine.low %v1468_v61, %v1472_v57 }
 0x460   :  { %v18082_v53 = vadd.f32 %v10894_v8, %v10854_v35  ;;  %11148 = vmatpush1.bf16.msra.mxu0 %v13871_v50  ;;  %v1464_v28 = vld [vmem:[%s19714_s1 + $0x2cf0] sm:$0xff]  ;;  %v13847_v50 = vcombine.low %v1332_v34, %v1336_v33 }
 0x461   :  { %v10896_v25 = vpop.f32.mrf.mxu1  ;;  %v10856_v6 = vpop.f32.mrf.mxu0  ;;  %11149 = vmatprep.subr.bf16.mxu0 %v13864_v7  ;;  %v13976_v42 = vcombine.high %v1460_v52, %v1464_v28  ;;  %v1328_v36 = vld [vmem:[%s19714_s1 + $0x28b0] sm:$0xff]  ;;  %v13975_v0 = vcombine.low %v1460_v52, %v1464_v28 }
 0x462   :  { %11189 = vmatpush1.bf16.msra.mxu1 %v13999_v19  ;;  %v1452_v46 = vld [vmem:[%s19714_s1 + $0x2c90] sm:$0xff]  ;;  %v13840_v19 = vcombine.high %v1324_v54, %v1328_v36  ;;  %v13839_v38 = vcombine.low %v1324_v54, %v1328_v36 }
 0x463   :  { %v10897_v37 = vpop.f32.mrf.mxu1  ;;  %11190 = vmatprep.subr.bf16.mxu1 %v13992_v12  ;;  %v1456_v62 = vld [vmem:[%s19714_s1 + $0x2cb0] sm:$0xff] }
 0x464   :  { %11150 = vmatpush1.bf16.msra.mxu0 %v13863_v1  ;;  %v13968_v7 = vcombine.high %v1452_v46, %v1456_v62  ;;  %v1316_v35 = vld [vmem:[%s19714_s1 + $0x2850] sm:$0xff]  ;;  %v13967_v16 = vcombine.low %v1452_v46, %v1456_v62 }
 0x465   :  { %11151 = vmatprep.subr.bf16.mxu0 %v13856_v60  ;;  %v1320_v8 = vld [vmem:[%s19714_s1 + $0x2870] sm:$0xff] }
 0x466   :  { %11191 = vmatpush1.bf16.msra.mxu1 %v13991_v59  ;;  %v1444_v12 = vld [vmem:[%s19714_s1 + $0x2c50] sm:$0xff]  ;;  %v13832_v61 = vcombine.high %v1316_v35, %v1320_v8  ;;  %v13831_v60 = vcombine.low %v1316_v35, %v1320_v8 }
 0x467   :  { %11192 = vmatprep.subr.bf16.mxu1 %v13984_v15  ;;  %v1448_v14 = vld [vmem:[%s19714_s1 + $0x2c70] sm:$0xff] }
 0x468   :  { %11152 = vmatpush1.bf16.msra.mxu0 %v13855_v2  ;;  %v13960_v57 = vcombine.high %v1444_v12, %v1448_v14  ;;  %v1308_v25 = vld [vmem:[%s19714_s1 + $0x2810] sm:$0xff]  ;;  %v13959_v37 = vcombine.low %v1444_v12, %v1448_v14 }
 0x469   :  { %11153 = vmatprep.subr.bf16.mxu0 %v13848_v48  ;;  %v1312_v1 = vld [vmem:[%s19714_s1 + $0x2830] sm:$0xff] }
 0x46a   :  { %11193 = vmatpush1.bf16.msra.mxu1 %v13983_v49  ;;  %v1436_v6 = vld [vmem:[%s19714_s1 + $0x2c10] sm:$0xff]  ;;  %v13824_v15 = vcombine.high %v1308_v25, %v1312_v1  ;;  %v13823_v49 = vcombine.low %v1308_v25, %v1312_v1 }
 0x46b   :  { %11194 = vmatprep.subr.bf16.mxu1 %v13976_v42  ;;  %v1440_v59 = vld [vmem:[%s19714_s1 + $0x2c30] sm:$0xff] }
 0x46c   :  { %11154 = vmatpush1.bf16.msra.mxu0 %v13847_v50  ;;  %v13952_v34 = vcombine.high %v1436_v6, %v1440_v59  ;;  %v1428_v33 = vld [vmem:[%s19714_s1 + $0x2bd0] sm:$0xff]  ;;  %v13951_v48 = vcombine.low %v1436_v6, %v1440_v59 }
 0x46d   :  { %11155 = vmatprep.subr.bf16.mxu0 %v13840_v19  ;;  %v1432_v52 = vld [vmem:[%s19714_s1 + $0x2bf0] sm:$0xff] }
 0x46e   :  { %11195 = vmatpush1.bf16.msra.mxu1 %v13975_v0  ;;  %v1556_v28 = vld [vmem:[%s19714_s1 + $0x2fd0] sm:$0xff]  ;;  %v13944_v42 = vcombine.high %v1428_v33, %v1432_v52  ;;  %v13943_v0 = vcombine.low %v1428_v33, %v1432_v52 }
 0x46f   :  { %11196 = vmatprep.subr.bf16.mxu1 %v13968_v7  ;;  %v1560_v2 = vld [vmem:[%s19714_s1 + $0x2ff0] sm:$0xff] }
 0x470   :  { %11156 = vmatpush1.bf16.msra.mxu0 %v13839_v38  ;;  %v14072_v54 = vcombine.high %v1556_v28, %v1560_v2  ;;  %v1420_v36 = vld [vmem:[%s19714_s1 + $0x2b90] sm:$0xff]  ;;  %v14071_v19 = vcombine.low %v1556_v28, %v1560_v2 }
 0x471   :  { %11157 = vmatprep.subr.bf16.mxu0 %v13832_v61  ;;  %v1424_v46 = vld [vmem:[%s19714_s1 + $0x2bb0] sm:$0xff] }
 0x472   :  { %11197 = vmatpush1.bf16.msra.mxu1 %v13967_v16  ;;  %v1548_v62 = vld [vmem:[%s19714_s1 + $0x2f90] sm:$0xff]  ;;  %v13936_v7 = vcombine.high %v1420_v36, %v1424_v46  ;;  %v13935_v16 = vcombine.low %v1420_v36, %v1424_v46 }
 0x473   :  { %11198 = vmatprep.subr.bf16.mxu1 %v13960_v57  ;;  %v1552_v50 = vld [vmem:[%s19714_s1 + $0x2fb0] sm:$0xff] }
 0x474   :  { %11158 = vmatpush1.bf16.msra.mxu0 %v13831_v60  ;;  %v14064_v35 = vcombine.high %v1548_v62, %v1552_v50  ;;  %v1412_v8 = vld [vmem:[%s19714_s1 + $0x2b50] sm:$0xff]  ;;  %v14063_v61 = vcombine.low %v1548_v62, %v1552_v50 }
 0x475   :  { %11159 = vmatprep.subr.bf16.mxu0 %v13824_v15  ;;  %v1416_v12 = vld [vmem:[%s19714_s1 + $0x2b70] sm:$0xff] }
 0x476   :  { %11199 = vmatpush1.bf16.msra.mxu1 %v13959_v37  ;;  %v1540_v14 = vld [vmem:[%s19714_s1 + $0x2f50] sm:$0xff]  ;;  %v13928_v57 = vcombine.high %v1412_v8, %v1416_v12  ;;  %v13927_v37 = vcombine.low %v1412_v8, %v1416_v12 }
 0x477   :  { %11200 = vmatprep.subr.bf16.mxu1 %v13952_v34  ;;  %v1544_v38 = vld [vmem:[%s19714_s1 + $0x2f70] sm:$0xff] }
 0x478   :  { %11160 = vmatpush1.bf16.msra.mxu0 %v13823_v49  ;;  %v14056_v25 = vcombine.high %v1540_v14, %v1544_v38  ;;  %v1404_v1 = vld [vmem:[%s19714_s1 + $0x2b10] sm:$0xff]  ;;  %v14055_v15 = vcombine.low %v1540_v14, %v1544_v38 }
 0x479   :  { %11161 = vmatprep.subr.bf16.mxu0 %v13944_v42  ;;  %v1408_v6 = vld [vmem:[%s19714_s1 + $0x2b30] sm:$0xff] }
 0x47a   :  { %11201 = vmatpush1.bf16.msra.mxu1 %v13951_v48  ;;  %v1532_v59 = vld [vmem:[%s19714_s1 + $0x2f10] sm:$0xff]  ;;  %v13920_v34 = vcombine.high %v1404_v1, %v1408_v6  ;;  %v13919_v48 = vcombine.low %v1404_v1, %v1408_v6 }
 0x47b   :  { %11202 = vmatprep.subr.bf16.mxu1 %v14072_v54  ;;  %v1536_v60 = vld [vmem:[%s19714_s1 + $0x2f30] sm:$0xff] }
 0x47c   :  { %11162 = vmatpush2.bf16.msra.mxu0 %v13943_v0  ;;  %v14048_v33 = vcombine.high %v1532_v59, %v1536_v60  ;;  %v1396_v52 = vld [vmem:[%s19714_s1 + $0x2ad0] sm:$0xff]  ;;  %v14047_v42 = vcombine.low %v1532_v59, %v1536_v60 }
 0x47d   :  { %11163 = vmatprep.subr.bf16.mxu0 %v13936_v7  ;;  %v1400_v28 = vld [vmem:[%s19714_s1 + $0x2af0] sm:$0xff] }
 0x47e   :  { %11203 = vmatpush2.bf16.msra.mxu1 %v14071_v19  ;;  %v1524_v2 = vld [vmem:[%s19714_s1 + $0x2ed0] sm:$0xff]  ;;  %v13912_v54 = vcombine.high %v1396_v52, %v1400_v28  ;;  %v13911_v19 = vcombine.low %v1396_v52, %v1400_v28 }
 0x47f   :  { %11204 = vmatprep.subr.bf16.mxu1 %v14064_v35  ;;  %v1528_v49 = vld [vmem:[%s19714_s1 + $0x2ef0] sm:$0xff] }
 0x480   :  { %11164 = vmatpush2.bf16.msra.mxu0 %v13935_v16  ;;  %v14040_v36 = vcombine.high %v1524_v2, %v1528_v49  ;;  %v1388_v46 = vld [vmem:[%s19714_s1 + $0x2a90] sm:$0xff]  ;;  %v14039_v7 = vcombine.low %v1524_v2, %v1528_v49  ;;  %v85_v49 = vld [vmem:[%s19714_s1 + $0x1d8] sm:$0xff] }
 0x481   :  { %11165 = vmatprep.subr.bf16.mxu0 %v13928_v57  ;;  %v1392_v62 = vld [vmem:[%s19714_s1 + $0x2ab0] sm:$0xff] }
 0x482   :  { %11205 = vmatpush2.bf16.msra.mxu1 %v14063_v61  ;;  %v1516_v50 = vld [vmem:[%s19714_s1 + $0x2e90] sm:$0xff]  ;;  %v13904_v35 = vcombine.high %v1388_v46, %v1392_v62  ;;  %v13903_v61 = vcombine.low %v1388_v46, %v1392_v62 }
 0x483   :  { %11206 = vmatprep.subr.bf16.mxu1 %v14056_v25  ;;  %v1520_v0 = vld [vmem:[%s19714_s1 + $0x2eb0] sm:$0xff] }
 0x484   :  { %11166 = vmatpush2.bf16.msra.mxu0 %v13927_v37  ;;  %v14032_v8 = vcombine.high %v1516_v50, %v1520_v0  ;;  %v1380_v12 = vld [vmem:[%s19714_s1 + $0x2a50] sm:$0xff]  ;;  %v14031_v57 = vcombine.low %v1516_v50, %v1520_v0  ;;  %v77_v0 = vld [vmem:[%s19714_s1 + $0x198] sm:$0xff] }
 0x485   :  { %11167 = vmatprep.subr.bf16.mxu0 %v13920_v34  ;;  %v1384_v14 = vld [vmem:[%s19714_s1 + $0x2a70] sm:$0xff] }
 0x486   :  { %11207 = vmatpush2.bf16.msra.mxu1 %v14055_v15  ;;  %v1508_v38 = vld [vmem:[%s19714_s1 + $0x2e50] sm:$0xff]  ;;  %v13896_v25 = vcombine.high %v1380_v12, %v1384_v14  ;;  %v13895_v15 = vcombine.low %v1380_v12, %v1384_v14 }
 0x487   :  { %11208 = vmatprep.subr.bf16.mxu1 %v14048_v33  ;;  %v1512_v16 = vld [vmem:[%s19714_s1 + $0x2e70] sm:$0xff] }
 0x488   :  { %11168 = vmatpush2.bf16.msra.mxu0 %v13919_v48  ;;  %v14024_v1 = vcombine.high %v1508_v38, %v1512_v16  ;;  %v1372_v6 = vld [vmem:[%s19714_s1 + $0x2a10] sm:$0xff]  ;;  %v14023_v34 = vcombine.low %v1508_v38, %v1512_v16  ;;  %v89_v48 = vld [vmem:[%s19714_s1 + $0x1f8] sm:$0xff] }
 0x489   :  { %11169 = vmatprep.subr.bf16.mxu0 %v13912_v54  ;;  %v1376_v59 = vld [vmem:[%s19714_s1 + $0x2a30] sm:$0xff]  ;;  %v12602_v46 = vcombine.high %v85_v49, %v89_v48 }
 0x48a   :  { %11209 = vmatpush2.bf16.msra.mxu1 %v14047_v42  ;;  %v1500_v60 = vld [vmem:[%s19714_s1 + $0x2e10] sm:$0xff]  ;;  %v13888_v33 = vcombine.high %v1372_v6, %v1376_v59  ;;  %v13887_v42 = vcombine.low %v1372_v6, %v1376_v59 }
 0x48b   :  { %11210 = vmatprep.subr.bf16.mxu1 %v14040_v36  ;;  %v1504_v37 = vld [vmem:[%s19714_s1 + $0x2e30] sm:$0xff] }
 0x48c   :  { %11170 = vmatpush2.bf16.msra.mxu0 %v13911_v19  ;;  %v14016_v52 = vcombine.high %v1500_v60, %v1504_v37  ;;  %v1588_v28 = vld [vmem:[%s19714_s1 + $0x30d0] sm:$0xff]  ;;  %v14015_v54 = vcombine.low %v1500_v60, %v1504_v37  ;;  %v81_v19 = vld [vmem:[%s19714_s1 + $0x1b8] sm:$0xff] }
 0x48d   :  { %11171 = vmatprep.subr.bf16.mxu0 %v13904_v35  ;;  %v1592_v2 = vld [vmem:[%s19714_s1 + $0x30f0] sm:$0xff]  ;;  %v12601_v35 = vcombine.low %v85_v49, %v89_v48  ;;  %v12594_v12 = vcombine.high %v77_v0, %v81_v19  ;;  %v12593_v60 = vcombine.low %v77_v0, %v81_v19  ;;  %v61_v49 = vld [vmem:[%s19714_s1 + $0x118] sm:$0xff] }
 0x48e   :  { %11211 = vmatpush2.bf16.msra.mxu1 %v14039_v7  ;;  %v14104_v36 = vcombine.high %v1588_v28, %v1592_v2  ;;  %v1580_v62 = vld [vmem:[%s19714_s1 + $0x3090] sm:$0xff]  ;;  %v14103_v7 = vcombine.low %v1588_v28, %v1592_v2  ;;  %v213_v19 = vld [vmem:[%s19714_s1 + $0x5d8] sm:$0xff] }
 0x48f   :  { %11212 = vmatprep.subr.bf16.mxu1 %v14032_v8  ;;  %v1584_v50 = vld [vmem:[%s19714_s1 + $0x30b0] sm:$0xff] }
 0x490   :  { %11172 = vmatpush2.bf16.msra.mxu0 %v13903_v61  ;;  %v14096_v8 = vcombine.high %v1580_v62, %v1584_v50  ;;  %v1572_v14 = vld [vmem:[%s19714_s1 + $0x3050] sm:$0xff]  ;;  %v69_v61 = vld [vmem:[%s19714_s1 + $0x158] sm:$0xff]  ;;  %v14095_v6 = vcombine.low %v1580_v62, %v1584_v50 }
 0x491   :  { %11173 = vmatprep.subr.bf16.mxu0 %v13896_v25  ;;  %v1576_v38 = vld [vmem:[%s19714_s1 + $0x3070] sm:$0xff] }
 0x492   :  { %11213 = vmatpush2.bf16.msra.mxu1 %v14031_v57  ;;  %v73_v57 = vld [vmem:[%s19714_s1 + $0x178] sm:$0xff]  ;;  %v14088_v37 = vcombine.high %v1572_v14, %v1576_v38  ;;  %v1568_v28 = vld [vmem:[%s19714_s1 + $0x3030] sm:$0xff] }
 0x493   :  { %11214 = vmatprep.subr.bf16.mxu1 %v14024_v1 }
 0x494   :  { %11174 = vmatpush2.bf16.msra.mxu0 %v13895_v15 }
 0x495   :  { %11175 = vmatprep.subr.bf16.mxu0 %v13888_v33 }
 0x496   :  { %11215 = vmatpush2.bf16.msra.mxu1 %v14023_v34 }
 0x497   :  { %11216 = vmatprep.subr.bf16.mxu1 %v14016_v52  ;;  %v12586_v52 = vcombine.high %v69_v61, %v73_v57 }
 0x498   :  { %11176 = vmatpush2.bf16.msra.mxu0 %v13887_v42 }
 0x499   :  { %11235 = vmatprep.subr.bf16.mxu0 %v14104_v36 }
 0x49a   :  { %11217 = vmatpush2.bf16.msra.mxu1 %v14015_v54  ;;  %v14087_v54 = vcombine.low %v1572_v14, %v1576_v38 }
 0x49b   :  { %11268 = vmatprep.subr.bf16.mxu1 %v12602_v46  ;;  %v10933_v16 = vpop.f32.mrf.mxu0  ;;  %11178 = vmatmul.mubr.bf16.vlgmr.msra.gmra.mxu0 %v15744_v45  ;;  %v12585_v46 = vcombine.low %v69_v61, %v73_v57  ;;  %v209_v61 = vld [vmem:[%s19714_s1 + $0x5b8] sm:$0xff] }
 0x49c   :  { %v10934_v25 = vadd.f32 %v10933_v16, %v18065_v51  ;;  %11236 = vmatpush1.bf16.msra.mxu0 %v14103_v7  ;;  %v1564_v51 = vld [vmem:[%s19714_s1 + $0x3010] sm:$0xff]  ;;  %11259 = vmatprep.mubr.bf16.mxu0 %v14365_v40  ;;  %v53_v7 = vld [vmem:[%s19714_s1 + $0xd8] sm:$0xff] }
 0x49d   :  { %v10974_v1 = vpop.f32.mrf.mxu1  ;;  %11219 = vmatmul.mubr.bf16.vlgmr.msra.gmra.mxu1 %v15760_v58  ;;  %v10935_v59 = vpop.f32.mrf.mxu0  ;;  %11237 = vmatprep.subr.bf16.mxu0 %v14096_v8  ;;  %v14080_v62 = vcombine.high %v1564_v51, %v1568_v28  ;;  %v14079_v8 = vcombine.low %v1564_v51, %v1568_v28  ;;  %v205_v16 = vld [vmem:[%s19714_s1 + $0x598] sm:$0xff] }
 0x49e   :  { %11269 = vmatpush1.bf16.msra.mxu1 %v12601_v35  ;;  %v18267_v15 = vadd.f32 %v10974_v1, %v10934_v25  ;;  %v10936_v34 = vadd.f32 %v10935_v59, %v18082_v53  ;;  %v65_v53 = vld [vmem:[%s19714_s1 + $0x138] sm:$0xff]  ;;  %11300 = vmatprep.mubr.bf16.mxu1 %v14517_v9  ;;  %v12722_v59 = vcombine.high %v205_v16, %v209_v61 }
 0x49f   :  { %v10976_v33 = vpop.f32.mrf.mxu1  ;;  %11270 = vmatprep.subr.bf16.mxu1 %v12594_v12  ;;  %v10937_v2 = vpop.f32.mrf.mxu0  ;;  %v12578_v0 = vcombine.high %v61_v49, %v65_v53  ;;  %v217_v9 = vld [vmem:[%s19714_s1 + $0x5f8] sm:$0xff]  ;;  %v12577_v12 = vcombine.low %v61_v49, %v65_v53  ;;  %v12721_v51 = vcombine.low %v205_v16, %v209_v61 }
 0x4a0   :  { %v18284_v48 = vadd.f32 %v10976_v33, %v10936_v34  ;;  %11238 = vmatpush1.bf16.msra.mxu0 %v14095_v6  ;;  %v57_v35 = vld [vmem:[%s19714_s1 + $0xf8] sm:$0xff]  ;;  %v12730_v14 = vcombine.high %v213_v19, %v217_v9  ;;  %v12729_v1 = vcombine.low %v213_v19, %v217_v9 }
 0x4a1   :  { %v10978_v42 = vpop.f32.mrf.mxu1  ;;  %v10938_v36 = vpop.f32.mrf.mxu0  ;;  %11239 = vmatprep.subr.bf16.mxu0 %v14088_v37  ;;  %v12570_v38 = vcombine.high %v53_v7, %v57_v35  ;;  %v45_v57 = vld [vmem:[%s19714_s1 + $0x98] sm:$0xff]  ;;  %v12569_v6 = vcombine.low %v53_v7, %v57_v35 }
 0x4a2   :  { %11271 = vmatpush1.bf16.msra.mxu1 %v12593_v60  ;;  %v49_v25 = vld [vmem:[%s19714_s1 + $0xb8] sm:$0xff] }
 0x4a3   :  { %v10979_v50 = vpop.f32.mrf.mxu1  ;;  %11272 = vmatprep.subr.bf16.mxu1 %v12586_v52  ;;  %v12562_v60 = vcombine.high %v45_v57, %v49_v25  ;;  %v197_v37 = vld [vmem:[%s19714_s1 + $0x558] sm:$0xff]  ;;  %v12561_v28 = vcombine.low %v45_v57, %v49_v25 }
 0x4a4   :  { %11240 = vmatpush1.bf16.msra.mxu0 %v14087_v54  ;;  %v201_v34 = vld [vmem:[%s19714_s1 + $0x578] sm:$0xff] }
 0x4a5   :  { %11241 = vmatprep.subr.bf16.mxu0 %v14080_v62  ;;  %v37_v33 = vld [vmem:[%s19714_s1 + $0x58] sm:$0xff]  ;;  %v12714_v2 = vcombine.high %v197_v37, %v201_v34  ;;  %v12713_v36 = vcombine.low %v197_v37, %v201_v34 }
 0x4a6   :  { %11273 = vmatpush1.bf16.msra.mxu1 %v12585_v46  ;;  %v41_v52 = vld [vmem:[%s19714_s1 + $0x78] sm:$0xff] }
 0x4a7   :  { %11274 = vmatprep.subr.bf16.mxu1 %v12578_v0  ;;  %v12554_v49 = vcombine.high %v37_v33, %v41_v52  ;;  %v189_v53 = vld [vmem:[%s19714_s1 + $0x518] sm:$0xff]  ;;  %v12553_v46 = vcombine.low %v37_v33, %v41_v52 }
 0x4a8   :  { %11242 = vmatpush1.bf16.msra.mxu0 %v14079_v8  ;;  %v193_v42 = vld [vmem:[%s19714_s1 + $0x538] sm:$0xff] }
 0x4a9   :  { %11309 = vmatprep.subr.bf16.mxu0 %v12730_v14  ;;  %v29_v54 = vld [vmem:[%s19714_s1 + $0x18] sm:$0xff]  ;;  %v12706_v62 = vcombine.high %v189_v53, %v193_v42  ;;  %v12705_v35 = vcombine.low %v189_v53, %v193_v42 }
 0x4aa   :  { %11275 = vmatpush1.bf16.msra.mxu1 %v12577_v12  ;;  %v181_v0 = vld [vmem:[%s19714_s1 + $0x4d8] sm:$0xff] }
 0x4ab   :  { %11276 = vmatprep.subr.bf16.mxu1 %v12570_v38  ;;  %14109 = vmatmul.mubr.msk.bf16.vlgmr.msra.gmra.mxu0 %vm9665_vm0, %v15818_v24  ;;  %v185_v19 = vld [vmem:[%s19714_s1 + $0x4f8] sm:$0xff] }
 0x4ac   :  { %11310 = vmatpush1.bf16.msra.mxu0 %v12729_v1  ;;  %11341 = vmatprep.mubr.bf16.mxu0 %v14528_v13  ;;  %v33_v13 = vld [vmem:[%s19714_s1 + $0x38] sm:$0xff]  ;;  %v12698_v12 = vcombine.high %v181_v0, %v185_v19  ;;  %v12697_v25 = vcombine.low %v181_v0, %v185_v19 }
 0x4ad   :  { %11311 = vmatprep.subr.bf16.mxu0 %v12722_v59  ;;  %v12546_v50 = vcombine.high %v29_v54, %v33_v13  ;;  %v149_v9 = vld [vmem:[%s19714_s1 + $0x3d8] sm:$0xff]  ;;  %v12545_v8 = vcombine.low %v29_v54, %v33_v13 }
 0x4ae   :  { %11277 = vmatpush1.bf16.msra.mxu1 %v12569_v6  ;;  %v153_v7 = vld [vmem:[%s19714_s1 + $0x3f8] sm:$0xff] }
 0x4af   :  { %11278 = vmatprep.subr.bf16.mxu1 %v12562_v60  ;;  %v12666_v14 = vcombine.high %v149_v9, %v153_v7  ;;  %v173_v38 = vld [vmem:[%s19714_s1 + $0x498] sm:$0xff]  ;;  %v12665_v1 = vcombine.low %v149_v9, %v153_v7 }
 0x4b0   :  { %11312 = vmatpush1.bf16.msra.mxu0 %v12721_v51  ;;  %v177_v16 = vld [vmem:[%s19714_s1 + $0x4b8] sm:$0xff] }
 0x4b1   :  { %11313 = vmatprep.subr.bf16.mxu0 %v12714_v2  ;;  %v141_v61 = vld [vmem:[%s19714_s1 + $0x398] sm:$0xff]  ;;  %v12690_v6 = vcombine.high %v173_v38, %v177_v16  ;;  %v12689_v52 = vcombine.low %v173_v38, %v177_v16 }
 0x4b2   :  { %11279 = vmatpush1.bf16.msra.mxu1 %v12561_v28  ;;  %v145_v57 = vld [vmem:[%s19714_s1 + $0x3b8] sm:$0xff] }
 0x4b3   :  { %11280 = vmatprep.subr.bf16.mxu1 %v12554_v49  ;;  %v12658_v59 = vcombine.high %v141_v61, %v145_v57  ;;  %v165_v60 = vld [vmem:[%s19714_s1 + $0x458] sm:$0xff]  ;;  %v12657_v51 = vcombine.low %v141_v61, %v145_v57 }
 0x4b4   :  { %11314 = vmatpush1.bf16.msra.mxu0 %v12713_v36  ;;  %v169_v37 = vld [vmem:[%s19714_s1 + $0x478] sm:$0xff] }
 0x4b5   :  { %11315 = vmatprep.subr.bf16.mxu0 %v12706_v62  ;;  %v133_v34 = vld [vmem:[%s19714_s1 + $0x358] sm:$0xff]  ;;  %v12682_v28 = vcombine.high %v165_v60, %v169_v37  ;;  %v12681_v13 = vcombine.low %v165_v60, %v169_v37 }
 0x4b6   :  { %11281 = vmatpush1.bf16.msra.mxu1 %v12553_v46  ;;  %v137_v33 = vld [vmem:[%s19714_s1 + $0x378] sm:$0xff] }
 0x4b7   :  { %11282 = vmatprep.subr.bf16.mxu1 %v12546_v50  ;;  %v12650_v2 = vcombine.high %v133_v34, %v137_v33  ;;  %v157_v49 = vld [vmem:[%s19714_s1 + $0x418] sm:$0xff]  ;;  %v12649_v36 = vcombine.low %v133_v34, %v137_v33 }
 0x4b8   :  { %11316 = vmatpush1.bf16.msra.mxu0 %v12705_v35  ;;  %v161_v53 = vld [vmem:[%s19714_s1 + $0x438] sm:$0xff] }
 0x4b9   :  { %11317 = vmatprep.subr.bf16.mxu0 %v12698_v12  ;;  %v125_v42 = vld [vmem:[%s19714_s1 + $0x318] sm:$0xff]  ;;  %v12674_v46 = vcombine.high %v157_v49, %v161_v53  ;;  %v12673_v7 = vcombine.low %v157_v49, %v161_v53 }
 0x4ba   :  { %11283 = vmatpush1.bf16.msra.mxu1 %v12545_v8  ;;  %v129_v54 = vld [vmem:[%s19714_s1 + $0x338] sm:$0xff] }
 0x4bb   :  { %11284 = vmatprep.subr.bf16.mxu1 %v12666_v14  ;;  %v12642_v62 = vcombine.high %v125_v42, %v129_v54  ;;  %v277_v50 = vld [vmem:[%s19714_s1 + $0x7d8] sm:$0xff]  ;;  %v12641_v35 = vcombine.low %v125_v42, %v129_v54 }
 0x4bc   :  { %11318 = vmatpush1.bf16.msra.mxu0 %v12697_v25  ;;  %v281_v0 = vld [vmem:[%s19714_s1 + $0x7f8] sm:$0xff] }
 0x4bd   :  { %11319 = vmatprep.subr.bf16.mxu0 %v12690_v6  ;;  %v117_v19 = vld [vmem:[%s19714_s1 + $0x2d8] sm:$0xff]  ;;  %v12794_v8 = vcombine.high %v277_v50, %v281_v0  ;;  %v12793_v57 = vcombine.low %v277_v50, %v281_v0 }
 0x4be   :  { %11285 = vmatpush2.bf16.msra.mxu1 %v12665_v1  ;;  %v121_v9 = vld [vmem:[%s19714_s1 + $0x2f8] sm:$0xff] }
 0x4bf   :  { %11286 = vmatprep.subr.bf16.mxu1 %v12658_v59  ;;  %v12634_v12 = vcombine.high %v117_v19, %v121_v9  ;;  %v269_v14 = vld [vmem:[%s19714_s1 + $0x798] sm:$0xff]  ;;  %v12633_v25 = vcombine.low %v117_v19, %v121_v9 }
 0x4c0   :  { %11320 = vmatpush1.bf16.msra.mxu0 %v12689_v52  ;;  %v273_v38 = vld [vmem:[%s19714_s1 + $0x7b8] sm:$0xff] }
 0x4c1   :  { %11321 = vmatprep.subr.bf16.mxu0 %v12682_v28  ;;  %v109_v16 = vld [vmem:[%s19714_s1 + $0x298] sm:$0xff]  ;;  %v12786_v1 = vcombine.high %v269_v14, %v273_v38  ;;  %v12785_v33 = vcombine.low %v269_v14, %v273_v38 }
 0x4c2   :  { %11287 = vmatpush2.bf16.msra.mxu1 %v12657_v51  ;;  %v113_v61 = vld [vmem:[%s19714_s1 + $0x2b8] sm:$0xff] }
 0x4c3   :  { %11288 = vmatprep.subr.bf16.mxu1 %v12650_v2  ;;  %v12626_v6 = vcombine.high %v109_v16, %v113_v61  ;;  %v261_v59 = vld [vmem:[%s19714_s1 + $0x758] sm:$0xff]  ;;  %v12625_v52 = vcombine.low %v109_v16, %v113_v61 }
 0x4c4   :  { %11322 = vmatpush1.bf16.msra.mxu0 %v12681_v13  ;;  %v265_v60 = vld [vmem:[%s19714_s1 + $0x778] sm:$0xff] }
 0x4c5   :  { %11323 = vmatprep.subr.bf16.mxu0 %v12674_v46  ;;  %v101_v37 = vld [vmem:[%s19714_s1 + $0x258] sm:$0xff]  ;;  %v12778_v51 = vcombine.high %v261_v59, %v265_v60  ;;  %v12777_v54 = vcombine.low %v261_v59, %v265_v60 }
 0x4c6   :  { %11289 = vmatpush2.bf16.msra.mxu1 %v12649_v36  ;;  %v105_v34 = vld [vmem:[%s19714_s1 + $0x278] sm:$0xff] }
 0x4c7   :  { %11290 = vmatprep.subr.bf16.mxu1 %v12642_v62  ;;  %v12618_v28 = vcombine.high %v101_v37, %v105_v34  ;;  %v253_v2 = vld [vmem:[%s19714_s1 + $0x718] sm:$0xff]  ;;  %v12617_v13 = vcombine.low %v101_v37, %v105_v34 }
 0x4c8   :  { %11324 = vmatpush1.bf16.msra.mxu0 %v12673_v7  ;;  %v257_v49 = vld [vmem:[%s19714_s1 + $0x738] sm:$0xff] }
 0x4c9   :  { %11325 = vmatprep.subr.bf16.mxu0 %v12794_v8  ;;  %v93_v53 = vld [vmem:[%s19714_s1 + $0x218] sm:$0xff]  ;;  %v12770_v36 = vcombine.high %v253_v2, %v257_v49  ;;  %v12769_v9 = vcombine.low %v253_v2, %v257_v49 }
 0x4ca   :  { %11291 = vmatpush2.bf16.msra.mxu1 %v12641_v35  ;;  %v97_v42 = vld [vmem:[%s19714_s1 + $0x238] sm:$0xff] }
 0x4cb   :  { %11292 = vmatprep.subr.bf16.mxu1 %v12634_v12  ;;  %v12610_v46 = vcombine.high %v93_v53, %v97_v42  ;;  %v245_v62 = vld [vmem:[%s19714_s1 + $0x6d8] sm:$0xff]  ;;  %v12609_v7 = vcombine.low %v93_v53, %v97_v42 }
 0x4cc   :  { %11326 = vmatpush2.bf16.msra.mxu0 %v12793_v57  ;;  %v249_v50 = vld [vmem:[%s19714_s1 + $0x6f8] sm:$0xff] }
 0x4cd   :  { %11327 = vmatprep.subr.bf16.mxu0 %v12786_v1  ;;  %v341_v0 = vld [vmem:[%s19714_s1 + $0x9d8] sm:$0xff]  ;;  %v12762_v35 = vcombine.high %v245_v62, %v249_v50  ;;  %v12761_v61 = vcombine.low %v245_v62, %v249_v50 }
 0x4ce   :  { %11293 = vmatpush2.bf16.msra.mxu1 %v12633_v25  ;;  %v345_v19 = vld [vmem:[%s19714_s1 + $0x9f8] sm:$0xff] }
 0x4cf   :  { %11294 = vmatprep.subr.bf16.mxu1 %v12626_v6  ;;  %v12858_v8 = vcombine.high %v341_v0, %v345_v19  ;;  %v237_v12 = vld [vmem:[%s19714_s1 + $0x698] sm:$0xff]  ;;  %v12857_v57 = vcombine.low %v341_v0, %v345_v19 }
 0x4d0   :  { %11328 = vmatpush2.bf16.msra.mxu0 %v12785_v33  ;;  %v241_v14 = vld [vmem:[%s19714_s1 + $0x6b8] sm:$0xff] }
 0x4d1   :  { %11329 = vmatprep.subr.bf16.mxu0 %v12778_v51  ;;  %v333_v38 = vld [vmem:[%s19714_s1 + $0x998] sm:$0xff]  ;;  %v12754_v25 = vcombine.high %v237_v12, %v241_v14  ;;  %v12753_v51 = vcombine.low %v237_v12, %v241_v14 }
 0x4d2   :  { %11295 = vmatpush2.bf16.msra.mxu1 %v12625_v52  ;;  %v337_v16 = vld [vmem:[%s19714_s1 + $0x9b8] sm:$0xff] }
 0x4d3   :  { %11296 = vmatprep.subr.bf16.mxu1 %v12618_v28  ;;  %v12850_v1 = vcombine.high %v333_v38, %v337_v16  ;;  %v229_v6 = vld [vmem:[%s19714_s1 + $0x658] sm:$0xff]  ;;  %v12849_v2 = vcombine.low %v333_v38, %v337_v16 }
 0x4d4   :  { %11330 = vmatpush2.bf16.msra.mxu0 %v12777_v54  ;;  %v233_v59 = vld [vmem:[%s19714_s1 + $0x678] sm:$0xff] }
 0x4d5   :  { %11331 = vmatprep.subr.bf16.mxu0 %v12770_v36  ;;  %v325_v37 = vld [vmem:[%s19714_s1 + $0x958] sm:$0xff]  ;;  %v12746_v49 = vcombine.high %v229_v6, %v233_v59  ;;  %v12745_v0 = vcombine.low %v229_v6, %v233_v59 }
 0x4d6   :  { %11297 = vmatpush2.bf16.msra.mxu1 %v12617_v13  ;;  %v329_v34 = vld [vmem:[%s19714_s1 + $0x978] sm:$0xff] }
 0x4d7   :  { %11298 = vmatprep.subr.bf16.mxu1 %v12610_v46  ;;  %v12842_v13 = vcombine.high %v325_v37, %v329_v34  ;;  %v317_v46 = vld [vmem:[%s19714_s1 + $0x918] sm:$0xff] }
 0x4d8   :  { %11332 = vmatpush2.bf16.msra.mxu0 %v12769_v9  ;;  %v12841_v9 = vcombine.low %v325_v37, %v329_v34  ;;  %v473_v12 = vld [vmem:[%s19714_s1 + $0xdf8] sm:$0xff] }
 0x4d9   :  { %11333 = vmatprep.subr.bf16.mxu0 %v12762_v35  ;;  %v309_v14 = vld [vmem:[%s19714_s1 + $0x8d8] sm:$0xff] }
 0x4da   :  { %11299 = vmatpush2.bf16.msra.mxu1 %v12609_v7  ;;  %v313_v38 = vld [vmem:[%s19714_s1 + $0x8f8] sm:$0xff] }
 0x4db   :  { %11350 = vmatprep.subr.bf16.mxu1 %v12858_v8  ;;  %v11015_v60 = vpop.f32.mrf.mxu0  ;;  %v469_v8 = vld [vmem:[%s19714_s1 + $0xdd8] sm:$0xff]  ;;  %v12825_v34 = vcombine.low %v309_v14, %v313_v38 }
 0x4dc   :  { %v11016_v33 = vadd.f32 %v11015_v60, %v18267_v15  ;;  %11334 = vmatpush2.bf16.msra.mxu0 %v12761_v61  ;;  %v221_v15 = vld [vmem:[%s19714_s1 + $0x618] sm:$0xff]  ;;  %v12985_v37 = vcombine.low %v469_v8, %v473_v12 }
 0x4dd   :  { %v11056_v52 = vpop.f32.mrf.mxu1  ;;  %11301 = vmatmul.mubr.bf16.vlgmr.msra.gmra.mxu1 %v14636_v22  ;;  %v11017_v28 = vpop.f32.mrf.mxu0  ;;  %11335 = vmatprep.subr.bf16.mxu0 %v12754_v25  ;;  %v225_v22 = vld [vmem:[%s19714_s1 + $0x638] sm:$0xff]  ;;  %v12826_v25 = vcombine.high %v309_v14, %v313_v38 }
 0x4de   :  { %11351 = vmatpush1.bf16.msra.mxu1 %v12857_v57  ;;  %v18471_v53 = vadd.f32 %v11056_v52, %v11016_v33  ;;  %v11018_v42 = vadd.f32 %v11017_v28, %v18284_v48  ;;  %11382 = vmatprep.mubr.bf16.mxu1 %v14651_v29  ;;  %v321_v48 = vld [vmem:[%s19714_s1 + $0x938] sm:$0xff]  ;;  %v12738_v7 = vcombine.high %v221_v15, %v225_v22 }
 0x4df   :  { %v11058_v54 = vpop.f32.mrf.mxu1  ;;  %11352 = vmatprep.subr.bf16.mxu1 %v12850_v1  ;;  %v11019_v36 = vpop.f32.mrf.mxu0  ;;  %v12834_v35 = vcombine.high %v317_v46, %v321_v48  ;;  %v12737_v16 = vcombine.low %v221_v15, %v225_v22  ;;  %v12833_v61 = vcombine.low %v317_v46, %v321_v48  ;;  %v12986_v57 = vcombine.high %v469_v8, %v473_v12  ;;  %v461_v1 = vld [vmem:[%s19714_s1 + $0xd98] sm:$0xff] }
 0x4e0   :  { %v18487_v62 = vadd.f32 %v11058_v54, %v11018_v42  ;;  %11336 = vmatpush2.bf16.msra.mxu0 %v12753_v51  ;;  %v465_v6 = vld [vmem:[%s19714_s1 + $0xdb8] sm:$0xff] }
 0x4e1   :  { %v11060_v50 = vpop.f32.mrf.mxu1  ;;  %v11020_v19 = vpop.f32.mrf.mxu0  ;;  %11337 = vmatprep.subr.bf16.mxu0 %v12746_v49  ;;  %v301_v59 = vld [vmem:[%s19714_s1 + $0x898] sm:$0xff]  ;;  %v12978_v33 = vcombine.high %v461_v1, %v465_v6  ;;  %v12977_v42 = vcombine.low %v461_v1, %v465_v6 }
 0x4e2   :  { %11353 = vmatpush1.bf16.msra.mxu1 %v12849_v2  ;;  %v305_v60 = vld [vmem:[%s19714_s1 + $0x8b8] sm:$0xff] }
 0x4e3   :  { %v11061_v29 = vpop.f32.mrf.mxu1  ;;  %11354 = vmatprep.subr.bf16.mxu1 %v12842_v13  ;;  %v12818_v52 = vcombine.high %v301_v59, %v305_v60  ;;  %v453_v51 = vld [vmem:[%s19714_s1 + $0xd58] sm:$0xff]  ;;  %v12817_v54 = vcombine.low %v301_v59, %v305_v60 }
 0x4e4   :  { %11338 = vmatpush2.bf16.msra.mxu0 %v12745_v0  ;;  %v457_v28 = vld [vmem:[%s19714_s1 + $0xd78] sm:$0xff] }
 0x4e5   :  { %11339 = vmatprep.subr.bf16.mxu0 %v12738_v7  ;;  %v293_v2 = vld [vmem:[%s19714_s1 + $0x858] sm:$0xff]  ;;  %v12970_v13 = vcombine.high %v453_v51, %v457_v28  ;;  %v12969_v46 = vcombine.low %v453_v51, %v457_v28 }
 0x4e6   :  { %11355 = vmatpush1.bf16.msra.mxu1 %v12841_v9  ;;  %v297_v49 = vld [vmem:[%s19714_s1 + $0x878] sm:$0xff] }
 0x4e7   :  { %11356 = vmatprep.subr.bf16.mxu1 %v12834_v35  ;;  %v12810_v15 = vcombine.high %v293_v2, %v297_v49  ;;  %v449_v22 = vld [vmem:[%s19714_s1 + $0xd38] sm:$0xff]  ;;  %v12809_v48 = vcombine.low %v293_v2, %v297_v49 }
 0x4e8   :  { %11340 = vmatpush2.bf16.msra.mxu0 %v12737_v16  ;;  %v285_v36 = vld [vmem:[%s19714_s1 + $0x818] sm:$0xff] }
 0x4e9   :  { %11391 = vmatprep.subr.bf16.mxu0 %v12986_v57  ;;  %v437_v19 = vld [vmem:[%s19714_s1 + $0xcd8] sm:$0xff] }
 0x4ea   :  { %11357 = vmatpush1.bf16.msra.mxu1 %v12833_v61  ;;  %v441_v9 = vld [vmem:[%s19714_s1 + $0xcf8] sm:$0xff] }
 0x4eb   :  { %11358 = vmatprep.subr.bf16.mxu1 %v12826_v25  ;;  %11342 = vmatmul.mubr.bf16.vlgmr.msra.gmra.mxu0 %v14655_v30  ;;  %v445_v30 = vld [vmem:[%s19714_s1 + $0xd18] sm:$0xff]  ;;  %v12954_v12 = vcombine.high %v437_v19, %v441_v9  ;;  %v12953_v25 = vcombine.low %v437_v19, %v441_v9 }
 0x4ec   :  { %11392 = vmatpush1.bf16.msra.mxu0 %v12985_v37  ;;  %11423 = vmatprep.mubr.bf16.mxu0 %v14672_v39  ;;  %v289_v39 = vld [vmem:[%s19714_s1 + $0x838] sm:$0xff]  ;;  %v12962_v50 = vcombine.high %v445_v30, %v449_v22  ;;  %v12961_v35 = vcombine.low %v445_v30, %v449_v22 }
 0x4ed   :  { %11393 = vmatprep.subr.bf16.mxu0 %v12978_v33  ;;  %v12802_v0 = vcombine.high %v285_v36, %v289_v39  ;;  %v405_v7 = vld [vmem:[%s19714_s1 + $0xbd8] sm:$0xff]  ;;  %v12801_v8 = vcombine.low %v285_v36, %v289_v39 }
 0x4ee   :  { %11359 = vmatpush1.bf16.msra.mxu1 %v12825_v34  ;;  %v409_v29 = vld [vmem:[%s19714_s1 + $0xbf8] sm:$0xff] }
 0x4ef   :  { %11360 = vmatprep.subr.bf16.mxu1 %v12818_v52  ;;  %v12922_v14 = vcombine.high %v405_v7, %v409_v29  ;;  %v429_v38 = vld [vmem:[%s19714_s1 + $0xc98] sm:$0xff]  ;;  %v12921_v1 = vcombine.low %v405_v7, %v409_v29 }
 0x4f0   :  { %11394 = vmatpush1.bf16.msra.mxu0 %v12977_v42  ;;  %v433_v16 = vld [vmem:[%s19714_s1 + $0xcb8] sm:$0xff] }
 0x4f1   :  { %11395 = vmatprep.subr.bf16.mxu0 %v12970_v13  ;;  %v397_v61 = vld [vmem:[%s19714_s1 + $0xb98] sm:$0xff]  ;;  %v12946_v6 = vcombine.high %v429_v38, %v433_v16  ;;  %v12945_v52 = vcombine.low %v429_v38, %v433_v16 }
 0x4f2   :  { %11361 = vmatpush1.bf16.msra.mxu1 %v12817_v54  ;;  %v401_v57 = vld [vmem:[%s19714_s1 + $0xbb8] sm:$0xff] }
 0x4f3   :  { %11362 = vmatprep.subr.bf16.mxu1 %v12810_v15  ;;  %v12914_v59 = vcombine.high %v397_v61, %v401_v57  ;;  %v421_v60 = vld [vmem:[%s19714_s1 + $0xc58] sm:$0xff]  ;;  %v12913_v51 = vcombine.low %v397_v61, %v401_v57 }
 0x4f4   :  { %11396 = vmatpush1.bf16.msra.mxu0 %v12969_v46  ;;  %v425_v37 = vld [vmem:[%s19714_s1 + $0xc78] sm:$0xff] }
 0x4f5   :  { %11397 = vmatprep.subr.bf16.mxu0 %v12962_v50  ;;  %v389_v34 = vld [vmem:[%s19714_s1 + $0xb58] sm:$0xff]  ;;  %v12938_v28 = vcombine.high %v421_v60, %v425_v37  ;;  %v12937_v15 = vcombine.low %v421_v60, %v425_v37 }
 0x4f6   :  { %11363 = vmatpush1.bf16.msra.mxu1 %v12809_v48  ;;  %v393_v33 = vld [vmem:[%s19714_s1 + $0xb78] sm:$0xff] }
 0x4f7   :  { %11364 = vmatprep.subr.bf16.mxu1 %v12802_v0  ;;  %v12906_v2 = vcombine.high %v389_v34, %v393_v33  ;;  %v413_v49 = vld [vmem:[%s19714_s1 + $0xc18] sm:$0xff]  ;;  %v12905_v30 = vcombine.low %v389_v34, %v393_v33 }
 0x4f8   :  { %11398 = vmatpush1.bf16.msra.mxu0 %v12961_v35  ;;  %v417_v42 = vld [vmem:[%s19714_s1 + $0xc38] sm:$0xff] }
 0x4f9   :  { %11399 = vmatprep.subr.bf16.mxu0 %v12954_v12  ;;  %v381_v54 = vld [vmem:[%s19714_s1 + $0xb18] sm:$0xff]  ;;  %v12930_v22 = vcombine.high %v413_v49, %v417_v42  ;;  %v12929_v0 = vcombine.low %v413_v49, %v417_v42 }
 0x4fa   :  { %11365 = vmatpush1.bf16.msra.mxu1 %v12801_v8  ;;  %v385_v13 = vld [vmem:[%s19714_s1 + $0xb38] sm:$0xff] }
 0x4fb   :  { %11366 = vmatprep.subr.bf16.mxu1 %v12922_v14  ;;  %v12898_v36 = vcombine.high %v381_v54, %v385_v13  ;;  %v533_v39 = vld [vmem:[%s19714_s1 + $0xfd8] sm:$0xff]  ;;  %v12897_v19 = vcombine.low %v381_v54, %v385_v13 }
 0x4fc   :  { %11400 = vmatpush1.bf16.msra.mxu0 %v12953_v25  ;;  %v537_v46 = vld [vmem:[%s19714_s1 + $0xff8] sm:$0xff] }
 0x4fd   :  { %11401 = vmatprep.subr.bf16.mxu0 %v12946_v6  ;;  %v373_v48 = vld [vmem:[%s19714_s1 + $0xad8] sm:$0xff]  ;;  %v13050_v9 = vcombine.high %v533_v39, %v537_v46  ;;  %v13049_v14 = vcombine.low %v533_v39, %v537_v46 }
 0x4fe   :  { %11367 = vmatpush2.bf16.msra.mxu1 %v12921_v1  ;;  %v377_v50 = vld [vmem:[%s19714_s1 + $0xaf8] sm:$0xff] }
 0x4ff   :  { %11368 = vmatprep.subr.bf16.mxu1 %v12914_v59  ;;  %v12890_v7 = vcombine.high %v373_v48, %v377_v50  ;;  %v525_v29 = vld [vmem:[%s19714_s1 + $0xf98] sm:$0xff]  ;;  %v12889_v38 = vcombine.low %v373_v48, %v377_v50 }
 0x500   :  { %11402 = vmatpush1.bf16.msra.mxu0 %v12945_v52  ;;  %v529_v35 = vld [vmem:[%s19714_s1 + $0xfb8] sm:$0xff] }
 0x501   :  { %11403 = vmatprep.subr.bf16.mxu0 %v12938_v28  ;;  %v365_v8 = vld [vmem:[%s19714_s1 + $0xa98] sm:$0xff]  ;;  %v13042_v16 = vcombine.high %v525_v29, %v529_v35  ;;  %v13041_v59 = vcombine.low %v525_v29, %v529_v35 }
 0x502   :  { %11369 = vmatpush2.bf16.msra.mxu1 %v12913_v51  ;;  %v369_v12 = vld [vmem:[%s19714_s1 + $0xab8] sm:$0xff] }
 0x503   :  { %11370 = vmatprep.subr.bf16.mxu1 %v12906_v2  ;;  %v12882_v61 = vcombine.high %v365_v8, %v369_v12  ;;  %v517_v57 = vld [vmem:[%s19714_s1 + $0xf58] sm:$0xff]  ;;  %v12881_v60 = vcombine.low %v365_v8, %v369_v12 }
 0x504   :  { %11404 = vmatpush1.bf16.msra.mxu0 %v12937_v15  ;;  %v521_v25 = vld [vmem:[%s19714_s1 + $0xf78] sm:$0xff] }
 0x505   :  { %11405 = vmatprep.subr.bf16.mxu0 %v12930_v22  ;;  %v357_v1 = vld [vmem:[%s19714_s1 + $0xa58] sm:$0xff]  ;;  %v13034_v37 = vcombine.high %v517_v57, %v521_v25  ;;  %v13033_v2 = vcombine.low %v517_v57, %v521_v25 }
 0x506   :  { %11371 = vmatpush2.bf16.msra.mxu1 %v12905_v30  ;;  %v361_v6 = vld [vmem:[%s19714_s1 + $0xa78] sm:$0xff] }
 0x507   :  { %11372 = vmatprep.subr.bf16.mxu1 %v12898_v36  ;;  %v12874_v34 = vcombine.high %v357_v1, %v361_v6  ;;  %v509_v33 = vld [vmem:[%s19714_s1 + $0xf18] sm:$0xff]  ;;  %v12873_v49 = vcombine.low %v357_v1, %v361_v6 }
 0x508   :  { %11406 = vmatpush1.bf16.msra.mxu0 %v12929_v0  ;;  %v513_v52 = vld [vmem:[%s19714_s1 + $0xf38] sm:$0xff] }
 0x509   :  { %11407 = vmatprep.subr.bf16.mxu0 %v13050_v9  ;;  %v349_v51 = vld [vmem:[%s19714_s1 + $0xa18] sm:$0xff]  ;;  %v13026_v42 = vcombine.high %v509_v33, %v513_v52  ;;  %v13025_v36 = vcombine.low %v509_v33, %v513_v52 }
 0x50a   :  { %11373 = vmatpush2.bf16.msra.mxu1 %v12897_v19  ;;  %v353_v28 = vld [vmem:[%s19714_s1 + $0xa38] sm:$0xff] }
 0x50b   :  { %11374 = vmatprep.subr.bf16.mxu1 %v12890_v7  ;;  %v12866_v54 = vcombine.high %v349_v51, %v353_v28  ;;  %v501_v13 = vld [vmem:[%s19714_s1 + $0xed8] sm:$0xff]  ;;  %v12865_v39 = vcombine.low %v349_v51, %v353_v28 }
 0x50c   :  { %11408 = vmatpush2.bf16.msra.mxu0 %v13049_v14  ;;  %v505_v15 = vld [vmem:[%s19714_s1 + $0xef8] sm:$0xff] }
 0x50d   :  { %11409 = vmatprep.subr.bf16.mxu0 %v13042_v16  ;;  %v597_v30 = vld [vmem:[%s19714_s1 + $0x11d8] sm:$0xff]  ;;  %v13018_v46 = vcombine.high %v501_v13, %v505_v15  ;;  %v13017_v7 = vcombine.low %v501_v13, %v505_v15 }
 0x50e   :  { %11375 = vmatpush2.bf16.msra.mxu1 %v12889_v38  ;;  %v601_v22 = vld [vmem:[%s19714_s1 + $0x11f8] sm:$0xff] }
 0x50f   :  { %11376 = vmatprep.subr.bf16.mxu1 %v12882_v61  ;;  %v13114_v48 = vcombine.high %v597_v30, %v601_v22  ;;  %v493_v50 = vld [vmem:[%s19714_s1 + $0xe98] sm:$0xff]  ;;  %v13113_v29 = vcombine.low %v597_v30, %v601_v22 }
 0x510   :  { %11410 = vmatpush2.bf16.msra.mxu0 %v13041_v59  ;;  %v497_v0 = vld [vmem:[%s19714_s1 + $0xeb8] sm:$0xff] }
 0x511   :  { %11411 = vmatprep.subr.bf16.mxu0 %v13034_v37  ;;  %v589_v19 = vld [vmem:[%s19714_s1 + $0x1198] sm:$0xff]  ;;  %v13010_v35 = vcombine.high %v493_v50, %v497_v0  ;;  %v13009_v1 = vcombine.low %v493_v50, %v497_v0 }
 0x512   :  { %11377 = vmatpush2.bf16.msra.mxu1 %v12881_v60  ;;  %v593_v9 = vld [vmem:[%s19714_s1 + $0x11b8] sm:$0xff] }
 0x513   :  { %11378 = vmatprep.subr.bf16.mxu1 %v12874_v34  ;;  %v13106_v8 = vcombine.high %v589_v19, %v593_v9  ;;  %v485_v12 = vld [vmem:[%s19714_s1 + $0xe58] sm:$0xff]  ;;  %v13105_v59 = vcombine.low %v589_v19, %v593_v9 }
 0x514   :  { %11412 = vmatpush2.bf16.msra.mxu0 %v13033_v2  ;;  %v489_v14 = vld [vmem:[%s19714_s1 + $0xe78] sm:$0xff] }
 0x515   :  { %11413 = vmatprep.subr.bf16.mxu0 %v13026_v42  ;;  %v581_v16 = vld [vmem:[%s19714_s1 + $0x1158] sm:$0xff]  ;;  %v13002_v60 = vcombine.high %v485_v12, %v489_v14  ;;  %v13001_v42 = vcombine.low %v485_v12, %v489_v14 }
 0x516   :  { %11379 = vmatpush2.bf16.msra.mxu1 %v12873_v49  ;;  %v585_v61 = vld [vmem:[%s19714_s1 + $0x1178] sm:$0xff] }
 0x517   :  { %11380 = vmatprep.subr.bf16.mxu1 %v12866_v54  ;;  %v13098_v52 = vcombine.high %v581_v16, %v585_v61  ;;  %v573_v28 = vld [vmem:[%s19714_s1 + $0x1118] sm:$0xff]  ;;  %v13097_v13 = vcombine.low %v581_v16, %v585_v61 }
 0x518   :  { %11414 = vmatpush2.bf16.msra.mxu0 %v13025_v36  ;;  %v725_v22 = vld [vmem:[%s19714_s1 + $0x15d8] sm:$0xff] }
 0x519   :  { %11415 = vmatprep.subr.bf16.mxu0 %v13018_v46  ;;  %v729_v36 = vld [vmem:[%s19714_s1 + $0x15f8] sm:$0xff] }
 0x51a   :  { %11381 = vmatpush2.bf16.msra.mxu1 %v12865_v39  ;;  %v565_v39 = vld [vmem:[%s19714_s1 + $0x10d8] sm:$0xff]  ;;  %v13242_v0 = vcombine.high %v725_v22, %v729_v36 }
 0x51b   :  { %11432 = vmatprep.subr.bf16.mxu1 %v13114_v48  ;;  %v11097_v38 = vpop.f32.mrf.mxu0  ;;  %v569_v46 = vld [vmem:[%s19714_s1 + $0x10f8] sm:$0xff] }
 0x51c   :  { %v11098_v57 = vadd.f32 %v11097_v38, %v18471_v53  ;;  %11416 = vmatpush2.bf16.msra.mxu0 %v13017_v7  ;;  %v477_v53 = vld [vmem:[%s19714_s1 + $0xe18] sm:$0xff]  ;;  %v13082_v19 = vcombine.high %v565_v39, %v569_v46  ;;  %v13081_v12 = vcombine.low %v565_v39, %v569_v46 }
 0x51d   :  { %v11138_v25 = vpop.f32.mrf.mxu1  ;;  %11383 = vmatmul.mubr.bf16.vlgmr.msra.gmra.mxu1 %v14858_v47  ;;  %v11099_v6 = vpop.f32.mrf.mxu0  ;;  %11417 = vmatprep.subr.bf16.mxu0 %v13010_v35  ;;  %v481_v47 = vld [vmem:[%s19714_s1 + $0xe38] sm:$0xff] }
 0x51e   :  { %11433 = vmatpush1.bf16.msra.mxu1 %v13113_v29  ;;  %v18673_v37 = vadd.f32 %v11138_v25, %v11098_v57  ;;  %v11100_v34 = vadd.f32 %v11099_v6, %v18487_v62  ;;  %11464 = vmatprep.mubr.bf16.mxu1 %v14873_v55  ;;  %v577_v62 = vld [vmem:[%s19714_s1 + $0x1138] sm:$0xff]  ;;  %v12994_v15 = vcombine.high %v477_v53, %v481_v47 }
 0x51f   :  { %v11140_v33 = vpop.f32.mrf.mxu1  ;;  %11434 = vmatprep.subr.bf16.mxu1 %v13106_v8  ;;  %v11101_v51 = vpop.f32.mrf.mxu0  ;;  %v13090_v30 = vcombine.high %v573_v28, %v577_v62  ;;  %v12993_v48 = vcombine.low %v477_v53, %v481_v47  ;;  %v13089_v50 = vcombine.low %v573_v28, %v577_v62  ;;  %v717_v9 = vld [vmem:[%s19714_s1 + $0x1598] sm:$0xff]  ;;  %v13241_v8 = vcombine.low %v725_v22, %v729_v36 }
 0x520   :  { %v18689_v2 = vadd.f32 %v11140_v33, %v11100_v34  ;;  %11418 = vmatpush2.bf16.msra.mxu0 %v13009_v1  ;;  %v721_v7 = vld [vmem:[%s19714_s1 + $0x15b8] sm:$0xff] }
 0x521   :  { %v11142_v49 = vpop.f32.mrf.mxu1  ;;  %v11102_v54 = vpop.f32.mrf.mxu0  ;;  %11419 = vmatprep.subr.bf16.mxu0 %v13002_v60  ;;  %v557_v29 = vld [vmem:[%s19714_s1 + $0x1098] sm:$0xff]  ;;  %v13234_v14 = vcombine.high %v717_v9, %v721_v7  ;;  %v13233_v1 = vcombine.low %v717_v9, %v721_v7 }
 0x522   :  { %11435 = vmatpush1.bf16.msra.mxu1 %v13105_v59  ;;  %v561_v35 = vld [vmem:[%s19714_s1 + $0x10b8] sm:$0xff] }
 0x523   :  { %v11143_v55 = vpop.f32.mrf.mxu1  ;;  %11436 = vmatprep.subr.bf16.mxu1 %v13098_v52  ;;  %v13074_v38 = vcombine.high %v557_v29, %v561_v35  ;;  %v709_v16 = vld [vmem:[%s19714_s1 + $0x1558] sm:$0xff]  ;;  %v13073_v6 = vcombine.low %v557_v29, %v561_v35 }
 0x524   :  { %11420 = vmatpush2.bf16.msra.mxu0 %v13001_v42  ;;  %v713_v61 = vld [vmem:[%s19714_s1 + $0x1578] sm:$0xff] }
 0x525   :  { %11421 = vmatprep.subr.bf16.mxu0 %v12994_v15  ;;  %v549_v57 = vld [vmem:[%s19714_s1 + $0x1058] sm:$0xff]  ;;  %v13226_v59 = vcombine.high %v709_v16, %v713_v61  ;;  %v13225_v52 = vcombine.low %v709_v16, %v713_v61 }
 0x526   :  { %11437 = vmatpush1.bf16.msra.mxu1 %v13097_v13  ;;  %v553_v25 = vld [vmem:[%s19714_s1 + $0x1078] sm:$0xff] }
 0x527   :  { %11438 = vmatprep.subr.bf16.mxu1 %v13090_v30  ;;  %v13066_v60 = vcombine.high %v549_v57, %v553_v25  ;;  %v705_v34 = vld [vmem:[%s19714_s1 + $0x1538] sm:$0xff]  ;;  %v13065_v53 = vcombine.low %v549_v57, %v553_v25 }
 0x528   :  { %11422 = vmatpush2.bf16.msra.mxu0 %v12993_v48  ;;  %v541_v33 = vld [vmem:[%s19714_s1 + $0x1018] sm:$0xff] }
 0x529   :  { %11473 = vmatprep.subr.bf16.mxu0 %v13242_v0  ;;  %v693_v28 = vld [vmem:[%s19714_s1 + $0x14d8] sm:$0xff] }
 0x52a   :  { %11439 = vmatpush1.bf16.msra.mxu1 %v13089_v50  ;;  %v697_v62 = vld [vmem:[%s19714_s1 + $0x14f8] sm:$0xff] }
 0x52b   :  { %11440 = vmatprep.subr.bf16.mxu1 %v13082_v19  ;;  %11424 = vmatmul.mubr.bf16.vlgmr.msra.gmra.mxu0 %v14877_v56  ;;  %v701_v56 = vld [vmem:[%s19714_s1 + $0x1518] sm:$0xff]  ;;  %v13210_v15 = vcombine.high %v693_v28, %v697_v62  ;;  %v13209_v46 = vcombine.low %v693_v28, %v697_v62 }
 0x52c   :  { %11474 = vmatpush1.bf16.msra.mxu0 %v13241_v8  ;;  %11505 = vmatprep.mubr.bf16.mxu0 %v14894_v3  ;;  %v545_v3 = vld [vmem:[%s19714_s1 + $0x1038] sm:$0xff]  ;;  %v13218_v47 = vcombine.high %v701_v56, %v705_v34  ;;  %v13217_v54 = vcombine.low %v701_v56, %v705_v34 }
 0x52d   :  { %11475 = vmatprep.subr.bf16.mxu0 %v13234_v14  ;;  %v13058_v51 = vcombine.high %v541_v33, %v545_v3  ;;  %v661_v49 = vld [vmem:[%s19714_s1 + $0x13d8] sm:$0xff]  ;;  %v13057_v13 = vcombine.low %v541_v33, %v545_v3 }
 0x52e   :  { %11441 = vmatpush1.bf16.msra.mxu1 %v13081_v12  ;;  %v665_v42 = vld [vmem:[%s19714_s1 + $0x13f8] sm:$0xff] }
 0x52f   :  { %11442 = vmatprep.subr.bf16.mxu1 %v13074_v38  ;;  %v13178_v55 = vcombine.high %v661_v49, %v665_v42  ;;  %v685_v30 = vld [vmem:[%s19714_s1 + $0x1498] sm:$0xff]  ;;  %v13177_v48 = vcombine.low %v661_v49, %v665_v42 }
 0x530   :  { %11476 = vmatpush1.bf16.msra.mxu0 %v13233_v1  ;;  %v689_v22 = vld [vmem:[%s19714_s1 + $0x14b8] sm:$0xff] }
 0x531   :  { %11477 = vmatprep.subr.bf16.mxu0 %v13226_v59  ;;  %v653_v36 = vld [vmem:[%s19714_s1 + $0x1398] sm:$0xff]  ;;  %v13202_v50 = vcombine.high %v685_v30, %v689_v22  ;;  %v13201_v35 = vcombine.low %v685_v30, %v689_v22 }
 0x532   :  { %11443 = vmatpush1.bf16.msra.mxu1 %v13073_v6  ;;  %v657_v39 = vld [vmem:[%s19714_s1 + $0x13b8] sm:$0xff] }
 0x533   :  { %11444 = vmatprep.subr.bf16.mxu1 %v13066_v60  ;;  %v13170_v0 = vcombine.high %v653_v36, %v657_v39  ;;  %v677_v19 = vld [vmem:[%s19714_s1 + $0x1458] sm:$0xff]  ;;  %v13169_v8 = vcombine.low %v653_v36, %v657_v39 }
 0x534   :  { %11478 = vmatpush1.bf16.msra.mxu0 %v13225_v52  ;;  %v681_v9 = vld [vmem:[%s19714_s1 + $0x1478] sm:$0xff] }
 0x535   :  { %11479 = vmatprep.subr.bf16.mxu0 %v13218_v47  ;;  %v645_v7 = vld [vmem:[%s19714_s1 + $0x1358] sm:$0xff]  ;;  %v13194_v12 = vcombine.high %v677_v19, %v681_v9  ;;  %v13193_v25 = vcombine.low %v677_v19, %v681_v9 }
 0x536   :  { %11445 = vmatpush1.bf16.msra.mxu1 %v13065_v53  ;;  %v649_v29 = vld [vmem:[%s19714_s1 + $0x1378] sm:$0xff] }
 0x537   :  { %11446 = vmatprep.subr.bf16.mxu1 %v13058_v51  ;;  %v13162_v14 = vcombine.high %v645_v7, %v649_v29  ;;  %v669_v38 = vld [vmem:[%s19714_s1 + $0x1418] sm:$0xff]  ;;  %v13161_v1 = vcombine.low %v645_v7, %v649_v29 }
 0x538   :  { %11480 = vmatpush1.bf16.msra.mxu0 %v13217_v54  ;;  %v673_v16 = vld [vmem:[%s19714_s1 + $0x1438] sm:$0xff] }
 0x539   :  { %11481 = vmatprep.subr.bf16.mxu0 %v13210_v15  ;;  %v637_v61 = vld [vmem:[%s19714_s1 + $0x1318] sm:$0xff]  ;;  %v13186_v6 = vcombine.high %v669_v38, %v673_v16  ;;  %v13185_v3 = vcombine.low %v669_v38, %v673_v16 }
 0x53a   :  { %11447 = vmatpush1.bf16.msra.mxu1 %v13057_v13  ;;  %v641_v57 = vld [vmem:[%s19714_s1 + $0x1338] sm:$0xff] }
 0x53b   :  { %11448 = vmatprep.subr.bf16.mxu1 %v13178_v55  ;;  %v13154_v59 = vcombine.high %v637_v61, %v641_v57  ;;  %v789_v60 = vld [vmem:[%s19714_s1 + $0x17d8] sm:$0xff]  ;;  %v13153_v52 = vcombine.low %v637_v61, %v641_v57 }
 0x53c   :  { %11482 = vmatpush1.bf16.msra.mxu0 %v13209_v46  ;;  %v793_v56 = vld [vmem:[%s19714_s1 + $0x17f8] sm:$0xff] }
 0x53d   :  { %11483 = vmatprep.subr.bf16.mxu0 %v13202_v50  ;;  %v629_v34 = vld [vmem:[%s19714_s1 + $0x12d8] sm:$0xff]  ;;  %v13306_v53 = vcombine.high %v789_v60, %v793_v56  ;;  %v13305_v42 = vcombine.low %v789_v60, %v793_v56 }
 0x53e   :  { %11449 = vmatpush2.bf16.msra.mxu1 %v13177_v48  ;;  %v633_v33 = vld [vmem:[%s19714_s1 + $0x12f8] sm:$0xff] }
 0x53f   :  { %11450 = vmatprep.subr.bf16.mxu1 %v13170_v0  ;;  %v13146_v47 = vcombine.high %v629_v34, %v633_v33  ;;  %v781_v51 = vld [vmem:[%s19714_s1 + $0x1798] sm:$0xff]  ;;  %v13145_v54 = vcombine.low %v629_v34, %v633_v33 }
 0x540   :  { %11484 = vmatpush1.bf16.msra.mxu0 %v13201_v35  ;;  %v785_v28 = vld [vmem:[%s19714_s1 + $0x17b8] sm:$0xff] }
 0x541   :  { %11485 = vmatprep.subr.bf16.mxu0 %v13194_v12  ;;  %v621_v62 = vld [vmem:[%s19714_s1 + $0x1298] sm:$0xff]  ;;  %v13298_v13 = vcombine.high %v781_v51, %v785_v28  ;;  %v13297_v39 = vcombine.low %v781_v51, %v785_v28 }
 0x542   :  { %11451 = vmatpush2.bf16.msra.mxu1 %v13169_v8  ;;  %v625_v49 = vld [vmem:[%s19714_s1 + $0x12b8] sm:$0xff] }
 0x543   :  { %11452 = vmatprep.subr.bf16.mxu1 %v13162_v14  ;;  %v13138_v15 = vcombine.high %v621_v62, %v625_v49  ;;  %v773_v55 = vld [vmem:[%s19714_s1 + $0x1758] sm:$0xff]  ;;  %v13137_v46 = vcombine.low %v621_v62, %v625_v49 }
 0x544   :  { %11486 = vmatpush1.bf16.msra.mxu0 %v13193_v25  ;;  %v777_v30 = vld [vmem:[%s19714_s1 + $0x1778] sm:$0xff] }
 0x545   :  { %11487 = vmatprep.subr.bf16.mxu0 %v13186_v6  ;;  %v613_v22 = vld [vmem:[%s19714_s1 + $0x1258] sm:$0xff]  ;;  %v13290_v48 = vcombine.high %v773_v55, %v777_v30  ;;  %v13289_v29 = vcombine.low %v773_v55, %v777_v30 }
 0x546   :  { %11453 = vmatpush2.bf16.msra.mxu1 %v13161_v1  ;;  %v617_v36 = vld [vmem:[%s19714_s1 + $0x1278] sm:$0xff] }
 0x547   :  { %11454 = vmatprep.subr.bf16.mxu1 %v13154_v59  ;;  %v13130_v50 = vcombine.high %v613_v22, %v617_v36  ;;  %v765_v0 = vld [vmem:[%s19714_s1 + $0x1718] sm:$0xff]  ;;  %v13129_v35 = vcombine.low %v613_v22, %v617_v36 }
 0x548   :  { %11488 = vmatpush1.bf16.msra.mxu0 %v13185_v3  ;;  %v769_v19 = vld [vmem:[%s19714_s1 + $0x1738] sm:$0xff] }
 0x549   :  { %11489 = vmatprep.subr.bf16.mxu0 %v13306_v53  ;;  %v605_v9 = vld [vmem:[%s19714_s1 + $0x1218] sm:$0xff]  ;;  %v13282_v8 = vcombine.high %v765_v0, %v769_v19  ;;  %v13281_v57 = vcombine.low %v765_v0, %v769_v19 }
 0x54a   :  { %11455 = vmatpush2.bf16.msra.mxu1 %v13153_v52  ;;  %v609_v7 = vld [vmem:[%s19714_s1 + $0x1238] sm:$0xff] }
 0x54b   :  { %11456 = vmatprep.subr.bf16.mxu1 %v13146_v47  ;;  %v13122_v12 = vcombine.high %v605_v9, %v609_v7  ;;  %v757_v14 = vld [vmem:[%s19714_s1 + $0x16d8] sm:$0xff]  ;;  %v13121_v25 = vcombine.low %v605_v9, %v609_v7 }
 0x54c   :  { %11490 = vmatpush2.bf16.msra.mxu0 %v13305_v42  ;;  %v761_v38 = vld [vmem:[%s19714_s1 + $0x16f8] sm:$0xff] }
 0x54d   :  { %11491 = vmatprep.subr.bf16.mxu0 %v13298_v13  ;;  %v853_v16 = vld [vmem:[%s19714_s1 + $0x19d8] sm:$0xff]  ;;  %v13274_v1 = vcombine.high %v757_v14, %v761_v38  ;;  %v13273_v33 = vcombine.low %v757_v14, %v761_v38 }
 0x54e   :  { %11457 = vmatpush2.bf16.msra.mxu1 %v13145_v54  ;;  %v857_v61 = vld [vmem:[%s19714_s1 + $0x19f8] sm:$0xff] }
 0x54f   :  { %11458 = vmatprep.subr.bf16.mxu1 %v13138_v15  ;;  %v13370_v6 = vcombine.high %v853_v16, %v857_v61  ;;  %v749_v59 = vld [vmem:[%s19714_s1 + $0x1698] sm:$0xff]  ;;  %v13369_v3 = vcombine.low %v853_v16, %v857_v61 }
 0x550   :  { %11492 = vmatpush2.bf16.msra.mxu0 %v13297_v39  ;;  %v753_v60 = vld [vmem:[%s19714_s1 + $0x16b8] sm:$0xff] }
 0x551   :  { %11493 = vmatprep.subr.bf16.mxu0 %v13290_v48  ;;  %v845_v56 = vld [vmem:[%s19714_s1 + $0x1998] sm:$0xff]  ;;  %v13266_v52 = vcombine.high %v749_v59, %v753_v60  ;;  %v13265_v13 = vcombine.low %v749_v59, %v753_v60 }
 0x552   :  { %11459 = vmatpush2.bf16.msra.mxu1 %v13137_v46  ;;  %v849_v34 = vld [vmem:[%s19714_s1 + $0x19b8] sm:$0xff] }
 0x553   :  { %11460 = vmatprep.subr.bf16.mxu1 %v13130_v50  ;;  %v13362_v53 = vcombine.high %v845_v56, %v849_v34  ;;  %v741_v47 = vld [vmem:[%s19714_s1 + $0x1658] sm:$0xff]  ;;  %v13361_v55 = vcombine.low %v845_v56, %v849_v34 }
 0x554   :  { %11494 = vmatpush2.bf16.msra.mxu0 %v13289_v29  ;;  %v745_v51 = vld [vmem:[%s19714_s1 + $0x1678] sm:$0xff] }
 0x555   :  { %11495 = vmatprep.subr.bf16.mxu0 %v13282_v8  ;;  %v837_v62 = vld [vmem:[%s19714_s1 + $0x1958] sm:$0xff]  ;;  %v13258_v30 = vcombine.high %v741_v47, %v745_v51  ;;  %v13257_v9 = vcombine.low %v741_v47, %v745_v51 }
 0x556   :  { %11461 = vmatpush2.bf16.msra.mxu1 %v13129_v35  ;;  %v841_v49 = vld [vmem:[%s19714_s1 + $0x1978] sm:$0xff] }
 0x557   :  { %11462 = vmatprep.subr.bf16.mxu1 %v13122_v12  ;;  %v13354_v46 = vcombine.high %v837_v62, %v841_v49  ;;  %v829_v50 = vld [vmem:[%s19714_s1 + $0x1918] sm:$0xff]  ;;  %v13353_v29 = vcombine.low %v837_v62, %v841_v49 }
 0x558   :  { %11496 = vmatpush2.bf16.msra.mxu0 %v13281_v57  ;;  %v981_v12 = vld [vmem:[%s19714_s1 + $0x1dd8] sm:$0xff] }
 0x559   :  { %11497 = vmatprep.subr.bf16.mxu0 %v13274_v1  ;;  %v985_v14 = vld [vmem:[%s19714_s1 + $0x1df8] sm:$0xff] }
 0x55a   :  { %11463 = vmatpush2.bf16.msra.mxu1 %v13121_v25  ;;  %v821_v38 = vld [vmem:[%s19714_s1 + $0x18d8] sm:$0xff]  ;;  %v13498_v25 = vcombine.high %v981_v12, %v985_v14  ;;  %v13497_v34 = vcombine.low %v981_v12, %v985_v14 }
 0x55b   :  { %11514 = vmatprep.subr.bf16.mxu1 %v13370_v6  ;;  %v11179_v28 = vpop.f32.mrf.mxu0  ;;  %v825_v16 = vld [vmem:[%s19714_s1 + $0x18f8] sm:$0xff] }
 0x55c   :  { %v11180_v42 = vadd.f32 %v11179_v28, %v18673_v37  ;;  %11498 = vmatpush2.bf16.msra.mxu0 %v13273_v33  ;;  %v733_v37 = vld [vmem:[%s19714_s1 + $0x1618] sm:$0xff]  ;;  %v13338_v1 = vcombine.high %v821_v38, %v825_v16  ;;  %v13337_v33 = vcombine.low %v821_v38, %v825_v16 }
 0x55d   :  { %v11220_v54 = vpop.f32.mrf.mxu1  ;;  %11465 = vmatmul.mubr.bf16.vlgmr.msra.gmra.mxu1 %v15076_v21  ;;  %v11181_v15 = vpop.f32.mrf.mxu0  ;;  %11499 = vmatprep.subr.bf16.mxu0 %v13266_v52  ;;  %v737_v21 = vld [vmem:[%s19714_s1 + $0x1638] sm:$0xff] }
 0x55e   :  { %11515 = vmatpush1.bf16.msra.mxu1 %v13369_v3  ;;  %v11221_v22 = vadd.f32 %v11220_v54, %v11180_v42  ;;  %v11182_v36 = vadd.f32 %v11181_v15, %v18689_v2  ;;  %11546 = vmatprep.mubr.bf16.mxu1 %v15091_v31  ;;  %v833_v2 = vld [vmem:[%s19714_s1 + $0x1938] sm:$0xff]  ;;  %v13250_v35 = vcombine.high %v733_v37, %v737_v21 }
 0x55f   :  { %v11222_v39 = vpop.f32.mrf.mxu1  ;;  %11516 = vmatprep.subr.bf16.mxu1 %v13362_v53  ;;  %v11183_v48 = vpop.f32.mrf.mxu0  ;;  %v13346_v31 = vcombine.high %v829_v50, %v833_v2  ;;  %v13249_v61 = vcombine.low %v733_v37, %v737_v21  ;;  %v13345_v57 = vcombine.low %v829_v50, %v833_v2  ;;  %v973_v6 = vld [vmem:[%s19714_s1 + $0x1d98] sm:$0xff] }
 0x560   :  { %v11223_v0 = vadd.f32 %v11222_v39, %v11182_v36  ;;  %11500 = vmatpush2.bf16.msra.mxu0 %v13265_v13  ;;  %v977_v59 = vld [vmem:[%s19714_s1 + $0x1db8] sm:$0xff] }
 0x561   :  { %v11224_v19 = vpop.f32.mrf.mxu1  ;;  %v11184_v7 = vpop.f32.mrf.mxu0  ;;  %11501 = vmatprep.subr.bf16.mxu0 %v13258_v30  ;;  %v813_v60 = vld [vmem:[%s19714_s1 + $0x1898] sm:$0xff]  ;;  %v13490_v3 = vcombine.high %v973_v6, %v977_v59  ;;  %v13489_v42 = vcombine.low %v973_v6, %v977_v59 }
 0x562   :  { %11517 = vmatpush1.bf16.msra.mxu1 %v13361_v55  ;;  %v817_v56 = vld [vmem:[%s19714_s1 + $0x18b8] sm:$0xff] }
 0x563   :  { %v11225_v8 = vpop.f32.mrf.mxu1  ;;  %11518 = vmatprep.subr.bf16.mxu1 %v13354_v46  ;;  %v13330_v52 = vcombine.high %v813_v60, %v817_v56  ;;  %v965_v53 = vld [vmem:[%s19714_s1 + $0x1d58] sm:$0xff]  ;;  %v13329_v13 = vcombine.low %v813_v60, %v817_v56 }
 0x564   :  { %11502 = vmatpush2.bf16.msra.mxu0 %v13257_v9  ;;  %v969_v47 = vld [vmem:[%s19714_s1 + $0x1d78] sm:$0xff] }
 0x565   :  { %11503 = vmatprep.subr.bf16.mxu0 %v13250_v35  ;;  %v805_v28 = vld [vmem:[%s19714_s1 + $0x1858] sm:$0xff]  ;;  %v13482_v15 = vcombine.high %v965_v53, %v969_v47  ;;  %v13481_v46 = vcombine.low %v965_v53, %v969_v47 }
 0x566   :  { %11519 = vmatpush1.bf16.msra.mxu1 %v13353_v29  ;;  %v809_v62 = vld [vmem:[%s19714_s1 + $0x1878] sm:$0xff] }
 0x567   :  { %11520 = vmatprep.subr.bf16.mxu1 %v13346_v31  ;;  %v13322_v55 = vcombine.high %v805_v28, %v809_v62  ;;  %v957_v30 = vld [vmem:[%s19714_s1 + $0x1d18] sm:$0xff]  ;;  %v13321_v21 = vcombine.low %v805_v28, %v809_v62 }
 0x568   :  { %11504 = vmatpush2.bf16.msra.mxu0 %v13249_v61  ;;  %v801_v39 = vld [vmem:[%s19714_s1 + $0x1838] sm:$0xff] }
 0x569   :  { %11555 = vmatprep.subr.bf16.mxu0 %v13498_v25  ;;  %v949_v2 = vld [vmem:[%s19714_s1 + $0x1cd8] sm:$0xff] }
 0x56a   :  { %11521 = vmatpush1.bf16.msra.mxu1 %v13345_v57  ;;  %v917_v19 = vld [vmem:[%s19714_s1 + $0x1bd8] sm:$0xff] }
 0x56b   :  { %11522 = vmatprep.subr.bf16.mxu1 %v13338_v1  ;;  %v11261_v51 = vpop.f32.mrf.mxu0  ;;  %11506 = vmatmul.mubr.bf16.vlgmr.msra.gmra.mxu0 %v15095_v32  ;;  %v921_v9 = vld [vmem:[%s19714_s1 + $0x1bf8] sm:$0xff] }
 0x56c   :  { %v18926_v49 = vadd.f32 %v11261_v51, %v11221_v22  ;;  %11556 = vmatpush1.bf16.msra.mxu0 %v13497_v34  ;;  %11587 = vmatprep.mubr.bf16.mxu0 %v15112_v44  ;;  %v961_v22 = vld [vmem:[%s19714_s1 + $0x1d38] sm:$0xff]  ;;  %v13434_v8 = vcombine.high %v917_v19, %v921_v9  ;;  %v13433_v61 = vcombine.low %v917_v19, %v921_v9 }
 0x56d   :  { %v11263_v54 = vpop.f32.mrf.mxu0  ;;  %11557 = vmatprep.subr.bf16.mxu0 %v13490_v3  ;;  %v797_v44 = vld [vmem:[%s19714_s1 + $0x1818] sm:$0xff]  ;;  %v13474_v48 = vcombine.high %v957_v30, %v961_v22  ;;  %v13473_v7 = vcombine.low %v957_v30, %v961_v22 }
 0x56e   :  { %11523 = vmatpush1.bf16.msra.mxu1 %v13337_v33  ;;  %v18929_v32 = vadd.f32 %v11263_v54, %v11223_v0  ;;  %v13314_v50 = vcombine.high %v797_v44, %v801_v39  ;;  %v953_v0 = vld [vmem:[%s19714_s1 + $0x1cf8] sm:$0xff]  ;;  %v13313_v29 = vcombine.low %v797_v44, %v801_v39 }
 0x56f   :  { %11524 = vmatprep.subr.bf16.mxu1 %v13330_v52  ;;  %v11265_v36 = vpop.f32.mrf.mxu0  ;;  %v13466_v35 = vcombine.high %v949_v2, %v953_v0  ;;  %v941_v31 = vld [vmem:[%s19714_s1 + $0x1c98] sm:$0xff]  ;;  %v13465_v16 = vcombine.low %v949_v2, %v953_v0 }
 0x570   :  { %11558 = vmatpush1.bf16.msra.mxu0 %v13489_v42  ;;  %v945_v12 = vld [vmem:[%s19714_s1 + $0x1cb8] sm:$0xff] }
 0x571   :  { %v11266_v37 = vpop.f32.mrf.mxu0  ;;  %11559 = vmatprep.subr.bf16.mxu0 %v13482_v15  ;;  %v909_v14 = vld [vmem:[%s19714_s1 + $0x1b98] sm:$0xff]  ;;  %v13458_v57 = vcombine.high %v941_v31, %v945_v12  ;;  %v13457_v56 = vcombine.low %v941_v31, %v945_v12 }
 0x572   :  { %11525 = vmatpush1.bf16.msra.mxu1 %v13329_v13  ;;  %v913_v38 = vld [vmem:[%s19714_s1 + $0x1bb8] sm:$0xff] }
 0x573   :  { %11526 = vmatprep.subr.bf16.mxu1 %v13322_v55  ;;  %v13426_v25 = vcombine.high %v909_v14, %v913_v38  ;;  %v933_v1 = vld [vmem:[%s19714_s1 + $0x1c58] sm:$0xff]  ;;  %v13425_v34 = vcombine.low %v909_v14, %v913_v38 }
 0x574   :  { %11560 = vmatpush1.bf16.msra.mxu0 %v13481_v46  ;;  %v937_v6 = vld [vmem:[%s19714_s1 + $0x1c78] sm:$0xff] }
 0x575   :  { %11561 = vmatprep.subr.bf16.mxu0 %v13474_v48  ;;  %v901_v59 = vld [vmem:[%s19714_s1 + $0x1b58] sm:$0xff]  ;;  %v13450_v33 = vcombine.high %v933_v1, %v937_v6  ;;  %v13449_v28 = vcombine.low %v933_v1, %v937_v6 }
 0x576   :  { %11527 = vmatpush1.bf16.msra.mxu1 %v13321_v21  ;;  %v905_v60 = vld [vmem:[%s19714_s1 + $0x1b78] sm:$0xff] }
 0x577   :  { %11528 = vmatprep.subr.bf16.mxu1 %v13314_v50  ;;  %v13418_v3 = vcombine.high %v901_v59, %v905_v60  ;;  %v925_v52 = vld [vmem:[%s19714_s1 + $0x1c18] sm:$0xff]  ;;  %v13417_v62 = vcombine.low %v901_v59, %v905_v60 }
 0x578   :  { %11562 = vmatpush1.bf16.msra.mxu0 %v13473_v7  ;;  %v929_v53 = vld [vmem:[%s19714_s1 + $0x1c38] sm:$0xff] }
 0x579   :  { %11563 = vmatprep.subr.bf16.mxu0 %v13466_v35  ;;  %v893_v47 = vld [vmem:[%s19714_s1 + $0x1b18] sm:$0xff]  ;;  %v13442_v42 = vcombine.high %v925_v52, %v929_v53  ;;  %v13441_v22 = vcombine.low %v925_v52, %v929_v53 }
 0x57a   :  { %11529 = vmatpush1.bf16.msra.mxu1 %v13313_v29  ;;  %v897_v51 = vld [vmem:[%s19714_s1 + $0x1b38] sm:$0xff] }
 0x57b   :  { %11530 = vmatprep.subr.bf16.mxu1 %v13434_v8  ;;  %v13410_v54 = vcombine.high %v893_v47, %v897_v51  ;;  %v1045_v13 = vld [vmem:[%s19714_s1 + $0x1fd8] sm:$0xff]  ;;  %v13409_v36 = vcombine.low %v893_v47, %v897_v51 }
 0x57c   :  { %11564 = vmatpush1.bf16.msra.mxu0 %v13465_v16  ;;  %v1049_v15 = vld [vmem:[%s19714_s1 + $0x1ff8] sm:$0xff] }
 0x57d   :  { %11565 = vmatprep.subr.bf16.mxu0 %v13458_v57  ;;  %v885_v55 = vld [vmem:[%s19714_s1 + $0x1ad8] sm:$0xff]  ;;  %v13562_v44 = vcombine.high %v1045_v13, %v1049_v15  ;;  %v13561_v50 = vcombine.low %v1045_v13, %v1049_v15 }
 0x57e   :  { %11531 = vmatpush2.bf16.msra.mxu1 %v13433_v61  ;;  %v889_v30 = vld [vmem:[%s19714_s1 + $0x1af8] sm:$0xff] }
 0x57f   :  { %11532 = vmatprep.subr.bf16.mxu1 %v13426_v25  ;;  %v13402_v39 = vcombine.high %v885_v55, %v889_v30  ;;  %v1037_v46 = vld [vmem:[%s19714_s1 + $0x1f98] sm:$0xff]  ;;  %v13401_v2 = vcombine.low %v885_v55, %v889_v30 }
 0x580   :  { %11566 = vmatpush1.bf16.msra.mxu0 %v13457_v56  ;;  %v1041_v37 = vld [vmem:[%s19714_s1 + $0x1fb8] sm:$0xff] }
 0x581   :  { %11567 = vmatprep.subr.bf16.mxu0 %v13450_v33  ;;  %v877_v21 = vld [vmem:[%s19714_s1 + $0x1a98] sm:$0xff]  ;;  %v13554_v0 = vcombine.high %v1037_v46, %v1041_v37  ;;  %v13553_v8 = vcombine.low %v1037_v46, %v1041_v37 }
 0x582   :  { %11533 = vmatpush2.bf16.msra.mxu1 %v13425_v34  ;;  %v881_v48 = vld [vmem:[%s19714_s1 + $0x1ab8] sm:$0xff] }
 0x583   :  { %11534 = vmatprep.subr.bf16.mxu1 %v13418_v3  ;;  %v13394_v19 = vcombine.high %v877_v21, %v881_v48  ;;  %v1029_v9 = vld [vmem:[%s19714_s1 + $0x1f58] sm:$0xff]  ;;  %v13393_v31 = vcombine.low %v877_v21, %v881_v48 }
 0x584   :  { %11568 = vmatpush1.bf16.msra.mxu0 %v13449_v28  ;;  %v1033_v7 = vld [vmem:[%s19714_s1 + $0x1f78] sm:$0xff] }
 0x585   :  { %11569 = vmatprep.subr.bf16.mxu0 %v13442_v42  ;;  %v869_v29 = vld [vmem:[%s19714_s1 + $0x1a58] sm:$0xff]  ;;  %v13546_v12 = vcombine.high %v1029_v9, %v1033_v7  ;;  %v13545_v25 = vcombine.low %v1029_v9, %v1033_v7 }
 0x586   :  { %11535 = vmatpush2.bf16.msra.mxu1 %v13417_v62  ;;  %v873_v35 = vld [vmem:[%s19714_s1 + $0x1a78] sm:$0xff] }
 0x587   :  { %11536 = vmatprep.subr.bf16.mxu1 %v13410_v54  ;;  %v13386_v14 = vcombine.high %v869_v29, %v873_v35  ;;  %v1021_v38 = vld [vmem:[%s19714_s1 + $0x1f18] sm:$0xff]  ;;  %v13385_v1 = vcombine.low %v869_v29, %v873_v35 }
 0x588   :  { %11570 = vmatpush1.bf16.msra.mxu0 %v13441_v22  ;;  %v1025_v16 = vld [vmem:[%s19714_s1 + $0x1f38] sm:$0xff] }
 0x589   :  { %11571 = vmatprep.subr.bf16.mxu0 %v13562_v44  ;;  %v861_v61 = vld [vmem:[%s19714_s1 + $0x1a18] sm:$0xff]  ;;  %v13538_v6 = vcombine.high %v1021_v38, %v1025_v16  ;;  %v13537_v3 = vcombine.low %v1021_v38, %v1025_v16 }
 0x58a   :  { %11537 = vmatpush2.bf16.msra.mxu1 %v13409_v36  ;;  %v865_v57 = vld [vmem:[%s19714_s1 + $0x1a38] sm:$0xff] }
 0x58b   :  { %11538 = vmatprep.subr.bf16.mxu1 %v13402_v39  ;;  %v13378_v59 = vcombine.high %v861_v61, %v865_v57  ;;  %v1013_v60 = vld [vmem:[%s19714_s1 + $0x1ed8] sm:$0xff]  ;;  %v13377_v52 = vcombine.low %v861_v61, %v865_v57  ;;  %v1626_v61 = vsub.s32 7, %v14464_v43 }
 0x58c   :  { %11572 = vmatpush2.bf16.msra.mxu0 %v13561_v50  ;;  %v1017_v56 = vld [vmem:[%s19714_s1 + $0x1ef8] sm:$0xff] }
 0x58d   :  { %11573 = vmatprep.subr.bf16.mxu0 %v13554_v0  ;;  %v1109_v34 = vld [vmem:[%s19714_s1 + $0x21d8] sm:$0xff]  ;;  %v13530_v53 = vcombine.high %v1013_v60, %v1017_v56  ;;  %v13529_v54 = vcombine.low %v1013_v60, %v1017_v56 }
 0x58e   :  { %11539 = vmatpush2.bf16.msra.mxu1 %v13401_v2  ;;  %v1113_v33 = vld [vmem:[%s19714_s1 + $0x21f8] sm:$0xff] }
 0x58f   :  { %11540 = vmatprep.subr.bf16.mxu1 %v13394_v19  ;;  %v13626_v47 = vcombine.high %v1109_v34, %v1113_v33  ;;  %v1005_v51 = vld [vmem:[%s19714_s1 + $0x1e98] sm:$0xff]  ;;  %v13625_v13 = vcombine.low %v1109_v34, %v1113_v33 }
 0x590   :  { %11574 = vmatpush2.bf16.msra.mxu0 %v13553_v8  ;;  %v1009_v28 = vld [vmem:[%s19714_s1 + $0x1eb8] sm:$0xff]  ;;  %v1622_v8 = vsub.s32 6, %v14464_v43 }
 0x591   :  { %11575 = vmatprep.subr.bf16.mxu0 %v13546_v12  ;;  %v1101_v62 = vld [vmem:[%s19714_s1 + $0x2198] sm:$0xff]  ;;  %v13522_v15 = vcombine.high %v1005_v51, %v1009_v28  ;;  %v13521_v46 = vcombine.low %v1005_v51, %v1009_v28 }
 0x592   :  { %11541 = vmatpush2.bf16.msra.mxu1 %v13393_v31  ;;  %v1105_v42 = vld [vmem:[%s19714_s1 + $0x21b8] sm:$0xff] }
 0x593   :  { %11542 = vmatprep.subr.bf16.mxu1 %v13386_v14  ;;  %v13618_v55 = vcombine.high %v1101_v62, %v1105_v42  ;;  %v997_v30 = vld [vmem:[%s19714_s1 + $0x1e58] sm:$0xff]  ;;  %v13617_v37 = vcombine.low %v1101_v62, %v1105_v42 }
 0x594   :  { %11576 = vmatpush2.bf16.msra.mxu0 %v13545_v25  ;;  %v1001_v22 = vld [vmem:[%s19714_s1 + $0x1e78] sm:$0xff] }
 0x595   :  { %11577 = vmatprep.subr.bf16.mxu0 %v13538_v6  ;;  %v1093_v36 = vld [vmem:[%s19714_s1 + $0x2158] sm:$0xff]  ;;  %v13514_v21 = vcombine.high %v997_v30, %v1001_v22  ;;  %v13513_v7 = vcombine.low %v997_v30, %v1001_v22  ;;  %v14341_v6 = vld [vmem:[%s19715_s2] sm:$0xff] }
 0x596   :  { %11543 = vmatpush2.bf16.msra.mxu1 %v13385_v1  ;;  %v1097_v44 = vld [vmem:[%s19714_s1 + $0x2178] sm:$0xff] }
 0x597   :  { %11544 = vmatprep.subr.bf16.mxu1 %v13378_v59  ;;  %v13610_v50 = vcombine.high %v1093_v36, %v1097_v44  ;;  %v989_v2 = vld [vmem:[%s19714_s1 + $0x1e18] sm:$0xff]  ;;  %v13609_v29 = vcombine.low %v1093_v36, %v1097_v44  ;;  %v1623_v59 = vrot.slane %v14341_v6, %v1622_v8 }
 0x598   :  { %11578 = vmatpush2.bf16.msra.mxu0 %v13537_v3  ;;  %v993_v0 = vld [vmem:[%s19714_s1 + $0x1e38] sm:$0xff]  ;;  %v1627_v3 = vrot.slane %v14341_v6, %v1626_v61 }
 0x599   :  { %11579 = vmatprep.subr.bf16.mxu0 %v13530_v53  ;;  %v1089_v19 = vld [vmem:[%s19714_s1 + $0x2138] sm:$0xff]  ;;  %v13506_v35 = vcombine.high %v989_v2, %v993_v0  ;;  %v13505_v57 = vcombine.low %v989_v2, %v993_v0 }
 0x59a   :  { %11545 = vmatpush2.bf16.msra.mxu1 %v13377_v52  ;;  %v1237_v12 = vld [vmem:[%s19714_s1 + $0x25d8] sm:$0xff] }
 0x59b   :  { %11596 = vmatprep.subr.bf16.mxu1 %v13626_v47  ;;  %v1241_v14 = vld [vmem:[%s19714_s1 + $0x25f8] sm:$0xff] }
 0x59c   :  { %11580 = vmatpush2.bf16.msra.mxu0 %v13529_v54  ;;  %v1077_v38 = vld [vmem:[%s19714_s1 + $0x20d8] sm:$0xff]  ;;  %v13754_v1 = vcombine.high %v1237_v12, %v1241_v14  ;;  %v13753_v52 = vcombine.low %v1237_v12, %v1241_v14 }
 0x59d   :  { %v11302_v39 = vpop.f32.mrf.mxu1  ;;  %11547 = vmatmul.mubr.bf16.vlgmr.msra.gmra.mxu1 %v15299_v11  ;;  %11581 = vmatprep.subr.bf16.mxu0 %v13522_v15  ;;  %v1085_v11 = vld [vmem:[%s19714_s1 + $0x2118] sm:$0xff] }
 0x59e   :  { %11597 = vmatpush1.bf16.msra.mxu1 %v13625_v13  ;;  %11628 = vmatprep.mubr.bf16.mxu1 %v15318_v23  ;;  %v13602_v23 = vcombine.high %v1085_v11, %v1089_v19  ;;  %v1081_v16 = vld [vmem:[%s19714_s1 + $0x20f8] sm:$0xff]  ;;  %v13601_v25 = vcombine.low %v1085_v11, %v1089_v19  ;;  %v11303_v51 = vadd.f32 %v11302_v39, %v1623_v59 }
 0x59f   :  { %v11304_v48 = vpop.f32.mrf.mxu1  ;;  %11598 = vmatprep.subr.bf16.mxu1 %v13618_v55  ;;  %v13594_v60 = vcombine.high %v1077_v38, %v1081_v16  ;;  %v1229_v56 = vld [vmem:[%s19714_s1 + $0x2598] sm:$0xff]  ;;  %v13593_v53 = vcombine.low %v1077_v38, %v1081_v16 }
 0x5a0   :  { %11582 = vmatpush2.bf16.msra.mxu0 %v13521_v46  ;;  %v1233_v43 = vld [vmem:[%s19714_s1 + $0x25b8] sm:$0xff]  ;;  %v11305_v55 = vadd.f32 %v11304_v48, %v1627_v3 }
 0x5a1   :  { %v11306_v9 = vpop.f32.mrf.mxu1  ;;  %11583 = vmatprep.subr.bf16.mxu0 %v13514_v21  ;;  %v1069_v34 = vld [vmem:[%s19714_s1 + $0x2098] sm:$0xff]  ;;  %v13746_v47 = vcombine.high %v1229_v56, %v1233_v43  ;;  %v13745_v22 = vcombine.low %v1229_v56, %v1233_v43 }
 0x5a2   :  { %11599 = vmatpush1.bf16.msra.mxu1 %v13617_v37  ;;  %v1073_v33 = vld [vmem:[%s19714_s1 + $0x20b8] sm:$0xff] }
 0x5a3   :  { %v11307_v31 = vpop.f32.mrf.mxu1  ;;  %11600 = vmatprep.subr.bf16.mxu1 %v13610_v50  ;;  %v13586_v28 = vcombine.high %v1069_v34, %v1073_v33  ;;  %v1221_v62 = vld [vmem:[%s19714_s1 + $0x2558] sm:$0xff]  ;;  %v13585_v44 = vcombine.low %v1069_v34, %v1073_v33 }
 0x5a4   :  { %11584 = vmatpush2.bf16.msra.mxu0 %v13513_v7  ;;  %v1225_v42 = vld [vmem:[%s19714_s1 + $0x2578] sm:$0xff] }
 0x5a5   :  { %11585 = vmatprep.subr.bf16.mxu0 %v13506_v35  ;;  %v1061_v13 = vld [vmem:[%s19714_s1 + $0x2058] sm:$0xff]  ;;  %v13737_v2 = vcombine.low %v1221_v62, %v1225_v42 }
 0x5a6   :  { %11601 = vmatpush1.bf16.msra.mxu1 %v13609_v29  ;;  %v1065_v15 = vld [vmem:[%s19714_s1 + $0x2078] sm:$0xff] }
 0x5a7   :  { %11602 = vmatprep.subr.bf16.mxu1 %v13602_v23  ;;  %v13578_v46 = vcombine.high %v1061_v13, %v1065_v15  ;;  %v1213_v37 = vld [vmem:[%s19714_s1 + $0x2518] sm:$0xff]  ;;  %v13577_v11 = vcombine.low %v1061_v13, %v1065_v15 }
 0x5a8   :  { %11586 = vmatpush2.bf16.msra.mxu0 %v13505_v57  ;;  %v1217_v21 = vld [vmem:[%s19714_s1 + $0x2538] sm:$0xff] }
 0x5a9   :  { %11637 = vmatprep.subr.bf16.mxu0 %v13754_v1  ;;  %v1057_v50 = vld [vmem:[%s19714_s1 + $0x2038] sm:$0xff]  ;;  %v13730_v19 = vcombine.high %v1213_v37, %v1217_v21  ;;  %v13729_v31 = vcombine.low %v1213_v37, %v1217_v21 }
 0x5aa   :  { %11603 = vmatpush1.bf16.msra.mxu1 %v13601_v25  ;;  %v1205_v7 = vld [vmem:[%s19714_s1 + $0x24d8] sm:$0xff] }
 0x5ab   :  { %11604 = vmatprep.subr.bf16.mxu1 %v13594_v60  ;;  %v11343_v54 = vpop.f32.mrf.mxu0  ;;  %11588 = vmatmul.mubr.bf16.vlgmr.msra.gmra.mxu0 %v15322_v26  ;;  %v13738_v26 = vcombine.high %v1221_v62, %v1225_v42  ;;  %v1209_v29 = vld [vmem:[%s19714_s1 + $0x24f8] sm:$0xff] }
 0x5ac   :  { %v19131_v30 = vadd.f32 %v11343_v54, %v11303_v51  ;;  %11638 = vmatpush1.bf16.msra.mxu0 %v13753_v52  ;;  %11669 = vmatprep.mubr.bf16.mxu0 %v15339_v41  ;;  %v1053_v41 = vld [vmem:[%s19714_s1 + $0x2018] sm:$0xff]  ;;  %v13722_v12 = vcombine.high %v1205_v7, %v1209_v29  ;;  %v13721_v25 = vcombine.low %v1205_v7, %v1209_v29 }
 0x5ad   :  { %v11345_v36 = vpop.f32.mrf.mxu0  ;;  %11639 = vmatprep.subr.bf16.mxu0 %v13746_v47  ;;  %v13570_v9 = vcombine.high %v1053_v41, %v1057_v50  ;;  %v1173_v35 = vld [vmem:[%s19714_s1 + $0x23d8] sm:$0xff]  ;;  %v13569_v23 = vcombine.low %v1053_v41, %v1057_v50 }
 0x5ae   :  { %11605 = vmatpush1.bf16.msra.mxu1 %v13593_v53  ;;  %v19134_v39 = vadd.f32 %v11345_v36, %v11305_v55  ;;  %v1177_v8 = vld [vmem:[%s19714_s1 + $0x23f8] sm:$0xff] }
 0x5af   :  { %11606 = vmatprep.subr.bf16.mxu1 %v13586_v28  ;;  %v11347_v48 = vpop.f32.mrf.mxu0  ;;  %v13690_v14 = vcombine.high %v1173_v35, %v1177_v8  ;;  %v1197_v38 = vld [vmem:[%s19714_s1 + $0x2498] sm:$0xff]  ;;  %v13689_v1 = vcombine.low %v1173_v35, %v1177_v8 }
 0x5b0   :  { %11640 = vmatpush1.bf16.msra.mxu0 %v13745_v22  ;;  %v1201_v16 = vld [vmem:[%s19714_s1 + $0x24b8] sm:$0xff] }
 0x5b1   :  { %v11348_v0 = vpop.f32.mrf.mxu0  ;;  %11641 = vmatprep.subr.bf16.mxu0 %v13738_v26  ;;  %v1165_v61 = vld [vmem:[%s19714_s1 + $0x2398] sm:$0xff]  ;;  %v13714_v6 = vcombine.high %v1197_v38, %v1201_v16  ;;  %v13713_v33 = vcombine.low %v1197_v38, %v1201_v16 }
 0x5b2   :  { %11607 = vmatpush1.bf16.msra.mxu1 %v13585_v44  ;;  %v1169_v57 = vld [vmem:[%s19714_s1 + $0x23b8] sm:$0xff] }
 0x5b3   :  { %11608 = vmatprep.subr.bf16.mxu1 %v13578_v46  ;;  %v13682_v59 = vcombine.high %v1165_v61, %v1169_v57  ;;  %v1189_v60 = vld [vmem:[%s19714_s1 + $0x2458] sm:$0xff]  ;;  %v13681_v3 = vcombine.low %v1165_v61, %v1169_v57 }
 0x5b4   :  { %11642 = vmatpush1.bf16.msra.mxu0 %v13737_v2  ;;  %v1193_v56 = vld [vmem:[%s19714_s1 + $0x2478] sm:$0xff] }
 0x5b5   :  { %11643 = vmatprep.subr.bf16.mxu0 %v13730_v19  ;;  %v1157_v43 = vld [vmem:[%s19714_s1 + $0x2358] sm:$0xff]  ;;  %v13706_v52 = vcombine.high %v1189_v60, %v1193_v56  ;;  %v13705_v42 = vcombine.low %v1189_v60, %v1193_v56 }
 0x5b6   :  { %11609 = vmatpush1.bf16.msra.mxu1 %v13577_v11  ;;  %v1161_v34 = vld [vmem:[%s19714_s1 + $0x2378] sm:$0xff] }
 0x5b7   :  { %11610 = vmatprep.subr.bf16.mxu1 %v13570_v9  ;;  %v13674_v53 = vcombine.high %v1157_v43, %v1161_v34  ;;  %v1181_v47 = vld [vmem:[%s19714_s1 + $0x2418] sm:$0xff]  ;;  %v13673_v54 = vcombine.low %v1157_v43, %v1161_v34 }
 0x5b8   :  { %11644 = vmatpush1.bf16.msra.mxu0 %v13729_v31  ;;  %v1185_v51 = vld [vmem:[%s19714_s1 + $0x2438] sm:$0xff] }
 0x5b9   :  { %11645 = vmatprep.subr.bf16.mxu0 %v13722_v12  ;;  %v1149_v28 = vld [vmem:[%s19714_s1 + $0x2318] sm:$0xff]  ;;  %v13698_v13 = vcombine.high %v1181_v47, %v1185_v51  ;;  %v13697_v26 = vcombine.low %v1181_v47, %v1185_v51 }
 0x5ba   :  { %11611 = vmatpush1.bf16.msra.mxu1 %v13569_v23  ;;  %v1153_v62 = vld [vmem:[%s19714_s1 + $0x2338] sm:$0xff] }
 0x5bb   :  { %11612 = vmatprep.subr.bf16.mxu1 %v13690_v14  ;;  %v13666_v15 = vcombine.high %v1149_v28, %v1153_v62  ;;  %v1301_v55 = vld [vmem:[%s19714_s1 + $0x27d8] sm:$0xff]  ;;  %v13665_v46 = vcombine.low %v1149_v28, %v1153_v62 }
 0x5bc   :  { %11646 = vmatpush1.bf16.msra.mxu0 %v13721_v25  ;;  %v1305_v22 = vld [vmem:[%s19714_s1 + $0x27f8] sm:$0xff] }
 0x5bd   :  { %11647 = vmatprep.subr.bf16.mxu0 %v13714_v6  ;;  %v1141_v36 = vld [vmem:[%s19714_s1 + $0x22d8] sm:$0xff]  ;;  %v13818_v37 = vcombine.high %v1301_v55, %v1305_v22  ;;  %v13817_v0 = vcombine.low %v1301_v55, %v1305_v22 }
 0x5be   :  { %11613 = vmatpush2.bf16.msra.mxu1 %v13689_v1  ;;  %v1145_v44 = vld [vmem:[%s19714_s1 + $0x22f8] sm:$0xff] }
 0x5bf   :  { %11614 = vmatprep.subr.bf16.mxu1 %v13682_v59  ;;  %v13658_v21 = vcombine.high %v1141_v36, %v1145_v44  ;;  %v1293_v48 = vld [vmem:[%s19714_s1 + $0x2798] sm:$0xff]  ;;  %v13657_v11 = vcombine.low %v1141_v36, %v1145_v44 }
 0x5c0   :  { %11648 = vmatpush1.bf16.msra.mxu0 %v13713_v33  ;;  %v1297_v41 = vld [vmem:[%s19714_s1 + $0x27b8] sm:$0xff] }
 0x5c1   :  { %11649 = vmatprep.subr.bf16.mxu0 %v13706_v52  ;;  %v1133_v50 = vld [vmem:[%s19714_s1 + $0x2298] sm:$0xff]  ;;  %v13810_v19 = vcombine.high %v1293_v48, %v1297_v41  ;;  %v13809_v31 = vcombine.low %v1293_v48, %v1297_v41 }
 0x5c2   :  { %11615 = vmatpush2.bf16.msra.mxu1 %v13681_v3  ;;  %v1137_v2 = vld [vmem:[%s19714_s1 + $0x22b8] sm:$0xff] }
 0x5c3   :  { %11616 = vmatprep.subr.bf16.mxu1 %v13674_v53  ;;  %v13650_v9 = vcombine.high %v1133_v50, %v1137_v2  ;;  %v1285_v7 = vld [vmem:[%s19714_s1 + $0x2758] sm:$0xff]  ;;  %v13649_v23 = vcombine.low %v1133_v50, %v1137_v2 }
 0x5c4   :  { %11650 = vmatpush1.bf16.msra.mxu0 %v13705_v42  ;;  %v1289_v29 = vld [vmem:[%s19714_s1 + $0x2778] sm:$0xff] }
 0x5c5   :  { %11651 = vmatprep.subr.bf16.mxu0 %v13698_v13  ;;  %v1125_v35 = vld [vmem:[%s19714_s1 + $0x2258] sm:$0xff]  ;;  %v13802_v12 = vcombine.high %v1285_v7, %v1289_v29  ;;  %v13801_v25 = vcombine.low %v1285_v7, %v1289_v29 }
 0x5c6   :  { %11617 = vmatpush2.bf16.msra.mxu1 %v13673_v54  ;;  %v1129_v8 = vld [vmem:[%s19714_s1 + $0x2278] sm:$0xff] }
 0x5c7   :  { %11618 = vmatprep.subr.bf16.mxu1 %v13666_v15  ;;  %v13642_v14 = vcombine.high %v1125_v35, %v1129_v8  ;;  %v1277_v38 = vld [vmem:[%s19714_s1 + $0x2718] sm:$0xff]  ;;  %v13641_v1 = vcombine.low %v1125_v35, %v1129_v8 }
 0x5c8   :  { %11652 = vmatpush1.bf16.msra.mxu0 %v13697_v26  ;;  %v1281_v16 = vld [vmem:[%s19714_s1 + $0x2738] sm:$0xff] }
 0x5c9   :  { %11653 = vmatprep.subr.bf16.mxu0 %v13818_v37  ;;  %v1117_v61 = vld [vmem:[%s19714_s1 + $0x2218] sm:$0xff]  ;;  %v13794_v6 = vcombine.high %v1277_v38, %v1281_v16  ;;  %v13793_v33 = vcombine.low %v1277_v38, %v1281_v16 }
 0x5ca   :  { %11619 = vmatpush2.bf16.msra.mxu1 %v13665_v46  ;;  %v1121_v57 = vld [vmem:[%s19714_s1 + $0x2238] sm:$0xff] }
 0x5cb   :  { %11620 = vmatprep.subr.bf16.mxu1 %v13658_v21  ;;  %v13634_v59 = vcombine.high %v1117_v61, %v1121_v57  ;;  %v1269_v60 = vld [vmem:[%s19714_s1 + $0x26d8] sm:$0xff]  ;;  %v13633_v3 = vcombine.low %v1117_v61, %v1121_v57 }
 0x5cc   :  { %11654 = vmatpush2.bf16.msra.mxu0 %v13817_v0  ;;  %v1273_v56 = vld [vmem:[%s19714_s1 + $0x26f8] sm:$0xff] }
 0x5cd   :  { %11655 = vmatprep.subr.bf16.mxu0 %v13810_v19  ;;  %v1365_v43 = vld [vmem:[%s19714_s1 + $0x29d8] sm:$0xff]  ;;  %v13786_v52 = vcombine.high %v1269_v60, %v1273_v56  ;;  %v13785_v42 = vcombine.low %v1269_v60, %v1273_v56 }
 0x5ce   :  { %11621 = vmatpush2.bf16.msra.mxu1 %v13657_v11  ;;  %v1369_v34 = vld [vmem:[%s19714_s1 + $0x29f8] sm:$0xff] }
 0x5cf   :  { %11622 = vmatprep.subr.bf16.mxu1 %v13650_v9  ;;  %v13882_v53 = vcombine.high %v1365_v43, %v1369_v34  ;;  %v1261_v47 = vld [vmem:[%s19714_s1 + $0x2698] sm:$0xff]  ;;  %v13881_v54 = vcombine.low %v1365_v43, %v1369_v34 }
 0x5d0   :  { %11656 = vmatpush2.bf16.msra.mxu0 %v13809_v31  ;;  %v1265_v51 = vld [vmem:[%s19714_s1 + $0x26b8] sm:$0xff] }
 0x5d1   :  { %11657 = vmatprep.subr.bf16.mxu0 %v13802_v12  ;;  %v1357_v28 = vld [vmem:[%s19714_s1 + $0x2998] sm:$0xff]  ;;  %v13778_v13 = vcombine.high %v1261_v47, %v1265_v51  ;;  %v13777_v46 = vcombine.low %v1261_v47, %v1265_v51 }
 0x5d2   :  { %11623 = vmatpush2.bf16.msra.mxu1 %v13649_v23  ;;  %v1361_v62 = vld [vmem:[%s19714_s1 + $0x29b8] sm:$0xff] }
 0x5d3   :  { %11624 = vmatprep.subr.bf16.mxu1 %v13642_v14  ;;  %v13874_v15 = vcombine.high %v1357_v28, %v1361_v62  ;;  %v1253_v55 = vld [vmem:[%s19714_s1 + $0x2658] sm:$0xff]  ;;  %v13873_v21 = vcombine.low %v1357_v28, %v1361_v62 }
 0x5d4   :  { %11658 = vmatpush2.bf16.msra.mxu0 %v13801_v25  ;;  %v1257_v22 = vld [vmem:[%s19714_s1 + $0x2678] sm:$0xff] }
 0x5d5   :  { %11659 = vmatprep.subr.bf16.mxu0 %v13794_v6  ;;  %v1349_v36 = vld [vmem:[%s19714_s1 + $0x2958] sm:$0xff]  ;;  %v13770_v48 = vcombine.high %v1253_v55, %v1257_v22  ;;  %v13769_v9 = vcombine.low %v1253_v55, %v1257_v22 }
 0x5d6   :  { %11625 = vmatpush2.bf16.msra.mxu1 %v13641_v1  ;;  %v1353_v44 = vld [vmem:[%s19714_s1 + $0x2978] sm:$0xff] }
 0x5d7   :  { %11626 = vmatprep.subr.bf16.mxu1 %v13634_v59  ;;  %v13866_v50 = vcombine.high %v1349_v36, %v1353_v44  ;;  %v1245_v2 = vld [vmem:[%s19714_s1 + $0x2618] sm:$0xff]  ;;  %v13865_v7 = vcombine.low %v1349_v36, %v1353_v44 }
 0x5d8   :  { %11660 = vmatpush2.bf16.msra.mxu0 %v13793_v33  ;;  %v1249_v0 = vld [vmem:[%s19714_s1 + $0x2638] sm:$0xff] }
 0x5d9   :  { %11661 = vmatprep.subr.bf16.mxu0 %v13786_v52  ;;  %v1345_v11 = vld [vmem:[%s19714_s1 + $0x2938] sm:$0xff]  ;;  %v13762_v29 = vcombine.high %v1245_v2, %v1249_v0  ;;  %v13761_v12 = vcombine.low %v1245_v2, %v1249_v0 }
 0x5da   :  { %11627 = vmatpush2.bf16.msra.mxu1 %v13633_v3  ;;  %v1497_v8 = vld [vmem:[%s19714_s1 + $0x2df8] sm:$0xff] }
 0x5db   :  { %11678 = vmatprep.subr.bf16.mxu1 %v13882_v53  ;;  %v1333_v31 = vld [vmem:[%s19714_s1 + $0x28d8] sm:$0xff] }
 0x5dc   :  { %11662 = vmatpush2.bf16.msra.mxu0 %v13785_v42  ;;  %v1337_v23 = vld [vmem:[%s19714_s1 + $0x28f8] sm:$0xff] }
 0x5dd   :  { %v11384_v26 = vpop.f32.mrf.mxu1  ;;  %11629 = vmatmul.mubr.bf16.vlgmr.msra.gmra.mxu1 %v15527_v10  ;;  %11663 = vmatprep.subr.bf16.mxu0 %v13778_v13  ;;  %v13850_v16 = vcombine.high %v1333_v31, %v1337_v23  ;;  %v1485_v61 = vld [vmem:[%s19714_s1 + $0x2d98] sm:$0xff]  ;;  %v13849_v59 = vcombine.low %v1333_v31, %v1337_v23 }
 0x5de   :  { %v11385_v37 = vadd.f32 %v11384_v26, %v19131_v30  ;;  %11679 = vmatpush1.bf16.msra.mxu1 %v13881_v54  ;;  %11710 = vmatprep.mubr.bf16.mxu1 %v15542_v4  ;;  %v1341_v30 = vld [vmem:[%s19714_s1 + $0x2918] sm:$0xff] }
 0x5df   :  { %v11386_v41 = vpop.f32.mrf.mxu1  ;;  %11680 = vmatprep.subr.bf16.mxu1 %v13874_v15  ;;  %v13858_v4 = vcombine.high %v1341_v30, %v1345_v11  ;;  %v13857_v14 = vcombine.low %v1341_v30, %v1345_v11  ;;  %v1489_v57 = vld [vmem:[%s19714_s1 + $0x2db8] sm:$0xff] }
 0x5e0   :  { %v11387_v10 = vadd.f32 %v11386_v41, %v19134_v39  ;;  %11664 = vmatpush2.bf16.msra.mxu0 %v13777_v46  ;;  %v1493_v39 = vld [vmem:[%s19714_s1 + $0x2dd8] sm:$0xff]  ;;  %v14002_v60 = vcombine.high %v1485_v61, %v1489_v57  ;;  %v14001_v47 = vcombine.low %v1485_v61, %v1489_v57 }
 0x5e1   :  { %v11388_v19 = vpop.f32.mrf.mxu1  ;;  %11665 = vmatprep.subr.bf16.mxu0 %v13770_v48  ;;  %v14010_v38 = vcombine.high %v1493_v39, %v1497_v8  ;;  %v1325_v25 = vld [vmem:[%s19714_s1 + $0x2898] sm:$0xff]  ;;  %v14009_v6 = vcombine.low %v1493_v39, %v1497_v8 }
 0x5e2   :  { %11681 = vmatpush1.bf16.msra.mxu1 %v13873_v21  ;;  %v1329_v1 = vld [vmem:[%s19714_s1 + $0x28b8] sm:$0xff] }
 0x5e3   :  { %v11389_v35 = vpop.f32.mrf.mxu1  ;;  %11682 = vmatprep.subr.bf16.mxu1 %v13866_v50  ;;  %v13842_v56 = vcombine.high %v1325_v25, %v1329_v1  ;;  %v1477_v43 = vld [vmem:[%s19714_s1 + $0x2d58] sm:$0xff]  ;;  %v13841_v28 = vcombine.low %v1325_v25, %v1329_v1 }
 0x5e4   :  { %11666 = vmatpush2.bf16.msra.mxu0 %v13769_v9  ;;  %v1481_v34 = vld [vmem:[%s19714_s1 + $0x2d78] sm:$0xff] }
 0x5e5   :  { %11667 = vmatprep.subr.bf16.mxu0 %v13762_v29  ;;  %v1317_v3 = vld [vmem:[%s19714_s1 + $0x2858] sm:$0xff]  ;;  %v13994_v62 = vcombine.high %v1477_v43, %v1481_v34  ;;  %v13993_v22 = vcombine.low %v1477_v43, %v1481_v34 }
 0x5e6   :  { %11683 = vmatpush1.bf16.msra.mxu1 %v13865_v7  ;;  %v1321_v52 = vld [vmem:[%s19714_s1 + $0x2878] sm:$0xff] }
 0x5e7   :  { %11684 = vmatprep.subr.bf16.mxu1 %v13858_v4  ;;  %v13834_v42 = vcombine.high %v1317_v3, %v1321_v52  ;;  %v1469_v54 = vld [vmem:[%s19714_s1 + $0x2d18] sm:$0xff]  ;;  %v13833_v44 = vcombine.low %v1317_v3, %v1321_v52 }
 0x5e8   :  { %11668 = vmatpush2.bf16.msra.mxu0 %v13761_v12  ;;  %v1473_v13 = vld [vmem:[%s19714_s1 + $0x2d38] sm:$0xff] }
 0x5e9   :  { %11719 = vmatprep.subr.bf16.mxu0 %v14010_v38  ;;  %v1313_v55 = vld [vmem:[%s19714_s1 + $0x2838] sm:$0xff]  ;;  %v13986_v26 = vcombine.high %v1469_v54, %v1473_v13  ;;  %v13985_v50 = vcombine.low %v1469_v54, %v1473_v13 }
 0x5ea   :  { %11685 = vmatpush1.bf16.msra.mxu1 %v13857_v14  ;;  %v1465_v21 = vld [vmem:[%s19714_s1 + $0x2cf8] sm:$0xff] }
 0x5eb   :  { %11686 = vmatprep.subr.bf16.mxu1 %v13850_v16  ;;  %v11425_v33 = vpop.f32.mrf.mxu0  ;;  %11670 = vmatmul.mubr.bf16.vlgmr.msra.gmra.mxu0 %v15546_v5  ;;  %v1429_v48 = vld [vmem:[%s19714_s1 + $0x2bd8] sm:$0xff] }
 0x5ec   :  { %v19333_v53 = vadd.f32 %v11425_v33, %v11385_v37  ;;  %11720 = vmatpush1.bf16.msra.mxu0 %v14009_v6  ;;  %11751 = vmatprep.mubr.bf16.mxu0 %v15563_v18  ;;  %v1309_v18 = vld [vmem:[%s19714_s1 + $0x2818] sm:$0xff] }
 0x5ed   :  { %v11427_v51 = vpop.f32.mrf.mxu0  ;;  %11721 = vmatprep.subr.bf16.mxu0 %v14002_v60  ;;  %v13826_v46 = vcombine.high %v1309_v18, %v1313_v55  ;;  %v1461_v37 = vld [vmem:[%s19714_s1 + $0x2cd8] sm:$0xff]  ;;  %v13825_v2 = vcombine.low %v1309_v18, %v1313_v55 }
 0x5ee   :  { %11687 = vmatpush1.bf16.msra.mxu1 %v13849_v59  ;;  %v19336_v5 = vadd.f32 %v11427_v51, %v11387_v10  ;;  %v1433_v41 = vld [vmem:[%s19714_s1 + $0x2bf8] sm:$0xff]  ;;  %v13978_v0 = vcombine.high %v1461_v37, %v1465_v21  ;;  %v13977_v7 = vcombine.low %v1461_v37, %v1465_v21 }
 0x5ef   :  { %11688 = vmatprep.subr.bf16.mxu1 %v13842_v56  ;;  %v11429_v15 = vpop.f32.mrf.mxu0  ;;  %v13946_v10 = vcombine.high %v1429_v48, %v1433_v41  ;;  %v1453_v30 = vld [vmem:[%s19714_s1 + $0x2c98] sm:$0xff]  ;;  %v13945_v29 = vcombine.low %v1429_v48, %v1433_v41 }
 0x5f0   :  { %11722 = vmatpush1.bf16.msra.mxu0 %v14001_v47  ;;  %v1457_v11 = vld [vmem:[%s19714_s1 + $0x2cb8] sm:$0xff] }
 0x5f1   :  { %v11430_v36 = vpop.f32.mrf.mxu0  ;;  %11723 = vmatprep.subr.bf16.mxu0 %v13994_v62  ;;  %v1421_v19 = vld [vmem:[%s19714_s1 + $0x2b98] sm:$0xff]  ;;  %v13970_v35 = vcombine.high %v1453_v30, %v1457_v11  ;;  %v13969_v12 = vcombine.low %v1453_v30, %v1457_v11 }
 0x5f2   :  { %11689 = vmatpush1.bf16.msra.mxu1 %v13841_v28  ;;  %v1425_v9 = vld [vmem:[%s19714_s1 + $0x2bb8] sm:$0xff] }
 0x5f3   :  { %11690 = vmatprep.subr.bf16.mxu1 %v13834_v42  ;;  %v13938_v4 = vcombine.high %v1421_v19, %v1425_v9  ;;  %v1445_v39 = vld [vmem:[%s19714_s1 + $0x2c58] sm:$0xff]  ;;  %v13937_v14 = vcombine.low %v1421_v19, %v1425_v9 }
 0x5f4   :  { %11724 = vmatpush1.bf16.msra.mxu0 %v13993_v22  ;;  %v1449_v8 = vld [vmem:[%s19714_s1 + $0x2c78] sm:$0xff] }
 0x5f5   :  { %11725 = vmatprep.subr.bf16.mxu0 %v13986_v26  ;;  %v1413_v31 = vld [vmem:[%s19714_s1 + $0x2b58] sm:$0xff]  ;;  %v13962_v38 = vcombine.high %v1445_v39, %v1449_v8  ;;  %v13961_v6 = vcombine.low %v1445_v39, %v1449_v8 }
 0x5f6   :  { %11691 = vmatpush1.bf16.msra.mxu1 %v13833_v44  ;;  %v1417_v23 = vld [vmem:[%s19714_s1 + $0x2b78] sm:$0xff] }
 0x5f7   :  { %11692 = vmatprep.subr.bf16.mxu1 %v13826_v46  ;;  %v13930_v16 = vcombine.high %v1413_v31, %v1417_v23  ;;  %v1437_v61 = vld [vmem:[%s19714_s1 + $0x2c18] sm:$0xff]  ;;  %v13929_v59 = vcombine.low %v1413_v31, %v1417_v23 }
 0x5f8   :  { %11726 = vmatpush1.bf16.msra.mxu0 %v13985_v50  ;;  %v1441_v57 = vld [vmem:[%s19714_s1 + $0x2c38] sm:$0xff] }
 0x5f9   :  { %11727 = vmatprep.subr.bf16.mxu0 %v13978_v0  ;;  %v1405_v25 = vld [vmem:[%s19714_s1 + $0x2b18] sm:$0xff]  ;;  %v13954_v60 = vcombine.high %v1437_v61, %v1441_v57  ;;  %v13953_v52 = vcombine.low %v1437_v61, %v1441_v57 }
 0x5fa   :  { %11693 = vmatpush1.bf16.msra.mxu1 %v13825_v2  ;;  %v1409_v1 = vld [vmem:[%s19714_s1 + $0x2b38] sm:$0xff] }
 0x5fb   :  { %11694 = vmatprep.subr.bf16.mxu1 %v13946_v10  ;;  %v13922_v56 = vcombine.high %v1405_v25, %v1409_v1  ;;  %v1557_v43 = vld [vmem:[%s19714_s1 + $0x2fd8] sm:$0xff]  ;;  %v13921_v47 = vcombine.low %v1405_v25, %v1409_v1 }
 0x5fc   :  { %11728 = vmatpush1.bf16.msra.mxu0 %v13977_v7  ;;  %v1561_v34 = vld [vmem:[%s19714_s1 + $0x2ff8] sm:$0xff] }
 0x5fd   :  { %11729 = vmatprep.subr.bf16.mxu0 %v13970_v35  ;;  %v1397_v33 = vld [vmem:[%s19714_s1 + $0x2ad8] sm:$0xff]  ;;  %v14074_v51 = vcombine.high %v1557_v43, %v1561_v34  ;;  %v14073_v15 = vcombine.low %v1557_v43, %v1561_v34 }
 0x5fe   :  { %11695 = vmatpush2.bf16.msra.mxu1 %v13945_v29  ;;  %v1401_v3 = vld [vmem:[%s19714_s1 + $0x2af8] sm:$0xff] }
 0x5ff   :  { %11696 = vmatprep.subr.bf16.mxu1 %v13938_v4  ;;  %v13914_v28 = vcombine.high %v1397_v33, %v1401_v3  ;;  %v1549_v62 = vld [vmem:[%s19714_s1 + $0x2f98] sm:$0xff]  ;;  %v13913_v18 = vcombine.low %v1397_v33, %v1401_v3 }
 0x600   :  { %11730 = vmatpush1.bf16.msra.mxu0 %v13969_v12  ;;  %v1553_v42 = vld [vmem:[%s19714_s1 + $0x2fb8] sm:$0xff] }
 0x601   :  { %11731 = vmatprep.subr.bf16.mxu0 %v13962_v38  ;;  %v1389_v54 = vld [vmem:[%s19714_s1 + $0x2a98] sm:$0xff]  ;;  %v14066_v55 = vcombine.high %v1549_v62, %v1553_v42  ;;  %v14065_v37 = vcombine.low %v1549_v62, %v1553_v42 }
 0x602   :  { %11697 = vmatpush2.bf16.msra.mxu1 %v13937_v14  ;;  %v1393_v13 = vld [vmem:[%s19714_s1 + $0x2ab8] sm:$0xff] }
 0x603   :  { %11698 = vmatprep.subr.bf16.mxu1 %v13930_v16  ;;  %v13906_v22 = vcombine.high %v1389_v54, %v1393_v13  ;;  %v1541_v36 = vld [vmem:[%s19714_s1 + $0x2f58] sm:$0xff]  ;;  %v13905_v21 = vcombine.low %v1389_v54, %v1393_v13 }
 0x604   :  { %11732 = vmatpush1.bf16.msra.mxu0 %v13961_v6  ;;  %v1545_v44 = vld [vmem:[%s19714_s1 + $0x2f78] sm:$0xff] }
 0x605   :  { %11733 = vmatprep.subr.bf16.mxu0 %v13954_v60  ;;  %v1381_v26 = vld [vmem:[%s19714_s1 + $0x2a58] sm:$0xff]  ;;  %v14058_v48 = vcombine.high %v1541_v36, %v1545_v44  ;;  %v14057_v30 = vcombine.low %v1541_v36, %v1545_v44 }
 0x606   :  { %11699 = vmatpush2.bf16.msra.mxu1 %v13929_v59  ;;  %v1385_v46 = vld [vmem:[%s19714_s1 + $0x2a78] sm:$0xff] }
 0x607   :  { %11700 = vmatprep.subr.bf16.mxu1 %v13922_v56  ;;  %v13898_v41 = vcombine.high %v1381_v26, %v1385_v46  ;;  %v1533_v50 = vld [vmem:[%s19714_s1 + $0x2f18] sm:$0xff]  ;;  %v13897_v11 = vcombine.low %v1381_v26, %v1385_v46  ;;  %v11802_v26 = vmax.f32 %v16445_v27, 0.0  ;;  %v11804_v46 = vmax.f32 %v17675_v63, 0.0  ;;  %v14280_v63 = vld [vmem:[%s19716_s3 + $0xf0] sm:$0xff]  }
 0x608   :  { %11734 = vmatpush1.bf16.msra.mxu0 %v13953_v52  ;;  %v1537_v2 = vld [vmem:[%s19714_s1 + $0x2f38] sm:$0xff] }
 0x609   :  { %11735 = vmatprep.subr.bf16.mxu0 %v14074_v51  ;;  %v1373_v0 = vld [vmem:[%s19714_s1 + $0x2a18] sm:$0xff]  ;;  %v14050_v19 = vcombine.high %v1533_v50, %v1537_v2  ;;  %v14049_v39 = vcombine.low %v1533_v50, %v1537_v2  ;;  %v11812_v50 = vpack.c.bf16 %v11804_v46, %v11804_v46  ;;  %v14319_v46 = vld [vmem:[%s19716_s3 + $0x148] sm:$0xff]  }
 0x60a   :  { %11701 = vmatpush2.bf16.msra.mxu1 %v13921_v47  ;;  %v1377_v10 = vld [vmem:[%s19714_s1 + $0x2a38] sm:$0xff] }
 0x60b   :  { %11702 = vmatprep.subr.bf16.mxu1 %v13914_v28  ;;  %v13890_v9 = vcombine.high %v1373_v0, %v1377_v10  ;;  %v1525_v7 = vld [vmem:[%s19714_s1 + $0x2ed8] sm:$0xff]  ;;  %v13889_v8 = vcombine.low %v1373_v0, %v1377_v10  ;;  %v14281_v0 = vld [vmem:[%s19716_s3 + $0x30] sm:$0xff]  }
 0x60c   :  { %11736 = vmatpush2.bf16.msra.mxu0 %v14073_v15  ;;  %v1529_v29 = vld [vmem:[%s19714_s1 + $0x2ef8] sm:$0xff] }
 0x60d   :  { %11737 = vmatprep.subr.bf16.mxu0 %v14066_v55  ;;  %v1589_v35 = vld [vmem:[%s19714_s1 + $0x30d8] sm:$0xff]  ;;  %v14042_v31 = vcombine.high %v1525_v7, %v1529_v29  ;;  %v14041_v61 = vcombine.low %v1525_v7, %v1529_v29  ;;  %v14286_v29 = vld [vmem:[%s19716_s3 + $0xa8] sm:$0xff]  }
 0x60e   :  { %11703 = vmatpush2.bf16.msra.mxu1 %v13913_v18  ;;  %v1593_v4 = vld [vmem:[%s19714_s1 + $0x30f8] sm:$0xff] }
 0x60f   :  { %11704 = vmatprep.subr.bf16.mxu1 %v13906_v22  ;;  %v14106_v23 = vcombine.high %v1589_v35, %v1593_v4  ;;  %v1517_v12 = vld [vmem:[%s19714_s1 + $0x2e98] sm:$0xff]  ;;  %v14105_v57 = vcombine.low %v1589_v35, %v1593_v4  ;;  %v14287_v35 = vld [vmem:[%s19716_s3 + $0x60] sm:$0xff]  }
 0x610   :  { %11738 = vmatpush2.bf16.msra.mxu0 %v14065_v37  ;;  %v1521_v14 = vld [vmem:[%s19714_s1 + $0x2eb8] sm:$0xff]  ;;  %v14288_v4 = vld [vmem:[%s19716_s3 + $0xe0] sm:$0xff]  }
 0x611   :  { %11739 = vmatprep.subr.bf16.mxu0 %v14058_v48  ;;  %v1581_v38 = vld [vmem:[%s19714_s1 + $0x3098] sm:$0xff]  ;;  %v14034_v25 = vcombine.high %v1517_v12, %v1521_v14  ;;  %v14033_v34 = vcombine.low %v1517_v12, %v1521_v14  ;;  %v14279_v48 = vld [vmem:[%s19716_s3 + $0x70] sm:$0xff]  }
 0x612   :  { %11705 = vmatpush2.bf16.msra.mxu1 %v13905_v21  ;;  %v1585_v16 = vld [vmem:[%s19714_s1 + $0x30b8] sm:$0xff] }
 0x613   :  { %11706 = vmatprep.subr.bf16.mxu1 %v13898_v41  ;;  %v14098_v1 = vcombine.high %v1581_v38, %v1585_v16  ;;  %v1509_v6 = vld [vmem:[%s19714_s1 + $0x2e58] sm:$0xff]  ;;  %v14097_v3 = vcombine.low %v1581_v38, %v1585_v16  ;;  %v11810_v41 = vpack.c.bf16 %v11802_v26, %v11802_v26  ;;  %v14295_v38 = vld [vmem:[%s19716_s3 + $0x50] sm:$0xff]  }
 0x614   :  { %11740 = vmatpush2.bf16.msra.mxu0 %v14057_v30  ;;  %v1513_v59 = vld [vmem:[%s19714_s1 + $0x2e78] sm:$0xff]  ;;  %v14283_v30 = vld [vmem:[%s19716_s3 + $0x68] sm:$0xff]   ;;  %v14296_v16 = vld [vmem:[%s19716_s3 + $0xd0] sm:$0xff]  }
 0x615   :  { %11741 = vmatprep.subr.bf16.mxu0 %v14050_v19  ;;  %v1573_v60 = vld [vmem:[%s19714_s1 + $0x3058] sm:$0xff]  ;;  %v14026_v52 = vcombine.high %v1509_v6, %v1513_v59  ;;  %v14025_v13 = vcombine.low %v1509_v6, %v1513_v59  ;;  %v14301_v6 = vld [vmem:[%s19716_s3 + $0x8] sm:$0xff]  }
 0x616   :  { %11707 = vmatpush2.bf16.msra.mxu1 %v13897_v11  ;;  %v1577_v56 = vld [vmem:[%s19714_s1 + $0x3078] sm:$0xff]  ;;  %v14302_v59 = vld [vmem:[%s19716_s3 + $0x88] sm:$0xff]  }
 0x617   :  { %11708 = vmatprep.subr.bf16.mxu1 %v13890_v9  ;;  %v14090_v51 = vcombine.high %v1573_v60, %v1577_v56  ;;  %v1501_v28 = vld [vmem:[%s19714_s1 + $0x2e18] sm:$0xff]  ;;  %v14089_v15 = vcombine.low %v1573_v60, %v1577_v56  ;;  %v14285_v9 = vld [vmem:[%s19716_s3 + $0x28] sm:$0xff]   ;;  %v14303_v60 = vld [vmem:[%s19716_s3 + $0x40] sm:$0xff]  }
 0x618   :  { %11742 = vmatpush2.bf16.msra.mxu0 %v14049_v39  ;;  %v1505_v62 = vld [vmem:[%s19714_s1 + $0x2e38] sm:$0xff]  ;;  %v14289_v39 = vld [vmem:[%s19716_s3 + $0x20] sm:$0xff]  }
 0x619   :  { %11743 = vmatprep.subr.bf16.mxu0 %v14042_v31  ;;  %v1569_v42 = vld [vmem:[%s19714_s1 + $0x3038] sm:$0xff]  ;;  %v14018_v18 = vcombine.high %v1501_v28, %v1505_v62  ;;  %v14304_v56 = vld [vmem:[%s19716_s3 + $0xc0] sm:$0xff]  }
 0x61a   :  { %11709 = vmatpush2.bf16.msra.mxu1 %v13889_v8  ;;  %v14275_v36 = vld [vmem:[%s19716_s3 + $0x78] sm:$0xff]   ;;  %v14290_v8 = vld [vmem:[%s19716_s3 + $0xa0] sm:$0xff]  }
 0x61b   :  { %11768 = vmatprep.subr.bf16.mxu1 %v14106_v23  ;;  %v14276_v44 = vld [vmem:[%s19716_s3 + $0xf8] sm:$0xff]  }
 0x61c   :  { %11744 = vmatpush2.bf16.msra.mxu0 %v14041_v61  ;;  %v14277_v37 = vld [vmem:[%s19716_s3 + $0x38] sm:$0xff]   ;;  %v14297_v61 = vld [vmem:[%s19716_s3 + $0x10] sm:$0xff]  }
 0x61d   :  { %v11466_v43 = vpop.f32.mrf.mxu1  ;;  %11711 = vmatmul.mubr.bf16.vlgmr.msra.gmra.mxu1 %v15744_v45  ;;  %11745 = vmatprep.subr.bf16.mxu0 %v14034_v25  ;;  %v14278_v21 = vld [vmem:[%s19716_s3 + $0xb8] sm:$0xff]   ;;  %v14299_v25 = vld [vmem:[%s19716_s3 + $0x48] sm:$0xff]  }
 0x61e   :  { %v11467_v33 = vadd.f32 %v11466_v43, %v19333_v53  ;;  %11769 = vmatpush1.bf16.msra.mxu1 %v14105_v57  ;;  %11792 = vmatprep.mubr.bf16.mxu1 %v14365_v40  ;;  %v1565_v53 = vld [vmem:[%s19714_s1 + $0x3018] sm:$0xff]  ;;  %v14298_v57 = vld [vmem:[%s19716_s3 + $0x90] sm:$0xff]   ;;  %v14305_v43 = vld [vmem:[%s19716_s3] sm:$0xff]  }
 0x61f   :  { %v11468_v47 = vpop.f32.mrf.mxu1  ;;  %11770 = vmatprep.subr.bf16.mxu1 %v14098_v1  ;;  %v14082_v40 = vcombine.high %v1565_v53, %v1569_v42  ;;  %v14081_v22 = vcombine.low %v1565_v53, %v1569_v42  ;;  %v14291_v31 = vld [vmem:[%s19716_s3 + $0x58] sm:$0xff]   ;;  %v14300_v1 = vld [vmem:[%s19716_s3 + $0xc8] sm:$0xff]  }
 0x620   :  { %v11469_v45 = vadd.f32 %v11468_v47, %v19336_v5  ;;  %11746 = vmatpush2.bf16.msra.mxu0 %v14033_v34  ;;  %v14017_v5 = vcombine.low %v1501_v28, %v1505_v62  ;;  %v14292_v23 = vld [vmem:[%s19716_s3 + $0xd8] sm:$0xff]   ;;  %v11801_v34 = vmax.f32 %v16442_v17, 0.0  ;;  %v14309_v62 = vld [vmem:[%s19716_s3 + $0x170] sm:$0xff]   ;;  %v14311_v42 = vld [vmem:[%s19716_s3 + $0x168] sm:$0xff]  }
 0x621   :  { %v11470_v54 = vpop.f32.mrf.mxu1  ;;  %11747 = vmatprep.subr.bf16.mxu0 %v14026_v52  ;;  %v14293_v12 = vld [vmem:[%s19716_s3 + $0x18] sm:$0xff]   ;;  %v11803_v52 = vmax.f32 %v17659_v20, 0.0 }
 0x622   :  { %11771 = vmatpush1.bf16.msra.mxu1 %v14097_v3  ;;  %v14294_v14 = vld [vmem:[%s19716_s3 + $0x98] sm:$0xff]   ;;  %v11809_v28 = vpack.c.bf16 %v11801_v34, %v11801_v34  ;;  %v14312_v54 = vld [vmem:[%s19716_s3 + $0x128] sm:$0xff]  }
 0x623   :  { %v11471_v55 = vpop.f32.mrf.mxu1  ;;  %11772 = vmatprep.subr.bf16.mxu1 %v14090_v51  ;;  %v14307_v3 = vld [vmem:[%s19716_s3 + $0x178] sm:$0xff]   ;;  %v11806_v51 = vmax.f32 %v18929_v32, 0.0  ;;  %v11811_v20 = vpack.c.bf16 %v11803_v52, %v11803_v52  ;;  %v14310_v32 = vld [vmem:[%s19716_s3 + $0x130] sm:$0xff]  }
 0x624   :  { %11748 = vmatpush2.bf16.msra.mxu0 %v14025_v13  ;;  %v14323_v47 = vld [vmem:[%s19716_s3 + $0x1f8] sm:$0xff]   ;;  %v14313_v13 = vld [vmem:[%s19716_s3 + $0x160] sm:$0xff]  }
 0x625   :  { %11749 = vmatprep.subr.bf16.mxu0 %v14018_v18  ;;  %v14308_v17 = vld [vmem:[%s19716_s3 + $0x138] sm:$0xff]   ;;  %v11814_v53 = vpack.c.bf16 %v11806_v51, %v11806_v51 }
 0x626   :  { %11773 = vmatpush1.bf16.msra.mxu1 %v14089_v15  ;;  %v14314_v15 = vld [vmem:[%s19716_s3 + $0x120] sm:$0xff]   ;;  %v14315_v18 = vld [vmem:[%s19716_s3 + $0x158] sm:$0xff]  }
 0x627   :  { %11774 = vmatprep.subr.bf16.mxu1 %v14082_v40  ;;  %v14316_v55 = vld [vmem:[%s19716_s3 + $0x118] sm:$0xff]   ;;  %v14317_v40 = vld [vmem:[%s19716_s3 + $0x150] sm:$0xff]  }
 0x628   :  { %11750 = vmatpush2.bf16.msra.mxu0 %v14017_v5  ;;  %v14325_v5 = vld [vmem:[%s19716_s3 + $0x1f0] sm:$0xff]  }
 0x629   :  { %14176 = vmatprep.subr.bf16.mxu0 %v14275_v36  ;;  %v14318_v36 = vld [vmem:[%s19716_s3 + $0x110] sm:$0xff]  }
 0x62a   :  { %11775 = vmatpush1.bf16.msra.mxu1 %v14081_v22 }
 0x62b   :  { %14198 = vmatprep.subr.bf16.mxu1 %v14276_v44  ;;  %v11507_v27 = vpop.f32.mrf.mxu0  ;;  %11752 = vmatmul.mubr.bf16.vlgmr.msra.gmra.mxu0 %v15760_v58  ;;  %v14282_v58 = vld [vmem:[%s19716_s3 + $0xb0] sm:$0xff]  }
 0x62c   :  { %v19519_v2 = vadd.f32 %v11507_v27, %v11467_v33  ;;  %14177 = vmatpush3.bf16.msra.mxu0 %v14277_v37  ;;  %12368 = vmatprep.mubr.bf16.mxu0 %v11810_v41  ;;  %v14306_v33 = vld [vmem:[%s19716_s3 + $0x80] sm:$0xff]   ;;  %v14326_v44 = vld [vmem:[%s19716_s3 + $0x1b0] sm:$0xff]   ;;  %v14320_v27 = vld [vmem:[%s19716_s3 + $0x108] sm:$0xff]  }
 0x62d   :  { %14110 = vmatmul.mubr.msk.bf16.vlgmr.msra.gmra.mxu1 %vm9665_vm0, %v15818_v24  ;;  %v11509_v10 = vpop.f32.mrf.mxu0  ;;  %14178 = vmatprep.subr.bf16.mxu0 %v14279_v48  ;;  %v14284_v24 = vld [vmem:[%s19716_s3 + $0xe8] sm:$0xff]  }
 0x62e   :  { %14199 = vmatpush3.bf16.msra.mxu1 %v14278_v21  ;;  %12408 = vmatprep.mubr.bf16.mxu1 %v11812_v50  ;;  %v19532_v11 = vadd.f32 %v11509_v10, %v11469_v45  ;;  %v14324_v45 = vld [vmem:[%s19716_s3 + $0x1b8] sm:$0xff]   ;;  %v14327_v48 = vld [vmem:[%s19716_s3 + $0x1e8] sm:$0xff]   ;;  %v14321_v50 = vld [vmem:[%s19716_s3 + $0x140] sm:$0xff]  }
 0x62f   :  { %v11511_v19 = vpop.f32.mrf.mxu0  ;;  %14200 = vmatprep.subr.bf16.mxu1 %v14280_v63  ;;  %v14328_v63 = vld [vmem:[%s19716_s3 + $0x1a8] sm:$0xff]   ;;  %v14330_v10 = vld [vmem:[%s19716_s3 + $0x1a0] sm:$0xff]  }
 0x630   :  { %14179 = vmatpush3.bf16.msra.mxu0 %v14281_v0  ;;  %v14329_v0 = vld [vmem:[%s19716_s3 + $0x1e0] sm:$0xff]  }
 0x631   :  { %v11512_v7 = vpop.f32.mrf.mxu0  ;;  %14180 = vmatprep.subr.bf16.mxu0 %v14283_v30  ;;  %v14322_v30 = vld [vmem:[%s19716_s3 + $0x100] sm:$0xff]  }
 0x632   :  { %14201 = vmatpush3.bf16.msra.mxu1 %v14282_v58  ;;  %v14331_v58 = vld [vmem:[%s19716_s3 + $0x1d8] sm:$0xff]   ;;  %v14333_v7 = vld [vmem:[%s19716_s3 + $0x1d0] sm:$0xff]  }
 0x633   :  { %14202 = vmatprep.subr.bf16.mxu1 %v14284_v24  ;;  %v14332_v24 = vld [vmem:[%s19716_s3 + $0x198] sm:$0xff]  }
 0x634   :  { %14181 = vmatpush3.bf16.msra.mxu0 %v14285_v9 }
 0x635   :  { %14182 = vmatprep.subr.bf16.mxu0 %v14287_v35 }
 0x636   :  { %14203 = vmatpush3.bf16.msra.mxu1 %v14286_v29 }
 0x637   :  { %14204 = vmatprep.subr.bf16.mxu1 %v14288_v4 }
 0x638   :  { %14183 = vmatpush3.bf16.msra.mxu0 %v14289_v39 }
 0x639   :  { %14184 = vmatprep.subr.bf16.mxu0 %v14291_v31  ;;  %v14336_v31 = vld [vmem:[%s19716_s3 + $0x188] sm:$0xff]  }
 0x63a   :  { %14205 = vmatpush3.bf16.msra.mxu1 %v14290_v8  ;;  %v14335_v8 = vld [vmem:[%s19716_s3 + $0x1c8] sm:$0xff]  }
 0x63b   :  { %14206 = vmatprep.subr.bf16.mxu1 %v14292_v23 }
 0x63c   :  { %14185 = vmatpush3.bf16.msra.mxu0 %v14293_v12  ;;  %v14337_v12 = vld [vmem:[%s19716_s3 + $0x1c0] sm:$0xff]  }
 0x63d   :  { %14186 = vmatprep.subr.bf16.mxu0 %v14295_v38 }
 0x63e   :  { %14207 = vmatpush3.bf16.msra.mxu1 %v14294_v14  ;;  %v14338_v14 = vld [vmem:[%s19716_s3 + $0x180] sm:$0xff]  }
 0x63f   :  { %14208 = vmatprep.subr.bf16.mxu1 %v14296_v16 }
 0x640   :  { %14187 = vmatpush3.bf16.msra.mxu0 %v14297_v61 }
 0x641   :  { %14188 = vmatprep.subr.bf16.mxu0 %v14299_v25 }
 0x642   :  { %14209 = vmatpush3.bf16.msra.mxu1 %v14298_v57 }
 0x643   :  { %14210 = vmatprep.subr.bf16.mxu1 %v14300_v1 }
 0x644   :  { %14189 = vmatpush3.bf16.msra.mxu0 %v14301_v6 }
 0x645   :  { %14190 = vmatprep.subr.bf16.mxu0 %v14303_v60 }
 0x646   :  { %14211 = vmatpush3.bf16.msra.mxu1 %v14302_v59 }
 0x647   :  { %14212 = vmatprep.subr.bf16.mxu1 %v14304_v56 }
 0x648   :  { %14191 = vmatpush3.bf16.msra.mxu0 %v14305_v43 }
 0x649   :  { %14220 = vmatprep.subr.bf16.mxu0 %v14307_v3 }
 0x64a   :  { %14213 = vmatpush3.bf16.msra.mxu1 %v14306_v33 }
 0x64b   :  { %14242 = vmatprep.subr.bf16.mxu1 %v14323_v47  ;;  %12369 = vmatmul.mubr.bf16.vlgmr.msra.gmra.mxu0 %v11809_v28 }
 0x64c   :  { %14221 = vmatpush3.bf16.msra.mxu0 %v14308_v17  ;;  %12448 = vmatprep.mubr.bf16.mxu0 %v11814_v53 }
 0x64d   :  { %12409 = vmatmul.mubr.bf16.vlgmr.msra.gmra.mxu1 %v11811_v20  ;;  %14222 = vmatprep.subr.bf16.mxu0 %v14309_v62 }
 0x64e   :  { %14243 = vmatpush3.bf16.msra.mxu1 %v14324_v45 }
 0x64f   :  { %14244 = vmatprep.subr.bf16.mxu1 %v14325_v5 }
 0x650   :  { %14223 = vmatpush3.bf16.msra.mxu0 %v14310_v32 }
 0x651   :  { %14224 = vmatprep.subr.bf16.mxu0 %v14311_v42 }
 0x652   :  { %14245 = vmatpush3.bf16.msra.mxu1 %v14326_v44 }
 0x653   :  { %14246 = vmatprep.subr.bf16.mxu1 %v14327_v48 }
 0x654   :  { %14225 = vmatpush3.bf16.msra.mxu0 %v14312_v54 }
 0x655   :  { %14226 = vmatprep.subr.bf16.mxu0 %v14313_v13 }
 0x656   :  { %14247 = vmatpush3.bf16.msra.mxu1 %v14328_v63 }
 0x657   :  { %14248 = vmatprep.subr.bf16.mxu1 %v14329_v0 }
 0x658   :  { %14227 = vmatpush3.bf16.msra.mxu0 %v14314_v15 }
 0x659   :  { %14228 = vmatprep.subr.bf16.mxu0 %v14315_v18 }
 0x65a   :  { %14249 = vmatpush3.bf16.msra.mxu1 %v14330_v10 }
 0x65b   :  { %14250 = vmatprep.subr.bf16.mxu1 %v14331_v58 }
 0x65c   :  { %14229 = vmatpush3.bf16.msra.mxu0 %v14316_v55 }
 0x65d   :  { %v11548_v22 = vpop.f32.mrf.mxu1  ;;  %14230 = vmatprep.subr.bf16.mxu0 %v14317_v40 }
 0x65e   :  { %v11549_v26 = vadd.f32 %v11548_v22, %v19519_v2  ;;  %14251 = vmatpush3.bf16.msra.mxu1 %v14332_v24 }
 0x65f   :  { %v11550_v37 = vpop.f32.mrf.mxu1  ;;  %14252 = vmatprep.subr.bf16.mxu1 %v14333_v7 }
 0x660   :  { %v11551_v21 = vadd.f32 %v11550_v37, %v19532_v11  ;;  %14231 = vmatpush3.bf16.msra.mxu0 %v14318_v36  ;;  %v11805_v11 = vmax.f32 %v18926_v49, 0.0  ;;  %v14334_v49 = vld [vmem:[%s19716_s3 + $0x190] sm:$0xff]  }
 0x661   :  { %v11552_v41 = vpop.f32.mrf.mxu1  ;;  %14232 = vmatprep.subr.bf16.mxu0 %v14319_v46  ;;  %v14111_v46 = vld [vmem:[%s19717_s4] ss:$0 sm:$0xff]  ;;  %s14366_s4 = smov 127  }
 0x662   :  { %v11813_v19 = vpack.c.bf16 %v11805_v11, %v11805_v11  ;;  %14253 = vmatpush3.bf16.msra.mxu1 %v14334_v49 }
 0x663   :  { %v11553_v2 = vpop.f32.mrf.mxu1  ;;  %14254 = vmatprep.subr.bf16.mxu1 %v14335_v8 }
 0x664   :  { %14233 = vmatpush3.bf16.msra.mxu0 %v14320_v27 }
 0x665   :  { %14234 = vmatprep.subr.bf16.mxu0 %v14321_v50 }
 0x666   :  { %14255 = vmatpush3.bf16.msra.mxu1 %v14336_v31 }
 0x667   :  { %14256 = vmatprep.subr.bf16.mxu1 %v14337_v12 }
 0x668   :  { %14235 = vmatpush3.bf16.msra.mxu0 %v14322_v30 }
 0x66a   :  { %14257 = vmatpush3.bf16.msra.mxu1 %v14338_v14 }
 0x66b   :  { %v11589_v9 = vpop.f32.mrf.mxu0  ;;  %12449 = vmatmul.mubr.bf16.vlgmr.msra.gmra.mxu0 %v11813_v19 }
 0x66c   :  { %v11590_v29 = vadd.f32 %v11589_v9, %v11549_v26 }
 0x66d   :  { %v11591_v35 = vpop.f32.mrf.mxu0 }
 0x66e   :  { %v11592_v4 = vadd.f32 %v11591_v35, %v11551_v21 }
 0x66f   :  { %v11593_v39 = vpop.f32.mrf.mxu0 }
 0x671   :  { %v11594_v23 = vpop.f32.mrf.mxu0 }
 0x69d   :  { %v11630_v38 = vpop.f32.mrf.mxu1 }
 0x69e   :  { %v11631_v16 = vadd.f32 %v11630_v38, %v11590_v29 }
 0x69f   :  { %v11632_v61 = vpop.f32.mrf.mxu1 }
 0x6a0   :  { %v11633_v57 = vadd.f32 %v11632_v61, %v11592_v4 }
 0x6a1   :  { %v11634_v25 = vpop.f32.mrf.mxu1 }
 0x6a3   :  { %v11635_v1 = vpop.f32.mrf.mxu1 }
 0x6ab   :  { %v11671_v6 = vpop.f32.mrf.mxu0 }
 0x6ac   :  { %v11672_v52 = vadd.f32 %v11671_v6, %v11631_v16 }
 0x6ad   :  { %v11673_v59 = vpop.f32.mrf.mxu0 }
 0x6ae   :  { %v11674_v47 = vadd.f32 %v11673_v59, %v11633_v57 }
 0x6af   :  { %v11675_v60 = vpop.f32.mrf.mxu0 }
 0x6b1   :  { %v11676_v56 = vpop.f32.mrf.mxu0 }
 0x6dd   :  { %v11712_v43 = vpop.f32.mrf.mxu1 }
 0x6de   :  { %v11713_v51 = vadd.f32 %v11712_v43, %v11672_v52 }
 0x6df   :  { %v11714_v34 = vpop.f32.mrf.mxu1 }
 0x6e0   :  { %v11715_v28 = vadd.f32 %v11714_v34, %v11674_v47 }
 0x6e1   :  { %v11716_v33 = vpop.f32.mrf.mxu1 }
 0x6e3   :  { %v11717_v3 = vpop.f32.mrf.mxu1 }
 0x6eb   :  { %v11753_v17 = vpop.f32.mrf.mxu0 }
 0x6ec   :  { %v11754_v62 = vadd.f32 %v11753_v17, %v11713_v51 }
 0x6ed   :  { %v11794_v20 = vpop.f32.mrf.mxu1  ;;  %v11755_v45 = vpop.f32.mrf.mxu0 }
 0x6ee   :  { %v11795_v53 = vadd.f32 %v11794_v20, %v11754_v62  ;;  %v11756_v32 = vadd.f32 %v11755_v45, %v11715_v28 }
 0x6ef   :  { %v11796_v42 = vpop.f32.mrf.mxu1  ;;  %v11757_v54 = vpop.f32.mrf.mxu0 }
 0x6f0   :  { %v11797_v13 = vadd.f32 %v11796_v42, %v11756_v32  ;;  %v11807_v18 = vmax.f32 %v11795_v53, 0.0 }
 0x6f1   :  { %v11798_v15 = vpop.f32.mrf.mxu1  ;;  %v11758_v55 = vpop.f32.mrf.mxu0 }
 0x6f2   :  { %v11808_v40 = vmax.f32 %v11797_v13, 0.0  ;;  %v11815_v36 = vpack.c.bf16 %v11807_v18, %v11807_v18 }
 0x6f3   :  { %v11799_v5 = vpop.f32.mrf.mxu1 }
 0x6f4   :  { %v11816_v22 = vpack.c.bf16 %v11808_v40, %v11808_v40 }
 0x6f6   :  { %12488 = vmatprep.mubr.bf16.mxu1 %v11816_v22 }
 0x6f7   :  { %12489 = vmatmul.mubr.bf16.vlgmr.msra.gmra.mxu1 %v11815_v36 }
 0x70b   :  { %v14192_v44 = vpop.f32.mrf.mxu0 }
 0x70d   :  { %v14214_v26 = vpop.f32.mrf.mxu1  ;;  %v14193_v37 = vpop.f32.mrf.mxu0 }
 0x70e   :  { %v14194_v21 = vadd.f32 %v14193_v37, %v14192_v44 }
 0x70f   :  { %v14215_v48 = vpop.f32.mrf.mxu1  ;;  %v14195_v27 = vpop.f32.mrf.mxu0 }
 0x710   :  { %v14216_v41 = vadd.f32 %v14215_v48, %v14214_v26  ;;  %v12371_v63 = vadd.f32 %v14194_v21, %v14111_v46 }
 0x711   :  { %v14217_v50 = vpop.f32.mrf.mxu1  ;;  %v14196_v2 = vpop.f32.mrf.mxu0 }
 0x712   :  { %v12411_v0 = vadd.f32 %v14216_v41, %v12371_v63 }
 0x713   :  { %v14218_v10 = vpop.f32.mrf.mxu1 }
 0x72b   :  { %v14236_v58 = vpop.f32.mrf.mxu0 }
 0x72d   :  { %v14237_v30 = vpop.f32.mrf.mxu0 }
 0x72e   :  { %v14238_v11 = vadd.f32 %v14237_v30, %v14236_v58 }
 0x72f   :  { %v14239_v24 = vpop.f32.mrf.mxu0 }
 0x730   :  { %v12451_v19 = vadd.f32 %v14238_v11, %v12411_v0 }
 0x731   :  { %v14240_v9 = vpop.f32.mrf.mxu0 }
 0x7b7   :  { %v14258_v7 = vpop.f32.mrf.mxu1 }
 0x7b9   :  { %v14259_v29 = vpop.f32.mrf.mxu1 }
 0x7ba   :  { %v14260_v49 = vadd.f32 %v14259_v29, %v14258_v7 }
 0x7bb   :  { %v14261_v35 = vpop.f32.mrf.mxu1 }
 0x7bc   :  { %v12491_v4 = vadd.f32 %v14260_v49, %v12451_v19 }
 0x7bd   :  { %v14262_v39 = vpop.f32.mrf.mxu1 }
 0x7be   :  { %12515 = vperm.xlu1 %14270, %v12491_v4   ;;  %12497 = vrot.lane.b32.xlu0 %v12491_v4, %s14366_s4 }
 0x830   :  { %v12498_v8 = vpop.permute.xlu0 %12497 }
 0x831   :  { %v12501_v31 = vsel %vm12500_vm1, %v12498_v8, 0.0 }
 0x832   :  { %12502 = vadd.xlane.f32.xlu0 %v12501_v31 }
 0x839   :  { %v12516_v6 = vpop.permute.xlu1 %12515 }
 0x8bb   :  { %v12503_v23 = vpop.xlane.xlu0 %12502 }
 0x8bc   :  { %v12504_v12 = vrot.slane %v12503_v23, 4 }
 0x8be   :  { %v12505_v14 = vadd.f32 %v12504_v12, %v12503_v23 }
 0x8c0   :  { %v12506_v38 = vrot.slane %v12505_v14, 2 }
 0x8c2   :  { %v12507_v16 = vadd.f32 %v12506_v38, %v12505_v14 }
 0x8c4   :  { %v12508_v61 = vrot.slane %v12507_v16, 1 }
 0x8c6   :  { %v12509_v57 = vadd.f32 %v12508_v61, %v12507_v16 }
 0x8c8   :  { %14264 = vpush %v12509_v57 }
 0x8f9   :  { %s14265_s11 = spop %14264 }
 0x8fa   :  { %s12511_s12 = smul.f32 0.125, %s14265_s11 }
 0x8fc   :  { %v12512_v25 = vstv %s12511_s12 }
 0x8fd   :  { %v12513_v1 = vsub.f32 %v12491_v4, %v12512_v25 }
 0x8ff   :  { %v12518_v59 = vadd.f32 %v12516_v6, %v12513_v1 }
 0x901   :  { %12520 = vrot.lane.b32.xlu1 %v12518_v59, %s14366_s4 }
 0x973   :  { %v12521_v60 = vpop.permute.xlu1 %12520 }
 0x974   :  { %12523 = vst.msk [vmem:[#allocation2] sm:$0x3] %vm12500_vm1, %v12521_v60 }
 0x975   :  { %14353 = shalt.err (!%p14350_p4)
}
 0x976   :  { %12533 = dma.vmem_to_hbm [thread:$0]  %s12531_s14, 32, %s19718_s5, [#allocation3]  }
 0x977   :  { %14362 = dma.done.wait [#allocation3], 32  }
 0x978   :  { %14363 = vsyncadd [#allocation3], 4294967264 }
 0x979   :  { %12537 = vsyncpa [#allocation3], 1 }

</bundles_post_ra>
